<compile_context>
chip_gen: v6e
topology: v6e:2x2x1
jax: 0.10.0
libtpu: 0.0.40
codegen_flags: <defaults>
</compile_context>

<pallas_src>
import functools

import jax
import jax.numpy as jnp
from jax.experimental import pallas as pl
from jax.experimental.pallas import tpu as pltpu

BN_EPS = 0.001
# BN_MOMENTUM only affects running-stat updates, not the training-mode forward.

_LANE = 128


def _vmem_limit_bytes():
    """Generation-aware scoped-VMEM request (~3/4 of physical, capped 96 MiB)."""
    cap = 64 * 1024 * 1024                      # conservative fallback (v7x)
    try:
        cap = int(getattr(pltpu.get_tpu_info(), "vmem_capacity_bytes", cap))
    except Exception:
        pass
    return min((cap * 3) // 4, 96 * 1024 * 1024)


_VMEM_LIMIT = _vmem_limit_bytes()


# ----------------------------- Pallas kernels ------------------------------

def _taps_accumulate(xpad_ref, w_ref, H, W):
    """Sum of 9 (H*W, Cin) @ (Cin, Cout) MXU matmuls over the 3x3 taps.

    Tap results are combined pairwise (tree) before being added into the
    running accumulator to cut full read-modify-write passes over the
    long-lived f32 accumulator (v5e has a single vst slot).
    """
    cin = xpad_ref.shape[-1]

    def tap(t):
        ky, kx = divmod(t, 3)
        xt = xpad_ref[ky:ky + H, kx:kx + W, :].reshape(H * W, cin)
        return jnp.dot(xt, w_ref[t], preferred_element_type=jnp.float32)

    acc = tap(0) + tap(1)
    for t in range(2, 8, 2):
        acc = acc + (tap(t) + tap(t + 1))
    return acc + tap(8)


def _stats(acc):
    """Per-channel [sum, sum of squares] of the f32 accumulator."""
    return jnp.concatenate(
        [jnp.sum(acc, axis=0, keepdims=True),
         jnp.sum(acc * acc, axis=0, keepdims=True)], axis=0)


def _conv1_kernel(x_ref, w_ref, y_ref, s_ref, xpad, *, H, W):
    """conv1 for one image: zero-pad in VMEM, 9 tap matmuls, bf16 out + stats.

    x_ref : (1, H, W, Cp)     bf16
    w_ref : (9, Cp, Cp)       bf16 (resident)
    y_ref : (1, H, W, Cp)     bf16   un-normalized conv1 output
    s_ref : (1, 2, Cp)        f32    per-image [sum, sumsq]
    xpad  : (H+2, W+2, Cp)    bf16   VMEM scratch (spatial zero-pad)
    """
    xpad[...] = jnp.zeros_like(xpad)          # border must be zero every step
    xpad[1:H + 1, 1:W + 1, :] = x_ref[0]
    acc = _taps_accumulate(xpad, w_ref, H, W)            # (H*W, Cp) f32
    y_ref[0] = acc.reshape(H, W, -1).astype(y_ref.dtype)
    s_ref[0] = _stats(acc)


def _bn_conv2_kernel(y1_ref, scale_ref, shift_ref, w_ref, y_ref, s_ref, apad,
                     *, H, W):
    """Fused bn1 + ReLU + bf16 cast + zero-pad (all in VMEM) + conv2.

    y1_ref    : (1, H, W, Cp)  bf16   conv1 output
    scale_ref : (1, Cp) f32, shift_ref : (1, Cp) f32   folded BN1 affine
    w_ref     : (9, Cp, Cp)    bf16 (resident)
    y_ref     : (1, H*W, Cp)   f32    un-normalized conv2 output
    s_ref     : (1, 2, Cp)     f32    per-image [sum, sumsq]
    apad      : (H+2, W+2, Cp) bf16   VMEM scratch for the padded activation
    """
    scale = scale_ref[...].reshape(1, 1, -1)
    shift = shift_ref[...].reshape(1, 1, -1)
    act = jnp.maximum(y1_ref[0].astype(jnp.float32) * scale + shift, 0.0)
    apad[...] = jnp.zeros_like(apad)
    apad[1:H + 1, 1:W + 1, :] = act.astype(apad.dtype)
    acc = _taps_accumulate(apad, w_ref, H, W)            # (H*W, Cp) f32
    y_ref[0] = acc.astype(y_ref.dtype)
    s_ref[0] = _stats(acc)


def _bn_add_act_kernel(y_ref, scale_ref, shift_ref, r_ref, o_ref):
    """out = relu(y * scale + shift + residual); residual arrives as bf16."""
    o_ref[...] = jnp.maximum(
        y_ref[...] * scale_ref[...] + shift_ref[...]
        + r_ref[...].astype(jnp.float32), 0.0).astype(o_ref.dtype)


# ------------------------------- helpers ------------------------------------

def _round_up(x, m):
    return ((x + m - 1) // m) * m


def _pad_last(a, to):
    pad = to - a.shape[-1]
    if pad == 0:
        return a
    return jnp.pad(a, [(0, 0)] * (a.ndim - 1) + [(0, pad)])


def _prep_weight(w_oihw, cin_p, cout_p):
    """PyTorch (Cout, Cin, 3, 3) -> (9, cin_p, cout_p) bf16, tap order (ky, kx)."""
    cout, cin, _, _ = w_oihw.shape
    w = jnp.transpose(w_oihw, (2, 3, 1, 0)).reshape(9, cin, cout)
    w = jnp.pad(w, ((0, 0), (0, cin_p - cin), (0, cout_p - cout)))
    return w.astype(jnp.bfloat16)


def _row_tile(rows, cap=1024):
    """Largest multiple-of-8 divisor of `rows` <= cap (prefer >= 2 grid steps)."""
    limit = min(cap, rows // 2 if rows >= 16 else rows)
    limit -= limit % 8
    for t in range(limit, 0, -8):
        if rows % t == 0:
            return t
    return rows


def _conv1(x_bf, w):
    """x_bf: (N, H, W, Cp) bf16; w: (9, Cp, Cp) bf16 -> (y1 bf16, stats f32)."""
    N, H, W, Cp = x_bf.shape
    Cout = w.shape[-1]
    kernel = functools.partial(_conv1_kernel, H=H, W=W)
    flops = 2 * N * H * W * 9 * Cp * Cout
    bytes_accessed = (x_bf.size * 2 + w.size * 2
                      + N * H * W * Cout * 2 + N * 2 * Cout * 4)
    return pl.pallas_call(
        kernel,
        out_shape=(jax.ShapeDtypeStruct((N, H, W, Cout), jnp.bfloat16),
                   jax.ShapeDtypeStruct((N, 2, Cout), jnp.float32)),
        grid=(N,),
        in_specs=[
            pl.BlockSpec((1, H, W, Cp), lambda n: (n, 0, 0, 0)),
            pl.BlockSpec((9, Cp, Cout), lambda n: (0, 0, 0)),     # resident
        ],
        out_specs=(
            pl.BlockSpec((1, H, W, Cout), lambda n: (n, 0, 0, 0)),
            pl.BlockSpec((1, 2, Cout), lambda n: (n, 0, 0)),
        ),
        scratch_shapes=[pltpu.VMEM((H + 2, W + 2, Cp), jnp.bfloat16)],
        compiler_params=pltpu.CompilerParams(
            dimension_semantics=("parallel",),
            vmem_limit_bytes=_VMEM_LIMIT),
        cost_estimate=pl.CostEstimate(
            flops=flops, transcendentals=0, bytes_accessed=bytes_accessed),
    )(x_bf, w)


def _bn_conv2(y1, scale1, shift1, w):
    """y1: (N,H,W,Cp) bf16; scale/shift: (1,Cp) f32; w: (9,Cp,Cp) bf16."""
    N, H, W, Cp = y1.shape
    Cout = w.shape[-1]
    kernel = functools.partial(_bn_conv2_kernel, H=H, W=W)
    flops = 2 * N * H * W * 9 * Cp * Cout
    bytes_accessed = (y1.size * 2 + w.size * 2
                      + N * H * W * Cout * 4 + N * 2 * Cout * 4)
    return pl.pallas_call(
        kernel,
        out_shape=(jax.ShapeDtypeStruct((N, H * W, Cout), jnp.float32),
                   jax.ShapeDtypeStruct((N, 2, Cout), jnp.float32)),
        grid=(N,),
        in_specs=[
            pl.BlockSpec((1, H, W, Cp), lambda n: (n, 0, 0, 0)),
            pl.BlockSpec((1, Cp), lambda n: (0, 0)),              # resident
            pl.BlockSpec((1, Cp), lambda n: (0, 0)),              # resident
            pl.BlockSpec((9, Cp, Cout), lambda n: (0, 0, 0)),     # resident
        ],
        out_specs=(
            pl.BlockSpec((1, H * W, Cout), lambda n: (n, 0, 0)),
            pl.BlockSpec((1, 2, Cout), lambda n: (n, 0, 0)),
        ),
        scratch_shapes=[pltpu.VMEM((H + 2, W + 2, Cp), jnp.bfloat16)],
        compiler_params=pltpu.CompilerParams(
            dimension_semantics=("parallel",),
            vmem_limit_bytes=_VMEM_LIMIT),
        cost_estimate=pl.CostEstimate(
            flops=flops, transcendentals=0, bytes_accessed=bytes_accessed),
    )(y1, scale1, shift1, w)


def _fold_bn(stats, gamma, beta, count):
    """stats: (N, 2, Cp) partial [sum, sumsq] -> per-channel (scale, shift)."""
    tot = jnp.sum(stats, axis=0)                      # (2, Cp)
    mean = tot[0] / count
    var = tot[1] / count - mean * mean                # biased variance (train)
    scale = gamma * jax.lax.rsqrt(var + BN_EPS)
    shift = beta - mean * scale
    return scale.reshape(1, -1), shift.reshape(1, -1)


def _bn_add_act(y2d, scale, shift, residual, out_dtype):
    """Row-tiled bn2 apply + residual + ReLU.  y2d: (R, Cp) f32, residual bf16."""
    R, Cp = y2d.shape
    tile = _row_tile(R)
    row_spec = pl.BlockSpec((tile, Cp), lambda i: (i, 0))
    vec_spec = pl.BlockSpec((1, Cp), lambda i: (0, 0))
    return pl.pallas_call(
        _bn_add_act_kernel,
        out_shape=jax.ShapeDtypeStruct((R, Cp), out_dtype),
        grid=(R // tile,),
        in_specs=[row_spec, vec_spec, vec_spec, row_spec],
        out_specs=row_spec,
        compiler_params=pltpu.CompilerParams(
            dimension_semantics=("parallel",),
            vmem_limit_bytes=_VMEM_LIMIT),
    )(y2d, scale, shift, residual)


# ------------------------------- forward ------------------------------------

def basic_block_forward(x_nchw, params):
    """BasicBlock forward (training-mode BN, stride=1, no downsample)."""
    N, C, H, W = x_nchw.shape
    planes = params["w1"].shape[0]
    assert planes == C, "no downsample => inplanes must equal planes"
    Cp = _round_up(C, _LANE)                           # lane-dense channels
    rows = N * H * W

    # Single HBM copy of the input: NHWC, channel-padded, bf16 (cast folded
    # into the layout transpose; no separate spatially padded arrays).
    x_bf = _pad_last(jnp.transpose(x_nchw, (0, 2, 3, 1)), Cp).astype(jnp.bfloat16)

    w1 = _prep_weight(params["w1"], Cp, Cp)
    w2 = _prep_weight(params["w2"], Cp, Cp)
    g1, b1 = _pad_last(params["g1"], Cp), _pad_last(params["b1"], Cp)
    g2, b2 = _pad_last(params["g2"], Cp), _pad_last(params["b2"], Cp)

    # ---- conv1 (+ per-image BN1 partial stats) ----
    y1, s1 = _conv1(x_bf, w1)                          # y1: (N,H,W,Cp) bf16
    scale1, shift1 = _fold_bn(s1, g1, b1, rows)

    # ---- fused bn1 + ReLU -> conv2 (+ per-image BN2 partial stats) ----
    y2, s2 = _bn_conv2(y1, scale1, shift1, w2)         # y2: (N,H*W,Cp) f32
    scale2, shift2 = _fold_bn(s2, g2, b2, rows)

    # ---- bn2 apply + residual + ReLU ----
    out = _bn_add_act(y2.reshape(rows, Cp), scale2, shift2,
                      x_bf.reshape(rows, Cp), out_dtype=jnp.float32)

    out = out.reshape(N, H, W, Cp)[..., :C]
    return jnp.transpose(out, (0, 3, 1, 2))            # back to NCHW


# ------------------------- pure-JAX reference check --------------------------

def _ref_forward(x, params):
    def conv3x3(x, w):
        return jax.lax.conv_general_dilated(
            x.astype(jnp.bfloat16), w.astype(jnp.bfloat16),
            window_strides=(1, 1), padding=((1, 1), (1, 1)),
            dimension_numbers=("NCHW", "OIHW", "NCHW"),
            preferred_element_type=jnp.float32)

    def bn(y, g, b):
        mean = y.mean(axis=(0, 2, 3), keepdims=True)
        var = ((y - mean) ** 2).mean(axis=(0, 2, 3), keepdims=True)
        return (g.reshape(1, -1, 1, 1) * (y - mean) * jax.lax.rsqrt(var + BN_EPS)
                + b.reshape(1, -1, 1, 1))

    out = jax.nn.relu(bn(conv3x3(x, params["w1"]), params["g1"], params["b1"]))
    out = bn(conv3x3(out, params["w2"]), params["g2"], params["b2"])
    return jax.nn.relu(out + x)


# ---------------------------------- main -------------------------------------

if __name__ == "__main__":
    key = jax.random.PRNGKey(0)
    k_x, k_w1, k_w2, k_g1, k_b1, k_g2, k_b2 = jax.random.split(key, 7)

    # Small correctness shapes; real tile/limit tuning must be redone at
    # ResNet shapes (C in {64..512}, H*W in {56^2..7^2}).
    N, C, H, W = 2, 4, 16, 16          # inplanes = planes = 4, stride = 1
    planes = C

    x = jax.random.normal(k_x, (N, C, H, W), dtype=jnp.float32)
    params = {
        "w1": 0.2 * jax.random.normal(k_w1, (planes, C, 3, 3), dtype=jnp.float32),
        "w2": 0.2 * jax.random.normal(k_w2, (planes, planes, 3, 3), dtype=jnp.float32),
        "g1": jax.random.uniform(k_g1, (planes,), jnp.float32, 0.5, 1.5),
        "b1": 0.1 * jax.random.normal(k_b1, (planes,), dtype=jnp.float32),
        "g2": jax.random.uniform(k_g2, (planes,), jnp.float32, 0.5, 1.5),
        "b2": 0.1 * jax.random.normal(k_b2, (planes,), dtype=jnp.float32),
    }

    fwd = jax.jit(basic_block_forward)
    out = jax.block_until_ready(fwd(x, params))
    ref = jax.block_until_ready(_ref_forward(x, params))

    assert out.shape == (N, C, H, W)
    # bf16 is used for the conv operands, the stored conv1 output and the
    # residual read (mixed-precision path); values are O(1), so a 2e-2
    # tolerance is a meaningful check of the f32 reference semantics.
    err = float(jnp.max(jnp.abs(out - ref)))
    assert jnp.allclose(out, ref, atol=2e-2, rtol=2e-2), f"max abs err {err}"

    print("KERNEL_OK")
</pallas_src>

<mosaic_0001>
module attributes {stable_mosaic.version = 11 : i64} {
  func.func @_conv1_kernel(%arg0: i32, %arg1: memref<1x16x16x128xbf16, #tpu.memory_space<vmem>>, %arg2: memref<9x128x128xbf16, #tpu.memory_space<vmem>>, %arg3: memref<1x16x16x128xbf16, #tpu.memory_space<vmem>>, %arg4: memref<1x2x128xf32, #tpu.memory_space<vmem>>, %arg5: memref<18x18x128xbf16, #tpu.memory_space<vmem>>) attributes {dimension_semantics = [#tpu.dimension_semantics<parallel>], iteration_bounds = array<i64: 2>, scalar_prefetch = 0 : i64, scratch_operands = 1 : i64, tpu.core_type = #tpu.core_type<tc>, window_params = [{transform_indices = @transform_0, window_bounds = array<i64: 1, 16, 16, 128>}, {pipeline_mode = #tpu.pipeline_mode<synchronous>, transform_indices = @transform_1, window_bounds = array<i64: 9, 128, 128>}, {transform_indices = @transform_2, window_bounds = array<i64: 1, 16, 16, 128>}, {transform_indices = @transform_3, window_bounds = array<i64: 1, 2, 128>}]} {
    %cst = arith.constant 0.000000e+00 : bf16
    %0 = vector.broadcast %cst : bf16 to vector<18x18x128xbf16>
    %c0 = arith.constant 0 : index
    %c0_0 = arith.constant 0 : index
    %c0_1 = arith.constant 0 : index
    %1 = vector.load %arg5[%c0, %c0_0, %c0_1] : memref<18x18x128xbf16, #tpu.memory_space<vmem>>, vector<18x18x128xbf16>
    tpu.vector_store %arg5[%c0, %c0_0, %c0_1], %0 {strides = array<i32>} : memref<18x18x128xbf16, #tpu.memory_space<vmem>>, vector<18x18x128xbf16>,
    %c0_2 = arith.constant 0 : index
    %c0_3 = arith.constant 0 : index
    %c0_4 = arith.constant 0 : index
    %c0_5 = arith.constant 0 : index
    %2 = vector.load %arg1[%c0_2, %c0_3, %c0_4, %c0_5] : memref<1x16x16x128xbf16, #tpu.memory_space<vmem>>, vector<1x16x16x128xbf16>
    %3 = vector.shape_cast %2 : vector<1x16x16x128xbf16> to vector<16x16x128xbf16>
    %c1 = arith.constant 1 : index
    %c1_6 = arith.constant 1 : index
    %c0_7 = arith.constant 0 : index
    %4 = vector.load %arg5[%c1, %c1_6, %c0_7] : memref<18x18x128xbf16, #tpu.memory_space<vmem>>, vector<16x16x128xbf16>
    tpu.vector_store %arg5[%c1, %c1_6, %c0_7], %3 {strides = array<i32>} : memref<18x18x128xbf16, #tpu.memory_space<vmem>>, vector<16x16x128xbf16>,
    %c0_8 = arith.constant 0 : index
    %c0_9 = arith.constant 0 : index
    %c0_10 = arith.constant 0 : index
    %5 = vector.load %arg5[%c0_8, %c0_9, %c0_10] : memref<18x18x128xbf16, #tpu.memory_space<vmem>>, vector<16x16x128xbf16>
    %6 = vector.shape_cast %5 : vector<16x16x128xbf16> to vector<256x128xbf16>
    %c0_11 = arith.constant 0 : index
    %c0_12 = arith.constant 0 : index
    %c0_13 = arith.constant 0 : index
    %7 = vector.load %arg2[%c0_11, %c0_12, %c0_13] : memref<9x128x128xbf16, #tpu.memory_space<vmem>>, vector<1x128x128xbf16>
    %8 = vector.shape_cast %7 : vector<1x128x128xbf16> to vector<128x128xbf16>
    %cst_14 = arith.constant dense<0.000000e+00> : vector<256x128xf32>
    %9 = tpu.matmul %6, %8, %cst_14 {dimension_numbers = #tpu.dot_dimension_numbers<[1], [0], [0], [1], [0, 0, 1, 1], [], []>} : vector<256x128xbf16>, vector<128x128xbf16>, vector<256x128xf32> -> vector<256x128xf32>
    %c0_15 = arith.constant 0 : index
    %c1_16 = arith.constant 1 : index
    %c0_17 = arith.constant 0 : index
    %10 = vector.load %arg5[%c0_15, %c1_16, %c0_17] : memref<18x18x128xbf16, #tpu.memory_space<vmem>>, vector<16x16x128xbf16>
    %11 = vector.shape_cast %10 : vector<16x16x128xbf16> to vector<256x128xbf16>
    %c1_18 = arith.constant 1 : index
    %c0_19 = arith.constant 0 : index
    %c0_20 = arith.constant 0 : index
    %12 = vector.load %arg2[%c1_18, %c0_19, %c0_20] : memref<9x128x128xbf16, #tpu.memory_space<vmem>>, vector<1x128x128xbf16>
    %13 = vector.shape_cast %12 : vector<1x128x128xbf16> to vector<128x128xbf16>
    %cst_21 = arith.constant dense<0.000000e+00> : vector<256x128xf32>
    %14 = tpu.matmul %11, %13, %cst_21 {dimension_numbers = #tpu.dot_dimension_numbers<[1], [0], [0], [1], [0, 0, 1, 1], [], []>} : vector<256x128xbf16>, vector<128x128xbf16>, vector<256x128xf32> -> vector<256x128xf32>
    %15 = arith.addf %9, %14 : vector<256x128xf32>
    %c0_22 = arith.constant 0 : index
    %c2 = arith.constant 2 : index
    %c0_23 = arith.constant 0 : index
    %16 = vector.load %arg5[%c0_22, %c2, %c0_23] : memref<18x18x128xbf16, #tpu.memory_space<vmem>>, vector<16x16x128xbf16>
    %17 = vector.shape_cast %16 : vector<16x16x128xbf16> to vector<256x128xbf16>
    %c2_24 = arith.constant 2 : index
    %c0_25 = arith.constant 0 : index
    %c0_26 = arith.constant 0 : index
    %18 = vector.load %arg2[%c2_24, %c0_25, %c0_26] : memref<9x128x128xbf16, #tpu.memory_space<vmem>>, vector<1x128x128xbf16>
    %19 = vector.shape_cast %18 : vector<1x128x128xbf16> to vector<128x128xbf16>
    %cst_27 = arith.constant dense<0.000000e+00> : vector<256x128xf32>
    %20 = tpu.matmul %17, %19, %cst_27 {dimension_numbers = #tpu.dot_dimension_numbers<[1], [0], [0], [1], [0, 0, 1, 1], [], []>} : vector<256x128xbf16>, vector<128x128xbf16>, vector<256x128xf32> -> vector<256x128xf32>
    %c1_28 = arith.constant 1 : index
    %c0_29 = arith.constant 0 : index
    %c0_30 = arith.constant 0 : index
    %21 = vector.load %arg5[%c1_28, %c0_29, %c0_30] : memref<18x18x128xbf16, #tpu.memory_space<vmem>>, vector<16x16x128xbf16>
    %22 = vector.shape_cast %21 : vector<16x16x128xbf16> to vector<256x128xbf16>
    %c3 = arith.constant 3 : index
    %c0_31 = arith.constant 0 : index
    %c0_32 = arith.constant 0 : index
    %23 = vector.load %arg2[%c3, %c0_31, %c0_32] : memref<9x128x128xbf16, #tpu.memory_space<vmem>>, vector<1x128x128xbf16>
    %24 = vector.shape_cast %23 : vector<1x128x128xbf16> to vector<128x128xbf16>
    %cst_33 = arith.constant dense<0.000000e+00> : vector<256x128xf32>
    %25 = tpu.matmul %22, %24, %cst_33 {dimension_numbers = #tpu.dot_dimension_numbers<[1], [0], [0], [1], [0, 0, 1, 1], [], []>} : vector<256x128xbf16>, vector<128x128xbf16>, vector<256x128xf32> -> vector<256x128xf32>
    %26 = arith.addf %20, %25 : vector<256x128xf32>
    %27 = arith.addf %15, %26 : vector<256x128xf32>
    %c1_34 = arith.constant 1 : index
    %c1_35 = arith.constant 1 : index
    %c0_36 = arith.constant 0 : index
    %28 = vector.load %arg5[%c1_34, %c1_35, %c0_36] : memref<18x18x128xbf16, #tpu.memory_space<vmem>>, vector<16x16x128xbf16>
    %29 = vector.shape_cast %28 : vector<16x16x128xbf16> to vector<256x128xbf16>
    %c4 = arith.constant 4 : index
    %c0_37 = arith.constant 0 : index
    %c0_38 = arith.constant 0 : index
    %30 = vector.load %arg2[%c4, %c0_37, %c0_38] : memref<9x128x128xbf16, #tpu.memory_space<vmem>>, vector<1x128x128xbf16>
    %31 = vector.shape_cast %30 : vector<1x128x128xbf16> to vector<128x128xbf16>
    %cst_39 = arith.constant dense<0.000000e+00> : vector<256x128xf32>
    %32 = tpu.matmul %29, %31, %cst_39 {dimension_numbers = #tpu.dot_dimension_numbers<[1], [0], [0], [1], [0, 0, 1, 1], [], []>} : vector<256x128xbf16>, vector<128x128xbf16>, vector<256x128xf32> -> vector<256x128xf32>
    %c1_40 = arith.constant 1 : index
    %c2_41 = arith.constant 2 : index
    %c0_42 = arith.constant 0 : index
    %33 = vector.load %arg5[%c1_40, %c2_41, %c0_42] : memref<18x18x128xbf16, #tpu.memory_space<vmem>>, vector<16x16x128xbf16>
    %34 = vector.shape_cast %33 : vector<16x16x128xbf16> to vector<256x128xbf16>
    %c5 = arith.constant 5 : index
    %c0_43 = arith.constant 0 : index
    %c0_44 = arith.constant 0 : index
    %35 = vector.load %arg2[%c5, %c0_43, %c0_44] : memref<9x128x128xbf16, #tpu.memory_space<vmem>>, vector<1x128x128xbf16>
    %36 = vector.shape_cast %35 : vector<1x128x128xbf16> to vector<128x128xbf16>
    %cst_45 = arith.constant dense<0.000000e+00> : vector<256x128xf32>
    %37 = tpu.matmul %34, %36, %cst_45 {dimension_numbers = #tpu.dot_dimension_numbers<[1], [0], [0], [1], [0, 0, 1, 1], [], []>} : vector<256x128xbf16>, vector<128x128xbf16>, vector<256x128xf32> -> vector<256x128xf32>
    %38 = arith.addf %32, %37 : vector<256x128xf32>
    %39 = arith.addf %27, %38 : vector<256x128xf32>
    %c2_46 = arith.constant 2 : index
    %c0_47 = arith.constant 0 : index
    %c0_48 = arith.constant 0 : index
    %40 = vector.load %arg5[%c2_46, %c0_47, %c0_48] : memref<18x18x128xbf16, #tpu.memory_space<vmem>>, vector<16x16x128xbf16>
    %41 = vector.shape_cast %40 : vector<16x16x128xbf16> to vector<256x128xbf16>
    %c6 = arith.constant 6 : index
    %c0_49 = arith.constant 0 : index
    %c0_50 = arith.constant 0 : index
    %42 = vector.load %arg2[%c6, %c0_49, %c0_50] : memref<9x128x128xbf16, #tpu.memory_space<vmem>>, vector<1x128x128xbf16>
    %43 = vector.shape_cast %42 : vector<1x128x128xbf16> to vector<128x128xbf16>
    %cst_51 = arith.constant dense<0.000000e+00> : vector<256x128xf32>
    %44 = tpu.matmul %41, %43, %cst_51 {dimension_numbers = #tpu.dot_dimension_numbers<[1], [0], [0], [1], [0, 0, 1, 1], [], []>} : vector<256x128xbf16>, vector<128x128xbf16>, vector<256x128xf32> -> vector<256x128xf32>
    %c2_52 = arith.constant 2 : index
    %c1_53 = arith.constant 1 : index
    %c0_54 = arith.constant 0 : index
    %45 = vector.load %arg5[%c2_52, %c1_53, %c0_54] : memref<18x18x128xbf16, #tpu.memory_space<vmem>>, vector<16x16x128xbf16>
    %46 = vector.shape_cast %45 : vector<16x16x128xbf16> to vector<256x128xbf16>
    %c7 = arith.constant 7 : index
    %c0_55 = arith.constant 0 : index
    %c0_56 = arith.constant 0 : index
    %47 = vector.load %arg2[%c7, %c0_55, %c0_56] : memref<9x128x128xbf16, #tpu.memory_space<vmem>>, vector<1x128x128xbf16>
    %48 = vector.shape_cast %47 : vector<1x128x128xbf16> to vector<128x128xbf16>
    %cst_57 = arith.constant dense<0.000000e+00> : vector<256x128xf32>
    %49 = tpu.matmul %46, %48, %cst_57 {dimension_numbers = #tpu.dot_dimension_numbers<[1], [0], [0], [1], [0, 0, 1, 1], [], []>} : vector<256x128xbf16>, vector<128x128xbf16>, vector<256x128xf32> -> vector<256x128xf32>
    %50 = arith.addf %44, %49 : vector<256x128xf32>
    %51 = arith.addf %39, %50 : vector<256x128xf32>
    %c2_58 = arith.constant 2 : index
    %c2_59 = arith.constant 2 : index
    %c0_60 = arith.constant 0 : index
    %52 = vector.load %arg5[%c2_58, %c2_59, %c0_60] : memref<18x18x128xbf16, #tpu.memory_space<vmem>>, vector<16x16x128xbf16>
    %53 = vector.shape_cast %52 : vector<16x16x128xbf16> to vector<256x128xbf16>
    %c8 = arith.constant 8 : index
    %c0_61 = arith.constant 0 : index
    %c0_62 = arith.constant 0 : index
    %54 = vector.load %arg2[%c8, %c0_61, %c0_62] : memref<9x128x128xbf16, #tpu.memory_space<vmem>>, vector<1x128x128xbf16>
    %55 = vector.shape_cast %54 : vector<1x128x128xbf16> to vector<128x128xbf16>
    %cst_63 = arith.constant dense<0.000000e+00> : vector<256x128xf32>
    %56 = tpu.matmul %53, %55, %cst_63 {dimension_numbers = #tpu.dot_dimension_numbers<[1], [0], [0], [1], [0, 0, 1, 1], [], []>} : vector<256x128xbf16>, vector<128x128xbf16>, vector<256x128xf32> -> vector<256x128xf32>
    %57 = arith.addf %51, %56 : vector<256x128xf32>
    %58 = vector.shape_cast %57 : vector<256x128xf32> to vector<16x16x128xf32>
    %59 = arith.truncf %58 : vector<16x16x128xf32> to vector<16x16x128xbf16>
    %c0_64 = arith.constant 0 : index
    %c0_65 = arith.constant 0 : index
    %c0_66 = arith.constant 0 : index
    %c0_67 = arith.constant 0 : index
    %60 = vector.load %arg3[%c0_64, %c0_65, %c0_66, %c0_67] : memref<1x16x16x128xbf16, #tpu.memory_space<vmem>>, vector<1x16x16x128xbf16>
    %61 = vector.shape_cast %60 : vector<1x16x16x128xbf16> to vector<16x16x128xbf16>
    %62 = vector.shape_cast %59 : vector<16x16x128xbf16> to vector<1x16x16x128xbf16>
    tpu.vector_store %arg3[%c0_64, %c0_65, %c0_66, %c0_67], %62 {strides = array<i32>} : memref<1x16x16x128xbf16, #tpu.memory_space<vmem>>, vector<1x16x16x128xbf16>,
    %cst_68 = arith.constant dense<0.000000e+00> : vector<128xf32>
    %63 = vector.multi_reduction <add>, %57, %cst_68 [0] : vector<256x128xf32> to vector<128xf32>
    %64 = vector.shape_cast %63 : vector<128xf32> to vector<1x128xf32>
    %65 = arith.mulf %57, %57 : vector<256x128xf32>
    %cst_69 = arith.constant dense<0.000000e+00> : vector<128xf32>
    %66 = vector.multi_reduction <add>, %65, %cst_69 [0] : vector<256x128xf32> to vector<128xf32>
    %67 = vector.shape_cast %66 : vector<128xf32> to vector<1x128xf32>
    %68 = tpu.concatenate %64, %67 in 0 : vector<1x128xf32>, vector<1x128xf32> -> vector<2x128xf32>
    %c0_70 = arith.constant 0 : index
    %c0_71 = arith.constant 0 : index
    %c0_72 = arith.constant 0 : index
    %69 = vector.load %arg4[%c0_70, %c0_71, %c0_72] : memref<1x2x128xf32, #tpu.memory_space<vmem>>, vector<1x2x128xf32>
    %70 = vector.shape_cast %69 : vector<1x2x128xf32> to vector<2x128xf32>
    %71 = vector.shape_cast %68 : vector<2x128xf32> to vector<1x2x128xf32>
    tpu.vector_store %arg4[%c0_70, %c0_71, %c0_72], %71 {strides = array<i32>} : memref<1x2x128xf32, #tpu.memory_space<vmem>>, vector<1x2x128xf32>,
    return
  }
  func.func @transform_0(%arg0: i32) -> (i32, i32, i32, i32) {
    %c0_i32 = arith.constant 0 : i32
    %c0_i32_0 = arith.constant 0 : i32
    %c0_i32_1 = arith.constant 0 : i32
    %c0_i32_2 = arith.constant 0 : i32
    return %arg0, %c0_i32, %c0_i32_0, %c0_i32_1 : i32, i32, i32, i32
  }
  func.func @transform_1(%arg0: i32) -> (i32, i32, i32) {
    %c0_i32 = arith.constant 0 : i32
    %c0_i32_0 = arith.constant 0 : i32
    %c0_i32_1 = arith.constant 0 : i32
    %c0_i32_2 = arith.constant 0 : i32
    return %c0_i32, %c0_i32_0, %c0_i32_1 : i32, i32, i32
  }
  func.func @transform_2(%arg0: i32) -> (i32, i32, i32, i32) {
    %c0_i32 = arith.constant 0 : i32
    %c0_i32_0 = arith.constant 0 : i32
    %c0_i32_1 = arith.constant 0 : i32
    %c0_i32_2 = arith.constant 0 : i32
    return %arg0, %c0_i32, %c0_i32_0, %c0_i32_1 : i32, i32, i32, i32
  }
  func.func @transform_3(%arg0: i32) -> (i32, i32, i32) {
    %c0_i32 = arith.constant 0 : i32
    %c0_i32_0 = arith.constant 0 : i32
    %c0_i32_1 = arith.constant 0 : i32
    return %arg0, %c0_i32, %c0_i32_0 : i32, i32, i32
  }
}

module attributes {stable_mosaic.version = 11 : i64} {
  func.func @_bn_conv2_kernel(%arg0: i32, %arg1: memref<1x16x16x128xbf16, #tpu.memory_space<vmem>>, %arg2: memref<1x128xf32, #tpu.memory_space<vmem>>, %arg3: memref<1x128xf32, #tpu.memory_space<vmem>>, %arg4: memref<9x128x128xbf16, #tpu.memory_space<vmem>>, %arg5: memref<1x256x128xf32, #tpu.memory_space<vmem>>, %arg6: memref<1x2x128xf32, #tpu.memory_space<vmem>>, %arg7: memref<18x18x128xbf16, #tpu.memory_space<vmem>>) attributes {dimension_semantics = [#tpu.dimension_semantics<parallel>], iteration_bounds = array<i64: 2>, scalar_prefetch = 0 : i64, scratch_operands = 1 : i64, tpu.core_type = #tpu.core_type<tc>, window_params = [{transform_indices = @transform_0, window_bounds = array<i64: 1, 16, 16, 128>}, {pipeline_mode = #tpu.pipeline_mode<synchronous>, transform_indices = @transform_1, window_bounds = array<i64: 1, 128>}, {pipeline_mode = #tpu.pipeline_mode<synchronous>, transform_indices = @transform_2, window_bounds = array<i64: 1, 128>}, {pipeline_mode = #tpu.pipeline_mode<synchronous>, transform_indices = @transform_3, window_bounds = array<i64: 9, 128, 128>}, {transform_indices = @transform_4, window_bounds = array<i64: 1, 256, 128>}, {transform_indices = @transform_5, window_bounds = array<i64: 1, 2, 128>}]} {
    %c0 = arith.constant 0 : index
    %c0_0 = arith.constant 0 : index
    %0 = vector.load %arg2[%c0, %c0_0] : memref<1x128xf32, #tpu.memory_space<vmem>>, vector<1x128xf32>
    %1 = vector.shape_cast %0 : vector<1x128xf32> to vector<1x1x128xf32>
    %c0_1 = arith.constant 0 : index
    %c0_2 = arith.constant 0 : index
    %2 = vector.load %arg3[%c0_1, %c0_2] : memref<1x128xf32, #tpu.memory_space<vmem>>, vector<1x128xf32>
    %3 = vector.shape_cast %2 : vector<1x128xf32> to vector<1x1x128xf32>
    %c0_3 = arith.constant 0 : index
    %c0_4 = arith.constant 0 : index
    %c0_5 = arith.constant 0 : index
    %c0_6 = arith.constant 0 : index
    %4 = vector.load %arg1[%c0_3, %c0_4, %c0_5, %c0_6] : memref<1x16x16x128xbf16, #tpu.memory_space<vmem>>, vector<1x16x16x128xbf16>
    %5 = vector.shape_cast %4 : vector<1x16x16x128xbf16> to vector<16x16x128xbf16>
    %6 = arith.extf %5 : vector<16x16x128xbf16> to vector<16x16x128xf32>
    %7 = vector.broadcast %1 : vector<1x1x128xf32> to vector<16x16x128xf32>
    %8 = arith.mulf %6, %7 : vector<16x16x128xf32>
    %9 = vector.broadcast %3 : vector<1x1x128xf32> to vector<16x16x128xf32>
    %10 = arith.addf %8, %9 : vector<16x16x128xf32>
    %cst = arith.constant 0.000000e+00 : f32
    %11 = vector.broadcast %cst : f32 to vector<16x16x128xf32>
    %12 = arith.maximumf %10, %11 : vector<16x16x128xf32>
    %cst_7 = arith.constant 0.000000e+00 : bf16
    %13 = vector.broadcast %cst_7 : bf16 to vector<18x18x128xbf16>
    %c0_8 = arith.constant 0 : index
    %c0_9 = arith.constant 0 : index
    %c0_10 = arith.constant 0 : index
    %14 = vector.load %arg7[%c0_8, %c0_9, %c0_10] : memref<18x18x128xbf16, #tpu.memory_space<vmem>>, vector<18x18x128xbf16>
    tpu.vector_store %arg7[%c0_8, %c0_9, %c0_10], %13 {strides = array<i32>} : memref<18x18x128xbf16, #tpu.memory_space<vmem>>, vector<18x18x128xbf16>,
    %15 = arith.truncf %12 : vector<16x16x128xf32> to vector<16x16x128xbf16>
    %c1 = arith.constant 1 : index
    %c1_11 = arith.constant 1 : index
    %c0_12 = arith.constant 0 : index
    %16 = vector.load %arg7[%c1, %c1_11, %c0_12] : memref<18x18x128xbf16, #tpu.memory_space<vmem>>, vector<16x16x128xbf16>
    tpu.vector_store %arg7[%c1, %c1_11, %c0_12], %15 {strides = array<i32>} : memref<18x18x128xbf16, #tpu.memory_space<vmem>>, vector<16x16x128xbf16>,
    %c0_13 = arith.constant 0 : index
    %c0_14 = arith.constant 0 : index
    %c0_15 = arith.constant 0 : index
    %17 = vector.load %arg7[%c0_13, %c0_14, %c0_15] : memref<18x18x128xbf16, #tpu.memory_space<vmem>>, vector<16x16x128xbf16>
    %18 = vector.shape_cast %17 : vector<16x16x128xbf16> to vector<256x128xbf16>
    %c0_16 = arith.constant 0 : index
    %c0_17 = arith.constant 0 : index
    %c0_18 = arith.constant 0 : index
    %19 = vector.load %arg4[%c0_16, %c0_17, %c0_18] : memref<9x128x128xbf16, #tpu.memory_space<vmem>>, vector<1x128x128xbf16>
    %20 = vector.shape_cast %19 : vector<1x128x128xbf16> to vector<128x128xbf16>
    %cst_19 = arith.constant dense<0.000000e+00> : vector<256x128xf32>
    %21 = tpu.matmul %18, %20, %cst_19 {dimension_numbers = #tpu.dot_dimension_numbers<[1], [0], [0], [1], [0, 0, 1, 1], [], []>} : vector<256x128xbf16>, vector<128x128xbf16>, vector<256x128xf32> -> vector<256x128xf32>
    %c0_20 = arith.constant 0 : index
    %c1_21 = arith.constant 1 : index
    %c0_22 = arith.constant 0 : index
    %22 = vector.load %arg7[%c0_20, %c1_21, %c0_22] : memref<18x18x128xbf16, #tpu.memory_space<vmem>>, vector<16x16x128xbf16>
    %23 = vector.shape_cast %22 : vector<16x16x128xbf16> to vector<256x128xbf16>
    %c1_23 = arith.constant 1 : index
    %c0_24 = arith.constant 0 : index
    %c0_25 = arith.constant 0 : index
    %24 = vector.load %arg4[%c1_23, %c0_24, %c0_25] : memref<9x128x128xbf16, #tpu.memory_space<vmem>>, vector<1x128x128xbf16>
    %25 = vector.shape_cast %24 : vector<1x128x128xbf16> to vector<128x128xbf16>
    %cst_26 = arith.constant dense<0.000000e+00> : vector<256x128xf32>
    %26 = tpu.matmul %23, %25, %cst_26 {dimension_numbers = #tpu.dot_dimension_numbers<[1], [0], [0], [1], [0, 0, 1, 1], [], []>} : vector<256x128xbf16>, vector<128x128xbf16>, vector<256x128xf32> -> vector<256x128xf32>
    %27 = arith.addf %21, %26 : vector<256x128xf32>
    %c0_27 = arith.constant 0 : index
    %c2 = arith.constant 2 : index
    %c0_28 = arith.constant 0 : index
    %28 = vector.load %arg7[%c0_27, %c2, %c0_28] : memref<18x18x128xbf16, #tpu.memory_space<vmem>>, vector<16x16x128xbf16>
    %29 = vector.shape_cast %28 : vector<16x16x128xbf16> to vector<256x128xbf16>
    %c2_29 = arith.constant 2 : index
    %c0_30 = arith.constant 0 : index
    %c0_31 = arith.constant 0 : index
    %30 = vector.load %arg4[%c2_29, %c0_30, %c0_31] : memref<9x128x128xbf16, #tpu.memory_space<vmem>>, vector<1x128x128xbf16>
    %31 = vector.shape_cast %30 : vector<1x128x128xbf16> to vector<128x128xbf16>
    %cst_32 = arith.constant dense<0.000000e+00> : vector<256x128xf32>
    %32 = tpu.matmul %29, %31, %cst_32 {dimension_numbers = #tpu.dot_dimension_numbers<[1], [0], [0], [1], [0, 0, 1, 1], [], []>} : vector<256x128xbf16>, vector<128x128xbf16>, vector<256x128xf32> -> vector<256x128xf32>
    %c1_33 = arith.constant 1 : index
    %c0_34 = arith.constant 0 : index
    %c0_35 = arith.constant 0 : index
    %33 = vector.load %arg7[%c1_33, %c0_34, %c0_35] : memref<18x18x128xbf16, #tpu.memory_space<vmem>>, vector<16x16x128xbf16>
    %34 = vector.shape_cast %33 : vector<16x16x128xbf16> to vector<256x128xbf16>
    %c3 = arith.constant 3 : index
    %c0_36 = arith.constant 0 : index
    %c0_37 = arith.constant 0 : index
    %35 = vector.load %arg4[%c3, %c0_36, %c0_37] : memref<9x128x128xbf16, #tpu.memory_space<vmem>>, vector<1x128x128xbf16>
    %36 = vector.shape_cast %35 : vector<1x128x128xbf16> to vector<128x128xbf16>
    %cst_38 = arith.constant dense<0.000000e+00> : vector<256x128xf32>
    %37 = tpu.matmul %34, %36, %cst_38 {dimension_numbers = #tpu.dot_dimension_numbers<[1], [0], [0], [1], [0, 0, 1, 1], [], []>} : vector<256x128xbf16>, vector<128x128xbf16>, vector<256x128xf32> -> vector<256x128xf32>
    %38 = arith.addf %32, %37 : vector<256x128xf32>
    %39 = arith.addf %27, %38 : vector<256x128xf32>
    %c1_39 = arith.constant 1 : index
    %c1_40 = arith.constant 1 : index
    %c0_41 = arith.constant 0 : index
    %40 = vector.load %arg7[%c1_39, %c1_40, %c0_41] : memref<18x18x128xbf16, #tpu.memory_space<vmem>>, vector<16x16x128xbf16>
    %41 = vector.shape_cast %40 : vector<16x16x128xbf16> to vector<256x128xbf16>
    %c4 = arith.constant 4 : index
    %c0_42 = arith.constant 0 : index
    %c0_43 = arith.constant 0 : index
    %42 = vector.load %arg4[%c4, %c0_42, %c0_43] : memref<9x128x128xbf16, #tpu.memory_space<vmem>>, vector<1x128x128xbf16>
    %43 = vector.shape_cast %42 : vector<1x128x128xbf16> to vector<128x128xbf16>
    %cst_44 = arith.constant dense<0.000000e+00> : vector<256x128xf32>
    %44 = tpu.matmul %41, %43, %cst_44 {dimension_numbers = #tpu.dot_dimension_numbers<[1], [0], [0], [1], [0, 0, 1, 1], [], []>} : vector<256x128xbf16>, vector<128x128xbf16>, vector<256x128xf32> -> vector<256x128xf32>
    %c1_45 = arith.constant 1 : index
    %c2_46 = arith.constant 2 : index
    %c0_47 = arith.constant 0 : index
    %45 = vector.load %arg7[%c1_45, %c2_46, %c0_47] : memref<18x18x128xbf16, #tpu.memory_space<vmem>>, vector<16x16x128xbf16>
    %46 = vector.shape_cast %45 : vector<16x16x128xbf16> to vector<256x128xbf16>
    %c5 = arith.constant 5 : index
    %c0_48 = arith.constant 0 : index
    %c0_49 = arith.constant 0 : index
    %47 = vector.load %arg4[%c5, %c0_48, %c0_49] : memref<9x128x128xbf16, #tpu.memory_space<vmem>>, vector<1x128x128xbf16>
    %48 = vector.shape_cast %47 : vector<1x128x128xbf16> to vector<128x128xbf16>
    %cst_50 = arith.constant dense<0.000000e+00> : vector<256x128xf32>
    %49 = tpu.matmul %46, %48, %cst_50 {dimension_numbers = #tpu.dot_dimension_numbers<[1], [0], [0], [1], [0, 0, 1, 1], [], []>} : vector<256x128xbf16>, vector<128x128xbf16>, vector<256x128xf32> -> vector<256x128xf32>
    %50 = arith.addf %44, %49 : vector<256x128xf32>
    %51 = arith.addf %39, %50 : vector<256x128xf32>
    %c2_51 = arith.constant 2 : index
    %c0_52 = arith.constant 0 : index
    %c0_53 = arith.constant 0 : index
    %52 = vector.load %arg7[%c2_51, %c0_52, %c0_53] : memref<18x18x128xbf16, #tpu.memory_space<vmem>>, vector<16x16x128xbf16>
    %53 = vector.shape_cast %52 : vector<16x16x128xbf16> to vector<256x128xbf16>
    %c6 = arith.constant 6 : index
    %c0_54 = arith.constant 0 : index
    %c0_55 = arith.constant 0 : index
    %54 = vector.load %arg4[%c6, %c0_54, %c0_55] : memref<9x128x128xbf16, #tpu.memory_space<vmem>>, vector<1x128x128xbf16>
    %55 = vector.shape_cast %54 : vector<1x128x128xbf16> to vector<128x128xbf16>
    %cst_56 = arith.constant dense<0.000000e+00> : vector<256x128xf32>
    %56 = tpu.matmul %53, %55, %cst_56 {dimension_numbers = #tpu.dot_dimension_numbers<[1], [0], [0], [1], [0, 0, 1, 1], [], []>} : vector<256x128xbf16>, vector<128x128xbf16>, vector<256x128xf32> -> vector<256x128xf32>
    %c2_57 = arith.constant 2 : index
    %c1_58 = arith.constant 1 : index
    %c0_59 = arith.constant 0 : index
    %57 = vector.load %arg7[%c2_57, %c1_58, %c0_59] : memref<18x18x128xbf16, #tpu.memory_space<vmem>>, vector<16x16x128xbf16>
    %58 = vector.shape_cast %57 : vector<16x16x128xbf16> to vector<256x128xbf16>
    %c7 = arith.constant 7 : index
    %c0_60 = arith.constant 0 : index
    %c0_61 = arith.constant 0 : index
    %59 = vector.load %arg4[%c7, %c0_60, %c0_61] : memref<9x128x128xbf16, #tpu.memory_space<vmem>>, vector<1x128x128xbf16>
    %60 = vector.shape_cast %59 : vector<1x128x128xbf16> to vector<128x128xbf16>
    %cst_62 = arith.constant dense<0.000000e+00> : vector<256x128xf32>
    %61 = tpu.matmul %58, %60, %cst_62 {dimension_numbers = #tpu.dot_dimension_numbers<[1], [0], [0], [1], [0, 0, 1, 1], [], []>} : vector<256x128xbf16>, vector<128x128xbf16>, vector<256x128xf32> -> vector<256x128xf32>
    %62 = arith.addf %56, %61 : vector<256x128xf32>
    %63 = arith.addf %51, %62 : vector<256x128xf32>
    %c2_63 = arith.constant 2 : index
    %c2_64 = arith.constant 2 : index
    %c0_65 = arith.constant 0 : index
    %64 = vector.load %arg7[%c2_63, %c2_64, %c0_65] : memref<18x18x128xbf16, #tpu.memory_space<vmem>>, vector<16x16x128xbf16>
    %65 = vector.shape_cast %64 : vector<16x16x128xbf16> to vector<256x128xbf16>
    %c8 = arith.constant 8 : index
    %c0_66 = arith.constant 0 : index
    %c0_67 = arith.constant 0 : index
    %66 = vector.load %arg4[%c8, %c0_66, %c0_67] : memref<9x128x128xbf16, #tpu.memory_space<vmem>>, vector<1x128x128xbf16>
    %67 = vector.shape_cast %66 : vector<1x128x128xbf16> to vector<128x128xbf16>
    %cst_68 = arith.constant dense<0.000000e+00> : vector<256x128xf32>
    %68 = tpu.matmul %65, %67, %cst_68 {dimension_numbers = #tpu.dot_dimension_numbers<[1], [0], [0], [1], [0, 0, 1, 1], [], []>} : vector<256x128xbf16>, vector<128x128xbf16>, vector<256x128xf32> -> vector<256x128xf32>
    %69 = arith.addf %63, %68 : vector<256x128xf32>
    %c0_69 = arith.constant 0 : index
    %c0_70 = arith.constant 0 : index
    %c0_71 = arith.constant 0 : index
    %70 = vector.load %arg5[%c0_69, %c0_70, %c0_71] : memref<1x256x128xf32, #tpu.memory_space<vmem>>, vector<1x256x128xf32>
    %71 = vector.shape_cast %70 : vector<1x256x128xf32> to vector<256x128xf32>
    %72 = vector.shape_cast %69 : vector<256x128xf32> to vector<1x256x128xf32>
    tpu.vector_store %arg5[%c0_69, %c0_70, %c0_71], %72 {strides = array<i32>} : memref<1x256x128xf32, #tpu.memory_space<vmem>>, vector<1x256x128xf32>,
    %cst_72 = arith.constant dense<0.000000e+00> : vector<128xf32>
    %73 = vector.multi_reduction <add>, %69, %cst_72 [0] : vector<256x128xf32> to vector<128xf32>
    %74 = vector.shape_cast %73 : vector<128xf32> to vector<1x128xf32>
    %75 = arith.mulf %69, %69 : vector<256x128xf32>
    %cst_73 = arith.constant dense<0.000000e+00> : vector<128xf32>
    %76 = vector.multi_reduction <add>, %75, %cst_73 [0] : vector<256x128xf32> to vector<128xf32>
    %77 = vector.shape_cast %76 : vector<128xf32> to vector<1x128xf32>
    %78 = tpu.concatenate %74, %77 in 0 : vector<1x128xf32>, vector<1x128xf32> -> vector<2x128xf32>
    %c0_74 = arith.constant 0 : index
    %c0_75 = arith.constant 0 : index
    %c0_76 = arith.constant 0 : index
    %79 = vector.load %arg6[%c0_74, %c0_75, %c0_76] : memref<1x2x128xf32, #tpu.memory_space<vmem>>, vector<1x2x128xf32>
    %80 = vector.shape_cast %79 : vector<1x2x128xf32> to vector<2x128xf32>
    %81 = vector.shape_cast %78 : vector<2x128xf32> to vector<1x2x128xf32>
    tpu.vector_store %arg6[%c0_74, %c0_75, %c0_76], %81 {strides = array<i32>} : memref<1x2x128xf32, #tpu.memory_space<vmem>>, vector<1x2x128xf32>,
    return
  }
  func.func @transform_0(%arg0: i32) -> (i32, i32, i32, i32) {
    %c0_i32 = arith.constant 0 : i32
    %c0_i32_0 = arith.constant 0 : i32
    %c0_i32_1 = arith.constant 0 : i32
    %c0_i32_2 = arith.constant 0 : i32
    return %arg0, %c0_i32, %c0_i32_0, %c0_i32_1 : i32, i32, i32, i32
  }
  func.func @transform_1(%arg0: i32) -> (i32, i32) {
    %c0_i32 = arith.constant 0 : i32
    %c0_i32_0 = arith.constant 0 : i32
    %c0_i32_1 = arith.constant 0 : i32
    return %c0_i32, %c0_i32_0 : i32, i32
  }
  func.func @transform_2(%arg0: i32) -> (i32, i32) {
    %c0_i32 = arith.constant 0 : i32
    %c0_i32_0 = arith.constant 0 : i32
    %c0_i32_1 = arith.constant 0 : i32
    return %c0_i32, %c0_i32_0 : i32, i32
  }
  func.func @transform_3(%arg0: i32) -> (i32, i32, i32) {
    %c0_i32 = arith.constant 0 : i32
    %c0_i32_0 = arith.constant 0 : i32
    %c0_i32_1 = arith.constant 0 : i32
    %c0_i32_2 = arith.constant 0 : i32
    return %c0_i32, %c0_i32_0, %c0_i32_1 : i32, i32, i32
  }
  func.func @transform_4(%arg0: i32) -> (i32, i32, i32) {
    %c0_i32 = arith.constant 0 : i32
    %c0_i32_0 = arith.constant 0 : i32
    %c0_i32_1 = arith.constant 0 : i32
    return %arg0, %c0_i32, %c0_i32_0 : i32, i32, i32
  }
  func.func @transform_5(%arg0: i32) -> (i32, i32, i32) {
    %c0_i32 = arith.constant 0 : i32
    %c0_i32_0 = arith.constant 0 : i32
    %c0_i32_1 = arith.constant 0 : i32
    return %arg0, %c0_i32, %c0_i32_0 : i32, i32, i32
  }
}

module attributes {stable_mosaic.version = 11 : i64} {
  func.func @_bn_add_act_kernel(%arg0: i32, %arg1: memref<256x128xf32, #tpu.memory_space<vmem>>, %arg2: memref<1x128xf32, #tpu.memory_space<vmem>>, %arg3: memref<1x128xf32, #tpu.memory_space<vmem>>, %arg4: memref<256x128xbf16, #tpu.memory_space<vmem>>, %arg5: memref<256x128xf32, #tpu.memory_space<vmem>>) attributes {dimension_semantics = [#tpu.dimension_semantics<parallel>], iteration_bounds = array<i64: 2>, scalar_prefetch = 0 : i64, scratch_operands = 0 : i64, tpu.core_type = #tpu.core_type<tc>, window_params = [{transform_indices = @transform_0, window_bounds = array<i64: 256, 128>}, {pipeline_mode = #tpu.pipeline_mode<synchronous>, transform_indices = @transform_1, window_bounds = array<i64: 1, 128>}, {pipeline_mode = #tpu.pipeline_mode<synchronous>, transform_indices = @transform_2, window_bounds = array<i64: 1, 128>}, {transform_indices = @transform_3, window_bounds = array<i64: 256, 128>}, {transform_indices = @transform_4, window_bounds = array<i64: 256, 128>}]} {
    %c0 = arith.constant 0 : index
    %c0_0 = arith.constant 0 : index
    %0 = vector.load %arg1[%c0, %c0_0] : memref<256x128xf32, #tpu.memory_space<vmem>>, vector<256x128xf32>
    %c0_1 = arith.constant 0 : index
    %c0_2 = arith.constant 0 : index
    %1 = vector.load %arg2[%c0_1, %c0_2] : memref<1x128xf32, #tpu.memory_space<vmem>>, vector<1x128xf32>
    %2 = vector.broadcast %1 : vector<1x128xf32> to vector<256x128xf32>
    %3 = arith.mulf %0, %2 : vector<256x128xf32>
    %c0_3 = arith.constant 0 : index
    %c0_4 = arith.constant 0 : index
    %4 = vector.load %arg3[%c0_3, %c0_4] : memref<1x128xf32, #tpu.memory_space<vmem>>, vector<1x128xf32>
    %5 = vector.broadcast %4 : vector<1x128xf32> to vector<256x128xf32>
    %6 = arith.addf %3, %5 : vector<256x128xf32>
    %c0_5 = arith.constant 0 : index
    %c0_6 = arith.constant 0 : index
    %7 = vector.load %arg4[%c0_5, %c0_6] : memref<256x128xbf16, #tpu.memory_space<vmem>>, vector<256x128xbf16>
    %8 = arith.extf %7 : vector<256x128xbf16> to vector<256x128xf32>
    %9 = arith.addf %6, %8 : vector<256x128xf32>
    %cst = arith.constant 0.000000e+00 : f32
    %10 = vector.broadcast %cst : f32 to vector<256x128xf32>
    %11 = arith.maximumf %9, %10 : vector<256x128xf32>
    %c0_7 = arith.constant 0 : index
    %c0_8 = arith.constant 0 : index
    %12 = vector.load %arg5[%c0_7, %c0_8] : memref<256x128xf32, #tpu.memory_space<vmem>>, vector<256x128xf32>
    tpu.vector_store %arg5[%c0_7, %c0_8], %11 {strides = array<i32>} : memref<256x128xf32, #tpu.memory_space<vmem>>, vector<256x128xf32>,
    return
  }
  func.func @transform_0(%arg0: i32) -> (i32, i32) {
    %c0_i32 = arith.constant 0 : i32
    %c0_i32_0 = arith.constant 0 : i32
    return %arg0, %c0_i32 : i32, i32
  }
  func.func @transform_1(%arg0: i32) -> (i32, i32) {
    %c0_i32 = arith.constant 0 : i32
    %c0_i32_0 = arith.constant 0 : i32
    %c0_i32_1 = arith.constant 0 : i32
    return %c0_i32, %c0_i32_0 : i32, i32
  }
  func.func @transform_2(%arg0: i32) -> (i32, i32) {
    %c0_i32 = arith.constant 0 : i32
    %c0_i32_0 = arith.constant 0 : i32
    %c0_i32_1 = arith.constant 0 : i32
    return %c0_i32, %c0_i32_0 : i32, i32
  }
  func.func @transform_3(%arg0: i32) -> (i32, i32) {
    %c0_i32 = arith.constant 0 : i32
    %c0_i32_0 = arith.constant 0 : i32
    return %arg0, %c0_i32 : i32, i32
  }
  func.func @transform_4(%arg0: i32) -> (i32, i32) {
    %c0_i32 = arith.constant 0 : i32
    %c0_i32_0 = arith.constant 0 : i32
    return %arg0, %c0_i32 : i32, i32
  }
}

</mosaic_0001>

<bundles_post_ra>
// kernel: basic_block_forward.5
= control target key start
LH: loop header
LB: loop body
LE: loop exit
PB: predicated region body
PF: predicated region fallthrough
CT: control target
= control target key end

     0   :  { %s696_s15 = smov 0   ;;  %s884_s0 = inlined_call_operand.vmem [shape: f32[512,128], index: 0, kind: input, shape index: {}]   ;;  %s885_s1 = inlined_call_operand.vmem [shape: f32[1,128], index: 1, kind: input, shape index: {}]   ;;  %s886_s2 = inlined_call_operand.vmem [shape: f32[1,128], index: 2, kind: input, shape index: {}]   ;;  %s887_s3 = inlined_call_operand.vmem [shape: bf16[512,128], index: 3, kind: input, shape index: {}]   ;;  %s888_s4 = inlined_call_operand.vmem [shape: f32[512,128], index: 4, kind: output, shape index: {}]  }
   0x1 LB: > { %s561_s16 = sadd.s32 4294967295, %s669_s15   ;;  %p565_p0 = scmp.ge.s32.totalorder %s669_s15, 1  ;;  %s669_s15 = sphi %s696_s15, %s14_s15  }
   0x2   : > { %p174_p1 = scmp.lt.s32.totalorder %s669_s15, 3 }
   0x4   : > { %p175_p2 = pnand %p565_p0, %p174_p1 }
   0x5   : > { %s566_s17 = sshll.u32 (!%p175_p2), %s561_s16, 5 }
   0x6   : > { %178 = sbr.rel (%p175_p2) target bundleno = 61 (0x3d), region = 36  ;;  %p206_p3 = scmp.lt.s32.totalorder (!%p175_p2), %s566_s17, 63 }
   0xb   : > { %s890_s17 = smov (!%p206_p3, %s566_s17), 63  ;;  %v711_v0 = vld [vmem:[%s885_s1] ss:$0 sm:$0xff] }
   0xc   : > { %s567_s18 = sshll.u32 %s890_s17, 3  ;;  %s569_s19 = sshll.u32 %s890_s17, 2  ;;  %v728_v1 = vld [vmem:[%s886_s2] ss:$0 sm:$0xff] }
   0xd   : > { %s718_s24 = scalar_lea.vmem %s884_s0, %s567_s18  ;;  %s723_s27 = scalar_lea.vmem %s887_s3, %s569_s19 }
   0xe   : > { %v223_v2 = vld [vmem:[%s718_s24] sm:$0xff]  ;;  %v224_v4 = vld [vmem:[%s718_s24 + $0x8] sm:$0xff]  ;;  %v225_v9 = vld [vmem:[%s718_s24 + $0x10] sm:$0xff]  ;;  %s759_s6 = scalar_lea.vmem %s888_s4, %s567_s18 }
   0xf   : > { %v577_v3 = vld [vmem:[%s723_s27] sm:$0xff]   ;;  %v262_v5 = vmul.f32 %v711_v0, %v223_v2  ;;  %v263_v7 = vmul.f32 %v711_v0, %v224_v4  ;;  %v640_v10 = vld [vmem:[%s723_s27 + $0x8] sm:$0xff]   ;;  %v226_v11 = vld [vmem:[%s718_s24 + $0x18] sm:$0xff]  ;;  %v264_v12 = vmul.f32 %v711_v0, %v225_v9 }
  0x10   : > { %v578_v6 = vunpack.c.l.bf16 %v577_v3  ;;  %v579_v8 = vunpack.c.h.bf16 %v577_v3  ;;  %v582_v13 = vunpack.c.l.bf16 %v640_v10  ;;  %v265_v14 = vmul.f32 %v711_v0, %v226_v11  ;;  %v227_v16 = vld [vmem:[%s718_s24 + $0x20] sm:$0xff]  ;;  %v641_v17 = vld [vmem:[%s723_s27 + $0x10] sm:$0xff]   ;;  %v228_v18 = vld [vmem:[%s718_s24 + $0x28] sm:$0xff] }
  0x11   : > { %v583_v15 = vunpack.c.h.bf16 %v640_v10  ;;  %v301_v19 = vadd.f32 %v728_v1, %v262_v5  ;;  %v302_v20 = vadd.f32 %v728_v1, %v263_v7  ;;  %v266_v21 = vmul.f32 %v711_v0, %v227_v16  ;;  %v229_v23 = vld [vmem:[%s718_s24 + $0x30] sm:$0xff]  ;;  %v642_v24 = vld [vmem:[%s723_s27 + $0x18] sm:$0xff]   ;;  %v231_v38 = vld [vmem:[%s718_s24 + $0x40] sm:$0xff] }
  0x12   : > { %v586_v22 = vunpack.c.l.bf16 %v641_v17  ;;  %v303_v25 = vadd.f32 %v728_v1, %v264_v12  ;;  %v304_v26 = vadd.f32 %v728_v1, %v265_v14  ;;  %v267_v27 = vmul.f32 %v711_v0, %v228_v18  ;;  %v230_v33 = vld [vmem:[%s718_s24 + $0x38] sm:$0xff]  ;;  %v643_v43 = vld [vmem:[%s723_s27 + $0x20] sm:$0xff]   ;;  %v232_v44 = vld [vmem:[%s718_s24 + $0x48] sm:$0xff] }
  0x13   : > { %v587_v28 = vunpack.c.h.bf16 %v641_v17  ;;  %v397_v29 = vadd.f32 %v578_v6, %v301_v19  ;;  %v398_v30 = vadd.f32 %v579_v8, %v302_v20  ;;  %v305_v31 = vadd.f32 %v728_v1, %v266_v21  ;;  %v233_v49 = vld [vmem:[%s718_s24 + $0x50] sm:$0xff]  ;;  %v644_v54 = vld [vmem:[%s723_s27 + $0x28] sm:$0xff]   ;;  %v234_v55 = vld [vmem:[%s718_s24 + $0x58] sm:$0xff] }
  0x14   : > { %v268_v32 = vmul.f32 %v711_v0, %v229_v23  ;;  %v399_v34 = vadd.f32 %v582_v13, %v303_v25  ;;  %v400_v35 = vadd.f32 %v583_v15, %v304_v26  ;;  %v306_v36 = vadd.f32 %v728_v1, %v267_v27  ;;  %v235_v60 = vld [vmem:[%s718_s24 + $0x60] sm:$0xff]  ;;  %v645_v3 = vld [vmem:[%s723_s27 + $0x30] sm:$0xff]   ;;  %v236_v8 = vld [vmem:[%s718_s24 + $0x68] sm:$0xff] }
  0x15   : > { %v590_v37 = vunpack.c.l.bf16 %v642_v24  ;;  %v429_v39 = vmax.f32 %v397_v29, 0.0  ;;  %v430_v40 = vmax.f32 %v398_v30, 0.0  ;;  %v401_v41 = vadd.f32 %v586_v22, %v305_v31  ;;  %v237_v13 = vld [vmem:[%s718_s24 + $0x70] sm:$0xff]  ;;  %v646_v18 = vld [vmem:[%s723_s27 + $0x38] sm:$0xff]   ;;  %v647_v29 = vld [vmem:[%s723_s27 + $0x40] sm:$0xff]  }
  0x16   : > { %v307_v42 = vadd.f32 %v728_v1, %v268_v32  ;;  %v431_v45 = vmax.f32 %v399_v34, 0.0  ;;  %v432_v46 = vmax.f32 %v400_v35, 0.0  ;;  %v402_v47 = vadd.f32 %v587_v28, %v306_v36  ;;  %v238_v23 = vld [vmem:[%s718_s24 + $0x78] sm:$0xff]  ;;  %v239_v28 = vld [vmem:[%s718_s24 + $0x80] sm:$0xff]  ;;  %v240_v34 = vld [vmem:[%s718_s24 + $0x88] sm:$0xff] }
  0x17   : > { %v269_v48 = vmul.f32 %v711_v0, %v230_v33  ;;  %461 = vst [vmem:[%s759_s6] sm:$0xff] %v429_v39  ;;  %462 = vst [vmem:[%s759_s6 + $0x8] sm:$0xff] %v430_v40  ;;  %v433_v50 = vmax.f32 %v401_v41, 0.0  ;;  %v591_v52 = vunpack.c.h.bf16 %v642_v24  ;;  %v270_v53 = vmul.f32 %v711_v0, %v231_v38  ;;  %v241_v39 = vld [vmem:[%s718_s24 + $0x90] sm:$0xff]  ;;  %v648_v40 = vld [vmem:[%s723_s27 + $0x48] sm:$0xff]  }
  0x18   : > { %v403_v51 = vadd.f32 %v590_v37, %v307_v42  ;;  %463 = vst [vmem:[%s759_s6 + $0x10] sm:$0xff] %v431_v45  ;;  %464 = vst [vmem:[%s759_s6 + $0x18] sm:$0xff] %v432_v46  ;;  %v434_v56 = vmax.f32 %v402_v47, 0.0  ;;  %v594_v58 = vunpack.c.l.bf16 %v643_v43  ;;  %v271_v59 = vmul.f32 %v711_v0, %v232_v44  ;;  %v242_v45 = vld [vmem:[%s718_s24 + $0x98] sm:$0xff] }
  0x19   : > { %v308_v57 = vadd.f32 %v728_v1, %v269_v48  ;;  %465 = vst [vmem:[%s759_s6 + $0x20] sm:$0xff] %v433_v50  ;;  %v309_v62 = vadd.f32 %v728_v1, %v270_v53  ;;  %v595_v63 = vunpack.c.h.bf16 %v643_v43  ;;  %v272_v2 = vmul.f32 %v711_v0, %v233_v49  ;;  %v243_v50 = vld [vmem:[%s718_s24 + $0xa0] sm:$0xff] }
  0x1a   : > { %v435_v61 = vmax.f32 %v403_v51, 0.0  ;;  %466 = vst [vmem:[%s759_s6 + $0x28] sm:$0xff] %v434_v56  ;;  %v310_v5 = vadd.f32 %v728_v1, %v271_v59  ;;  %v598_v6 = vunpack.c.l.bf16 %v644_v54  ;;  %v273_v7 = vmul.f32 %v711_v0, %v234_v55  ;;  %v649_v55 = vld [vmem:[%s723_s27 + $0x50] sm:$0xff]  }
  0x1b   : > { %v404_v4 = vadd.f32 %v591_v52, %v308_v57  ;;  %v405_v9 = vadd.f32 %v594_v58, %v309_v62  ;;  %v311_v10 = vadd.f32 %v728_v1, %v272_v2  ;;  %v599_v11 = vunpack.c.h.bf16 %v644_v54 }
  0x1c   : > { %467 = vst [vmem:[%s759_s6 + $0x30] sm:$0xff] %v435_v61  ;;  %v274_v12 = vmul.f32 %v711_v0, %v235_v60  ;;  %v406_v15 = vadd.f32 %v595_v63, %v310_v5  ;;  %v312_v16 = vadd.f32 %v728_v1, %v273_v7  ;;  %v602_v17 = vunpack.c.l.bf16 %v645_v3  ;;  %v244_v60 = vld [vmem:[%s718_s24 + $0xa8] sm:$0xff] }
  0x1d   : > { %v436_v14 = vmax.f32 %v404_v4, 0.0  ;;  %v437_v19 = vmax.f32 %v405_v9, 0.0  ;;  %v407_v20 = vadd.f32 %v598_v6, %v311_v10  ;;  %v275_v22 = vmul.f32 %v711_v0, %v236_v8  ;;  %v650_v8 = vld [vmem:[%s723_s27 + $0x58] sm:$0xff]  }
  0x1e   : > { %v313_v21 = vadd.f32 %v728_v1, %v274_v12  ;;  %v438_v24 = vmax.f32 %v406_v15, 0.0  ;;  %v408_v25 = vadd.f32 %v599_v11, %v312_v16  ;;  %v603_v26 = vunpack.c.h.bf16 %v645_v3  ;;  %v245_v3 = vld [vmem:[%s718_s24 + $0xb0] sm:$0xff] }
  0x1f   : > { %468 = vst [vmem:[%s759_s6 + $0x38] sm:$0xff] %v436_v14  ;;  %v276_v27 = vmul.f32 %v711_v0, %v237_v13  ;;  %469 = vst [vmem:[%s759_s6 + $0x40] sm:$0xff] %v437_v19  ;;  %v439_v30 = vmax.f32 %v407_v20, 0.0  ;;  %v314_v32 = vadd.f32 %v728_v1, %v275_v22  ;;  %v606_v33 = vunpack.c.l.bf16 %v646_v18  ;;  %v246_v13 = vld [vmem:[%s718_s24 + $0xb8] sm:$0xff]  ;;  %v651_v19 = vld [vmem:[%s723_s27 + $0x60] sm:$0xff]  }
  0x20   : > { %v409_v31 = vadd.f32 %v602_v17, %v313_v21  ;;  %470 = vst [vmem:[%s759_s6 + $0x48] sm:$0xff] %v438_v24  ;;  %v440_v35 = vmax.f32 %v408_v25, 0.0  ;;  %v277_v37 = vmul.f32 %v711_v0, %v238_v23  ;;  %v607_v38 = vunpack.c.h.bf16 %v646_v18  ;;  %v247_v18 = vld [vmem:[%s718_s24 + $0xc0] sm:$0xff]  ;;  %v248_v24 = vld [vmem:[%s718_s24 + $0xc8] sm:$0xff] }
  0x21   : > { %v315_v36 = vadd.f32 %v728_v1, %v276_v27  ;;  %471 = vst [vmem:[%s759_s6 + $0x50] sm:$0xff] %v439_v30  ;;  %v410_v42 = vadd.f32 %v603_v26, %v314_v32  ;;  %v278_v43 = vmul.f32 %v711_v0, %v239_v28  ;;  %v610_v44 = vunpack.c.l.bf16 %v647_v29  ;;  %v652_v30 = vld [vmem:[%s723_s27 + $0x68] sm:$0xff]  }
  0x22   : > { %v441_v41 = vmax.f32 %v409_v31, 0.0  ;;  %472 = vst [vmem:[%s759_s6 + $0x58] sm:$0xff] %v440_v35  ;;  %v316_v47 = vadd.f32 %v728_v1, %v277_v37  ;;  %v279_v48 = vmul.f32 %v711_v0, %v240_v34  ;;  %v611_v49 = vunpack.c.h.bf16 %v647_v29  ;;  %v249_v29 = vld [vmem:[%s718_s24 + $0xd0] sm:$0xff]  ;;  %v250_v35 = vld [vmem:[%s718_s24 + $0xd8] sm:$0xff] }
  0x23   : > { %v411_v46 = vadd.f32 %v606_v33, %v315_v36  ;;  %v442_v51 = vmax.f32 %v410_v42, 0.0  ;;  %v317_v52 = vadd.f32 %v728_v1, %v278_v43  ;;  %v280_v53 = vmul.f32 %v711_v0, %v241_v39 }
  0x24   : > { %473 = vst [vmem:[%s759_s6 + $0x60] sm:$0xff] %v441_v41  ;;  %v614_v54 = vunpack.c.l.bf16 %v648_v40  ;;  %v412_v57 = vadd.f32 %v607_v38, %v316_v47  ;;  %v318_v58 = vadd.f32 %v728_v1, %v279_v48  ;;  %v281_v59 = vmul.f32 %v711_v0, %v242_v45  ;;  %v653_v45 = vld [vmem:[%s723_s27 + $0x70] sm:$0xff]  }
  0x25   : > { %v443_v56 = vmax.f32 %v411_v46, 0.0  ;;  %474 = vst [vmem:[%s759_s6 + $0x68] sm:$0xff] %v442_v51  ;;  %v413_v61 = vadd.f32 %v610_v44, %v317_v52  ;;  %v319_v62 = vadd.f32 %v728_v1, %v280_v53  ;;  %v615_v63 = vunpack.c.h.bf16 %v648_v40  ;;  %v251_v40 = vld [vmem:[%s718_s24 + $0xe0] sm:$0xff] }
  0x26   : > { %v282_v2 = vmul.f32 %v711_v0, %v243_v50  ;;  %v444_v4 = vmax.f32 %v412_v57, 0.0  ;;  %v414_v5 = vadd.f32 %v611_v49, %v318_v58  ;;  %v320_v6 = vadd.f32 %v728_v1, %v281_v59  ;;  %v252_v50 = vld [vmem:[%s718_s24 + $0xe8] sm:$0xff] }
  0x27   : > { %475 = vst [vmem:[%s759_s6 + $0x70] sm:$0xff] %v443_v56  ;;  %v618_v7 = vunpack.c.l.bf16 %v649_v55  ;;  %v445_v9 = vmax.f32 %v413_v61, 0.0  ;;  %v415_v10 = vadd.f32 %v614_v54, %v319_v62  ;;  %v283_v12 = vmul.f32 %v711_v0, %v244_v60  ;;  %v654_v60 = vld [vmem:[%s723_s27 + $0x78] sm:$0xff]  }
  0x28   : > { %v321_v11 = vadd.f32 %v728_v1, %v282_v2  ;;  %476 = vst [vmem:[%s759_s6 + $0x78] sm:$0xff] %v444_v4  ;;  %v446_v14 = vmax.f32 %v414_v5, 0.0  ;;  %v416_v15 = vadd.f32 %v615_v63, %v320_v6  ;;  %v619_v16 = vunpack.c.h.bf16 %v649_v55  ;;  %v253_v55 = vld [vmem:[%s718_s24 + $0xf0] sm:$0xff] }
  0x29   : > { %v284_v17 = vmul.f32 %v711_v0, %v245_v3  ;;  %477 = vst [vmem:[%s759_s6 + $0x80] sm:$0xff] %v445_v9  ;;  %v447_v20 = vmax.f32 %v415_v10, 0.0  ;;  %v322_v22 = vadd.f32 %v728_v1, %v283_v12  ;;  %v622_v23 = vunpack.c.l.bf16 %v650_v8  ;;  %v254_v3 = vld [vmem:[%s718_s24 + $0xf8] sm:$0xff] }
  0x2a   : > { %v417_v21 = vadd.f32 %v618_v7, %v321_v11  ;;  %478 = vst [vmem:[%s759_s6 + $0x88] sm:$0xff] %v446_v14  ;;  %v448_v25 = vmax.f32 %v416_v15, 0.0  ;;  %v285_v27 = vmul.f32 %v711_v0, %v246_v13  ;;  %v623_v28 = vunpack.c.h.bf16 %v650_v8 }
  0x2b   : > { %v323_v26 = vadd.f32 %v728_v1, %v284_v17  ;;  %479 = vst [vmem:[%s759_s6 + $0x90] sm:$0xff] %v447_v20  ;;  %v418_v32 = vadd.f32 %v619_v16, %v322_v22  ;;  %v286_v33 = vmul.f32 %v711_v0, %v247_v18  ;;  %v626_v34 = vunpack.c.l.bf16 %v651_v19 }
  0x2c   : > { %v449_v31 = vmax.f32 %v417_v21, 0.0  ;;  %480 = vst [vmem:[%s759_s6 + $0x98] sm:$0xff] %v448_v25  ;;  %v324_v37 = vadd.f32 %v728_v1, %v285_v27  ;;  %v287_v38 = vmul.f32 %v711_v0, %v248_v24  ;;  %v627_v39 = vunpack.c.h.bf16 %v651_v19 }
  0x2d   : > { %v419_v36 = vadd.f32 %v622_v23, %v323_v26  ;;  %v450_v41 = vmax.f32 %v418_v32, 0.0  ;;  %v325_v42 = vadd.f32 %v728_v1, %v286_v33  ;;  %v288_v43 = vmul.f32 %v711_v0, %v249_v29 }
  0x2e   : > { %481 = vst [vmem:[%s759_s6 + $0xa0] sm:$0xff] %v449_v31  ;;  %v630_v44 = vunpack.c.l.bf16 %v652_v30  ;;  %v420_v47 = vadd.f32 %v623_v28, %v324_v37  ;;  %v326_v48 = vadd.f32 %v728_v1, %v287_v38  ;;  %v289_v49 = vmul.f32 %v711_v0, %v250_v35 }
  0x2f   : > { %v451_v46 = vmax.f32 %v419_v36, 0.0  ;;  %482 = vst [vmem:[%s759_s6 + $0xa8] sm:$0xff] %v450_v41  ;;  %v421_v51 = vadd.f32 %v626_v34, %v325_v42  ;;  %v327_v52 = vadd.f32 %v728_v1, %v288_v43  ;;  %v631_v53 = vunpack.c.h.bf16 %v652_v30 }
  0x30   : > { %v290_v54 = vmul.f32 %v711_v0, %v251_v40  ;;  %v452_v56 = vmax.f32 %v420_v47, 0.0  ;;  %v422_v57 = vadd.f32 %v627_v39, %v326_v48  ;;  %v328_v58 = vadd.f32 %v728_v1, %v289_v49 }
  0x31   : > { %483 = vst [vmem:[%s759_s6 + $0xb0] sm:$0xff] %v451_v46  ;;  %v634_v59 = vunpack.c.l.bf16 %v653_v45  ;;  %v453_v61 = vmax.f32 %v421_v51, 0.0  ;;  %v423_v62 = vadd.f32 %v630_v44, %v327_v52  ;;  %v291_v2 = vmul.f32 %v711_v0, %v252_v50 }
  0x32   : > { %v329_v63 = vadd.f32 %v728_v1, %v290_v54  ;;  %484 = vst [vmem:[%s759_s6 + $0xb8] sm:$0xff] %v452_v56  ;;  %v454_v4 = vmax.f32 %v422_v57, 0.0  ;;  %v424_v5 = vadd.f32 %v631_v53, %v328_v58  ;;  %v635_v6 = vunpack.c.h.bf16 %v653_v45 }
  0x33   : > { %v292_v7 = vmul.f32 %v711_v0, %v253_v55  ;;  %485 = vst [vmem:[%s759_s6 + $0xc0] sm:$0xff] %v453_v61  ;;  %v455_v8 = vmax.f32 %v423_v62, 0.0  ;;  %v330_v10 = vadd.f32 %v728_v1, %v291_v2  ;;  %v638_v11 = vunpack.c.l.bf16 %v654_v60 }
  0x34   : > { %v425_v9 = vadd.f32 %v634_v59, %v329_v63  ;;  %486 = vst [vmem:[%s759_s6 + $0xc8] sm:$0xff] %v454_v4  ;;  %v456_v12 = vmax.f32 %v424_v5, 0.0  ;;  %v293_v14 = vmul.f32 %v711_v0, %v254_v3  ;;  %v639_v15 = vunpack.c.h.bf16 %v654_v60 }
  0x35   : > { %v331_v13 = vadd.f32 %v728_v1, %v292_v7  ;;  %487 = vst [vmem:[%s759_s6 + $0xd0] sm:$0xff] %v455_v8  ;;  %v426_v17 = vadd.f32 %v635_v6, %v330_v10 }
  0x36   : > { %v457_v16 = vmax.f32 %v425_v9, 0.0  ;;  %488 = vst [vmem:[%s759_s6 + $0xd8] sm:$0xff] %v456_v12  ;;  %v332_v19 = vadd.f32 %v728_v1, %v293_v14 }
  0x37   : > { %v427_v18 = vadd.f32 %v638_v11, %v331_v13  ;;  %v458_v20 = vmax.f32 %v426_v17, 0.0 }
  0x38   : > { %489 = vst [vmem:[%s759_s6 + $0xe0] sm:$0xff] %v457_v16  ;;  %v428_v22 = vadd.f32 %v639_v15, %v332_v19 }
  0x39   : > { %v459_v21 = vmax.f32 %v427_v18, 0.0  ;;  %490 = vst [vmem:[%s759_s6 + $0xe8] sm:$0xff] %v458_v20 }
  0x3a   : > { %v460_v23 = vmax.f32 %v428_v22, 0.0 }
  0x3b   : > { %491 = vst [vmem:[%s759_s6 + $0xf0] sm:$0xff] %v459_v21 }
  0x3c   : > { %492 = vst [vmem:[%s759_s6 + $0xf8] sm:$0xff] %v460_v23 }
  0x3d PF: > { %s14_s15 = sadd.s32 1, %s669_s15  }
  0x3e   : > { %p11_p4 = scmp.ge.s32.totalorder %s14_s15, 4  }
  0x40   :  { %13 = sbr.rel (!%p11_p4) target bundleno = 1 (0x1), region = 69 }

// kernel: basic_block_forward.3
= control target key start
LH: loop header
LB: loop body
LE: loop exit
PB: predicated region body
PF: predicated region fallthrough
CT: control target
= control target key end

     0   :  { %s7200_s12 = smov 0   ;;  %s9760_s0 = inlined_call_operand.vmem [shape: bf16[2,16,16,128], index: 0, kind: input, shape index: {}]   ;;  %s9761_s1 = inlined_call_operand.vmem [shape: bf16[9,128,128], index: 1, kind: input, shape index: {}]   ;;  %s9762_s2 = inlined_call_operand.vmem [shape: bf16[2,16,16,128], index: 2, kind: output, shape index: {0}]   ;;  %s9763_s3 = inlined_call_operand.vmem [shape: f32[2,2,128], index: 3, kind: output, shape index: {1}]  }
   0x1 LB: > { %s5729_s13 = sadd.s32 4294967295, %s7177_s12   ;;  %p5733_p0 = scmp.ge.s32.totalorder %s7177_s12, 1  ;;  %s7177_s12 = sphi %s7200_s12, %s14_s12  }
   0x2   : > { %p140_p1 = scmp.lt.s32.totalorder %s7177_s12, 3 }
   0x4   : > { %p141_p2 = pnand %p5733_p0, %p140_p1 }
   0x6   : > { %144 = sbr.rel (%p141_p2) target bundleno = 662 (0x296), region = 28 }
   0xb   : > { %v6967_v0 = vld [vmem:[%s9761_s1 + $0x78] sm:$0xff]   ;;  %v7214_v1 = vld [vmem:[%s9761_s1 + $0x70] sm:$0xff]   ;;  %v7179_v2 = vmov 0   ;;  %p168_p3 = scmp.lt.s32.totalorder %s5729_s13, 1  ;;  %v6969_v3 = vld [vmem:[%s9761_s1 + $0x68] sm:$0xff]   ;;  %vm593_vm1 = vcmask 1043456  }
   0xc   : > { %183 = vst [vmem:[#allocation2] sm:$0xf] %v7179_v2  ;;  %184 = vst [vmem:[#allocation2 + $0x4] sm:$0xf] %v7179_v2  ;;  %6510 = vmatprep.subr.bf16.mxu0 %v6967_v0  ;;  %6942 = vmatprep.subr.bf16.mxu1 %v6967_v0  ;;  %v6970_v4 = vld [vmem:[%s9761_s1 + $0x60] sm:$0xff]   ;;  %v6971_v10 = vld [vmem:[%s9761_s1 + $0x58] sm:$0xff]  }
   0xd   : > { %185 = vst [vmem:[#allocation2 + $0x8] sm:$0x1] %v7179_v2  ;;  %186 = vst [vmem:[#allocation2 + $0xc] sm:$0xf] %v7179_v2  ;;  %6511 = vmatpush3.bf16.msra.mxu0 %v6967_v0  ;;  %6950 = vmatpush3.bf16.msra.mxu1 %v6967_v0  ;;  %s10182_s13 = smov (!%p168_p3, %s5729_s13), 1  ;;  %vm600_vm2 = vcmask 1040384  }
   0xe   : > { %187 = vst [vmem:[#allocation2 + $0x10] sm:$0xf] %v7179_v2  ;;  %188 = vst [vmem:[#allocation2 + $0x14] sm:$0x1] %v7179_v2  ;;  %6512 = vmatprep.subr.bf16.mxu0 %v7214_v1  ;;  %6943 = vmatprep.subr.bf16.mxu1 %v7214_v1  ;;  %s6165_s20 = sshll.u32 %s10182_s13, 7  ;;  %v9815_v24 = vmov 0 }
   0xf   : > { %189 = vst [vmem:[#allocation2 + $0x18] sm:$0xf] %v7179_v2  ;;  %190 = vst [vmem:[#allocation2 + $0x1c] sm:$0xf] %v7179_v2  ;;  %s7238_s25 = scalar_lea.vmem %s9760_s0, %s6165_s20  ;;  %vm774_vm0 = vsmask.f32 3328  ;;  %s9655_s21 = scalar_lea.vmem %s9762_s2, %s6165_s20 }
  0x10   : > { %191 = vst [vmem:[#allocation2 + $0x20] sm:$0x1] %v7179_v2  ;;  %192 = vst [vmem:[#allocation2 + $0x24] sm:$0xf] %v7179_v2  ;;  %v251_v14 = vld [vmem:[%s7238_s25 + $0x38] sm:$0xf] }
  0x11   : > { %193 = vst [vmem:[#allocation2 + $0x28] sm:$0xf] %v7179_v2  ;;  %194 = vst [vmem:[#allocation2 + $0x2c] sm:$0x1] %v7179_v2  ;;  %6513 = vmatpush3.bf16.msra.mxu0 %v7214_v1  ;;  %6951 = vmatpush3.bf16.msra.mxu1 %v7214_v1  ;;  %vm775_vm3 = vsmask.f32 7440 }
  0x12   : > { %195 = vst [vmem:[#allocation2 + $0x30] sm:$0xf] %v7179_v2  ;;  %196 = vst [vmem:[#allocation2 + $0x34] sm:$0xf] %v7179_v2  ;;  %6514 = vmatprep.subr.bf16.mxu0 %v6969_v3  ;;  %6944 = vmatprep.subr.bf16.mxu1 %v6969_v3  ;;  %v252_v17 = vld [vmem:[%s7238_s25 + $0x3c] sm:$0xf] }
  0x13   : > { %197 = vst [vmem:[#allocation2 + $0x38] sm:$0x1] %v7179_v2  ;;  %198 = vst [vmem:[#allocation2 + $0x3c] sm:$0xf] %v7179_v2  ;;  %v710_v5 = vld [vmem:[#allocation2] sm:$0xf] }
  0x14   : > { %199 = vst [vmem:[#allocation2 + $0x40] sm:$0xf] %v7179_v2  ;;  %200 = vst [vmem:[#allocation2 + $0x44] sm:$0x1] %v7179_v2  ;;  %v711_v6 = vld [vmem:[#allocation2 + $0x4] sm:$0xf] }
  0x15   : > { %201 = vst [vmem:[#allocation2 + $0x48] sm:$0xf] %v7179_v2  ;;  %202 = vst [vmem:[#allocation2 + $0x4c] sm:$0xf] %v7179_v2  ;;  %v758_v7 = vld [vmem:[#allocation2 + $0x8] sm:$0x1]  ;;  %6515 = vmatpush3.bf16.msra.mxu0 %v6969_v3  ;;  %6952 = vmatpush3.bf16.msra.mxu1 %v6969_v3 }
  0x16   : > { %203 = vst [vmem:[#allocation2 + $0x50] sm:$0x1] %v7179_v2  ;;  %204 = vst [vmem:[#allocation2 + $0x54] sm:$0xf] %v7179_v2  ;;  %v778_v8 = vshrl.u32 %v710_v5, 16  ;;  %v781_v9 = vshll.u32 %v710_v5, 16  ;;  %6516 = vmatprep.subr.bf16.mxu0 %v6970_v4  ;;  %6945 = vmatprep.subr.bf16.mxu1 %v6970_v4 }
  0x17   : > { %205 = vst [vmem:[#allocation2 + $0x58] sm:$0xf] %v7179_v2  ;;  %206 = vst [vmem:[#allocation2 + $0x5c] sm:$0x1] %v7179_v2  ;;  %v787_v11 = vshll.u32 %v711_v6, 16  ;;  %v791_v12 = vshrl.u32 %v711_v6, 16 }
  0x18   : > { %207 = vst [vmem:[#allocation2 + $0x60] sm:$0xf] %v7179_v2  ;;  %208 = vst [vmem:[#allocation2 + $0x64] sm:$0xf] %v7179_v2  ;;  %v797_v13 = vshll.u32 %v758_v7, 16  ;;  %v780_v15 = vrot.slane %v778_v8, 4 }
  0x19   : > { %209 = vst [vmem:[#allocation2 + $0x68] sm:$0x1] %v7179_v2  ;;  %210 = vst [vmem:[#allocation2 + $0x6c] sm:$0xf] %v7179_v2  ;;  %v783_v16 = vrot.slane %v781_v9, 5  ;;  %v789_v18 = vrot.slane %v787_v11, 5  ;;  %6517 = vmatpush3.bf16.msra.mxu0 %v6970_v4  ;;  %6953 = vmatpush3.bf16.msra.mxu1 %v6970_v4 }
  0x1a   : > { %211 = vst [vmem:[#allocation2 + $0x70] sm:$0xf] %v7179_v2  ;;  %212 = vst [vmem:[#allocation2 + $0x74] sm:$0x1] %v7179_v2  ;;  %v793_v19 = vrot.slane %v791_v12, 4  ;;  %v392_v21 = vshrl.u32 %v251_v14, 16  ;;  %6518 = vmatprep.subr.bf16.mxu0 %v6971_v10  ;;  %6946 = vmatprep.subr.bf16.mxu1 %v6971_v10 }
  0x1b   : > { %213 = vst [vmem:[#allocation2 + $0x78] sm:$0xf] %v7179_v2  ;;  %214 = vst [vmem:[#allocation2 + $0x7c] sm:$0xf] %v7179_v2  ;;  %vm269_vm4 = vsmask.f32 256  ;;  %v784_v20 = vor.u32 %v783_v16, %v780_v15 }
  0x1c   : > { %215 = vst [vmem:[#allocation2 + $0x80] sm:$0x1] %v7179_v2  ;;  %216 = vst [vmem:[#allocation2 + $0x84] sm:$0xf] %v7179_v2  ;;  %vm270_vm5 = vsmask.f32 4368  ;;  %v794_v25 = vor.u32 %v793_v19, %v789_v18 }
  0x1d   : > { %217 = vst [vmem:[#allocation2 + $0x88] sm:$0xf] %v7179_v2  ;;  %218 = vst [vmem:[#allocation2 + $0x8c] sm:$0x1] %v7179_v2  ;;  %v395_v22 = vshll.u32 %v251_v14, 16  ;;  %v400_v23 = vshrl.u32 %v252_v17, 16  ;;  %6519 = vmatpush3.bf16.msra.mxu0 %v6971_v10  ;;  %6954 = vmatpush3.bf16.msra.mxu1 %v6971_v10 }
  0x1e   : > { %219 = vst [vmem:[#allocation2 + $0x90] sm:$0xf] %v7179_v2  ;;  %220 = vst [vmem:[#allocation2 + $0x94] sm:$0xf] %v7179_v2  ;;  %v799_v26 = vrot.slane %v797_v13, 5  ;;  %v403_v27 = vshll.u32 %v252_v17, 16 }
  0x1f   : > { %221 = vst [vmem:[#allocation2 + $0x98] sm:$0x1] %v7179_v2  ;;  %222 = vst [vmem:[#allocation2 + $0x9c] sm:$0xf] %v7179_v2  ;;  %vm594_vm7 = vsmask.f32 7938 }
  0x20   : > { %223 = vst [vmem:[#allocation2 + $0xa0] sm:$0xf] %v7179_v2  ;;  %224 = vst [vmem:[#allocation2 + $0xa4] sm:$0x1] %v7179_v2  ;;  %v647_v28 = vld [vmem:[#allocation2 + $0x60] sm:$0xf] }
  0x21   : > { %225 = vst [vmem:[#allocation2 + $0xa8] sm:$0xf] %v7179_v2  ;;  %226 = vst [vmem:[#allocation2 + $0xac] sm:$0xf] %v7179_v2  ;;  %v785_v29 = vrot.slane %v784_v20, 4  ;;  %v394_v31 = vrot.slane %v392_v21, 7 }
  0x22   : > { %227 = vst [vmem:[#allocation2 + $0xb0] sm:$0x1] %v7179_v2  ;;  %228 = vst [vmem:[#allocation2 + $0xb4] sm:$0xf] %v7179_v2  ;;  %v402_v32 = vrot.slane %v400_v23, 7  ;;  %v6972_v34 = vld [vmem:[%s9761_s1 + $0x50] sm:$0xff]  }
  0x23   : > { %229 = vst [vmem:[#allocation2 + $0xb8] sm:$0xf] %v7179_v2  ;;  %230 = vst [vmem:[#allocation2 + $0xbc] sm:$0x1] %v7179_v2  ;;  %v237_v33 = vld [vmem:[%s7238_s25] sm:$0xf]  ;;  %v397_v41 = vor.u32 %v395_v22, %v394_v31  ;;  %6520 = vmatprep.subr.bf16.mxu0 %v6972_v34  ;;  %6947 = vmatprep.subr.bf16.mxu1 %v6972_v34 }
  0x24   : > { %231 = vst [vmem:[#allocation2 + $0xc0] sm:$0xf] %v7179_v2  ;;  %232 = vst [vmem:[#allocation2 + $0xc4] sm:$0xf] %v7179_v2  ;;  %v795_v35 = vrot.slane %v794_v25, 4  ;;  %v273_v38 = vshrl.u32 %v237_v33, 16  ;;  %v405_v43 = vor.u32 %v403_v27, %v402_v32  ;;  %6521 = vmatpush3.bf16.msra.mxu0 %v6972_v34  ;;  %6955 = vmatpush3.bf16.msra.mxu1 %v6972_v34 }
  0x25   : > { %233 = vst [vmem:[#allocation2 + $0xc8] sm:$0x1] %v7179_v2  ;;  %234 = vst [vmem:[#allocation2 + $0xcc] sm:$0xf] %v7179_v2  ;;  %v238_v37 = vld [vmem:[%s7238_s25 + $0x4] sm:$0xf] }
  0x26   : > { %235 = vst [vmem:[#allocation2 + $0xd0] sm:$0xf] %v7179_v2  ;;  %236 = vst [vmem:[#allocation2 + $0xd4] sm:$0x1] %v7179_v2  ;;  %v276_v39 = vshll.u32 %v237_v33, 16  ;;  %v398_v42 = vrot.slane %v394_v31, 4 }
  0x27   : > { %vm7246_vm6 = vmor %vm774_vm0, %vm775_vm3  ;;  %v9822_v44 = vmov 0  ;;  %v651_v45 = vld [vmem:[#allocation2 + $0x68] sm:$0x1]  ;;  %v407_v47 = vrot.slane %v402_v32, 4  ;;  %v275_v48 = vrot.slane %v273_v38, 7  ;;  %v281_v49 = vshrl.u32 %v238_v37, 16 }
  0x28   : > { %v9816_v24 = vsel %vm7246_vm6, 4294967295, %v9815_v24  ;;  %vm7251_vm8 = vmor %vm269_vm4, %vm270_vm5  ;;  %v790_v40 = vsel %vm7246_vm6, %v785_v29, %v789_v18  ;;  %v800_v46 = vsel %vm7246_vm6, %v795_v35, %v799_v26  ;;  %v253_v50 = vld [vmem:[%s7238_s25 + $0x40] sm:$0xf]  ;;  %v6973_v51 = vld [vmem:[%s9761_s1 + $0x48] sm:$0xff]   ;;  %v284_v55 = vshll.u32 %v238_v37, 16  ;;  %s5738_s20 = sshll.u32 %s10182_s13, 1 }
  0x29   : > { %9817 = vst [vmem:[#allocation3_spill] sm:$0xff] %v9816_v24  ;;  %vm7260_vm9 = vmand %vm593_vm1, %vm594_vm7  ;;  %v5755_v52 = vcombine.low %v790_v40, %v800_v46  ;;  %v406_v53 = vsel %vm7251_vm8, %v398_v42, %v405_v43  ;;  %v596_v56 = vld [vmem:[#allocation2 + $0xc] sm:$0xf]  ;;  %v254_v57 = vld [vmem:[%s7238_s25 + $0x44] sm:$0xf]  ;;  %v278_v59 = vor.u32 %v276_v39, %v275_v48  ;;  %v279_v60 = vrot.slane %v275_v48, 4  ;;  %6522 = vmatprep.subr.bf16.mxu0 %v6973_v51  ;;  %s181_s23 = scalar_lea.vmem %s9763_s3, %s5738_s20 }
  0x2a   : > { %vm7269_vm10 = vmand %vm600_vm2, %vm269_vm4  ;;  %v648_v54 = vsel %vm7260_vm9, %v397_v41, %v647_v28  ;;  %650 = vst [vmem:[#allocation2 + $0x64] sm:$0xf] %v406_v53  ;;  %v283_v61 = vrot.slane %v281_v49, 7  ;;  %v602_v62 = vld [vmem:[#allocation2 + $0x14] sm:$0x1]  ;;  %v409_v63 = vshrl.u32 %v253_v50, 16  ;;  %6948 = vmatprep.subr.bf16.mxu1 %v6973_v51  ;;  %6523 = vmatpush3.bf16.msra.mxu0 %v6973_v51 }
  0x2b   : > { %v9823_v44 = vsel %vm7269_vm10, 4294967295, %v9822_v44  ;;  %649 = vst [vmem:[#allocation2 + $0x60] sm:$0xf] %v648_v54  ;;  %v652_v58 = vsel %vm7269_vm10, %v407_v47, %v651_v45  ;;  %6526 = vmatprep.mubr.bf16.mxu0 %v5755_v52  ;;  %v412_v0 = vshll.u32 %v253_v50, 16  ;;  %v417_v1 = vshrl.u32 %v254_v57, 16  ;;  %v6974_v3 = vld [vmem:[%s9761_s1 + $0x40] sm:$0xff]   ;;  %6956 = vmatpush3.bf16.msra.mxu1 %v6973_v51 }
  0x2c   : > { %9824 = vst [vmem:[#allocation4_spill] sm:$0xff] %v9823_v44  ;;  %653 = vst [vmem:[#allocation2 + $0x68] sm:$0x1] %v652_v58  ;;  %v420_v2 = vshll.u32 %v254_v57, 16  ;;  %v286_v4 = vor.u32 %v284_v55, %v283_v61  ;;  %v288_v5 = vrot.slane %v283_v61, 4  ;;  %v597_v6 = vsel %vm7260_vm9, %v278_v59, %v596_v56  ;;  %v7300_v19 = vld [vmem:[%s9761_s1 + $0x38] sm:$0xff]   ;;  %6524 = vmatprep.subr.bf16.mxu0 %v6974_v3 }
  0x2d   : > { %v654_v7 = vld [vmem:[#allocation2 + $0x6c] sm:$0xf]  ;;  %v658_v8 = vld [vmem:[#allocation2 + $0x74] sm:$0x1]  ;;  %598 = vst [vmem:[#allocation2 + $0xc] sm:$0xf] %v597_v6  ;;  %6949 = vmatprep.subr.bf16.mxu1 %v6974_v3 }
  0x2e   : > { %v411_v9 = vrot.slane %v409_v63, 7  ;;  %v419_v10 = vrot.slane %v417_v1, 7  ;;  %v287_v11 = vsel %vm7251_vm8, %v279_v60, %v286_v4  ;;  %v603_v12 = vsel %vm7269_vm10, %v288_v5, %v602_v62  ;;  %v239_v13 = vld [vmem:[%s7238_s25 + $0x8] sm:$0xf]  ;;  %v240_v18 = vld [vmem:[%s7238_s25 + $0xc] sm:$0xf]  ;;  %6525 = vmatpush3.bf16.msra.mxu0 %v6974_v3 }
  0x2f   : > { %599 = vst [vmem:[#allocation2 + $0x10] sm:$0xf] %v287_v11  ;;  %604 = vst [vmem:[#allocation2 + $0x14] sm:$0x1] %v603_v12  ;;  %v290_v20 = vshrl.u32 %v239_v13, 16  ;;  %v298_v21 = vshrl.u32 %v240_v18, 16  ;;  %6957 = vmatpush3.bf16.msra.mxu1 %v6974_v3 }
  0x30   : > { %v414_v14 = vor.u32 %v412_v0, %v411_v9  ;;  %v415_v15 = vrot.slane %v411_v9, 4  ;;  %v422_v16 = vor.u32 %v420_v2, %v419_v10  ;;  %v424_v17 = vrot.slane %v419_v10, 4  ;;  %v7311_v28 = vld [vmem:[%s9761_s1 + $0xf8] sm:$0xff]   ;;  %6558 = vmatprep.subr.bf16.mxu1 %v7300_v19 }
  0x31   : > { %v727_v23 = vld [vmem:[#allocation2 + $0x64] sm:$0xf]  ;;  %v301_v29 = vshll.u32 %v240_v18, 16  ;;  %v292_v38 = vrot.slane %v290_v20, 7  ;;  %v293_v39 = vshll.u32 %v239_v13, 16  ;;  %v7313_v40 = vrot.slane %v298_v21, 7  ;;  %6606 = vmatprep.subr.bf16.mxu0 %v7311_v28 }
  0x32   : > { %v726_v22 = vld [vmem:[#allocation2 + $0x60] sm:$0xf]  ;;  %v423_v25 = vsel %vm7251_vm8, %v415_v15, %v422_v16  ;;  %v655_v26 = vsel %vm7260_vm9, %v414_v14, %v654_v7  ;;  %v659_v27 = vsel %vm7269_vm10, %v424_v17, %v658_v8  ;;  %v979_v34 = vshll.u32 %v727_v23, 16  ;;  %v605_v15 = vld [vmem:[#allocation2 + $0x18] sm:$0xf] }
  0x33   : > { %v766_v31 = vld [vmem:[#allocation2 + $0x68] sm:$0x1]  ;;  %v970_v32 = vshrl.u32 %v726_v22, 16  ;;  %v973_v33 = vshll.u32 %v726_v22, 16  ;;  %v983_v35 = vshrl.u32 %v727_v23, 16  ;;  %v296_v54 = vrot.slane %v292_v38, 4 }
  0x34   : > { %656 = vst [vmem:[#allocation2 + $0x6c] sm:$0xf] %v655_v26  ;;  %657 = vst [vmem:[#allocation2 + $0x70] sm:$0xf] %v423_v25  ;;  %v989_v37 = vshll.u32 %v766_v31, 16  ;;  %v981_v43 = vrot.slane %v979_v34, 5  ;;  %v303_v55 = vor.u32 %v301_v29, %v7313_v40  ;;  %v295_v63 = vor.u32 %v293_v39, %v292_v38 }
  0x35   : > { %660 = vst [vmem:[#allocation2 + $0x74] sm:$0x1] %v659_v27  ;;  %v972_v41 = vrot.slane %v970_v32, 4  ;;  %v975_v42 = vrot.slane %v973_v33, 5  ;;  %v985_v45 = vrot.slane %v983_v35, 4  ;;  %v305_v27 = vrot.slane %v7313_v40, 4 }
  0x36   : > { %v712_v46 = vld [vmem:[#allocation2 + $0xc] sm:$0xf]  ;;  %v991_v47 = vrot.slane %v989_v37, 5  ;;  %v713_v52 = vld [vmem:[#allocation2 + $0x10] sm:$0xf]  ;;  %v304_v5 = vsel %vm7251_vm8, %v296_v54, %v303_v55  ;;  %v606_v34 = vsel %vm7260_vm9, %v295_v63, %v605_v15  ;;  %v6982_v15 = vld [vmem:[%s9761_s1 + $0xe0] sm:$0xff]  }
  0x37   : > { %v802_v48 = vshrl.u32 %v712_v46, 16  ;;  %v805_v49 = vshll.u32 %v712_v46, 16  ;;  %v976_v50 = vor.u32 %v975_v42, %v972_v41  ;;  %v986_v51 = vor.u32 %v985_v45, %v981_v43  ;;  %v759_v53 = vld [vmem:[#allocation2 + $0x14] sm:$0x1]  ;;  %608 = vst [vmem:[#allocation2 + $0x1c] sm:$0xf] %v304_v5 }
  0x38   : > { %v811_v58 = vshll.u32 %v713_v52, 16  ;;  %v815_v59 = vshrl.u32 %v713_v52, 16  ;;  %v821_v62 = vshll.u32 %v759_v53, 16  ;;  %v609_v16 = vld [vmem:[#allocation2 + $0x20] sm:$0x1]  ;;  %v6978_v39 = vld [vmem:[%s9761_s1 + $0xf0] sm:$0xff]  }
  0x39   : > { %v804_v56 = vrot.slane %v802_v48, 4  ;;  %v807_v57 = vrot.slane %v805_v49, 5  ;;  %v977_v60 = vrot.slane %v976_v50, 4  ;;  %v987_v61 = vrot.slane %v986_v51, 4  ;;  %v255_v22 = vld [vmem:[%s7238_s25 + $0x48] sm:$0xf] }
  0x3a   : > { %v813_v1 = vrot.slane %v811_v58, 5  ;;  %v817_v2 = vrot.slane %v815_v59, 4  ;;  %v823_v8 = vrot.slane %v821_v62, 5  ;;  %v256_v29 = vld [vmem:[%s7238_s25 + $0x4c] sm:$0xf]  ;;  %v610_v40 = vsel %vm7269_vm10, %v305_v27, %v609_v16  ;;  %v6977_v5 = vld [vmem:[%s9761_s1 + $0x30] sm:$0xff]  }
  0x3b   : > { %v808_v0 = vor.u32 %v807_v57, %v804_v56  ;;  %v728_v3 = vld [vmem:[#allocation2 + $0x6c] sm:$0xf]  ;;  %v729_v4 = vld [vmem:[#allocation2 + $0x70] sm:$0xf]  ;;  %v982_v6 = vsel %vm7246_vm6, %v977_v60, %v981_v43  ;;  %v992_v7 = vsel %vm7246_vm6, %v987_v61, %v991_v47  ;;  %607 = vst [vmem:[#allocation2 + $0x18] sm:$0xf] %v606_v34 }
  0x3c   : > { %v767_v9 = vld [vmem:[#allocation2 + $0x74] sm:$0x1]  ;;  %v994_v10 = vshrl.u32 %v728_v3, 16  ;;  %v5763_v11 = vcombine.low %v982_v6, %v992_v7  ;;  %v818_v13 = vor.u32 %v817_v2, %v813_v1  ;;  %v997_v14 = vshll.u32 %v728_v3, 16  ;;  %v241_v35 = vld [vmem:[%s7238_s25 + $0x10] sm:$0xf] }
  0x3d   : > { %v809_v12 = vrot.slane %v808_v0, 4  ;;  %v1003_v18 = vshll.u32 %v729_v4, 16  ;;  %v1007_v20 = vshrl.u32 %v729_v4, 16  ;;  %v1013_v21 = vshll.u32 %v767_v9, 16  ;;  %611 = vst [vmem:[#allocation2 + $0x20] sm:$0x1] %v610_v40 }
  0x3e   : > { %v996_v17 = vrot.slane %v994_v10, 4  ;;  %6542 = vmatprep.mubr.bf16.mxu1 %v5763_v11  ;;  %v819_v25 = vrot.slane %v818_v13, 4  ;;  %v999_v26 = vrot.slane %v997_v14, 5  ;;  %v426_v41 = vshrl.u32 %v255_v22, 16  ;;  %v661_v47 = vld [vmem:[#allocation2 + $0x78] sm:$0xf] }
  0x3f   : > { %v814_v23 = vsel %vm7246_vm6, %v809_v12, %v813_v1  ;;  %v1005_v31 = vrot.slane %v1003_v18, 5  ;;  %v1009_v32 = vrot.slane %v1007_v20, 4  ;;  %v1015_v33 = vrot.slane %v1013_v21, 5  ;;  %v715_v49 = vld [vmem:[#allocation2 + $0x1c] sm:$0xf]  ;;  %v6980_v59 = vld [vmem:[%s9761_s1 + $0xe8] sm:$0xff]  }
  0x40   : > { %v824_v37 = vsel %vm7246_vm6, %v819_v25, %v823_v8  ;;  %v1000_v38 = vor.u32 %v999_v26, %v996_v17  ;;  %v429_v45 = vshll.u32 %v255_v22, 16  ;;  %v434_v46 = vshrl.u32 %v256_v29, 16  ;;  %v242_v52 = vld [vmem:[%s7238_s25 + $0x14] sm:$0xf]  ;;  %v665_v58 = vld [vmem:[#allocation2 + $0x80] sm:$0x1] }
  0x41   : > { %v5756_v42 = vcombine.low %v814_v23, %v824_v37  ;;  %v1010_v43 = vor.u32 %v1009_v32, %v1005_v31  ;;  %v428_v50 = vrot.slane %v426_v41, 7  ;;  %v437_v51 = vshll.u32 %v256_v29, 16  ;;  %v612_v8 = vld [vmem:[#allocation2 + $0x24] sm:$0xf]  ;;  %v257_v14 = vld [vmem:[%s7238_s25 + $0x50] sm:$0xf] }
  0x42   : > { %v1001_v48 = vrot.slane %v1000_v38, 4  ;;  %v307_v53 = vshrl.u32 %v241_v35, 16  ;;  %v835_v55 = vshll.u32 %v715_v49, 16  ;;  %v839_v56 = vshrl.u32 %v715_v49, 16  ;;  %v714_v9 = vld [vmem:[#allocation2 + $0x18] sm:$0xf] }
  0x43   : > { %6527 = vmatmul.mubr.bf16.vlgmr.msra.gmra.mxu0 %v5756_v42  ;;  %v1011_v54 = vrot.slane %v1010_v43, 4  ;;  %v436_v57 = vrot.slane %v434_v46, 7  ;;  %v431_v61 = vor.u32 %v429_v45, %v428_v50  ;;  %v432_v62 = vrot.slane %v428_v50, 4  ;;  %v616_v22 = vld [vmem:[#allocation2 + $0x2c] sm:$0x1]  ;;  %v6984_v50 = vld [vmem:[%s9761_s1 + $0xd8] sm:$0xff]  }
  0x44   : > { %v1006_v60 = vsel %vm7246_vm6, %v1001_v48, %v1005_v31  ;;  %6607 = vmatpush3.bf16.msra.mxu0 %v7311_v28  ;;  %v309_v63 = vrot.slane %v307_v53, 7  ;;  %v7348_v1 = vrot.slane %v835_v55, 5  ;;  %v841_v2 = vrot.slane %v839_v56, 4  ;;  %v760_v16 = vld [vmem:[#allocation2 + $0x20] sm:$0x1] }
  0x45   : > { %v1016_v0 = vsel %vm7246_vm6, %v1011_v54, %v1015_v33  ;;  %6608 = vmatprep.subr.bf16.mxu0 %v6978_v39  ;;  %v439_v3 = vor.u32 %v437_v51, %v436_v57  ;;  %v441_v6 = vrot.slane %v436_v57, 4  ;;  %v662_v28 = vsel %vm7260_vm9, %v431_v61, %v661_v47  ;;  %v258_v29 = vld [vmem:[%s7238_s25 + $0x54] sm:$0xf]  ;;  %v7372_v37 = vld [vmem:[%s7238_s25 + $0x18] sm:$0xf]  ;;  %v6981_v56 = vld [vmem:[%s9761_s1 + $0x20] sm:$0xff]  }
  0x46   : > { %v5764_v4 = vcombine.low %v1006_v60, %v1016_v0  ;;  %v310_v7 = vshll.u32 %v241_v35, 16  ;;  %v842_v10 = vor.u32 %v841_v2, %v7348_v1  ;;  %663 = vst [vmem:[#allocation2 + $0x78] sm:$0xf] %v662_v28  ;;  %v313_v12 = vrot.slane %v309_v63, 4  ;;  %v6979_v35 = vld [vmem:[%s9761_s1 + $0x28] sm:$0xff]  }
  0x47   : > { %v440_v11 = vsel %vm7251_vm8, %v432_v62, %v439_v3  ;;  %v315_v13 = vshrl.u32 %v242_v52, 16  ;;  %v826_v17 = vshrl.u32 %v714_v9, 16  ;;  %v829_v18 = vshll.u32 %v714_v9, 16  ;;  %v6986_v9 = vld [vmem:[%s9761_s1 + $0xd0] sm:$0xff]  }
  0x48   : > { %6543 = vmatmul.mubr.bf16.vlgmr.msra.gmra.mxu1 %v5764_v4  ;;  %6609 = vmatpush3.bf16.msra.mxu0 %v6978_v39  ;;  %664 = vst [vmem:[#allocation2 + $0x7c] sm:$0xf] %v440_v11  ;;  %v666_v20 = vsel %vm7269_vm10, %v441_v6, %v665_v58  ;;  %v312_v21 = vor.u32 %v310_v7, %v309_v63  ;;  %v843_v23 = vrot.slane %v842_v10, 4  ;;  %v845_v25 = vshll.u32 %v760_v16, 16  ;;  %v668_v4 = vld [vmem:[#allocation2 + $0x84] sm:$0xf] }
  0x49   : > { %6559 = vmatpush3.bf16.msra.mxu1 %v7300_v19  ;;  %667 = vst [vmem:[#allocation2 + $0x80] sm:$0x1] %v666_v20  ;;  %v317_v26 = vrot.slane %v315_v13, 7  ;;  %v318_v27 = vshll.u32 %v242_v52, 16  ;;  %6610 = vmatprep.subr.bf16.mxu0 %v6980_v59  ;;  %v828_v31 = vrot.slane %v826_v17, 4  ;;  %v831_v32 = vrot.slane %v829_v18, 5 }
  0x4a   : > { %6560 = vmatprep.subr.bf16.mxu1 %v6977_v5  ;;  %v613_v33 = vsel %vm7260_vm9, %v312_v21, %v612_v8  ;;  %v443_v34 = vshrl.u32 %v257_v14, 16  ;;  %v847_v19 = vrot.slane %v845_v25, 5  ;;  %v446_v40 = vshll.u32 %v257_v14, 16  ;;  %v672_v8 = vld [vmem:[#allocation2 + $0x8c] sm:$0x1]  ;;  %v6983_v14 = vld [vmem:[%s9761_s1 + $0x18] sm:$0xff]  }
  0x4b   : > { %v320_v38 = vor.u32 %v318_v27, %v317_v26  ;;  %v322_v39 = vrot.slane %v317_v26, 4  ;;  %614 = vst [vmem:[#allocation2 + $0x24] sm:$0xf] %v613_v33  ;;  %v832_v41 = vor.u32 %v831_v32, %v828_v31  ;;  %v451_v43 = vshrl.u32 %v258_v29, 16  ;;  %v6985_v25 = vld [vmem:[%s9761_s1 + $0x10] sm:$0xff]   ;;  %v6988_v26 = vld [vmem:[%s9761_s1 + $0xc8] sm:$0xff]  }
  0x4c   : > { %v445_v42 = vrot.slane %v443_v34, 7  ;;  %v454_v45 = vshll.u32 %v258_v29, 16  ;;  %6611 = vmatpush3.bf16.msra.mxu0 %v6980_v59  ;;  %v848_v46 = vsel %vm7246_vm6, %v843_v23, %v847_v19  ;;  %v324_v49 = vshrl.u32 %v7372_v37, 16  ;;  %v244_v23 = vld [vmem:[%s7238_s25 + $0x1c] sm:$0xf] }
  0x4d   : > { %6561 = vmatpush3.bf16.msra.mxu1 %v6977_v5  ;;  %v321_v47 = vsel %vm7251_vm8, %v313_v12, %v320_v38  ;;  %v617_v48 = vsel %vm7269_vm10, %v322_v39, %v616_v22  ;;  %6612 = vmatprep.subr.bf16.mxu0 %v6982_v15  ;;  %v833_v51 = vrot.slane %v832_v41, 4  ;;  %v730_v52 = vld [vmem:[#allocation2 + $0x78] sm:$0xf]  ;;  %v453_v55 = vrot.slane %v451_v43, 7  ;;  %v619_v34 = vld [vmem:[#allocation2 + $0x30] sm:$0xf] }
  0x4e   : > { %615 = vst [vmem:[#allocation2 + $0x28] sm:$0xf] %v321_v47  ;;  %618 = vst [vmem:[#allocation2 + $0x2c] sm:$0x1] %v617_v48  ;;  %v448_v53 = vor.u32 %v446_v40, %v445_v42  ;;  %v449_v54 = vrot.slane %v445_v42, 4  ;;  %6562 = vmatprep.subr.bf16.mxu1 %v6979_v35  ;;  %v1018_v58 = vshrl.u32 %v730_v52, 16 }
  0x4f   : > { %v731_v57 = vld [vmem:[#allocation2 + $0x7c] sm:$0xf]  ;;  %v1021_v59 = vshll.u32 %v730_v52, 16  ;;  %v7387_v60 = vrot.slane %v324_v49, 7  ;;  %v327_v61 = vshll.u32 %v7372_v37, 16  ;;  %v838_v62 = vsel %vm7246_vm6, %v833_v51, %v7348_v1  ;;  %v6987_v49 = vld [vmem:[%s9761_s1 + $0x8] sm:$0xff]  }
  0x50   : > { %v768_v63 = vld [vmem:[#allocation2 + $0x80] sm:$0x1]  ;;  %v1027_v0 = vshll.u32 %v731_v57, 16  ;;  %v1031_v2 = vshrl.u32 %v731_v57, 16  ;;  %v456_v3 = vor.u32 %v454_v45, %v453_v55  ;;  %6613 = vmatpush3.bf16.msra.mxu0 %v6982_v15  ;;  %v5757_v5 = vcombine.low %v838_v62, %v848_v46 }
  0x51   : > { %v1020_v6 = vrot.slane %v1018_v58, 4  ;;  %v1023_v28 = vrot.slane %v1021_v59, 5  ;;  %v1037_v7 = vshll.u32 %v768_v63, 16  ;;  %6563 = vmatpush3.bf16.msra.mxu1 %v6979_v35  ;;  %6614 = vmatprep.subr.bf16.mxu0 %v6984_v50  ;;  %v458_v13 = vrot.slane %v453_v55, 4  ;;  %v7420_v35 = vld [vmem:[%s7238_s25 + $0x58] sm:$0xf] }
  0x52   : > { %v1029_v10 = vrot.slane %v1027_v0, 5  ;;  %v1033_v1 = vrot.slane %v1031_v2, 4  ;;  %v7396_v11 = vld [vmem:[#allocation2 + $0x24] sm:$0xf]  ;;  %v457_v12 = vsel %vm7251_vm8, %v449_v54, %v456_v3  ;;  %6564 = vmatprep.subr.bf16.mxu1 %v6981_v56  ;;  %6530 = vmatprep.mubr.bf16.mxu0 %v5757_v5  ;;  %v669_v21 = vsel %vm7260_vm9, %v448_v53, %v668_v4  ;;  %v623_v54 = vld [vmem:[#allocation2 + $0x38] sm:$0x1] }
  0x53   : > { %v1024_v15 = vor.u32 %v1023_v28, %v1020_v6  ;;  %v850_v16 = vshrl.u32 %v7396_v11, 16  ;;  %v853_v17 = vshll.u32 %v7396_v11, 16  ;;  %671 = vst [vmem:[#allocation2 + $0x88] sm:$0xf] %v457_v12  ;;  %v1039_v20 = vrot.slane %v1037_v7, 5  ;;  %v6990_v55 = vld [vmem:[%s9761_s1 + $0xc0] sm:$0xff]  }
  0x54   : > { %v1034_v18 = vor.u32 %v1033_v1, %v1029_v10  ;;  %v673_v22 = vsel %vm7269_vm10, %v458_v13, %v672_v8  ;;  %6615 = vmatpush3.bf16.msra.mxu0 %v6984_v50  ;;  %670 = vst [vmem:[#allocation2 + $0x84] sm:$0xf] %v669_v21  ;;  %v329_v33 = vor.u32 %v327_v61, %v7387_v60  ;;  %v330_v42 = vrot.slane %v7387_v60, 4  ;;  %v260_v2 = vld [vmem:[%s7238_s25 + $0x5c] sm:$0xf] }
  0x55   : > { %v1025_v27 = vrot.slane %v1024_v15, 4  ;;  %v7416_v29 = vld [vmem:[#allocation2 + $0x28] sm:$0xf]  ;;  %v761_v31 = vld [vmem:[#allocation2 + $0x2c] sm:$0x1]  ;;  %v852_v32 = vrot.slane %v850_v16, 4  ;;  %6565 = vmatpush3.bf16.msra.mxu1 %v6981_v56  ;;  %6616 = vmatprep.subr.bf16.mxu0 %v6986_v9 }
  0x56   : > { %674 = vst [vmem:[#allocation2 + $0x8c] sm:$0x1] %v673_v22  ;;  %v1035_v37 = vrot.slane %v1034_v18, 4  ;;  %v855_v19 = vrot.slane %v853_v17, 5  ;;  %v859_v38 = vshll.u32 %v7416_v29, 16  ;;  %v863_v39 = vshrl.u32 %v7416_v29, 16  ;;  %6566 = vmatprep.subr.bf16.mxu1 %v6983_v14 }
  0x57   : > { %v1030_v40 = vsel %vm7246_vm6, %v1025_v27, %v1029_v10  ;;  %v869_v41 = vshll.u32 %v761_v31, 16  ;;  %v332_v43 = vshrl.u32 %v244_v23, 16  ;;  %v335_v53 = vshll.u32 %v244_v23, 16  ;;  %v245_v15 = vld [vmem:[%s7238_s25 + $0x20] sm:$0xf]  ;;  %v7464_v17 = vld [vmem:[%s9761_s1 + $0x178] sm:$0xff]  }
  0x58   : > { %v1040_v45 = vsel %vm7246_vm6, %v1035_v37, %v1039_v20  ;;  %v856_v46 = vor.u32 %v855_v19, %v852_v32  ;;  %v861_v47 = vrot.slane %v859_v38, 5  ;;  %v865_v48 = vrot.slane %v863_v39, 4  ;;  %6617 = vmatpush3.bf16.msra.mxu0 %v6986_v9  ;;  %v6989_v16 = vld [vmem:[%s9761_s1] sm:$0xff]   ;;  %v675_v37 = vld [vmem:[#allocation2 + $0x90] sm:$0xf] }
  0x59   : > { %v5765_v50 = vcombine.low %v1030_v40, %v1040_v45  ;;  %v871_v51 = vrot.slane %v869_v41, 5  ;;  %v334_v52 = vrot.slane %v332_v43, 7  ;;  %6567 = vmatpush3.bf16.msra.mxu1 %v6983_v14  ;;  %6618 = vmatprep.subr.bf16.mxu0 %v6988_v26  ;;  %v620_v59 = vsel %vm7260_vm9, %v329_v33, %v619_v34  ;;  %v7467_v23 = vld [vmem:[%s7238_s25 + $0x24] sm:$0xf] }
  0x5a   : > { %v857_v56 = vrot.slane %v856_v46, 4  ;;  %v866_v57 = vor.u32 %v865_v48, %v861_v47  ;;  %v7435_v58 = vld [vmem:[#allocation2 + $0x88] sm:$0xf]  ;;  %v460_v60 = vshrl.u32 %v7420_v35, 16  ;;  %6568 = vmatprep.subr.bf16.mxu1 %v6985_v25  ;;  %621 = vst [vmem:[#allocation2 + $0x30] sm:$0xf] %v620_v59 }
  0x5b   : > { %9825 = vst [vmem:[#allocation5_spill] sm:$0xff] %v7435_v58  ;;  %6546 = vmatprep.mubr.bf16.mxu1 %v5765_v50  ;;  %v1051_v61 = vshll.u32 %v7435_v58, 16  ;;  %v1055_v62 = vshrl.u32 %v7435_v58, 16  ;;  %v337_v63 = vor.u32 %v335_v53, %v334_v52  ;;  %v339_v0 = vrot.slane %v334_v52, 4  ;;  %v7445_v5 = vld [vmem:[#allocation2 + $0x84] sm:$0xf] }
  0x5c   : > { %v862_v3 = vsel %vm7246_vm6, %v857_v56, %v861_v47  ;;  %v867_v4 = vrot.slane %v866_v57, 4  ;;  %9826 = vst [vmem:[#allocation6_spill] sm:$0xff] %v7445_v5  ;;  %v7447_v28 = vrot.slane %v460_v60, 7  ;;  %6619 = vmatpush3.bf16.msra.mxu0 %v6988_v26  ;;  %v1042_v7 = vshrl.u32 %v7445_v5, 16  ;;  %v679_v48 = vld [vmem:[#allocation2 + $0x98] sm:$0x1] }
  0x5d   : > { %v769_v6 = vld [vmem:[#allocation2 + $0x8c] sm:$0x1]  ;;  %v1045_v8 = vshll.u32 %v7445_v5, 16  ;;  %v1053_v9 = vrot.slane %v1051_v61, 5  ;;  %v1057_v10 = vrot.slane %v1055_v62, 4  ;;  %6569 = vmatpush3.bf16.msra.mxu1 %v6985_v25  ;;  %6620 = vmatprep.subr.bf16.mxu0 %v6990_v55  ;;  %v338_v13 = vsel %vm7251_vm8, %v330_v42, %v337_v63 }
  0x5e   : > { %v872_v1 = vsel %vm7246_vm6, %v867_v4, %v871_v51  ;;  %v1061_v12 = vshll.u32 %v769_v6, 16  ;;  %v624_v14 = vsel %vm7269_vm10, %v339_v0, %v623_v54  ;;  %6570 = vmatprep.subr.bf16.mxu1 %v6987_v49  ;;  %v1044_v20 = vrot.slane %v1042_v7, 4  ;;  %622 = vst [vmem:[#allocation2 + $0x34] sm:$0xf] %v338_v13  ;;  %v626_v57 = vld [vmem:[#allocation2 + $0x3c] sm:$0xf] }
  0x5f   : > { %v5758_v18 = vcombine.low %v862_v3, %v872_v1  ;;  %v1047_v21 = vrot.slane %v1045_v8, 5  ;;  %v1058_v22 = vor.u32 %v1057_v10, %v1053_v9  ;;  %625 = vst [vmem:[#allocation2 + $0x38] sm:$0x1] %v624_v14  ;;  %v463_v26 = vshll.u32 %v7420_v35, 16  ;;  %v7478_v35 = vld [vmem:[%s9761_s1 + $0xb8] sm:$0xff]  }
  0x60   : > { %v1063_v25 = vrot.slane %v1061_v12, 5  ;;  %v466_v27 = vrot.slane %v7447_v28, 4  ;;  %v468_v31 = vshrl.u32 %v260_v2, 16  ;;  %6621 = vmatpush3.bf16.msra.mxu0 %v6990_v55  ;;  %v471_v34 = vshll.u32 %v260_v2, 16  ;;  %v630_v2 = vld [vmem:[#allocation2 + $0x44] sm:$0x1] }
  0x61   : > { %6531 = vmatmul.mubr.bf16.gmra.mxu0 %v5758_v18  ;;  %v1048_v32 = vor.u32 %v1047_v21, %v1044_v20  ;;  %v1059_v33 = vrot.slane %v1058_v22, 4  ;;  %v341_v19 = vshrl.u32 %v245_v15, 16  ;;  %6571 = vmatpush3.bf16.msra.mxu1 %v6987_v49  ;;  %v7471_v38 = vld [vmem:[#allocation2 + $0x30] sm:$0xf]  ;;  %v465_v39 = vor.u32 %v463_v26, %v7447_v28  ;;  %v261_v7 = vld [vmem:[%s7238_s25 + $0x60] sm:$0xf] }
  0x62   : > { %v470_v40 = vrot.slane %v468_v31, 7  ;;  %v344_v41 = vshll.u32 %v245_v15, 16  ;;  %v349_v42 = vshrl.u32 %v7467_v23, 16  ;;  %6572 = vmatprep.subr.bf16.mxu1 %v6989_v16  ;;  %6702 = vmatprep.subr.bf16.mxu0 %v7464_v17  ;;  %v874_v46 = vshrl.u32 %v7471_v38, 16  ;;  %v262_v12 = vld [vmem:[%s7238_s25 + $0x64] sm:$0xf] }
  0x63   : > { %v1049_v43 = vrot.slane %v1048_v32, 4  ;;  %v1064_v45 = vsel %vm7246_vm6, %v1059_v33, %v1063_v25  ;;  %v877_v47 = vshll.u32 %v7471_v38, 16  ;;  %v676_v51 = vsel %vm7260_vm9, %v465_v39, %v675_v37  ;;  %v247_v18 = vld [vmem:[%s7238_s25 + $0x28] sm:$0xf] }
  0x64   : > { %v473_v49 = vor.u32 %v471_v34, %v470_v40  ;;  %v475_v50 = vrot.slane %v470_v40, 4  ;;  %v343_v52 = vrot.slane %v341_v19, 7  ;;  %v876_v54 = vrot.slane %v874_v46, 4  ;;  %677 = vst [vmem:[#allocation2 + $0x90] sm:$0xf] %v676_v51 }
  0x65   : > { %v1054_v53 = vsel %vm7246_vm6, %v1049_v43, %v1053_v9  ;;  %v879_v55 = vrot.slane %v877_v47, 5  ;;  %v351_v56 = vrot.slane %v349_v42, 7  ;;  %6573 = vmatpush3.bf16.msra.mxu1 %v6989_v16  ;;  %v7489_v60 = vld [vmem:[#allocation2 + $0x34] sm:$0xf]  ;;  %v352_v9 = vshll.u32 %v7467_v23, 16 }
  0x66   : > { %v5766_v59 = vcombine.low %v1054_v53, %v1064_v45  ;;  %v7491_v61 = vld [vmem:[#allocation2 + $0x38] sm:$0x1]  ;;  %v474_v62 = vsel %vm7251_vm8, %v466_v27, %v473_v49  ;;  %v680_v63 = vsel %vm7269_vm10, %v475_v50, %v679_v48  ;;  %v346_v0 = vor.u32 %v344_v41, %v343_v52  ;;  %6654 = vmatprep.subr.bf16.mxu1 %v7478_v35  ;;  %v682_v53 = vld [vmem:[#allocation2 + $0x9c] sm:$0xf]  ;;  %v7795_v58 = vld [vmem:[#allocation2 + $0x34] sm:$0xf] }
  0x67   : > { %v880_v3 = vor.u32 %v879_v55, %v876_v54  ;;  %v883_v4 = vshll.u32 %v7489_v60, 16  ;;  %v887_v6 = vshrl.u32 %v7489_v60, 16  ;;  %v893_v28 = vshll.u32 %v7491_v61, 16  ;;  %678 = vst [vmem:[#allocation2 + $0x94] sm:$0xf] %v474_v62  ;;  %9845 = vst [vmem:[#allocation21_spill] sm:$0xff] %v7795_v58 }
  0x68   : > { %681 = vst [vmem:[#allocation2 + $0x98] sm:$0x1] %v680_v63  ;;  %6547 = vmatmul.mubr.bf16.gmra.mxu1 %v5766_v59  ;;  %v347_v8 = vrot.slane %v343_v52, 4  ;;  %v356_v10 = vrot.slane %v351_v56, 4  ;;  %v627_v1 = vsel %vm7260_vm9, %v346_v0, %v626_v57  ;;  %v354_v20 = vor.u32 %v352_v9, %v351_v56  ;;  %v686_v54 = vld [vmem:[#allocation2 + $0xa4] sm:$0x1] }
  0x69   : > { %v881_v13 = vrot.slane %v880_v3, 4  ;;  %v885_v14 = vrot.slane %v883_v4, 5  ;;  %v889_v15 = vrot.slane %v887_v6, 4  ;;  %v895_v16 = vrot.slane %v893_v28, 5  ;;  %628 = vst [vmem:[#allocation2 + $0x3c] sm:$0xf] %v627_v1 }
  0x6a   : > { %v631_v21 = vsel %vm7269_vm10, %v356_v10, %v630_v2  ;;  %v477_v22 = vshrl.u32 %v261_v7, 16  ;;  %v480_v25 = vshll.u32 %v261_v7, 16  ;;  %v485_v27 = vshrl.u32 %v262_v12, 16  ;;  %v248_v4 = vld [vmem:[%s7238_s25 + $0x2c] sm:$0xf] }
  0x6b   : > { %v886_v23 = vsel %vm7246_vm6, %v881_v13, %v885_v14  ;;  %v890_v26 = vor.u32 %v889_v15, %v885_v14  ;;  %632 = vst [vmem:[#allocation2 + $0x44] sm:$0x1] %v631_v21  ;;  %v488_v31 = vshll.u32 %v262_v12, 16  ;;  %v7511_v32 = vld [vmem:[#allocation2 + $0x90] sm:$0xf]  ;;  %v355_v33 = vsel %vm7251_vm8, %v347_v8, %v354_v20 }
  0x6c   : > { %9827 = vst [vmem:[#allocation7_spill] sm:$0xff] %v7511_v32  ;;  %v479_v34 = vrot.slane %v477_v22, 7  ;;  %v358_v37 = vshrl.u32 %v247_v18, 16  ;;  %v361_v19 = vshll.u32 %v247_v18, 16  ;;  %v1066_v40 = vshrl.u32 %v7511_v32, 16 }
  0x6d   : > { %v891_v39 = vrot.slane %v890_v26, 4  ;;  %v1069_v41 = vshll.u32 %v7511_v32, 16  ;;  %629 = vst [vmem:[#allocation2 + $0x40] sm:$0xf] %v355_v33  ;;  %v487_v42 = vrot.slane %v485_v27, 7  ;;  %vm1804_vm11 = vcmask 1042432  }
  0x6e   : > { %v7517_v43 = vld [vmem:[#allocation2 + $0x94] sm:$0xf]  ;;  %v482_v46 = vor.u32 %v480_v25, %v479_v34  ;;  %v483_v47 = vrot.slane %v479_v34, 4  ;;  %v7519_v48 = vrot.slane %v358_v37, 7  ;;  %v1068_v50 = vrot.slane %v1066_v40, 4 }
  0x6f   : > { %9828 = vst [vmem:[#allocation8_spill] sm:$0xff] %v7517_v43  ;;  %v770_v45 = vld [vmem:[#allocation2 + $0x98] sm:$0x1]  ;;  %v896_v49 = vsel %vm7246_vm6, %v891_v39, %v895_v16  ;;  %v1071_v51 = vrot.slane %v1069_v41, 5  ;;  %v1075_v52 = vshll.u32 %v7517_v43, 16  ;;  %v1079_v56 = vshrl.u32 %v7517_v43, 16 }
  0x70   : > { %v5759_v55 = vcombine.low %v886_v23, %v896_v49  ;;  %v1085_v57 = vshll.u32 %v770_v45, 16  ;;  %v7525_v59 = vld [vmem:[#allocation2 + $0x3c] sm:$0xf]  ;;  %v490_v62 = vor.u32 %v488_v31, %v487_v42  ;;  %v492_v9 = vrot.slane %v487_v42, 4  ;;  %v633_v14 = vld [vmem:[#allocation2 + $0x48] sm:$0xf] }
  0x71   : > { %v1072_v63 = vor.u32 %v1071_v51, %v1068_v50  ;;  %v1077_v0 = vrot.slane %v1075_v52, 5  ;;  %v898_v2 = vshrl.u32 %v7525_v59, 16  ;;  %v901_v3 = vshll.u32 %v7525_v59, 16  ;;  %v263_v15 = vld [vmem:[%s7238_s25 + $0x68] sm:$0xf] }
  0x72   : > { %6534 = vmatprep.mubr.bf16.mxu0 %v5759_v55  ;;  %v1081_v6 = vrot.slane %v1079_v56, 4  ;;  %v1087_v28 = vrot.slane %v1085_v57, 5  ;;  %v7530_v7 = vld [vmem:[#allocation2 + $0x44] sm:$0x1]  ;;  %v491_v8 = vsel %vm7251_vm8, %v483_v47, %v490_v62  ;;  %v683_v20 = vsel %vm7260_vm9, %v482_v46, %v682_v53  ;;  %v264_v31 = vld [vmem:[%s7238_s25 + $0x6c] sm:$0xf] }
  0x73   : > { %v1073_v10 = vrot.slane %v1072_v63, 4  ;;  %v900_v1 = vrot.slane %v898_v2, 4  ;;  %v903_v12 = vrot.slane %v901_v3, 5  ;;  %v917_v13 = vshll.u32 %v7530_v7, 16  ;;  %685 = vst [vmem:[#allocation2 + $0xa0] sm:$0xf] %v491_v8 }
  0x74   : > { %v1082_v16 = vor.u32 %v1081_v6, %v1077_v0  ;;  %v7536_v18 = vld [vmem:[#allocation2 + $0x40] sm:$0xf]  ;;  %v687_v21 = vsel %vm7269_vm10, %v492_v9, %v686_v54  ;;  %v363_v22 = vor.u32 %v361_v19, %v7519_v48  ;;  %684 = vst [vmem:[#allocation2 + $0x9c] sm:$0xf] %v683_v20  ;;  %v364_v37 = vrot.slane %v7519_v48, 4 }
  0x75   : > { %v1078_v25 = vsel %vm7246_vm6, %v1073_v10, %v1077_v0  ;;  %v904_v23 = vor.u32 %v903_v12, %v900_v1  ;;  %v907_v26 = vshll.u32 %v7536_v18, 16  ;;  %v911_v27 = vshrl.u32 %v7536_v18, 16  ;;  %688 = vst [vmem:[#allocation2 + $0xa4] sm:$0x1] %v687_v21  ;;  %v637_v45 = vld [vmem:[#allocation2 + $0x50] sm:$0x1] }
  0x76   : > { %v1083_v33 = vrot.slane %v1082_v16, 4  ;;  %v919_v34 = vrot.slane %v917_v13, 5  ;;  %v366_v39 = vshrl.u32 %v248_v4, 16  ;;  %v369_v19 = vshll.u32 %v248_v4, 16  ;;  %v689_v63 = vld [vmem:[#allocation2 + $0xa8] sm:$0xf] }
  0x77   : > { %v905_v40 = vrot.slane %v904_v23, 4  ;;  %v909_v41 = vrot.slane %v907_v26, 5  ;;  %v913_v42 = vrot.slane %v911_v27, 4  ;;  %v634_v49 = vsel %vm7260_vm9, %v363_v22, %v633_v14  ;;  %v249_v0 = vld [vmem:[%s7238_s25 + $0x30] sm:$0xf]  ;;  %v7004_v36 = vld [vmem:[#allocation2 + $0x3c] sm:$0xff]  }
  0x78   : > { %v1088_v46 = vsel %vm7246_vm6, %v1083_v33, %v1087_v28  ;;  %v368_v47 = vrot.slane %v366_v39, 7  ;;  %v494_v50 = vshrl.u32 %v263_v15, 16  ;;  %635 = vst [vmem:[#allocation2 + $0x48] sm:$0xf] %v634_v49  ;;  %v497_v53 = vshll.u32 %v263_v15, 16 }
  0x79   : > { %v5767_v51 = vcombine.low %v1078_v25, %v1088_v46  ;;  %v910_v52 = vsel %vm7246_vm6, %v905_v40, %v909_v41  ;;  %v914_v48 = vor.u32 %v913_v42, %v909_v41  ;;  %v502_v62 = vshrl.u32 %v264_v31, 16  ;;  %v693_v20 = vld [vmem:[#allocation2 + $0xb0] sm:$0x1]  ;;  %v250_v33 = vld [vmem:[%s7238_s25 + $0x34] sm:$0xf] }
  0x7a   : > { %v7555_v54 = vld [vmem:[#allocation2 + $0xa0] sm:$0xf]  ;;  %v371_v55 = vor.u32 %v369_v19, %v368_v47  ;;  %v373_v56 = vrot.slane %v368_v47, 4  ;;  %v496_v57 = vrot.slane %v494_v50, 7  ;;  %v505_v6 = vshll.u32 %v264_v31, 16 }
  0x7b   : > { %9829 = vst [vmem:[#allocation9_spill] sm:$0xff] %v7555_v54  ;;  %6550 = vmatprep.mubr.bf16.mxu1 %v5767_v51  ;;  %v915_v2 = vrot.slane %v914_v48, 4  ;;  %v1099_v3 = vshll.u32 %v7555_v54, 16  ;;  %v1103_v4 = vshrl.u32 %v7555_v54, 16  ;;  %v7560_v28 = vld [vmem:[#allocation2 + $0x9c] sm:$0xf] }
  0x7c   : > { %v771_v8 = vld [vmem:[#allocation2 + $0xa4] sm:$0x1]  ;;  %v372_v9 = vsel %vm7251_vm8, %v364_v37, %v371_v55  ;;  %v638_v10 = vsel %vm7269_vm10, %v373_v56, %v637_v45  ;;  %v499_v1 = vor.u32 %v497_v53, %v496_v57  ;;  %v500_v12 = vrot.slane %v496_v57, 4  ;;  %v640_v49 = vld [vmem:[#allocation2 + $0x54] sm:$0xf] }
  0x7d   : > { %v920_v13 = vsel %vm7246_vm6, %v915_v2, %v919_v34  ;;  %v1090_v14 = vshrl.u32 %v7560_v28, 16  ;;  %v1093_v15 = vshll.u32 %v7560_v28, 16  ;;  %v1101_v16 = vrot.slane %v1099_v3, 5  ;;  %636 = vst [vmem:[#allocation2 + $0x4c] sm:$0xf] %v372_v9 }
  0x7e   : > { %639 = vst [vmem:[#allocation2 + $0x50] sm:$0x1] %v638_v10  ;;  %v5760_v21 = vcombine.low %v910_v52, %v920_v13  ;;  %v1105_v22 = vrot.slane %v1103_v4, 4  ;;  %v1109_v25 = vshll.u32 %v771_v8, 16  ;;  %v504_v23 = vrot.slane %v502_v62, 7 }
  0x7f   : > { %v1092_v26 = vrot.slane %v1090_v14, 4  ;;  %v1095_v27 = vrot.slane %v1093_v15, 5  ;;  %v690_v31 = vsel %vm7260_vm9, %v499_v1, %v689_v63  ;;  %v375_v37 = vshrl.u32 %v249_v0, 16  ;;  %v7573_v40 = vld [vmem:[#allocation2 + $0x48] sm:$0xf] }
  0x80   : > { %6535 = vmatmul.mubr.bf16.gmra.mxu0 %v5760_v21  ;;  %v1106_v34 = vor.u32 %v1105_v22, %v1101_v16  ;;  %v1111_v39 = vrot.slane %v1109_v25, 5  ;;  %v507_v41 = vor.u32 %v505_v6, %v504_v23  ;;  %v509_v42 = vrot.slane %v504_v23, 4  ;;  %691 = vst [vmem:[#allocation2 + $0xa8] sm:$0xf] %v690_v31  ;;  %v265_v53 = vld [vmem:[%s7238_s25 + $0x70] sm:$0xf] }
  0x81   : > { %v1096_v19 = vor.u32 %v1095_v27, %v1092_v26  ;;  %v922_v45 = vshrl.u32 %v7573_v40, 16  ;;  %v925_v46 = vshll.u32 %v7573_v40, 16  ;;  %v377_v47 = vrot.slane %v375_v37, 7  ;;  %v1759_v32 = vld [vmem:[#allocation2 + $0x24] sm:$0xe] }
  0x82   : > { %v1107_v50 = vrot.slane %v1106_v34, 4  ;;  %v508_v51 = vsel %vm7251_vm8, %v500_v12, %v507_v41  ;;  %v694_v52 = vsel %vm7269_vm10, %v509_v42, %v693_v20  ;;  %v378_v48 = vshll.u32 %v249_v0, 16 }
  0x83   : > { %v1097_v55 = vrot.slane %v1096_v19, 4  ;;  %v924_v56 = vrot.slane %v922_v45, 4  ;;  %v927_v57 = vrot.slane %v925_v46, 5  ;;  %692 = vst [vmem:[#allocation2 + $0xac] sm:$0xf] %v508_v51  ;;  %v381_v62 = vrot.slane %v377_v47, 4 }
  0x84   : > { %695 = vst [vmem:[#allocation2 + $0xb0] sm:$0x1] %v694_v52  ;;  %v1112_v63 = vsel %vm7246_vm6, %v1107_v50, %v1111_v39  ;;  %v7584_v2 = vld [vmem:[#allocation2 + $0x4c] sm:$0xf]  ;;  %v380_v4 = vor.u32 %v378_v48, %v377_v47  ;;  %v383_v6 = vshrl.u32 %v250_v33, 16  ;;  %v386_v8 = vshll.u32 %v250_v33, 16 }
  0x85   : > { %v7586_v3 = vld [vmem:[#allocation2 + $0x50] sm:$0x1]  ;;  %v1102_v0 = vsel %vm7246_vm6, %v1097_v55, %v1101_v16  ;;  %v928_v9 = vor.u32 %v927_v57, %v924_v56  ;;  %v931_v10 = vshll.u32 %v7584_v2, 16  ;;  %v935_v1 = vshrl.u32 %v7584_v2, 16  ;;  %v644_v16 = vld [vmem:[#allocation2 + $0x5c] sm:$0x1] }
  0x86   : > { %v5768_v12 = vcombine.low %v1102_v0, %v1112_v63  ;;  %v941_v13 = vshll.u32 %v7586_v3, 16  ;;  %v385_v14 = vrot.slane %v383_v6, 7  ;;  %v641_v15 = vsel %vm7260_vm9, %v380_v4, %v640_v49  ;;  %v266_v39 = vld [vmem:[%s7238_s25 + $0x74] sm:$0xf] }
  0x87   : > { %v929_v20 = vrot.slane %v928_v9, 4  ;;  %v933_v21 = vrot.slane %v931_v10, 5  ;;  %v937_v22 = vrot.slane %v935_v1, 4  ;;  %v7595_v25 = vld [vmem:[#allocation2 + $0xa8] sm:$0xf]  ;;  %v511_v23 = vshrl.u32 %v265_v53, 16 }
  0x88   : > { %642 = vst [vmem:[#allocation2 + $0x54] sm:$0xf] %v641_v15  ;;  %6551 = vmatmul.mubr.bf16.gmra.mxu1 %v5768_v12  ;;  %v943_v26 = vrot.slane %v941_v13, 5  ;;  %v1114_v27 = vshrl.u32 %v7595_v25, 16  ;;  %v1117_v31 = vshll.u32 %v7595_v25, 16  ;;  %v388_v33 = vor.u32 %v386_v8, %v385_v14 }
  0x89   : > { %v938_v37 = vor.u32 %v937_v22, %v933_v21  ;;  %v390_v34 = vrot.slane %v385_v14, 4  ;;  %v513_v41 = vrot.slane %v511_v23, 7  ;;  %v934_v42 = vsel %vm7246_vm6, %v929_v20, %v933_v21  ;;  %v696_v55 = vld [vmem:[#allocation2 + $0xb4] sm:$0xf] }
  0x8a   : > { %v7602_v19 = vld [vmem:[#allocation2 + $0xac] sm:$0xf]  ;;  %v1116_v46 = vrot.slane %v1114_v27, 4  ;;  %v1119_v47 = vrot.slane %v1117_v31, 5  ;;  %v389_v49 = vsel %vm7251_vm8, %v381_v62, %v388_v33  ;;  %v514_v63 = vshll.u32 %v265_v53, 16 }
  0x8b   : > { %v772_v45 = vld [vmem:[#allocation2 + $0xb0] sm:$0x1]  ;;  %v939_v50 = vrot.slane %v938_v37, 4  ;;  %v1123_v51 = vshll.u32 %v7602_v19, 16  ;;  %v1127_v52 = vshrl.u32 %v7602_v19, 16  ;;  %v645_v57 = vsel %vm7269_vm10, %v390_v34, %v644_v16 }
  0x8c   : > { %v1133_v48 = vshll.u32 %v772_v45, 16  ;;  %643 = vst [vmem:[#allocation2 + $0x58] sm:$0xf] %v389_v49  ;;  %v1120_v56 = vor.u32 %v1119_v47, %v1116_v46  ;;  %646 = vst [vmem:[#allocation2 + $0x5c] sm:$0x1] %v645_v57  ;;  %v516_v1 = vor.u32 %v514_v63, %v513_v41  ;;  %v519_v12 = vshrl.u32 %v266_v39, 16 }
  0x8d   : > { %v944_v4 = vsel %vm7246_vm6, %v939_v50, %v943_v26  ;;  %v1125_v6 = vrot.slane %v1123_v51, 5  ;;  %v1129_v8 = vrot.slane %v1127_v52, 4  ;;  %v522_v20 = vshll.u32 %v266_v39, 16  ;;  %v700_v53 = vld [vmem:[#allocation2 + $0xbc] sm:$0x1] }
  0x8e   : > { %v1135_v0 = vrot.slane %v1133_v48, 5  ;;  %v5761_v62 = vcombine.low %v934_v42, %v944_v4  ;;  %v1121_v9 = vrot.slane %v1120_v56, 4  ;;  %v517_v21 = vrot.slane %v513_v41, 4  ;;  %v7620_v33 = vld [vmem:[#allocation2 + $0x8] sm:$0x1] }
  0x8f   : > { %v7612_v10 = vld [vmem:[#allocation2 + $0x54] sm:$0xf]  ;;  %v1130_v13 = vor.u32 %v1129_v8, %v1125_v6  ;;  %v521_v22 = vrot.slane %v519_v12, 7  ;;  %v697_v16 = vsel %vm7260_vm9, %v516_v1, %v696_v55  ;;  %v7636_v63 = vld [vmem:[#allocation2 + $0x68] sm:$0x1]  ;;  %vm1805_vm12 = vcmask 1046532  }
  0x90   : > { %v946_v14 = vshrl.u32 %v7612_v10, 16  ;;  %v949_v15 = vshll.u32 %v7612_v10, 16  ;;  %6538 = vmatprep.mubr.bf16.mxu0 %v5761_v62  ;;  %v1126_v23 = vsel %vm7246_vm6, %v1121_v9, %v1125_v6  ;;  %698 = vst [vmem:[#allocation2 + $0xb4] sm:$0xf] %v697_v16  ;;  %vm7730_vm13 = vmor %vm1804_vm11, %vm1805_vm12 }
  0x91   : > { %v1131_v26 = vrot.slane %v1130_v13, 4  ;;  %v524_v39 = vor.u32 %v522_v20, %v521_v22  ;;  %v526_v42 = vrot.slane %v521_v22, 4  ;;  %v6992_v13 = vld [vmem:[#allocation2 + $0xc] sm:$0xff]  }
  0x92   : > { %v948_v27 = vrot.slane %v946_v14, 4  ;;  %v951_v31 = vrot.slane %v949_v15, 5 }
  0x93   : > { %v7623_v34 = vld [vmem:[#allocation2 + $0x58] sm:$0xf]  ;;  %v1136_v41 = vsel %vm7246_vm6, %v1131_v26, %v1135_v0  ;;  %v7629_v50 = vld [vmem:[#allocation2 + $0x5c] sm:$0x1]  ;;  %v525_v51 = vsel %vm7251_vm8, %v517_v21, %v524_v39  ;;  %v701_v52 = vsel %vm7269_vm10, %v526_v42, %v700_v53  ;;  %v7656_v39 = vld [vmem:[#allocation2 + $0x14] sm:$0x1] }
  0x94   : > { %v952_v45 = vor.u32 %v951_v31, %v948_v27  ;;  %v955_v46 = vshll.u32 %v7623_v34, 16  ;;  %v959_v47 = vshrl.u32 %v7623_v34, 16  ;;  %v5769_v49 = vcombine.low %v1126_v23, %v1136_v41  ;;  %699 = vst [vmem:[#allocation2 + $0xb8] sm:$0xf] %v525_v51  ;;  %702 = vst [vmem:[#allocation2 + $0xbc] sm:$0x1] %v701_v52 }
  0x95   : > { %v965_v57 = vshll.u32 %v7629_v50, 16  ;;  %v267_v51 = vld [vmem:[%s7238_s25 + $0x78] sm:$0xf]  ;;  %v268_v52 = vld [vmem:[%s7238_s25 + $0x7c] sm:$0xf] }
  0x96   : > { %v953_v48 = vrot.slane %v952_v45, 4  ;;  %v957_v55 = vrot.slane %v955_v46, 5  ;;  %v961_v56 = vrot.slane %v959_v47, 4  ;;  %6554 = vmatprep.mubr.bf16.mxu1 %v5769_v49  ;;  %v6994_v49 = vld [vmem:[#allocation2 + $0x18] sm:$0xff]   ;;  %v3044_v42 = vld [vmem:[#allocation2 + $0xc] sm:$0xe] }
  0x97   : > { %v967_v8 = vrot.slane %v965_v57, 5  ;;  %v7639_v0 = vld [vmem:[#allocation2 + $0xb4] sm:$0xf]  ;;  %v7090_v57 = vld [vmem:[#allocation2] sm:$0xf] }
  0x98   : > { %v962_v6 = vor.u32 %v961_v56, %v957_v55  ;;  %9830 = vst [vmem:[#allocation10_spill] sm:$0xff] %v7639_v0  ;;  %v958_v62 = vsel %vm7246_vm6, %v953_v48, %v957_v55  ;;  %v1138_v1 = vshrl.u32 %v7639_v0, 16  ;;  %v1141_v12 = vshll.u32 %v7639_v0, 16  ;;  %v1758_v0 = vld [vmem:[#allocation2 + $0x18] sm:$0xe] }
  0x99   : > { %v528_v55 = vshrl.u32 %v267_v51, 16  ;;  %v531_v56 = vshll.u32 %v267_v51, 16  ;;  %v7685_v51 = vld [vmem:[#allocation2] sm:$0xe] }
  0x9a   : > { %v963_v9 = vrot.slane %v962_v6, 4  ;;  %v1140_v15 = vrot.slane %v1138_v1, 4  ;;  %v1143_v20 = vrot.slane %v1141_v12, 5  ;;  %v7661_v6 = vld [vmem:[#allocation2 + $0x4] sm:$0xf] }
  0x9b   : > { %v7647_v21 = vld [vmem:[#allocation2 + $0xb8] sm:$0xf]  ;;  %v7649_v22 = vld [vmem:[#allocation2 + $0xbc] sm:$0x1] }
  0x9c   : > { %v968_v14 = vsel %vm7246_vm6, %v963_v9, %v967_v8  ;;  %9831 = vst [vmem:[#allocation11_spill] sm:$0xff] %v7647_v21  ;;  %9832 = vst [vmem:[#allocation12_spill] sm:$0xff] %v7649_v22  ;;  %v1144_v16 = vor.u32 %v1143_v20, %v1140_v15  ;;  %v1147_v23 = vshll.u32 %v7647_v21, 16  ;;  %v1151_v26 = vshrl.u32 %v7647_v21, 16  ;;  %v6998_v20 = vld [vmem:[#allocation2 + $0x24] sm:$0xff]  }
  0x9d   : > { %v5762_v53 = vcombine.low %v958_v62, %v968_v14  ;;  %v1157_v27 = vshll.u32 %v7649_v22, 16  ;;  %v5779_v8 = vcombine.low %v7090_v57, %v7661_v6  ;;  %v536_v62 = vshrl.u32 %v268_v52, 16  ;;  %v7666_v14 = vld [vmem:[#allocation2 + $0xc] sm:$0xf]  ;;  %v7746_v57 = vld [vmem:[#allocation2 + $0x20] sm:$0x1] }
  0x9e   : > { %v1145_v41 = vrot.slane %v1144_v16, 4  ;;  %v1149_v45 = vrot.slane %v1147_v23, 5  ;;  %v1153_v46 = vrot.slane %v1151_v26, 4  ;;  %v539_v9 = vshll.u32 %v268_v52, 16  ;;  %v703_v23 = vld [vmem:[#allocation2 + $0xc0] sm:$0xf] }
  0x9f   : > { %6539 = vmatmul.mubr.bf16.gmra.mxu0 %v5762_v53  ;;  %v1159_v47 = vrot.slane %v1157_v27, 5  ;;  %v7002_v53 = vld [vmem:[%s9761_s1 + $0x170] sm:$0xff]   ;;  %v530_v16 = vrot.slane %v528_v55, 7  ;;  %v7675_v26 = vld [vmem:[#allocation2 + $0x1c] sm:$0xf]  ;;  %v1809_v52 = vrot.slane %v7661_v6, 5 }
  0xa0   : > { %6622 = vmatprep.mubr.bf16.mxu0 %v6992_v13  ;;  %v1154_v48 = vor.u32 %v1153_v46, %v1149_v45  ;;  %v1150_v1 = vsel %vm7246_vm6, %v1145_v41, %v1149_v45  ;;  %v7668_v13 = vld [vmem:[#allocation2 + $0x10] sm:$0xf]  ;;  %v7677_v27 = vld [vmem:[#allocation2 + $0x18] sm:$0xf]  ;;  %v7683_v46 = vrot.slane %v536_v62, 7  ;;  %v7697_v62 = vld [vmem:[%s9761_s1 + $0x168] sm:$0xff]  }
  0xa1   : > { %v533_v31 = vor.u32 %v531_v56, %v530_v16  ;;  %v534_v4 = vrot.slane %v530_v16, 4  ;;  %v7700_v45 = vld [vmem:[#allocation2 + $0x14] sm:$0x1]  ;;  %v5803_v56 = vrot.slane %v7685_v51, 9  ;;  %v7721_v51 = vld [vmem:[#allocation2 + $0x6c] sm:$0xf] }
  0xa2   : > { %v1155_v12 = vrot.slane %v1154_v48, 4  ;;  %9833 = vst [vmem:[#allocation13_spill] sm:$0xff] %v7683_v46  ;;  %v7688_v48 = vld [vmem:[#allocation2 + $0x10] sm:$0xf]  ;;  %v541_v6 = vor.u32 %v539_v9, %v7683_v46  ;;  %9835 = vst [vmem:[#allocation15_spill] sm:$0xff] %v7700_v45  ;;  %v3113_v30 = vrot.slane %v7700_v45, 5 }
  0xa3   : > { %9834 = vst [vmem:[#allocation14_spill] sm:$0xff] %v7688_v48  ;;  %v7000_v9 = vld [vmem:[#allocation2 + $0x30] sm:$0xff]   ;;  %v7741_v16 = vld [vmem:[#allocation2 + $0x7c] sm:$0xf]  ;;  %9840 = vst [vmem:[#allocation18_spill] sm:$0xff] %v7746_v57  ;;  %v1823_v24 = vrot.slane %v7675_v26, 5 }
  0xa4   : > { %v1160_v55 = vsel %vm7246_vm6, %v1155_v12, %v1159_v47  ;;  %v7709_v12 = vld [vmem:[#allocation2 + $0x1c] sm:$0xf]  ;;  %v7723_v47 = vld [vmem:[#allocation2 + $0x70] sm:$0xf]  ;;  %v3045_v15 = vld [vmem:[#allocation2 + $0x18] sm:$0xe] }
  0xa5   : > { %v5770_v41 = vcombine.low %v1150_v1, %v1160_v55  ;;  %v3110_v1 = vrot.slane %v7688_v48, 5  ;;  %9836 = vst [vmem:[#allocation16_spill] sm:$0xff] %v7709_v12  ;;  %v5915_v55 = vrot.slane %v3044_v42, 9  ;;  %v3117_v37 = vrot.slane %v7709_v12, 5  ;;  %v7754_v48 = vld [vmem:[#allocation2 + $0x28] sm:$0xf] }
  0xa6   : > { %9841 = vst [vmem:[#allocation19_spill] sm:$0xff] %v7754_v48  ;;  %v7780_v46 = vld [vmem:[#allocation2 + $0x2c] sm:$0x1]  ;;  %v3046_v22 = vld [vmem:[#allocation2 + $0x24] sm:$0xe]  ;;  %v9844_v21 = vrot.slane %v7668_v13, 5 }
  0xa7   : > { %6623 = vmatmul.mubr.bf16.vlgmr.msra.gmra.mxu0 %v6994_v49  ;;  %v704_v49 = vsel %vm7260_vm9, %v533_v31, %v703_v23  ;;  %6555 = vmatmul.mubr.bf16.gmra.mxu1 %v5770_v41  ;;  %v7715_v31 = vld [vmem:[#allocation2 + $0x60] sm:$0xf]  ;;  %v7717_v23 = vld [vmem:[#allocation2 + $0x64] sm:$0xf]  ;;  %v7739_v41 = vld [vmem:[#allocation2 + $0x78] sm:$0xf]  ;;  %v7777_v45 = vsel %vm7730_vm13, %v5915_v55, %v3110_v1 }
  0xa8   : > { %6703 = vmatpush3.bf16.msra.mxu0 %v7464_v17  ;;  %6626 = vmatprep.mubr.bf16.mxu0 %v6998_v20  ;;  %v542_v17 = vsel %vm7251_vm8, %v534_v4, %v541_v6  ;;  %705 = vst [vmem:[#allocation2 + $0xc0] sm:$0xf] %v704_v49  ;;  %v1811_v20 = vrot.slane %v1809_v52, 4  ;;  %9839 = vst [vmem:[#allocation17_spill] sm:$0xff] %v7739_v41  ;;  %v3112_v4 = vrot.slane %v3110_v1, 4  ;;  %v9842_v6 = vrot.slane %v7620_v33, 5 }
  0xa9   : > { %6704 = vmatprep.subr.bf16.mxu0 %v7002_v53  ;;  %6574 = vmatprep.mubr.bf16.mxu1 %v5779_v8  ;;  %706 = vst [vmem:[#allocation2 + $0xc4] sm:$0xf] %v542_v17  ;;  %v7734_v8 = vld [vmem:[#allocation2 + $0xc] sm:$0xe]  ;;  %v7759_v17 = vld [vmem:[%s9761_s1 + $0xb0] sm:$0xff]   ;;  %v7767_v49 = vsel %vm7730_vm13, %v5803_v56, %v1809_v52  ;;  %9843 = vst [vmem:[#allocation20_spill] sm:$0xff] %v7780_v46  ;;  %v9846_v41 = vcombine.low %v7666_v14, %v7668_v13 }
  0xaa   : > { %v7773_v12 = vsel %vm7730_vm13, %v1811_v20, %v9842_v6  ;;  %v5804_v44 = vrot.slane %v7734_v8, 9  ;;  %v1818_v43 = vrot.slane %v9844_v21, 4  ;;  %v5916_v52 = vrot.slane %v3045_v15, 9  ;;  %v7789_v1 = vld [vmem:[%s9761_s1 + $0x158] sm:$0xff]   ;;  %v7102_v8 = vld [vmem:[#allocation2 + $0x20] sm:$0x1] }
  0xab   : > { %v3120_v56 = vrot.slane %v7746_v57, 5  ;;  %v3124_v33 = vrot.slane %v7754_v48, 5  ;;  %v7793_v20 = vsel %vm7730_vm13, %v3112_v4, %v3113_v30  ;;  %v5805_v55 = vrot.slane %v1758_v0, 9  ;;  %v7103_v21 = vld [vmem:[#allocation2 + $0x28] sm:$0xf] }
  0xac   : > { %6705 = vmatpush3.bf16.msra.mxu0 %v7002_v53  ;;  %v7014_v53 = vld [vmem:[%s9761_s1 + $0x160] sm:$0xff]   ;;  %v1826_v6 = vrot.slane %v7102_v8, 5  ;;  %v1830_v15 = vrot.slane %v7103_v21, 5  ;;  %v1825_v48 = vrot.slane %v1823_v24, 4  ;;  %v5917_v57 = vrot.slane %v3046_v22, 9  ;;  %v7805_v0 = vld [vmem:[%s9761_s1 + $0xa8] sm:$0xff]  }
  0xad   : > { %6706 = vmatprep.subr.bf16.mxu0 %v7697_v62  ;;  %v3127_v5 = vrot.slane %v7780_v46, 5  ;;  %v3126_v30 = vrot.slane %v3124_v33, 4  ;;  %v5806_v22 = vrot.slane %v1759_v32, 9  ;;  %v7811_v4 = vld [vmem:[#allocation2 + $0x38] sm:$0x1]  ;;  %v9847_v14 = vcombine.low %v7677_v27, %v7675_v26 }
  0xae   : > { %v7813_v8 = vld [vmem:[#allocation2 + $0x30] sm:$0xe]  ;;  %v7104_v46 = vld [vmem:[#allocation2 + $0x2c] sm:$0x1]  ;;  %v9849_v27 = vrot.slane %v7656_v39, 5  ;;  %v7010_v21 = vld [vmem:[#allocation2 + $0x54] sm:$0xff]   ;;  %v7851_v39 = vsel %vm7730_vm13, %v1825_v48, %v1826_v6 }
  0xaf   : > { %6627 = vmatmul.mubr.bf16.gmra.mxu0 %v7000_v9  ;;  %v3119_v9 = vrot.slane %v3117_v37, 4  ;;  %6575 = vmatmul.mubr.bf16.vlgmr.msra.gmra.mxu1 %v9846_v41  ;;  %v7006_v41 = vld [vmem:[#allocation2 + $0x48] sm:$0xff]   ;;  %v1833_v54 = vrot.slane %v7104_v46, 5  ;;  %v7839_v46 = vsel %vm7730_vm13, %v5916_v52, %v3117_v37  ;;  %v7026_v37 = vld [vmem:[%s9761_s1 + $0x150] sm:$0xff]   ;;  %v7868_v48 = vsel %vm7730_vm13, %v5806_v22, %v1830_v15  ;;  %v2609_v6 = vld [vmem:[#allocation2 + $0x44] sm:$0x1] }
  0xb0   : > { %6630 = vmatprep.mubr.bf16.mxu0 %v7004_v36  ;;  %6707 = vmatpush3.bf16.msra.mxu0 %v7697_v62  ;;  %v1832_v36 = vrot.slane %v1830_v15, 4  ;;  %v3131_v62 = vrot.slane %v7795_v58, 5  ;;  %9850 = vst [vmem:[#allocation22_spill] sm:$0xff] %v7868_v48  ;;  %v5918_v52 = vrot.slane %v7813_v8, 9  ;;  %v1840_v22 = vrot.slane %v7491_v61, 5 }
  0xb1   : > { %6708 = vmatprep.subr.bf16.mxu0 %v7014_v53  ;;  %6655 = vmatpush3.bf16.msra.mxu1 %v7478_v35  ;;  %v9848_v35 = vrot.slane %v7668_v13, 5  ;;  %v7843_v32 = vsel %vm7730_vm13, %v3119_v9, %v3120_v56  ;;  %v1837_v13 = vrot.slane %v7489_v60, 5  ;;  %v3048_v56 = vld [vmem:[#allocation2 + $0x3c] sm:$0xe]  ;;  %v9852_v61 = vcombine.low %v7396_v11, %v7416_v29  ;;  %v7968_v48 = vld [vmem:[#allocation2 + $0x64] sm:$0xf] }
  0xb2   : > { %6578 = vmatprep.mubr.bf16.mxu1 %v9847_v14  ;;  %6656 = vmatprep.subr.bf16.mxu1 %v7759_v17  ;;  %v7835_v14 = vsel %vm7730_vm13, %v1818_v43, %v9849_v27  ;;  %v1760_v43 = vld [vmem:[#allocation2 + $0x30] sm:$0xe]  ;;  %v5919_v8 = vrot.slane %v3048_v56, 9  ;;  %v7896_v27 = vld [vmem:[#allocation2 + $0x3c] sm:$0xe]  ;;  %v9853_v11 = vcombine.low %v7471_v38, %v7489_v60  ;;  %v7921_v29 = vsel %vm7730_vm13, %v5918_v52, %v3131_v62 }
  0xb3   : > { %v7829_v26 = vsel %vm7730_vm13, %v5804_v44, %v9848_v35  ;;  %v7847_v44 = vsel %vm7730_vm13, %v5805_v55, %v1823_v24  ;;  %v2608_v35 = vld [vmem:[#allocation2 + $0x40] sm:$0xf]  ;;  %v7864_v24 = vsel %vm7730_vm13, %v3126_v30, %v3127_v5  ;;  %v3134_v5 = vrot.slane %v7811_v4, 5  ;;  %v7913_v4 = vld [vmem:[#allocation2 + $0x48] sm:$0xe] }
  0xb4   : > { %6709 = vmatpush3.bf16.msra.mxu0 %v7014_v53  ;;  %v7860_v53 = vsel %vm7730_vm13, %v5917_v57, %v3124_v33  ;;  %v7013_v55 = vld [vmem:[%s9761_s1 + $0xa0] sm:$0xff]   ;;  %v7877_v57 = vsel %vm7730_vm13, %v1832_v36, %v1833_v54  ;;  %v3133_v33 = vrot.slane %v3131_v62, 4  ;;  %v3138_v9 = vrot.slane %v2608_v35, 5  ;;  %v7887_v54 = vld [vmem:[#allocation2 + $0x4c] sm:$0xf] }
  0xb5   : > { %6710 = vmatprep.subr.bf16.mxu0 %v7789_v1  ;;  %6657 = vmatpush3.bf16.msra.mxu1 %v7759_v17  ;;  %9851 = vst [vmem:[#allocation23_spill] sm:$0xff] %v7877_v57  ;;  %v7884_v17 = vld [vmem:[%s9761_s1 + $0x148] sm:$0xff]   ;;  %v5807_v15 = vrot.slane %v1760_v43, 9  ;;  %v1839_v30 = vrot.slane %v1837_v13, 4  ;;  %v7898_v43 = vld [vmem:[#allocation2 + $0x50] sm:$0x1] }
  0xb6   : > { %6658 = vmatprep.subr.bf16.mxu1 %v7805_v0  ;;  %v1844_v36 = vrot.slane %v7536_v18, 5  ;;  %v3140_v56 = vrot.slane %v3138_v9, 4  ;;  %v5808_v60 = vrot.slane %v7896_v27, 9  ;;  %v1851_v62 = vrot.slane %v7584_v2, 5  ;;  %v7938_v52 = vld [vmem:[#allocation2 + $0x58] sm:$0xf] }
  0xb7   : > { %6631 = vmatmul.mubr.bf16.gmra.mxu0 %v7006_v41  ;;  %6579 = vmatmul.mubr.bf16.gmra.mxu1 %v9852_v61  ;;  %v3141_v41 = vrot.slane %v2609_v6, 5  ;;  %v7925_v61 = vsel %vm7730_vm13, %v3133_v33, %v3134_v5  ;;  %v3145_v6 = vrot.slane %v7887_v54, 5  ;;  %v7930_v35 = vsel %vm7730_vm13, %v5807_v15, %v1837_v13  ;;  %v7016_v33 = vld [vmem:[#allocation2 + $0x6c] sm:$0xff]   ;;  %v7038_v5 = vld [vmem:[%s9761_s1 + $0x140] sm:$0xff]   ;;  %v7018_v57 = vld [vmem:[#allocation2 + $0x78] sm:$0xff]  }
  0xb8   : > { %6634 = vmatprep.mubr.bf16.mxu0 %v7010_v21  ;;  %6711 = vmatpush3.bf16.msra.mxu0 %v7789_v1  ;;  %v7012_v21 = vld [vmem:[#allocation2 + $0x60] sm:$0xff]   ;;  %v7906_v1 = vld [vmem:[%s9761_s1 + $0x98] sm:$0xff]   ;;  %9854 = vst [vmem:[#allocation24_spill] sm:$0xff] %v7930_v35  ;;  %v7934_v38 = vsel %vm7730_vm13, %v1839_v30, %v1840_v22  ;;  %v7945_v13 = vsel %vm7730_vm13, %v5919_v8, %v3138_v9  ;;  %v1847_v15 = vrot.slane %v7530_v7, 5  ;;  %v1854_v22 = vrot.slane %v7586_v3, 5  ;;  %v7952_v54 = vld [vmem:[%s9761_s1 + $0x90] sm:$0xff]  }
  0xb9   : > { %6712 = vmatprep.subr.bf16.mxu0 %v7026_v37  ;;  %6582 = vmatprep.mubr.bf16.mxu1 %v9853_v11  ;;  %9855 = vst [vmem:[#allocation25_spill] sm:$0xff] %v7934_v38  ;;  %v5920_v27 = vrot.slane %v7913_v4, 9  ;;  %v3148_v11 = vrot.slane %v7898_v43, 5  ;;  %v1853_v58 = vrot.slane %v1851_v62, 4  ;;  %v1763_v9 = vld [vmem:[#allocation2 + $0x54] sm:$0xe]  ;;  %v7959_v7 = vsel %vm7730_vm13, %v3140_v56, %v3141_v41 }
  0xba   : > { %6659 = vmatpush3.bf16.msra.mxu1 %v7805_v0  ;;  %v1762_v0 = vld [vmem:[#allocation2 + $0x48] sm:$0xe]  ;;  %v3147_v3 = vrot.slane %v3145_v6, 4  ;;  %v7980_v41 = vld [vmem:[#allocation2 + $0x5c] sm:$0x1]  ;;  %v5810_v43 = vrot.slane %v1763_v9, 9  ;;  %v9858_v9 = vcombine.low %v7525_v59, %v7536_v18 }
  0xbb   : > { %6660 = vmatprep.subr.bf16.mxu1 %v7013_v55  ;;  %v5809_v30 = vrot.slane %v1762_v0, 9  ;;  %v7965_v0 = vld [vmem:[#allocation2 + $0x54] sm:$0xe]  ;;  %v7978_v4 = vsel %vm7730_vm13, %v1853_v58, %v1854_v22  ;;  %v1858_v56 = vrot.slane %v7623_v34, 5  ;;  %v2618_v22 = vld [vmem:[#allocation2 + $0x68] sm:$0x1]  ;;  %v9861_v58 = vcombine.low %v7573_v40, %v7584_v2 }
  0xbc   : > { %6713 = vmatpush3.bf16.msra.mxu0 %v7026_v37  ;;  %v1846_v37 = vrot.slane %v1844_v36, 4  ;;  %9857 = vst [vmem:[#allocation27_spill] sm:$0xff] %v7978_v4  ;;  %v7031_v59 = vld [vmem:[%s9761_s1 + $0x88] sm:$0xff]   ;;  %v1865_v40 = vrot.slane %v7717_v23, 5  ;;  %v2620_v2 = vld [vmem:[#allocation2 + $0x70] sm:$0xf] }
  0xbd   : > { %6714 = vmatprep.subr.bf16.mxu0 %v7884_v17  ;;  %v7963_v8 = vsel %vm7730_vm13, %v5809_v30, %v1851_v62  ;;  %v1861_v62 = vrot.slane %v7629_v50, 5  ;;  %v7996_v50 = vsel %vm7730_vm13, %v5808_v60, %v1844_v36  ;;  %v3051_v30 = vld [vmem:[#allocation2 + $0x60] sm:$0xe]  ;;  %v3155_v18 = vrot.slane %v7980_v41, 5  ;;  %v8041_v38 = vld [vmem:[#allocation2 + $0x7c] sm:$0xf] }
  0xbe   : > { %6661 = vmatpush3.bf16.msra.mxu1 %v7013_v55  ;;  %9856 = vst [vmem:[#allocation26_spill] sm:$0xff] %v7963_v8  ;;  %v7974_v55 = vld [vmem:[%s9761_s1 + $0x1f8] sm:$0xff]   ;;  %9859 = vst [vmem:[#allocation28_spill] sm:$0xff] %v7996_v50  ;;  %v8014_v36 = vsel %vm7730_vm13, %v1846_v37, %v1847_v15  ;;  %v1764_v60 = vld [vmem:[#allocation2 + $0x60] sm:$0xe]  ;;  %v3162_v4 = vrot.slane %v2618_v22, 5  ;;  %v9867_v22 = vcombine.low %v7612_v10, %v7623_v34 }
  0xbf   : > { %6635 = vmatmul.mubr.bf16.gmra.mxu0 %v7012_v21  ;;  %6662 = vmatprep.subr.bf16.mxu1 %v7906_v1  ;;  %v3159_v21 = vrot.slane %v7968_v48, 5  ;;  %9862 = vst [vmem:[#allocation30_spill] sm:$0xff] %v8014_v36  ;;  %v8018_v48 = vsel %vm7730_vm13, %v5920_v27, %v3145_v6  ;;  %v2621_v37 = vld [vmem:[#allocation2 + $0x74] sm:$0x1]  ;;  %v1872_v6 = vrot.slane %v7723_v47, 5  ;;  %v7022_v27 = vld [vmem:[#allocation2 + $0x84] sm:$0xff]  }
  0xc0   : > { %6638 = vmatprep.mubr.bf16.mxu0 %v7016_v33  ;;  %6715 = vmatpush3.bf16.msra.mxu0 %v7884_v17  ;;  %v8000_v17 = vsel %vm7730_vm13, %v5810_v43, %v1858_v56  ;;  %v1860_v33 = vrot.slane %v1858_v56, 4  ;;  %v5921_v43 = vrot.slane %v7965_v0, 9  ;;  %v3052_v56 = vld [vmem:[#allocation2 + $0x6c] sm:$0xe]  ;;  %v5811_v8 = vrot.slane %v1764_v60, 9  ;;  %v7024_v10 = vld [vmem:[#allocation2 + $0x90] sm:$0xff]  }
  0xc1   : > { %6583 = vmatmul.mubr.bf16.gmra.mxu1 %v9858_v9  ;;  %6716 = vmatprep.subr.bf16.mxu0 %v7038_v5  ;;  %9860 = vst [vmem:[#allocation29_spill] sm:$0xff] %v8000_v17  ;;  %v1765_v0 = vld [vmem:[#allocation2 + $0x6c] sm:$0xe]  ;;  %v1867_v41 = vrot.slane %v1865_v40, 4  ;;  %v3169_v35 = vrot.slane %v2621_v37, 5  ;;  %v9866_v17 = vrot.slane %v7938_v52, 5 }
  0xc2   : > { %6586 = vmatprep.mubr.bf16.mxu1 %v9861_v58  ;;  %6663 = vmatpush3.bf16.msra.mxu1 %v7906_v1  ;;  %v8024_v1 = vsel %vm7730_vm13, %v3147_v3, %v3148_v11  ;;  %v8029_v15 = vsel %vm7730_vm13, %v1860_v33, %v1861_v62  ;;  %v9865_v58 = vrot.slane %v7938_v52, 5  ;;  %v5922_v3 = vrot.slane %v3051_v30, 9  ;;  %v7037_v62 = vld [vmem:[%s9761_s1 + $0x80] sm:$0xff]   ;;  %v8044_v30 = vld [vmem:[#allocation2 + $0x78] sm:$0xe] }
  0xc3   : > { %6664 = vmatprep.subr.bf16.mxu1 %v7952_v54  ;;  %9863 = vst [vmem:[#allocation31_spill] sm:$0xff] %v8024_v1  ;;  %9864 = vst [vmem:[#allocation32_spill] sm:$0xff] %v8029_v15  ;;  %v3161_v33 = vrot.slane %v3159_v21, 4  ;;  %v5812_v11 = vrot.slane %v1765_v0, 9  ;;  %v2624_v0 = vld [vmem:[#allocation2 + $0x80] sm:$0x1] }
  0xc4   : > { %6717 = vmatpush3.bf16.msra.mxu0 %v7038_v5  ;;  %v3154_v9 = vrot.slane %v9865_v58, 4  ;;  %v3166_v5 = vrot.slane %v2620_v2, 5  ;;  %v5923_v58 = vrot.slane %v3052_v56, 9  ;;  %v1874_v2 = vrot.slane %v1872_v6, 4 }
  0xc5   : > { %6798 = vmatprep.subr.bf16.mxu0 %v7974_v55  ;;  %v3173_v15 = vrot.slane %v8041_v38, 5  ;;  %v8066_v52 = vsel %vm7730_vm13, %v5922_v3, %v3159_v21  ;;  %v9869_v38 = vcombine.low %v7715_v31, %v7717_v23  ;;  %v9870_v34 = vrot.slane %v7636_v63, 5  ;;  %v2626_v31 = vld [vmem:[#allocation2 + $0x88] sm:$0xf]  ;;  %v2627_v23 = vld [vmem:[#allocation2 + $0x8c] sm:$0x1] }
  0xc6   : > { %6665 = vmatpush3.bf16.msra.mxu1 %v7952_v54  ;;  %v3168_v60 = vrot.slane %v3166_v5, 4  ;;  %v8054_v54 = vsel %vm7730_vm13, %v5921_v43, %v9866_v17  ;;  %v8058_v37 = vsel %vm7730_vm13, %v3154_v9, %v3155_v18  ;;  %v8070_v17 = vsel %vm7730_vm13, %v3161_v33, %v3162_v4  ;;  %v1766_v43 = vld [vmem:[#allocation2 + $0x78] sm:$0xe]  ;;  %v7106_v3 = vld [vmem:[#allocation2 + $0x80] sm:$0x1] }
  0xc7   : > { %6639 = vmatmul.mubr.bf16.gmra.mxu0 %v7018_v57  ;;  %6666 = vmatprep.subr.bf16.mxu1 %v7031_v59  ;;  %v7105_v57 = vld [vmem:[#allocation2 + $0x74] sm:$0x1]  ;;  %v8074_v18 = vsel %vm7730_vm13, %v5811_v8, %v1865_v40  ;;  %v8084_v21 = vsel %vm7730_vm13, %v1867_v41, %v9870_v34  ;;  %v8088_v4 = vsel %vm7730_vm13, %v5923_v58, %v3166_v5  ;;  %v5924_v40 = vrot.slane %v8044_v30, 9  ;;  %v8098_v63 = vld [vmem:[%s9761_s1 + $0x138] sm:$0xff]   ;;  %v3054_v5 = vld [vmem:[#allocation2 + $0x84] sm:$0xe] }
  0xc8   : > { %6642 = vmatprep.mubr.bf16.mxu0 %v7022_v27  ;;  %v1875_v56 = vrot.slane %v7105_v57, 5  ;;  %9868 = vst [vmem:[#allocation33_spill] sm:$0xff] %v8074_v18  ;;  %v1879_v27 = vrot.slane %v7741_v16, 5  ;;  %9871 = vst [vmem:[#allocation34_spill] sm:$0xff] %v8084_v21  ;;  %v8092_v8 = vsel %vm7730_vm13, %v5812_v11, %v1872_v6  ;;  %v3176_v9 = vrot.slane %v2624_v0, 5  ;;  %v7028_v11 = vld [vmem:[#allocation2 + $0x9c] sm:$0xff]  }
  0xc9   : > { %6587 = vmatmul.mubr.bf16.gmra.mxu1 %v9867_v22  ;;  %9872 = vst [vmem:[#allocation35_spill] sm:$0xff] %v8088_v4  ;;  %9873 = vst [vmem:[#allocation36_spill] sm:$0xff] %v8092_v8  ;;  %v1882_v33 = vrot.slane %v7106_v3, 5  ;;  %v3180_v6 = vrot.slane %v2626_v31, 5  ;;  %v3175_v58 = vrot.slane %v3173_v15, 4  ;;  %v5813_v30 = vrot.slane %v1766_v43, 9 }
  0xca   : > { %6590 = vmatprep.mubr.bf16.mxu1 %v9869_v38  ;;  %6667 = vmatpush3.bf16.msra.mxu1 %v7031_v59  ;;  %v8102_v59 = vsel %vm7730_vm13, %v3168_v60, %v3169_v35  ;;  %v8106_v41 = vsel %vm7730_vm13, %v1874_v2, %v1875_v56  ;;  %v1767_v22 = vld [vmem:[#allocation2 + $0x84] sm:$0xe]  ;;  %v7107_v57 = vld [vmem:[#allocation2 + $0x88] sm:$0xf]  ;;  %v1881_v34 = vrot.slane %v1879_v27, 4  ;;  %v5925_v36 = vrot.slane %v3054_v5, 9 }
  0xcb   : > { %6668 = vmatprep.subr.bf16.mxu1 %v7037_v62  ;;  %9874 = vst [vmem:[#allocation37_spill] sm:$0xff] %v8102_v59  ;;  %9875 = vst [vmem:[#allocation38_spill] sm:$0xff] %v8106_v41  ;;  %v1886_v38 = vrot.slane %v7107_v57, 5  ;;  %v3182_v50 = vrot.slane %v3180_v6, 4  ;;  %v3183_v35 = vrot.slane %v2627_v23, 5  ;;  %v5814_v23 = vrot.slane %v1767_v22, 9 }
  0xcc   : > { %v2629_v60 = vld [vmem:[#allocation2 + $0x94] sm:$0xf]  ;;  %v2630_v43 = vld [vmem:[#allocation2 + $0x98] sm:$0x1]  ;;  %v3055_v3 = vld [vmem:[#allocation2 + $0x90] sm:$0xe]  ;;  %v8121_v2 = vsel %vm7730_vm13, %v5924_v40, %v3173_v15 }
  0xcd   : > { %v1888_v5 = vrot.slane %v1886_v38, 4  ;;  %v3187_v1 = vrot.slane %v2629_v60, 5  ;;  %v5926_v0 = vrot.slane %v3055_v3, 9  ;;  %v7109_v56 = vld [vmem:[#allocation2 + $0x94] sm:$0xf]  ;;  %v7030_v22 = vld [vmem:[#allocation2 + $0xa8] sm:$0xff]  }
  0xce   : > { %6669 = vmatpush3.bf16.msra.mxu1 %v7037_v62  ;;  %v7108_v62 = vld [vmem:[#allocation2 + $0x8c] sm:$0x1]  ;;  %v1893_v21 = vrot.slane %v7109_v56, 5  ;;  %v3190_v31 = vrot.slane %v2630_v43, 5  ;;  %v1768_v15 = vld [vmem:[#allocation2 + $0x90] sm:$0xe] }
  0xcf   : > { %6643 = vmatmul.mubr.bf16.gmra.mxu0 %v7024_v10  ;;  %6750 = vmatprep.subr.bf16.mxu1 %v8098_v63  ;;  %v1889_v57 = vrot.slane %v7108_v62, 5  ;;  %v9876_v10 = vcombine.low %v7721_v51, %v7723_v47  ;;  %v8128_v62 = vsel %vm7730_vm13, %v3175_v58, %v3176_v9  ;;  %v3189_v60 = vrot.slane %v3187_v1, 4  ;;  %v2632_v40 = vld [vmem:[#allocation2 + $0xa0] sm:$0xf]  ;;  %v9878_v3 = vld [vmem:[#allocation17_spill] sm:$0xff]  ;;  %v7034_v41 = vld [vmem:[#allocation2 + $0xb4] sm:$0xff]  }
  0xd0   : > { %6646 = vmatprep.mubr.bf16.mxu0 %v7028_v11  ;;  %9877 = vst [vmem:[#allocation39_spill] sm:$0xff] %v8128_v62  ;;  %v8132_v11 = vsel %vm7730_vm13, %v5813_v30, %v1879_v27  ;;  %v9879_v56 = vcombine.low %v9878_v3, %v7741_v16  ;;  %v8139_v47 = vsel %vm7730_vm13, %v1881_v34, %v1882_v33  ;;  %v7110_v9 = vld [vmem:[#allocation2 + $0x98] sm:$0x1]  ;;  %v2633_v30 = vld [vmem:[#allocation2 + $0xa4] sm:$0x1]  ;;  %v1895_v16 = vrot.slane %v1893_v21, 4 }
  0xd1   : > { %6591 = vmatmul.mubr.bf16.gmra.mxu1 %v9876_v10  ;;  %9880 = vst [vmem:[#allocation17_spill] sm:$0xff] %v8139_v47  ;;  %v8143_v51 = vsel %vm7730_vm13, %v5925_v36, %v3180_v6  ;;  %v8147_v27 = vsel %vm7730_vm13, %v3182_v50, %v3183_v35  ;;  %v1896_v58 = vrot.slane %v7110_v9, 5  ;;  %v3056_v43 = vld [vmem:[#allocation2 + $0x9c] sm:$0xe]  ;;  %v5815_v10 = vrot.slane %v1768_v15, 9 }
  0xd2   : > { %6594 = vmatprep.mubr.bf16.mxu1 %v9879_v56  ;;  %v5927_v3 = vrot.slane %v3056_v43, 9  ;;  %v3194_v56 = vrot.slane %v2632_v40, 5  ;;  %v1769_v8 = vld [vmem:[#allocation2 + $0x9c] sm:$0xe]  ;;  %v8151_v33 = vsel %vm7730_vm13, %v5814_v23, %v1886_v38  ;;  %v8155_v36 = vsel %vm7730_vm13, %v1888_v5, %v1889_v57  ;;  %v2635_v34 = vld [vmem:[#allocation2 + $0xac] sm:$0xf] }
  0xd3   : > { %9881 = vst [vmem:[#allocation40_spill] sm:$0xff] %v8151_v33  ;;  %9882 = vst [vmem:[#allocation41_spill] sm:$0xff] %v8155_v36  ;;  %v3197_v6 = vrot.slane %v2633_v30, 5  ;;  %v5816_v50 = vrot.slane %v1769_v8, 9  ;;  %v2636_v35 = vld [vmem:[#allocation2 + $0xb0] sm:$0x1]  ;;  %v8159_v9 = vsel %vm7730_vm13, %v5926_v0, %v3187_v1  ;;  %v8163_v15 = vsel %vm7730_vm13, %v3189_v60, %v3190_v31 }
  0xd4   : > { %v3196_v40 = vrot.slane %v3194_v56, 4  ;;  %v7111_v43 = vld [vmem:[#allocation2 + $0xa0] sm:$0xf]  ;;  %v3057_v23 = vld [vmem:[#allocation2 + $0xa8] sm:$0xe]  ;;  %v3201_v57 = vrot.slane %v2635_v34, 5 }
  0xd5   : > { %v1900_v38 = vrot.slane %v7111_v43, 5  ;;  %v7112_v18 = vld [vmem:[#allocation2 + $0xa4] sm:$0x1]  ;;  %v5928_v5 = vrot.slane %v3057_v23, 9  ;;  %v3204_v30 = vrot.slane %v2636_v35, 5  ;;  %v9883_v23 = vld [vmem:[#allocation6_spill] sm:$0xff] }
  0xd6   : > { %v1903_v59 = vrot.slane %v7112_v18, 5  ;;  %v7113_v4 = vld [vmem:[#allocation2 + $0xac] sm:$0xf]  ;;  %v1770_v35 = vld [vmem:[#allocation2 + $0xa8] sm:$0xe]  ;;  %v8188_v18 = vsel %vm7730_vm13, %v5927_v3, %v3194_v56  ;;  %v8192_v1 = vsel %vm7730_vm13, %v3196_v40, %v3197_v6  ;;  %v9888_v60 = vld [vmem:[#allocation7_spill] sm:$0xff] }
  0xd7   : > { %6647 = vmatmul.mubr.bf16.gmra.mxu0 %v7030_v22  ;;  %v1902_v0 = vrot.slane %v1900_v38, 4  ;;  %v1907_v31 = vrot.slane %v7113_v4, 5  ;;  %v3203_v22 = vrot.slane %v3201_v57, 4  ;;  %v2638_v43 = vld [vmem:[#allocation2 + $0xb8] sm:$0xf]  ;;  %v9884_v8 = vld [vmem:[#allocation5_spill] sm:$0xff]  ;;  %v8180_v4 = vsel %vm7730_vm13, %v5815_v10, %v1893_v21 }
  0xd8   : > { %6650 = vmatprep.mubr.bf16.mxu0 %v7034_v41  ;;  %v9885_v62 = vcombine.low %v9883_v23, %v9884_v8  ;;  %9886 = vst [vmem:[#allocation6_spill] sm:$0xff] %v8180_v4  ;;  %v8184_v41 = vsel %vm7730_vm13, %v1895_v16, %v1896_v58  ;;  %v3058_v34 = vld [vmem:[#allocation2 + $0xb4] sm:$0xe]  ;;  %v9889_v8 = vld [vmem:[#allocation8_spill] sm:$0xff]  ;;  %v8199_v21 = vsel %vm7730_vm13, %v5816_v50, %v1900_v38  ;;  %v5817_v16 = vrot.slane %v1770_v35, 9  ;;  %v9896_v33 = vld [vmem:[#allocation13_spill] sm:$0xff] }
  0xd9   : > { %9887 = vst [vmem:[#allocation5_spill] sm:$0xff] %v8184_v41  ;;  %9891 = vst [vmem:[#allocation7_spill] sm:$0xff] %v8199_v21  ;;  %v8203_v58 = vsel %vm7730_vm13, %v1902_v0, %v1903_v59  ;;  %v8207_v10 = vsel %vm7730_vm13, %v5928_v5, %v3201_v57  ;;  %v1771_v3 = vld [vmem:[#allocation2 + $0xb4] sm:$0xe]  ;;  %v707_v56 = vld [vmem:[#allocation2 + $0xc8] sm:$0x1]  ;;  %v8211_v40 = vsel %vm7730_vm13, %v3203_v22, %v3204_v30 }
  0xda   : > { %6595 = vmatmul.mubr.bf16.gmra.mxu1 %v9885_v62  ;;  %v9890_v62 = vcombine.low %v9888_v60, %v9889_v8  ;;  %9892 = vst [vmem:[#allocation8_spill] sm:$0xff] %v8203_v58  ;;  %v7036_v6 = vld [vmem:[#allocation2 + $0xc0] sm:$0xff]   ;;  %9893 = vst [vmem:[#allocation42_spill] sm:$0xff] %v8211_v40  ;;  %v1909_v60 = vrot.slane %v1907_v31, 4  ;;  %v7114_v23 = vld [vmem:[#allocation2 + $0xb0] sm:$0x1]  ;;  %v8229_v5 = vsel %vm7730_vm13, %v5817_v16, %v1907_v31 }
  0xdb   : > { %v1910_v50 = vrot.slane %v7114_v23, 5  ;;  %v2639_v38 = vld [vmem:[#allocation2 + $0xbc] sm:$0x1]  ;;  %v3208_v8 = vrot.slane %v2638_v43, 5  ;;  %v5929_v57 = vrot.slane %v3058_v34, 9  ;;  %v5818_v0 = vrot.slane %v1771_v3, 9 }
  0xdc   : > { %6598 = vmatprep.mubr.bf16.mxu1 %v9890_v62  ;;  %v9894_v62 = vld [vmem:[#allocation11_spill] sm:$0xff]  ;;  %v9895_v30 = vld [vmem:[#allocation12_spill] sm:$0xff]  ;;  %v9897_v47 = vrot.slane %v9896_v33, 4  ;;  %v3211_v34 = vrot.slane %v2639_v38, 5  ;;  %v2595_v3 = vld [vmem:[#allocation2 + $0xc] sm:$0xf]  ;;  %v9900_v23 = vcombine.low %v7777_v45, %v7793_v20 }
  0xdd   : > { %v1914_v36 = vrot.slane %v9894_v62, 5  ;;  %v1917_v22 = vrot.slane %v9895_v30, 5  ;;  %v9899_v35 = vld [vmem:[#allocation14_spill] sm:$0xff]  ;;  %v3210_v21 = vrot.slane %v3208_v8, 4  ;;  %v8241_v31 = vsel %vm7730_vm13, %v1909_v60, %v1910_v50  ;;  %v3059_v20 = vld [vmem:[#allocation2 + $0xc0] sm:$0xe] }
  0xde   : > { %v708_v43 = vsel %vm7269_vm10, %v9897_v47, %v707_v56  ;;  %v2653_v58 = vshll.u32 %v9899_v35, 16  ;;  %v2644_v47 = vshrl.u32 %v2595_v3, 16  ;;  %v3816_v56 = vld [vmem:[#allocation2 + $0x18] sm:$0xf]  ;;  %v8245_v16 = vsel %vm7730_vm13, %v5929_v57, %v3208_v8 }
  0xdf   : > { %709 = vst [vmem:[#allocation2 + $0xc8] sm:$0x1] %v708_v43  ;;  %6651 = vmatmul.mubr.bf16.gmra.mxu0 %v7036_v6  ;;  %v8234_v33 = vsel %vm7730_vm13, %v5818_v0, %v1914_v36  ;;  %v1916_v30 = vrot.slane %v1914_v36, 4  ;;  %v2641_v6 = vld [vmem:[#allocation2 + $0xc4] sm:$0xf]  ;;  %v2647_v38 = vshll.u32 %v2595_v3, 16  ;;  %v9905_v8 = vcombine.low %v7595_v25, %v7602_v19 }
  0xe0   : > { %6718 = vmatprep.mubr.bf16.mxu0 %v9900_v23  ;;  %v2655_v43 = vrot.slane %v2653_v58, 5  ;;  %v3817_v0 = vld [vmem:[#allocation2 + $0x1c] sm:$0xf]  ;;  %v9901_v36 = vld [vmem:[#allocation9_spill] sm:$0xff]  ;;  %v2646_v23 = vrot.slane %v2644_v47, 4  ;;  %v2657_v60 = vshrl.u32 %v9899_v35, 16 }
  0xe1   : > { %v9902_v59 = vcombine.low %v7560_v28, %v9901_v36  ;;  %v8252_v45 = vsel %vm7730_vm13, %v1916_v30, %v1917_v22  ;;  %v9904_v50 = vld [vmem:[#allocation15_spill] sm:$0xff]  ;;  %v2649_v57 = vrot.slane %v2647_v38, 5  ;;  %v3882_v28 = vshrl.u32 %v3816_v56, 16  ;;  %v7042_v25 = vld [vmem:[%s9761_s1 + $0x1f0] sm:$0xff]   ;;  %v3865_v38 = vld [vmem:[#allocation2 + $0x20] sm:$0x1] }
  0xe2   : > { %9903 = vst [vmem:[#allocation11_spill] sm:$0xff] %v8252_v45  ;;  %v2663_v41 = vshll.u32 %v9904_v50, 16  ;;  %v2598_v3 = vld [vmem:[#allocation2 + $0x18] sm:$0xf]  ;;  %v8263_v22 = vsel %vm7730_vm13, %v3210_v21, %v3211_v34  ;;  %v2659_v30 = vrot.slane %v2657_v60, 4  ;;  %v3891_v47 = vshll.u32 %v3817_v0, 16 }
  0xe3   : > { %6599 = vmatmul.mubr.bf16.gmra.mxu1 %v9902_v59  ;;  %v3885_v59 = vshll.u32 %v3816_v56, 16  ;;  %v3895_v35 = vshrl.u32 %v3817_v0, 16  ;;  %v5930_v36 = vrot.slane %v3059_v20, 9  ;;  %v3215_v50 = vrot.slane %v2641_v6, 5 }
  0xe4   : > { %6602 = vmatprep.mubr.bf16.mxu1 %v9905_v8  ;;  %v2650_v4 = vor.u32 %v2649_v57, %v2646_v23  ;;  %v2665_v40 = vrot.slane %v2663_v41, 5  ;;  %v2660_v19 = vor.u32 %v2659_v30, %v2655_v43  ;;  %v3884_v8 = vrot.slane %v3882_v28, 4  ;;  %v3818_v41 = vld [vmem:[#allocation2 + $0x24] sm:$0xf] }
  0xe5   : > { %v3887_v56 = vrot.slane %v3885_v59, 5  ;;  %v2668_v58 = vshrl.u32 %v2598_v3, 16  ;;  %v8272_v6 = vrot.slane %v3891_v47, 5  ;;  %v9906_v23 = vcombine.low %v7839_v46, %v7843_v32  ;;  %v9909_v32 = vld [vmem:[#allocation16_spill] sm:$0xff]  ;;  %v7147_v47 = vld [vmem:[#allocation2 + $0x38] sm:$0x1] }
  0xe6   : > { %v2642_v0 = vld [vmem:[#allocation2 + $0xc8] sm:$0x1]  ;;  %v2651_v20 = vrot.slane %v2650_v4, 4  ;;  %v2661_v60 = vrot.slane %v2660_v19, 4  ;;  %v3897_v57 = vrot.slane %v3895_v35, 4  ;;  %v2671_v59 = vshll.u32 %v2598_v3, 16 }
  0xe7   : > { %6719 = vmatmul.mubr.bf16.vlgmr.msra.gmra.mxu0 %v9906_v23  ;;  %v2670_v28 = vrot.slane %v2668_v58, 4  ;;  %v9907_v30 = vcombine.low %v7860_v53, %v7864_v24  ;;  %v8283_v4 = vsel %vm7730_vm13, %v5930_v36, %v3215_v50  ;;  %v3901_v34 = vshll.u32 %v3865_v38, 16  ;;  %v9910_v19 = vld [vmem:[#allocation10_spill] sm:$0xff]  ;;  %v7044_v53 = vld [vmem:[%s9761_s1 + $0x1e8] sm:$0xff]  }
  0xe8   : > { %6799 = vmatpush3.bf16.msra.mxu0 %v7974_v55  ;;  %v2656_v21 = vsel %vm7246_vm6, %v2651_v20, %v2655_v43  ;;  %v2677_v46 = vshll.u32 %v9909_v32, 16  ;;  %v9911_v58 = vcombine.low %v9910_v19, %v9894_v62  ;;  %v3217_v24 = vrot.slane %v3215_v50, 4  ;;  %v3819_v36 = vld [vmem:[#allocation2 + $0x28] sm:$0xf]  ;;  %v9913_v50 = vld [vmem:[#allocation18_spill] sm:$0xff] }
  0xe9   : > { %6722 = vmatprep.mubr.bf16.mxu0 %v9907_v30  ;;  %6800 = vmatprep.subr.bf16.mxu0 %v7042_v25  ;;  %v3218_v55 = vrot.slane %v2642_v0, 5  ;;  %v2666_v3 = vsel %vm7246_vm6, %v2661_v60, %v2665_v40  ;;  %v2673_v35 = vrot.slane %v2671_v59, 5  ;;  %v9912_v43 = vcombine.low %v7767_v49, %v7773_v12  ;;  %v2601_v12 = vld [vmem:[#allocation2 + $0x24] sm:$0xf] }
  0xea   : > { %v8299_v38 = vcombine.low %v2656_v21, %v2666_v3  ;;  %v3888_v62 = vor.u32 %v3887_v56, %v3884_v8  ;;  %v2679_v20 = vrot.slane %v2677_v46, 5  ;;  %v2681_v23 = vshrl.u32 %v9909_v32, 16  ;;  %v7046_v49 = vld [vmem:[%s9761_s1 + $0x1e0] sm:$0xff]   ;;  %v3866_v21 = vld [vmem:[#allocation2 + $0x2c] sm:$0x1] }
  0xeb   : > { %6603 = vmatmul.mubr.bf16.gmra.mxu1 %v9911_v58  ;;  %v3898_v30 = vor.u32 %v3897_v57, %v8272_v6  ;;  %v2674_v19 = vor.u32 %v2673_v35, %v2670_v28  ;;  %v2687_v0 = vshll.u32 %v9913_v50, 16  ;;  %v3906_v58 = vshrl.u32 %v3818_v41, 16 }
  0xec   : > { %6670 = vmatprep.mubr.bf16.mxu1 %v9912_v43  ;;  %6801 = vmatpush3.bf16.msra.mxu0 %v7042_v25  ;;  %v8304_v40 = vrot.slane %v3901_v34, 5  ;;  %v2683_v60 = vrot.slane %v2681_v23, 4  ;;  %v3909_v59 = vshll.u32 %v3818_v41, 16  ;;  %v3915_v45 = vshll.u32 %v3819_v36, 16  ;;  %v7041_v25 = vld [vmem:[%s9761_s1 + $0x130] sm:$0xff]  }
  0xed   : > { %6802 = vmatprep.subr.bf16.mxu0 %v7044_v53  ;;  %v8311_v8 = vsel %vm7730_vm13, %v3217_v24, %v3218_v55  ;;  %v2675_v56 = vrot.slane %v2674_v19, 4  ;;  %v3908_v57 = vrot.slane %v3906_v58, 4  ;;  %v3919_v28 = vshrl.u32 %v3819_v36, 16 }
  0xee   : > { %v2684_v34 = vor.u32 %v2683_v60, %v2679_v20  ;;  %v2689_v41 = vrot.slane %v2687_v0, 5  ;;  %v3911_v32 = vrot.slane %v3909_v59, 5  ;;  %v8316_v46 = vrot.slane %v3915_v45, 5  ;;  %v3821_v59 = vld [vmem:[#allocation2 + $0x34] sm:$0xf] }
  0xef   : > { %v9914_v3 = vcombine.low %v7921_v29, %v7925_v61  ;;  %v8321_v35 = vrot.slane %v3888_v62, 4  ;;  %v8323_v24 = vrot.slane %v3898_v30, 4  ;;  %v3921_v55 = vrot.slane %v3919_v28, 4  ;;  %v3820_v61 = vld [vmem:[#allocation2 + $0x30] sm:$0xf]  ;;  %v9917_v30 = vld [vmem:[#allocation19_spill] sm:$0xff] }
  0xf0   : > { %v2692_v43 = vshrl.u32 %v2601_v12, 16  ;;  %v9915_v36 = vcombine.low %v7945_v13, %v7959_v7  ;;  %6803 = vmatpush3.bf16.msra.mxu0 %v7044_v53  ;;  %v5962_v23 = vcombine.low %v8283_v4, %v8311_v8  ;;  %v2680_v45 = vsel %vm7246_vm6, %v2675_v56, %v2679_v20  ;;  %v7048_v13 = vld [vmem:[%s9761_s1 + $0x1d8] sm:$0xff]   ;;  %v9966_v8 = vld [vmem:[#allocation8_spill] sm:$0xff] }
  0xf1   : > { %6723 = vmatmul.mubr.bf16.gmra.mxu0 %v9914_v3  ;;  %v2685_v19 = vrot.slane %v2684_v34, 4  ;;  %v2695_v29 = vshll.u32 %v2601_v12, 16  ;;  %v9916_v62 = vcombine.low %v7829_v26, %v7835_v14  ;;  %6804 = vmatprep.subr.bf16.mxu0 %v7046_v49  ;;  %v3912_v7 = vor.u32 %v3911_v32, %v3908_v57  ;;  %v7043_v12 = vld [vmem:[%s9761_s1 + $0x128] sm:$0xff]   ;;  %v7045_v32 = vld [vmem:[%s9761_s1 + $0x120] sm:$0xff]   ;;  %v9965_v4 = vld [vmem:[#allocation7_spill] sm:$0xff] }
  0xf2   : > { %6726 = vmatprep.mubr.bf16.mxu0 %v9915_v36  ;;  %v2694_v53 = vrot.slane %v2692_v43, 4  ;;  %v2701_v50 = vshll.u32 %v9917_v30, 16  ;;  %v2705_v0 = vshrl.u32 %v9917_v30, 16  ;;  %v9918_v20 = vcombine.low %v7847_v44, %v7851_v39  ;;  %v9919_v44 = vld [vmem:[#allocation20_spill] sm:$0xff]  ;;  %v2604_v43 = vld [vmem:[#allocation2 + $0x30] sm:$0xf] }
  0xf3   : > { %6671 = vmatmul.mubr.bf16.vlgmr.msra.gmra.mxu1 %v9916_v62  ;;  %v2690_v26 = vsel %vm7246_vm6, %v2685_v19, %v2689_v41  ;;  %v3922_v14 = vor.u32 %v3921_v55, %v8316_v46  ;;  %v3925_v58 = vshll.u32 %v3866_v21, 16  ;;  %v2697_v60 = vrot.slane %v2695_v29, 5  ;;  %v3867_v36 = vld [vmem:[#allocation2 + $0x38] sm:$0x1] }
  0xf4   : > { %6751 = vmatpush3.bf16.msra.mxu1 %v8098_v63  ;;  %6674 = vmatprep.mubr.bf16.mxu1 %v9918_v20  ;;  %v8350_v56 = vcombine.low %v2680_v45, %v2690_v26  ;;  %v8352_v63 = vrot.slane %v2701_v50, 5  ;;  %v2707_v57 = vrot.slane %v2705_v0, 4  ;;  %v2711_v39 = vshll.u32 %v9919_v44, 16  ;;  %v9920_v29 = vld [vmem:[#allocation31_spill] sm:$0xff] }
  0xf5   : > { %6752 = vmatprep.subr.bf16.mxu1 %v7041_v25  ;;  %6805 = vmatpush3.bf16.msra.mxu0 %v7046_v49  ;;  %v3894_v21 = vsel %vm7246_vm6, %v8321_v35, %v8272_v6  ;;  %v3904_v28 = vsel %vm7246_vm6, %v8323_v24, %v8304_v40  ;;  %v2698_v34 = vor.u32 %v2697_v60, %v2694_v53  ;;  %v3930_v41 = vshrl.u32 %v3820_v61, 16  ;;  %v7050_v49 = vld [vmem:[%s9761_s1 + $0x1d0] sm:$0xff]   ;;  %v9924_v60 = vld [vmem:[#allocation23_spill] sm:$0xff] }
  0xf6   : > { %6806 = vmatprep.subr.bf16.mxu0 %v7048_v13  ;;  %v8369_v3 = vrot.slane %v3912_v7, 4  ;;  %v2708_v6 = vor.u32 %v2707_v57, %v8352_v63  ;;  %v3933_v35 = vshll.u32 %v3820_v61, 16  ;;  %v3939_v55 = vshll.u32 %v3821_v59, 16  ;;  %v7052_v7 = vld [vmem:[%s9761_s1 + $0x1c8] sm:$0xff]  }
  0xf7   : > { %v3923_v40 = vrot.slane %v3922_v14, 4  ;;  %v3927_v24 = vrot.slane %v3925_v58, 5  ;;  %v3932_v45 = vrot.slane %v3930_v41, 4  ;;  %v3943_v19 = vshrl.u32 %v3821_v59, 16  ;;  %v9923_v58 = vld [vmem:[#allocation22_spill] sm:$0xff] }
  0xf8   : > { %6753 = vmatpush3.bf16.msra.mxu1 %v7041_v25  ;;  %v9921_v62 = vcombine.low %v8018_v48, %v9920_v29  ;;  %v2699_v53 = vrot.slane %v2698_v34, 4  ;;  %v2713_v30 = vrot.slane %v2711_v39, 5  ;;  %v3935_v61 = vrot.slane %v3933_v35, 5  ;;  %v3822_v25 = vld [vmem:[#allocation2 + $0x3c] sm:$0xf]  ;;  %v9928_v34 = vld [vmem:[#allocation25_spill] sm:$0xff] }
  0xf9   : > { %6754 = vmatprep.subr.bf16.mxu1 %v7043_v12  ;;  %v8378_v50 = vrot.slane %v3939_v55, 5  ;;  %v9922_v0 = vcombine.low %v8054_v54, %v8058_v37  ;;  %6807 = vmatpush3.bf16.msra.mxu0 %v7048_v13  ;;  %v2709_v20 = vrot.slane %v2708_v6, 4  ;;  %v3945_v26 = vrot.slane %v3943_v19, 4  ;;  %v9926_v54 = vld [vmem:[#allocation21_spill] sm:$0xff]  ;;  %v9927_v13 = vld [vmem:[#allocation24_spill] sm:$0xff] }
  0xfa   : > { %6727 = vmatmul.mubr.bf16.gmra.mxu0 %v9921_v62  ;;  %v2716_v48 = vshrl.u32 %v2604_v43, 16  ;;  %v2719_v14 = vshll.u32 %v2604_v43, 16  ;;  %v9925_v59 = vcombine.low %v9923_v58, %v9924_v60  ;;  %6808 = vmatprep.subr.bf16.mxu0 %v7050_v49  ;;  %v8386_v57 = vcombine.low %v3894_v21, %v3904_v28  ;;  %v3823_v21 = vld [vmem:[#allocation2 + $0x40] sm:$0xf]  ;;  %v7047_v28 = vld [vmem:[%s9761_s1 + $0x118] sm:$0xff]  }
  0xfb   : > { %6730 = vmatprep.mubr.bf16.mxu0 %v9922_v0  ;;  %v3918_v44 = vsel %vm7246_vm6, %v8369_v3, %v8316_v46  ;;  %v3949_v39 = vshll.u32 %v3867_v36, 16  ;;  %v2725_v37 = vshll.u32 %v9926_v54, 16  ;;  %v9929_v41 = vcombine.low %v9927_v13, %v9928_v34  ;;  %v7116_v29 = vld [vmem:[#allocation2 + $0x38] sm:$0x1]  ;;  %v2607_v60 = vld [vmem:[#allocation2 + $0x3c] sm:$0xf] }
  0xfc   : > { %6675 = vmatmul.mubr.bf16.gmra.mxu1 %v9925_v59  ;;  %v3936_v6 = vor.u32 %v3935_v61, %v3932_v45  ;;  %v3946_v35 = vor.u32 %v3945_v26, %v8378_v50  ;;  %v2718_v55 = vrot.slane %v2716_v48, 4  ;;  %v2721_v43 = vrot.slane %v2719_v14, 5  ;;  %v7054_v26 = vld [vmem:[%s9761_s1 + $0x1c0] sm:$0xff]   ;;  %v7049_v59 = vld [vmem:[%s9761_s1 + $0x110] sm:$0xff]  }
  0xfd   : > { %6678 = vmatprep.mubr.bf16.mxu1 %v9929_v41  ;;  %6755 = vmatpush3.bf16.msra.mxu1 %v7043_v12  ;;  %v3928_v46 = vsel %vm7246_vm6, %v3923_v40, %v3927_v24  ;;  %v2704_v3 = vsel %vm7246_vm6, %v2699_v53, %v8352_v63  ;;  %v8405_v36 = vrot.slane %v2725_v37, 5  ;;  %v7115_v12 = vld [vmem:[#allocation2 + $0x34] sm:$0xf]  ;;  %v2735_v62 = vshll.u32 %v7116_v29, 16 }
  0xfe   : > { %6756 = vmatprep.subr.bf16.mxu1 %v7045_v32  ;;  %v2729_v45 = vshrl.u32 %v7115_v12, 16  ;;  %6809 = vmatpush3.bf16.msra.mxu0 %v7050_v49  ;;  %v2722_v19 = vor.u32 %v2721_v43, %v2718_v55  ;;  %v3954_v61 = vshrl.u32 %v3822_v25, 16  ;;  %v3957_v0 = vshll.u32 %v3822_v25, 16  ;;  %v9934_v55 = vld [vmem:[#allocation28_spill] sm:$0xff]  ;;  %v9935_v43 = vld [vmem:[#allocation30_spill] sm:$0xff] }
  0xff   : > { %6810 = vmatprep.subr.bf16.mxu0 %v7052_v7  ;;  %v2714_v40 = vsel %vm7246_vm6, %v2709_v20, %v2713_v30  ;;  %v8412_v24 = vrot.slane %v3949_v39, 5  ;;  %v3963_v53 = vshll.u32 %v3823_v21, 16  ;;  %v3937_v48 = vrot.slane %v3936_v6, 4  ;;  %v3868_v39 = vld [vmem:[#allocation2 + $0x44] sm:$0x1] }
 0x100   : > { %v2731_v63 = vrot.slane %v2729_v45, 4  ;;  %v3947_v49 = vrot.slane %v3946_v35, 4  ;;  %v3956_v14 = vrot.slane %v3954_v61, 4  ;;  %v3959_v58 = vrot.slane %v3957_v0, 5  ;;  %v3824_v35 = vld [vmem:[#allocation2 + $0x48] sm:$0xf] }
 0x101   : > { %6757 = vmatpush3.bf16.msra.mxu1 %v7045_v32  ;;  %v9930_v25 = vcombine.low %v8066_v52, %v8070_v17  ;;  %v8420_v30 = vcombine.low %v3918_v44, %v3928_v46  ;;  %v8425_v32 = vld [vmem:[%s9761_s1 + $0x238] sm:$0xff]   ;;  %v8428_v54 = vrot.slane %v3963_v53, 5  ;;  %v3967_v37 = vshrl.u32 %v3823_v21, 16  ;;  %v9932_v17 = vld [vmem:[#allocation37_spill] sm:$0xff]  ;;  %v9937_v61 = vld [vmem:[#allocation26_spill] sm:$0xff] }
 0x102   : > { %6758 = vmatprep.subr.bf16.mxu1 %v7047_v28  ;;  %v2732_v20 = vor.u32 %v2731_v63, %v8405_v36  ;;  %v9931_v52 = vld [vmem:[#allocation35_spill] sm:$0xff]  ;;  %6811 = vmatpush3.bf16.msra.mxu0 %v7052_v7  ;;  %v8433_v34 = vcombine.low %v2704_v3, %v2714_v40  ;;  %v2723_v44 = vrot.slane %v2722_v19, 4  ;;  %v2737_v41 = vrot.slane %v2735_v62, 5  ;;  %v7117_v19 = vld [vmem:[#allocation2 + $0x40] sm:$0xf] }
 0x103   : > { %6731 = vmatmul.mubr.bf16.gmra.mxu0 %v9930_v25  ;;  %v9933_v13 = vcombine.low %v9931_v52, %v9932_v17  ;;  %v3960_v6 = vor.u32 %v3959_v58, %v3956_v14  ;;  %v9936_v46 = vcombine.low %v9934_v55, %v9935_v43  ;;  %6812 = vmatprep.subr.bf16.mxu0 %v7054_v26  ;;  %v3969_v45 = vrot.slane %v3967_v37, 4  ;;  %v9938_v0 = vld [vmem:[#allocation27_spill] sm:$0xff]  ;;  %v3825_v53 = vld [vmem:[#allocation2 + $0x4c] sm:$0xf]  ;;  %v7118_v52 = vld [vmem:[#allocation2 + $0x44] sm:$0x1] }
 0x104   : > { %v2733_v12 = vrot.slane %v2732_v20, 4  ;;  %v2740_v29 = vshrl.u32 %v2607_v60, 16  ;;  %v2743_v21 = vshll.u32 %v2607_v60, 16  ;;  %v9939_v63 = vcombine.low %v9937_v61, %v9938_v0  ;;  %v7051_v14 = vld [vmem:[%s9761_s1 + $0x108] sm:$0xff]  }
 0x105   : > { %6734 = vmatprep.mubr.bf16.mxu0 %v9933_v13  ;;  %6679 = vmatmul.mubr.bf16.gmra.mxu1 %v9936_v46  ;;  %v3942_v7 = vsel %vm7246_vm6, %v3937_v48, %v8378_v50  ;;  %v3952_v3 = vsel %vm7246_vm6, %v3947_v49, %v8412_v24  ;;  %v2749_v62 = vshll.u32 %v7117_v19, 16  ;;  %v2753_v40 = vshrl.u32 %v7117_v19, 16  ;;  %v9943_v19 = vld [vmem:[#allocation29_spill] sm:$0xff] }
 0x106   : > { %6682 = vmatprep.mubr.bf16.mxu1 %v9939_v63  ;;  %6759 = vmatpush3.bf16.msra.mxu1 %v7047_v28  ;;  %v3970_v58 = vor.u32 %v3969_v45, %v8428_v54  ;;  %v3973_v28 = vshll.u32 %v3868_v39, 16  ;;  %v2742_v60 = vrot.slane %v2740_v29, 4  ;;  %v2745_v25 = vrot.slane %v2743_v21, 5  ;;  %v3826_v63 = vld [vmem:[#allocation2 + $0x54] sm:$0xf] }
 0x107   : > { %6760 = vmatprep.subr.bf16.mxu1 %v7049_v59  ;;  %6813 = vmatpush3.bf16.msra.mxu0 %v7054_v26  ;;  %v2728_v50 = vsel %vm7246_vm6, %v2723_v44, %v8405_v36  ;;  %v8454_v24 = vrot.slane %v3960_v6, 4  ;;  %v8456_v48 = vrot.slane %v2749_v62, 5  ;;  %v2755_v49 = vrot.slane %v2753_v40, 4  ;;  %v2610_v44 = vld [vmem:[#allocation2 + $0x48] sm:$0xf]  ;;  %v9940_v6 = vld [vmem:[#allocation39_spill] sm:$0xff] }
 0x108   : > { %6894 = vmatprep.subr.bf16.mxu0 %v8425_v32  ;;  %v2738_v20 = vsel %vm7246_vm6, %v2733_v12, %v2737_v41  ;;  %v2746_v37 = vor.u32 %v2745_v25, %v2742_v60  ;;  %v2759_v39 = vshll.u32 %v7118_v52, 16  ;;  %v3978_v17 = vshrl.u32 %v3824_v35, 16  ;;  %v7053_v41 = vld [vmem:[%s9761_s1 + $0x100] sm:$0xff]   ;;  %v9947_v60 = vld [vmem:[#allocation34_spill] sm:$0xff] }
 0x109   : > { %v2756_v26 = vor.u32 %v2755_v49, %v8456_v48  ;;  %v3981_v13 = vshll.u32 %v3824_v35, 16  ;;  %v3987_v55 = vshll.u32 %v3825_v53, 16  ;;  %v3991_v36 = vshrl.u32 %v3825_v53, 16  ;;  %v9944_v62 = vld [vmem:[#allocation32_spill] sm:$0xff] }
 0x10a   : > { %6761 = vmatpush3.bf16.msra.mxu1 %v7049_v59  ;;  %v9941_v43 = vcombine.low %v8121_v2, %v9940_v6  ;;  %v8468_v46 = vcombine.low %v3942_v7, %v3952_v3  ;;  %v3971_v12 = vrot.slane %v3970_v58, 4  ;;  %v3975_v45 = vrot.slane %v3973_v28, 5  ;;  %v3869_v59 = vld [vmem:[#allocation2 + $0x50] sm:$0x1]  ;;  %v8483_v7 = vld [vmem:[%s9761_s1 + $0x1b8] sm:$0xff]   ;;  %v9946_v28 = vld [vmem:[#allocation33_spill] sm:$0xff] }
 0x10b   : > { %6762 = vmatprep.subr.bf16.mxu1 %v7051_v14  ;;  %v3980_v29 = vrot.slane %v3978_v17, 4  ;;  %v9942_v35 = vcombine.low %v8143_v51, %v8147_v27  ;;  %v8473_v21 = vcombine.low %v2728_v50, %v2738_v20  ;;  %v2747_v61 = vrot.slane %v2746_v37, 4  ;;  %v3827_v58 = vld [vmem:[#allocation2 + $0x58] sm:$0xf]  ;;  %v7119_v37 = vld [vmem:[#allocation2 + $0x4c] sm:$0xf] }
 0x10c   : > { %6735 = vmatmul.mubr.bf16.gmra.mxu0 %v9941_v43  ;;  %v3983_v2 = vrot.slane %v3981_v13, 5  ;;  %v8475_v0 = vrot.slane %v3987_v55, 5  ;;  %v9945_v40 = vcombine.low %v9943_v19, %v9944_v62  ;;  %v2757_v3 = vrot.slane %v2756_v26, 4 }
 0x10d   : > { %6738 = vmatprep.mubr.bf16.mxu0 %v9942_v35  ;;  %v2761_v53 = vrot.slane %v2759_v39, 5  ;;  %v3993_v51 = vrot.slane %v3991_v36, 4  ;;  %v2764_v27 = vshrl.u32 %v2610_v44, 16  ;;  %v9948_v25 = vcombine.low %v9946_v28, %v9947_v60 }
 0x10e   : > { %6683 = vmatmul.mubr.bf16.gmra.mxu1 %v9945_v40  ;;  %v3966_v50 = vsel %vm7246_vm6, %v8454_v24, %v8428_v54  ;;  %v3984_v49 = vor.u32 %v3983_v2, %v3980_v29  ;;  %v2767_v20 = vshll.u32 %v2610_v44, 16  ;;  %v2773_v52 = vshll.u32 %v7119_v37, 16  ;;  %v7120_v44 = vld [vmem:[#allocation2 + $0x50] sm:$0x1]  ;;  %v2613_v40 = vld [vmem:[#allocation2 + $0x54] sm:$0xf] }
 0x10f   : > { %6686 = vmatprep.mubr.bf16.mxu1 %v9948_v25  ;;  %6763 = vmatpush3.bf16.msra.mxu1 %v7051_v14  ;;  %v3976_v39 = vsel %vm7246_vm6, %v3971_v12, %v3975_v45  ;;  %v3994_v17 = vor.u32 %v3993_v51, %v8475_v0  ;;  %v3997_v26 = vshll.u32 %v3869_v59, 16  ;;  %v2766_v13 = vrot.slane %v2764_v27, 4  ;;  %v9952_v27 = vld [vmem:[#allocation38_spill] sm:$0xff] }
 0x110   : > { %6764 = vmatprep.subr.bf16.mxu1 %v7053_v41  ;;  %v2752_v14 = vsel %vm7246_vm6, %v2747_v61, %v8456_v48  ;;  %v2769_v55 = vrot.slane %v2767_v20, 5  ;;  %v8498_v36 = vrot.slane %v2773_v52, 5  ;;  %v2777_v54 = vshrl.u32 %v7119_v37, 16  ;;  %v3828_v37 = vld [vmem:[#allocation2 + $0x60] sm:$0xf] }
 0x111   : > { %v2762_v24 = vsel %vm7246_vm6, %v2757_v3, %v2761_v53  ;;  %v2783_v6 = vshll.u32 %v7120_v44, 16  ;;  %v4002_v43 = vshrl.u32 %v3826_v63, 16  ;;  %v4005_v29 = vshll.u32 %v3826_v63, 16 }
 0x112   : > { %v3985_v12 = vrot.slane %v3984_v49, 4  ;;  %v2770_v45 = vor.u32 %v2769_v55, %v2766_v13  ;;  %v2779_v59 = vrot.slane %v2777_v54, 4  ;;  %v4011_v35 = vshll.u32 %v3827_v58, 16  ;;  %v7121_v54 = vld [vmem:[#allocation2 + $0x58] sm:$0xf] }
 0x113   : > { %6765 = vmatpush3.bf16.msra.mxu1 %v7053_v41  ;;  %v9949_v2 = vcombine.low %v8159_v9, %v8163_v15  ;;  %v3995_v48 = vrot.slane %v3994_v17, 4  ;;  %v3999_v61 = vrot.slane %v3997_v26, 5  ;;  %v4004_v19 = vrot.slane %v4002_v43, 4  ;;  %v3870_v9 = vld [vmem:[#allocation2 + $0x5c] sm:$0x1]  ;;  %v9951_v15 = vld [vmem:[#allocation36_spill] sm:$0xff] }
 0x114   : > { %6846 = vmatprep.subr.bf16.mxu1 %v8483_v7  ;;  %v4007_v62 = vrot.slane %v4005_v29, 5  ;;  %v9950_v3 = vcombine.low %v8188_v18, %v8192_v1  ;;  %v8509_v41 = vcombine.low %v3966_v50, %v3976_v39  ;;  %v8511_v63 = vcombine.low %v2752_v14, %v2762_v24  ;;  %v9954_v1 = vld [vmem:[#allocation17_spill] sm:$0xff]  ;;  %v3829_v26 = vld [vmem:[#allocation2 + $0x64] sm:$0xf] }
 0x115   : > { %6739 = vmatmul.mubr.bf16.gmra.mxu0 %v9949_v2  ;;  %v2771_v53 = vrot.slane %v2770_v45, 4  ;;  %v2780_v51 = vor.u32 %v2779_v59, %v8498_v36  ;;  %v9953_v28 = vcombine.low %v9951_v15, %v9952_v27  ;;  %v2785_v60 = vrot.slane %v2783_v6, 5 }
 0x116   : > { %6742 = vmatprep.mubr.bf16.mxu0 %v9950_v3  ;;  %v4008_v25 = vor.u32 %v4007_v62, %v4004_v19  ;;  %v8517_v49 = vrot.slane %v4011_v35, 5  ;;  %v4015_v20 = vshrl.u32 %v3827_v58, 16  ;;  %v9955_v18 = vcombine.low %v8132_v11, %v9954_v1  ;;  %v7122_v35 = vld [vmem:[#allocation2 + $0x5c] sm:$0x1]  ;;  %v3871_v62 = vld [vmem:[#allocation2 + $0x68] sm:$0x1] }
 0x117   : > { %6687 = vmatmul.mubr.bf16.gmra.mxu1 %v9953_v28  ;;  %v3990_v50 = vsel %vm7246_vm6, %v3985_v12, %v8475_v0  ;;  %v2781_v52 = vrot.slane %v2780_v51, 4  ;;  %v2788_v39 = vshrl.u32 %v2613_v40, 16  ;;  %v2791_v17 = vshll.u32 %v2613_v40, 16 }
 0x118   : > { %6690 = vmatprep.mubr.bf16.mxu1 %v9955_v18  ;;  %v4000_v13 = vsel %vm7246_vm6, %v3995_v48, %v3999_v61  ;;  %v4017_v14 = vrot.slane %v4015_v20, 4  ;;  %v4021_v55 = vshll.u32 %v3870_v9, 16  ;;  %v2797_v58 = vshll.u32 %v7121_v54, 16  ;;  %v9956_v61 = vld [vmem:[#allocation42_spill] sm:$0xff]  ;;  %v9960_v20 = vld [vmem:[#allocation41_spill] sm:$0xff] }
 0x119   : > { %v2776_v11 = vsel %vm7246_vm6, %v2771_v53, %v8498_v36  ;;  %v2790_v24 = vrot.slane %v2788_v39, 4  ;;  %v2793_v44 = vrot.slane %v2791_v17, 5  ;;  %v2801_v6 = vshrl.u32 %v7121_v54, 16  ;;  %v9963_v39 = vld [vmem:[#allocation5_spill] sm:$0xff] }
 0x11a   : > { %v2786_v0 = vsel %vm7246_vm6, %v2781_v52, %v2785_v60  ;;  %v4009_v43 = vrot.slane %v4008_v25, 4  ;;  %v4018_v29 = vor.u32 %v4017_v14, %v8517_v49  ;;  %v8533_v12 = vrot.slane %v2797_v58, 5  ;;  %v2616_v60 = vld [vmem:[#allocation2 + $0x60] sm:$0xf]  ;;  %v9962_v52 = vld [vmem:[#allocation6_spill] sm:$0xff] }
 0x11b   : > { %v2794_v45 = vor.u32 %v2793_v44, %v2790_v24  ;;  %v2803_v59 = vrot.slane %v2801_v6, 4  ;;  %v2807_v2 = vshll.u32 %v7122_v35, 16  ;;  %v4026_v48 = vshrl.u32 %v3828_v37, 16  ;;  %v9959_v25 = vld [vmem:[#allocation40_spill] sm:$0xff] }
 0x11c   : > { %v9957_v19 = vcombine.low %v8207_v10, %v9956_v61  ;;  %v8538_v36 = vcombine.low %v3990_v50, %v4000_v13  ;;  %v4029_v40 = vshll.u32 %v3828_v37, 16  ;;  %v4035_v3 = vshll.u32 %v3829_v26, 16  ;;  %v7123_v6 = vld [vmem:[#allocation2 + $0x64] sm:$0xf] }
 0x11d   : > { %v4039_v53 = vshrl.u32 %v3829_v26, 16  ;;  %v9958_v51 = vcombine.low %v8245_v16, %v8263_v22  ;;  %v4019_v9 = vrot.slane %v4018_v29, 4  ;;  %v4023_v15 = vrot.slane %v4021_v55, 5 }
 0x11e   : > { %6743 = vmatmul.mubr.bf16.gmra.mxu0 %v9957_v19  ;;  %v2804_v27 = vor.u32 %v2803_v59, %v8533_v12  ;;  %v4028_v28 = vrot.slane %v4026_v48, 4  ;;  %v9961_v10 = vcombine.low %v9959_v25, %v9960_v20  ;;  %v8547_v1 = vcombine.low %v2776_v11, %v2786_v0  ;;  %v3830_v11 = vld [vmem:[#allocation2 + $0x6c] sm:$0xf]  ;;  %v3831_v59 = vld [vmem:[#allocation2 + $0x70] sm:$0xf] }
 0x11f   : > { %6746 = vmatprep.mubr.bf16.mxu0 %v9958_v51  ;;  %v4031_v18 = vrot.slane %v4029_v40, 5  ;;  %v4037_v37 = vrot.slane %v4035_v3, 5  ;;  %v4041_v50 = vrot.slane %v4039_v53, 4  ;;  %v9964_v17 = vcombine.low %v9962_v52, %v9963_v39  ;;  %v7124_v19 = vld [vmem:[#allocation2 + $0x68] sm:$0x1] }
 0x120   : > { %6691 = vmatmul.mubr.bf16.gmra.mxu1 %v9961_v10  ;;  %v4014_v16 = vsel %vm7246_vm6, %v4009_v43, %v8517_v49  ;;  %v2795_v22 = vrot.slane %v2794_v45, 4  ;;  %v2809_v26 = vrot.slane %v2807_v2, 5  ;;  %v4045_v13 = vshll.u32 %v3871_v62, 16  ;;  %v2619_v25 = vld [vmem:[#allocation2 + $0x6c] sm:$0xf] }
 0x121   : > { %6694 = vmatprep.mubr.bf16.mxu1 %v9964_v17  ;;  %v4032_v14 = vor.u32 %v4031_v18, %v4028_v28  ;;  %v4042_v55 = vor.u32 %v4041_v50, %v4037_v37  ;;  %v2812_v54 = vshrl.u32 %v2616_v60, 16  ;;  %v2815_v58 = vshll.u32 %v2616_v60, 16  ;;  %v3872_v60 = vld [vmem:[#allocation2 + $0x74] sm:$0x1] }
 0x122   : > { %v4024_v24 = vsel %vm7246_vm6, %v4019_v9, %v4023_v15  ;;  %v2805_v44 = vrot.slane %v2804_v27, 4  ;;  %v2821_v0 = vshll.u32 %v7123_v6, 16  ;;  %v2825_v29 = vshrl.u32 %v7123_v6, 16 }
 0x123   : > { %v4033_v35 = vrot.slane %v4032_v14, 4  ;;  %v4043_v48 = vrot.slane %v4042_v55, 4  ;;  %v4047_v61 = vrot.slane %v4045_v13, 5  ;;  %v2814_v49 = vrot.slane %v2812_v54, 4  ;;  %v3832_v14 = vld [vmem:[#allocation2 + $0x78] sm:$0xf] }
 0x124   : > { %v2817_v43 = vrot.slane %v2815_v58, 5  ;;  %v2823_v45 = vrot.slane %v2821_v0, 5  ;;  %v2827_v2 = vrot.slane %v2825_v29, 4  ;;  %v2831_v62 = vshll.u32 %v7124_v19, 16  ;;  %v7058_v58 = vld [vmem:[%s9761_s1 + $0x230] sm:$0xff]  }
 0x125   : > { %v8560_v40 = vcombine.low %v4014_v16, %v4024_v24  ;;  %v2800_v3 = vsel %vm7246_vm6, %v2795_v22, %v8533_v12  ;;  %v4050_v53 = vshrl.u32 %v3830_v11, 16  ;;  %v4053_v51 = vshll.u32 %v3830_v11, 16  ;;  %v7125_v29 = vld [vmem:[#allocation2 + $0x70] sm:$0xf] }
 0x126   : > { %6747 = vmatmul.mubr.bf16.gmra.mxu0 %v5962_v23  ;;  %v2810_v9 = vsel %vm7246_vm6, %v2805_v44, %v2809_v26  ;;  %v2818_v15 = vor.u32 %v2817_v43, %v2814_v49  ;;  %v2828_v27 = vor.u32 %v2827_v2, %v2823_v45  ;;  %v2833_v28 = vrot.slane %v2831_v62, 5 }
 0x127   : > { %6814 = vmatprep.mubr.bf16.mxu0 %v8386_v57  ;;  %v9967_v23 = vcombine.low %v9965_v4, %v9966_v8  ;;  %v4052_v20 = vrot.slane %v4050_v53, 4  ;;  %v4055_v10 = vrot.slane %v4053_v51, 5  ;;  %v4059_v18 = vshll.u32 %v3831_v59, 16 }
 0x128   : > { %v4063_v12 = vshrl.u32 %v3831_v59, 16  ;;  %v9968_v50 = vcombine.low %v8229_v5, %v8241_v31  ;;  %v4038_v57 = vsel %vm7246_vm6, %v4033_v35, %v4037_v37  ;;  %v4048_v52 = vsel %vm7246_vm6, %v4043_v48, %v4047_v61  ;;  %v8584_v37 = vld [vmem:[#allocation2 + $0x7c] sm:$0xf]  ;;  %v7126_v48 = vld [vmem:[#allocation2 + $0x74] sm:$0x1] }
 0x129   : > { %6695 = vmatmul.mubr.bf16.gmra.mxu1 %v9967_v23  ;;  %v2819_v39 = vrot.slane %v2818_v15, 4  ;;  %v2829_v17 = vrot.slane %v2828_v27, 4  ;;  %v8578_v16 = vrot.slane %v4059_v18, 5  ;;  %v4069_v26 = vshll.u32 %v3872_v60, 16  ;;  %v9969_v15 = vld [vmem:[#allocation11_spill] sm:$0xff] }
 0x12a   : > { %6698 = vmatprep.mubr.bf16.mxu1 %v9968_v50  ;;  %v4065_v22 = vrot.slane %v4063_v12, 4  ;;  %v2836_v13 = vshrl.u32 %v2619_v25, 16  ;;  %v4056_v31 = vor.u32 %v4055_v10, %v4052_v20  ;;  %v2839_v54 = vshll.u32 %v2619_v25, 16 }
 0x12b   : > { %v2824_v55 = vsel %vm7246_vm6, %v2819_v39, %v2823_v45  ;;  %v2834_v5 = vsel %vm7246_vm6, %v2829_v17, %v2833_v28  ;;  %v8589_v11 = vcombine.low %v2800_v3, %v2810_v9  ;;  %v8591_v24 = vcombine.low %v4038_v57, %v4048_v52  ;;  %v8597_v45 = vld [vmem:[#allocation2 + $0x80] sm:$0x1]  ;;  %v2622_v9 = vld [vmem:[#allocation2 + $0x78] sm:$0xf] }
 0x12c   : > { %v4066_v44 = vor.u32 %v4065_v22, %v8578_v16  ;;  %v2838_v6 = vrot.slane %v2836_v13, 4  ;;  %v2841_v0 = vrot.slane %v2839_v54, 5  ;;  %v2845_v59 = vshll.u32 %v7125_v29, 16  ;;  %v7062_v39 = vld [vmem:[%s9761_s1 + $0x220] sm:$0xff]   ;;  %v8626_v54 = vld [vmem:[#allocation2 + $0x88] sm:$0xf] }
 0x12d   : > { %v2849_v35 = vshrl.u32 %v7125_v29, 16  ;;  %v2855_v61 = vshll.u32 %v7126_v48, 16  ;;  %v8595_v49 = vcombine.low %v2824_v55, %v2834_v5  ;;  %v4071_v43 = vrot.slane %v4069_v26, 5  ;;  %v7127_v26 = vld [vmem:[#allocation2 + $0x7c] sm:$0xf] }
 0x12e   : > { %6815 = vmatmul.mubr.bf16.vlgmr.msra.gmra.mxu0 %v8420_v30  ;;  %v4074_v2 = vshrl.u32 %v3832_v14, 16  ;;  %v4077_v19 = vshll.u32 %v3832_v14, 16  ;;  %v4057_v62 = vrot.slane %v4056_v31, 4  ;;  %v2842_v3 = vor.u32 %v2841_v0, %v2838_v6  ;;  %v7060_v30 = vld [vmem:[%s9761_s1 + $0x228] sm:$0xff]   ;;  %v3834_v14 = vld [vmem:[#allocation2 + $0x84] sm:$0xf]  ;;  %v8634_v0 = vpop.f32.mrf.mxu0 }
 0x12f   : > { %6895 = vmatpush3.bf16.msra.mxu0 %v8425_v32  ;;  %6818 = vmatprep.mubr.bf16.mxu0 %v8468_v46  ;;  %v2847_v53 = vrot.slane %v2845_v59, 5  ;;  %v2851_v51 = vrot.slane %v2849_v35, 4  ;;  %v9970_v27 = vcombine.low %v8234_v33, %v9969_v15  ;;  %v4067_v28 = vrot.slane %v4066_v44, 4  ;;  %9971 = vst [vmem:[#allocation12_spill] sm:$0xff] %v8634_v0  ;;  %v7128_v59 = vld [vmem:[#allocation2 + $0x80] sm:$0x1] }
 0x130   : > { %6896 = vmatprep.subr.bf16.mxu0 %v7058_v58  ;;  %v4076_v60 = vrot.slane %v4074_v2, 4  ;;  %v4079_v25 = vrot.slane %v4077_v19, 5  ;;  %v4083_v32 = vshll.u32 %v8584_v37, 16  ;;  %v2843_v46 = vrot.slane %v2842_v3, 4  ;;  %v3874_v19 = vld [vmem:[#allocation2 + $0x8c] sm:$0x1] }
 0x131   : > { %6699 = vmatmul.mubr.bf16.gmra.mxu1 %v9970_v27  ;;  %v2852_v4 = vor.u32 %v2851_v51, %v2847_v53  ;;  %v2857_v8 = vrot.slane %v2855_v61, 5  ;;  %v4087_v23 = vshrl.u32 %v8584_v37, 16  ;;  %v4093_v10 = vshll.u32 %v8597_v45, 16  ;;  %v2625_v27 = vld [vmem:[#allocation2 + $0x84] sm:$0xf] }
 0x132   : > { %6766 = vmatprep.mubr.bf16.mxu1 %v8299_v38  ;;  %v4080_v20 = vor.u32 %v4079_v25, %v4076_v60  ;;  %v8610_v33 = vrot.slane %v4083_v32, 5  ;;  %v2860_v18 = vshrl.u32 %v2622_v9, 16  ;;  %v4062_v12 = vsel %vm7246_vm6, %v4057_v62, %v8578_v16 }
 0x133   : > { %6897 = vmatpush3.bf16.msra.mxu0 %v7058_v58  ;;  %v2853_v50 = vrot.slane %v2852_v4, 4  ;;  %v4089_v57 = vrot.slane %v4087_v23, 4  ;;  %v2863_v52 = vshll.u32 %v2622_v9, 16  ;;  %v4072_v38 = vsel %vm7246_vm6, %v4067_v28, %v4071_v43  ;;  %v7057_v58 = vld [vmem:[%s9761_s1 + $0x1b0] sm:$0xff]  }
 0x134   : > { %6898 = vmatprep.subr.bf16.mxu0 %v7060_v30  ;;  %v2848_v17 = vsel %vm7246_vm6, %v2843_v46, %v2847_v53  ;;  %v2862_v22 = vrot.slane %v2860_v18, 4  ;;  %v2869_v13 = vshll.u32 %v7127_v26, 16  ;;  %v8623_v55 = vrot.slane %v4080_v20, 4  ;;  %v8655_v46 = vpop.f32.mrf.mxu0 }
 0x135   : > { %v4090_v16 = vor.u32 %v4089_v57, %v8610_v33  ;;  %v2865_v5 = vrot.slane %v2863_v52, 5  ;;  %v2873_v31 = vshrl.u32 %v7127_v26, 16  ;;  %v2858_v44 = vsel %vm7246_vm6, %v2853_v50, %v2857_v8  ;;  %9972 = vst [vmem:[#allocation13_spill] sm:$0xff] %v8655_v46  ;;  %v7129_v57 = vld [vmem:[#allocation2 + $0x88] sm:$0xf] }
 0x136   : > { %6819 = vmatmul.mubr.bf16.gmra.mxu0 %v8509_v41  ;;  %v4095_v6 = vrot.slane %v4093_v10, 5  ;;  %v8636_v29 = vrot.slane %v2869_v13, 5  ;;  %v2879_v35 = vshll.u32 %v7128_v59, 16  ;;  %v4098_v43 = vshrl.u32 %v3834_v14, 16  ;;  %v8692_v59 = vld [vmem:[#allocation2 + $0x98] sm:$0x1] }
 0x137   : > { %6822 = vmatprep.mubr.bf16.mxu0 %v8538_v36  ;;  %6899 = vmatpush3.bf16.msra.mxu0 %v7060_v30  ;;  %v4091_v48 = vrot.slane %v4090_v16, 4  ;;  %v2866_v61 = vor.u32 %v2865_v5, %v2862_v22  ;;  %v2875_v41 = vrot.slane %v2873_v31, 4  ;;  %v8640_v2 = vcombine.low %v4062_v12, %v4072_v38  ;;  %v7064_v36 = vld [vmem:[%s9761_s1 + $0x218] sm:$0xff]   ;;  %v7059_v30 = vld [vmem:[%s9761_s1 + $0x1a8] sm:$0xff]   ;;  %v7066_v12 = vld [vmem:[%s9761_s1 + $0x210] sm:$0xff]  }
 0x138   : > { %6900 = vmatprep.subr.bf16.mxu0 %v7062_v39  ;;  %v4101_v62 = vshll.u32 %v3834_v14, 16  ;;  %v4107_v3 = vshll.u32 %v8626_v54, 16  ;;  %v4111_v53 = vshrl.u32 %v8626_v54, 16  ;;  %v8649_v51 = vcombine.low %v2848_v17, %v2858_v44  ;;  %v7061_v17 = vld [vmem:[%s9761_s1 + $0x1a0] sm:$0xff]   ;;  %v8675_v14 = vpop.f32.mrf.mxu0  ;;  %v7068_v44 = vld [vmem:[%s9761_s1 + $0x208] sm:$0xff]  }
 0x139   : > { %6767 = vmatmul.mubr.bf16.vlgmr.msra.gmra.mxu1 %v8350_v56  ;;  %v2867_v56 = vrot.slane %v2866_v61, 4  ;;  %v2876_v9 = vor.u32 %v2875_v41, %v8636_v29  ;;  %v4100_v15 = vrot.slane %v4098_v43, 4  ;;  %v2881_v28 = vrot.slane %v2879_v35, 5  ;;  %9973 = vst [vmem:[#allocation4_spill] sm:$0xff] %v8675_v14  ;;  %v2628_v61 = vld [vmem:[#allocation2 + $0x90] sm:$0xf] }
 0x13a   : > { %6847 = vmatpush3.bf16.msra.mxu1 %v8483_v7  ;;  %6770 = vmatprep.mubr.bf16.mxu1 %v8433_v34  ;;  %v4103_v60 = vrot.slane %v4101_v62, 5  ;;  %v4109_v25 = vrot.slane %v4107_v3, 5  ;;  %v4113_v32 = vrot.slane %v4111_v53, 4  ;;  %v4086_v34 = vsel %vm7246_vm6, %v8623_v55, %v8610_v33  ;;  %v7063_v3 = vld [vmem:[%s9761_s1 + $0x198] sm:$0xff]   ;;  %v8701_v53 = vpop.f32.mrf.mxu0  ;;  %v7154_v46 = vld [vmem:[#allocation2 + $0x50] sm:$0x1] }
 0x13b   : > { %6848 = vmatprep.subr.bf16.mxu1 %v7057_v58  ;;  %6901 = vmatpush3.bf16.msra.mxu0 %v7062_v39  ;;  %v4096_v7 = vsel %vm7246_vm6, %v4091_v48, %v4095_v6  ;;  %v2877_v4 = vrot.slane %v2876_v9, 4  ;;  %v4117_v8 = vshll.u32 %v3874_v19, 16  ;;  %v2884_v10 = vshrl.u32 %v2625_v27, 16  ;;  %v3836_v39 = vld [vmem:[#allocation2 + $0x90] sm:$0xf]  ;;  %v8686_v6 = vpop.f32.mrf.mxu1  ;;  %9975 = vst [vmem:[#allocation9_spill] sm:$0xff] %v8701_v53 }
 0x13c   : > { %v4104_v23 = vor.u32 %v4103_v60, %v4100_v15  ;;  %v4114_v20 = vor.u32 %v4113_v32, %v4109_v25  ;;  %6902 = vmatprep.subr.bf16.mxu0 %v7064_v36  ;;  %v2887_v18 = vshll.u32 %v2625_v27, 16  ;;  %v2872_v50 = vsel %vm7246_vm6, %v2867_v56, %v8636_v29  ;;  %9974 = vst [vmem:[#allocation14_spill] sm:$0xff] %v8686_v6  ;;  %v7130_v19 = vld [vmem:[#allocation2 + $0x8c] sm:$0x1] }
 0x13d   : > { %v4119_v33 = vrot.slane %v4117_v8, 5  ;;  %v2893_v52 = vshll.u32 %v7129_v57, 16  ;;  %v2897_v38 = vshrl.u32 %v7129_v57, 16  ;;  %v2882_v22 = vsel %vm7246_vm6, %v2877_v4, %v2881_v28  ;;  %v8710_v60 = vpop.f32.mrf.mxu1  ;;  %v8712_v4 = vld [vmem:[#allocation2 + $0x9c] sm:$0xf]  ;;  %v7070_v8 = vld [vmem:[%s9761_s1 + $0x200] sm:$0xff]   ;;  %v8722_v57 = vpop.f32.mrf.mxu0 }
 0x13e   : > { %6849 = vmatpush3.bf16.msra.mxu1 %v7057_v58  ;;  %6823 = vmatmul.mubr.bf16.gmra.mxu0 %v8560_v40  ;;  %v4105_v26 = vrot.slane %v4104_v23, 4  ;;  %v4115_v13 = vrot.slane %v4114_v20, 4  ;;  %v2886_v55 = vrot.slane %v2884_v10, 4  ;;  %v6035_v16 = vcombine.low %v4086_v34, %v4096_v7  ;;  %v8680_v58 = vld [vmem:[#allocation2 + $0x94] sm:$0xf]  ;;  %9976 = vst [vmem:[#allocation15_spill] sm:$0xff] %v8710_v60 }
 0x13f   : > { %6850 = vmatprep.subr.bf16.mxu1 %v7059_v30  ;;  %6826 = vmatprep.mubr.bf16.mxu0 %v8591_v24  ;;  %v2889_v5 = vrot.slane %v2887_v18, 5  ;;  %v8678_v31 = vrot.slane %v2893_v52, 5  ;;  %v2899_v40 = vrot.slane %v2897_v38, 4  ;;  %v4122_v35 = vshrl.u32 %v3836_v39, 16  ;;  %9977 = vst [vmem:[#allocation3_spill] sm:$0xff] %v8722_v57  ;;  %v7065_v38 = vld [vmem:[%s9761_s1 + $0x190] sm:$0xff]  }
 0x140   : > { %6903 = vmatpush3.bf16.msra.mxu0 %v7064_v36  ;;  %v4110_v29 = vsel %vm7246_vm6, %v4105_v26, %v4109_v25  ;;  %v4120_v24 = vsel %vm7246_vm6, %v4115_v13, %v4119_v33  ;;  %v4125_v48 = vshll.u32 %v3836_v39, 16  ;;  %v8695_v41 = vcombine.low %v2872_v50, %v2882_v22  ;;  %v7131_v39 = vld [vmem:[#allocation2 + $0x94] sm:$0xf]  ;;  %v7132_v26 = vld [vmem:[#allocation2 + $0x98] sm:$0x1] }
 0x141   : > { %6771 = vmatmul.mubr.bf16.gmra.mxu1 %v8473_v21  ;;  %6904 = vmatprep.subr.bf16.mxu0 %v7066_v12  ;;  %v2890_v21 = vor.u32 %v2889_v5, %v2886_v55  ;;  %v2900_v43 = vor.u32 %v2899_v40, %v8678_v31  ;;  %v2903_v62 = vshll.u32 %v7130_v19, 16  ;;  %v4124_v36 = vrot.slane %v4122_v35, 4  ;;  %v8727_v55 = vld [vmem:[#allocation2 + $0xa0] sm:$0xf]  ;;  %v8731_v5 = vpop.f32.mrf.mxu1 }
 0x142   : > { %6774 = vmatprep.mubr.bf16.mxu1 %v8511_v63  ;;  %6851 = vmatpush3.bf16.msra.mxu1 %v7059_v30  ;;  %v4127_v56 = vrot.slane %v4125_v48, 5  ;;  %v4131_v9 = vshll.u32 %v8680_v58, 16  ;;  %v4135_v63 = vshrl.u32 %v8680_v58, 16  ;;  %v8705_v15 = vcombine.low %v4110_v29, %v4120_v24  ;;  %9978 = vst [vmem:[#allocation16_spill] sm:$0xff] %v8731_v5 }
 0x143   : > { %6852 = vmatprep.subr.bf16.mxu1 %v7061_v17  ;;  %v8707_v27 = vrot.slane %v2890_v21, 4  ;;  %v4141_v30 = vshll.u32 %v8692_v59, 16  ;;  %v2908_v28 = vshrl.u32 %v2628_v61, 16  ;;  %v2911_v7 = vshll.u32 %v2628_v61, 16 }
 0x144   : > { %6905 = vmatpush3.bf16.msra.mxu0 %v7066_v12  ;;  %v4128_v25 = vor.u32 %v4127_v56, %v4124_v36  ;;  %v4133_v32 = vrot.slane %v4131_v9, 5  ;;  %v4137_v34 = vrot.slane %v4135_v63, 4  ;;  %v2901_v20 = vrot.slane %v2900_v43, 4 }
 0x145   : > { %6906 = vmatprep.subr.bf16.mxu0 %v7068_v44  ;;  %v2896_v23 = vsel %vm7246_vm6, %v8707_v27, %v8678_v31  ;;  %v2905_v10 = vrot.slane %v2903_v62, 5  ;;  %v2910_v18 = vrot.slane %v2908_v28, 4  ;;  %v4143_v33 = vrot.slane %v4141_v30, 5  ;;  %v8748_v62 = vpop.f32.mrf.mxu0  ;;  %v8756_v27 = vpop.f32.mrf.mxu1 }
 0x146   : > { %6853 = vmatpush3.bf16.msra.mxu1 %v7061_v17  ;;  %6827 = vmatmul.mubr.bf16.gmra.mxu0 %v8640_v2  ;;  %v4129_v12 = vrot.slane %v4128_v25, 4  ;;  %v4138_v50 = vor.u32 %v4137_v34, %v4133_v32  ;;  %v2913_v52 = vrot.slane %v2911_v7, 5  ;;  %v2917_v17 = vshll.u32 %v7131_v39, 16  ;;  %9979 = vst [vmem:[#allocation10_spill] sm:$0xff] %v8748_v62  ;;  %9980 = vst [vmem:[#allocation18_spill] sm:$0xff] %v8756_v27 }
 0x147   : > { %6854 = vmatprep.subr.bf16.mxu1 %v7063_v3  ;;  %6830 = vmatprep.mubr.bf16.mxu0 %v6035_v16  ;;  %v2921_v22 = vshrl.u32 %v7131_v39, 16  ;;  %v2927_v13 = vshll.u32 %v7132_v26, 16  ;;  %v4146_v2 = vshrl.u32 %v8712_v4, 16  ;;  %v8735_v16 = vld [vmem:[#allocation2 + $0xa4] sm:$0x1]  ;;  %v4149_v24 = vshll.u32 %v8712_v4, 16 }
 0x148   : > { %6907 = vmatpush3.bf16.msra.mxu0 %v7068_v44  ;;  %v4134_v31 = vsel %vm7246_vm6, %v4129_v12, %v4133_v32  ;;  %v4139_v40 = vrot.slane %v4138_v50, 4  ;;  %v2914_v29 = vor.u32 %v2913_v52, %v2910_v18  ;;  %v2906_v44 = vsel %vm7246_vm6, %v2901_v20, %v2905_v10  ;;  %v8768_v18 = vpop.f32.mrf.mxu0  ;;  %v7133_v50 = vld [vmem:[#allocation2 + $0xa0] sm:$0xf]  ;;  %v8770_v39 = vld [vmem:[#allocation2 + $0xa8] sm:$0xf] }
 0x149   : > { %6775 = vmatmul.mubr.bf16.gmra.mxu1 %v8547_v1  ;;  %6908 = vmatprep.subr.bf16.mxu0 %v7070_v8  ;;  %v8741_v35 = vrot.slane %v2917_v17, 5  ;;  %v2923_v1 = vrot.slane %v2921_v22, 4  ;;  %v4148_v48 = vrot.slane %v4146_v2, 4  ;;  %v4151_v43 = vrot.slane %v4149_v24, 5  ;;  %9981 = vst [vmem:[#allocation19_spill] sm:$0xff] %v8768_v18 }
 0x14a   : > { %6778 = vmatprep.mubr.bf16.mxu1 %v8589_v11  ;;  %6855 = vmatpush3.bf16.msra.mxu1 %v7063_v3  ;;  %v4144_v61 = vsel %vm7246_vm6, %v4139_v40, %v4143_v33  ;;  %v8745_v21 = vrot.slane %v2914_v29, 4  ;;  %v4155_v19 = vshll.u32 %v8727_v55, 16  ;;  %v2631_v11 = vld [vmem:[#allocation2 + $0x9c] sm:$0xf]  ;;  %v7067_v3 = vld [vmem:[%s9761_s1 + $0x188] sm:$0xff]   ;;  %v4159_v9 = vshrl.u32 %v8727_v55, 16 }
 0x14b   : > { %6856 = vmatprep.subr.bf16.mxu1 %v7065_v38  ;;  %v6037_v36 = vcombine.low %v4134_v31, %v4144_v61  ;;  %v2924_v56 = vor.u32 %v2923_v1, %v8741_v35  ;;  %v4165_v63 = vshll.u32 %v8735_v16, 16  ;;  %v8758_v30 = vcombine.low %v2896_v23, %v2906_v44  ;;  %v7134_v26 = vld [vmem:[#allocation2 + $0xa4] sm:$0x1]  ;;  %v8772_v2 = vld [vmem:[#allocation2 + $0xac] sm:$0xf]  ;;  %v8787_v61 = vpop.f32.mrf.mxu0 }
 0x14c   : > { %6909 = vmatpush3.bf16.msra.mxu0 %v7070_v8  ;;  %v2929_v28 = vrot.slane %v2927_v13, 5  ;;  %v4152_v25 = vor.u32 %v4151_v43, %v4148_v48  ;;  %v4157_v32 = vrot.slane %v4155_v19, 5  ;;  %v2920_v34 = vsel %vm7246_vm6, %v8745_v21, %v8741_v35  ;;  %v7069_v8 = vld [vmem:[%s9761_s1 + $0x180] sm:$0xff]   ;;  %v8783_v44 = vld [vmem:[#allocation2 + $0xb0] sm:$0x1] }
 0x14d   : > { %v2925_v7 = vrot.slane %v2924_v56, 4  ;;  %v4161_v20 = vrot.slane %v4159_v9, 4  ;;  %v2932_v10 = vshrl.u32 %v2631_v11, 16  ;;  %v2935_v12 = vshll.u32 %v2631_v11, 16  ;;  %v4893_v62 = vld [vmem:[#allocation2 + $0x24] sm:$0xe] }
 0x14e   : > { %6857 = vmatpush3.bf16.msra.mxu1 %v7065_v38  ;;  %6831 = vmatmul.mubr.bf16.gmra.mxu0 %v8705_v15  ;;  %v4153_v23 = vrot.slane %v4152_v25, 4  ;;  %v2941_v33 = vshll.u32 %v7133_v50, 16  ;;  %v2945_v52 = vshrl.u32 %v7133_v50, 16  ;;  %v4167_v38 = vrot.slane %v4165_v63, 5  ;;  %v8775_v15 = vpop.f32.mrf.mxu1 }
 0x14f   : > { %6858 = vmatprep.subr.bf16.mxu1 %v7067_v3  ;;  %6834 = vmatprep.mubr.bf16.mxu0 %v6037_v36  ;;  %v4162_v17 = vor.u32 %v4161_v20, %v4157_v32  ;;  %v2934_v22 = vrot.slane %v2932_v10, 4  ;;  %v2951_v13 = vshll.u32 %v7134_v26, 16  ;;  %9982 = vst [vmem:[#allocation20_spill] sm:$0xff] %v8775_v15  ;;  %v2930_v31 = vsel %vm7246_vm6, %v2925_v7, %v2929_v28  ;;  %v2634_v36 = vld [vmem:[#allocation2 + $0xa8] sm:$0xf] }
 0x150   : > { %v4158_v40 = vsel %vm7246_vm6, %v4153_v23, %v4157_v32  ;;  %v2937_v29 = vrot.slane %v2935_v12, 5  ;;  %v8781_v24 = vrot.slane %v2941_v33, 5  ;;  %v2947_v1 = vrot.slane %v2945_v52, 4  ;;  %v8796_v28 = vpop.f32.mrf.mxu1  ;;  %v8798_v52 = vpop.f32.mrf.mxu0  ;;  %v8800_v26 = vld [vmem:[#allocation2 + $0xb4] sm:$0xf] }
 0x151   : > { %6779 = vmatmul.mubr.bf16.gmra.mxu1 %v8595_v49  ;;  %v4163_v35 = vrot.slane %v4162_v17, 4  ;;  %v2953_v48 = vrot.slane %v2951_v13, 5  ;;  %v4170_v49 = vshrl.u32 %v8770_v39, 16  ;;  %v4173_v43 = vshll.u32 %v8770_v39, 16  ;;  %9983 = vst [vmem:[#allocation31_spill] sm:$0xff] %v8796_v28 }
 0x152   : > { %6782 = vmatprep.mubr.bf16.mxu1 %v8649_v51  ;;  %6859 = vmatpush3.bf16.msra.mxu1 %v7067_v3  ;;  %v2938_v21 = vor.u32 %v2937_v29, %v2934_v22  ;;  %v4179_v19 = vshll.u32 %v8772_v2, 16  ;;  %v4183_v11 = vshrl.u32 %v8772_v2, 16  ;;  %v2948_v56 = vor.u32 %v2947_v1, %v8781_v24  ;;  %v8805_v29 = vld [vmem:[#allocation2 + $0xb8] sm:$0xf]  ;;  %v8873_v15 = vld [vmem:[#allocation2 + $0xd4] sm:$0x1] }
 0x153   : > { %6860 = vmatprep.subr.bf16.mxu1 %v7069_v8  ;;  %v4168_v51 = vsel %vm7246_vm6, %v4163_v35, %v4167_v38  ;;  %v4172_v9 = vrot.slane %v4170_v49, 4  ;;  %v4189_v63 = vshll.u32 %v8783_v44, 16  ;;  %v4175_v32 = vrot.slane %v4173_v43, 5  ;;  %v7135_v38 = vld [vmem:[#allocation2 + $0xac] sm:$0xf] }
 0x154   : > { %v6038_v3 = vcombine.low %v4158_v40, %v4168_v51  ;;  %v2939_v25 = vrot.slane %v2938_v21, 4  ;;  %v4181_v7 = vrot.slane %v4179_v19, 5  ;;  %v5982_v20 = vcombine.low %v2920_v34, %v2930_v31 }
 0x155   : > { %v2949_v10 = vrot.slane %v2948_v56, 4  ;;  %v4185_v23 = vrot.slane %v4183_v11, 4  ;;  %v2956_v12 = vshrl.u32 %v2634_v36, 16  ;;  %v4176_v50 = vor.u32 %v4175_v32, %v4172_v9  ;;  %v8816_v56 = vld [vmem:[#allocation2 + $0xbc] sm:$0x1] }
 0x156   : > { %6861 = vmatpush3.bf16.msra.mxu1 %v7069_v8  ;;  %6835 = vmatmul.mubr.bf16.gmra.mxu0 %v6038_v3  ;;  %v4191_v33 = vrot.slane %v4189_v63, 5  ;;  %v2959_v17 = vshll.u32 %v2634_v36, 16  ;;  %v2965_v22 = vshll.u32 %v7135_v38, 16  ;;  %v2944_v13 = vsel %vm7246_vm6, %v2939_v25, %v8781_v24  ;;  %v8808_v8 = vpop.f32.mrf.mxu1  ;;  %v7136_v24 = vld [vmem:[#allocation2 + $0xb0] sm:$0x1]  ;;  %v8820_v63 = vpop.f32.mrf.mxu0 }
 0x157   : > { %v4186_v40 = vor.u32 %v4185_v23, %v4181_v7  ;;  %v2958_v34 = vrot.slane %v2956_v12, 4  ;;  %v2969_v31 = vshrl.u32 %v7135_v38, 16  ;;  %9984 = vst [vmem:[#allocation22_spill] sm:$0xff] %v8808_v8  ;;  %v2954_v35 = vsel %vm7246_vm6, %v2949_v10, %v2953_v48  ;;  %v2637_v10 = vld [vmem:[#allocation2 + $0xb4] sm:$0xf] }
 0x158   : > { %v4177_v1 = vrot.slane %v4176_v50, 4  ;;  %v2961_v49 = vrot.slane %v2959_v17, 5  ;;  %v2967_v21 = vrot.slane %v2965_v22, 5  ;;  %v2975_v11 = vshll.u32 %v7136_v24, 16  ;;  %v8824_v23 = vpop.f32.mrf.mxu1  ;;  %v7137_v24 = vld [vmem:[#allocation2 + $0xb8] sm:$0xf] }
 0x159   : > { %6783 = vmatmul.mubr.bf16.gmra.mxu1 %v8695_v41  ;;  %v4187_v43 = vrot.slane %v4186_v40, 4  ;;  %v2971_v19 = vrot.slane %v2969_v31, 4  ;;  %v4194_v36 = vshrl.u32 %v8800_v26, 16  ;;  %v4197_v9 = vshll.u32 %v8800_v26, 16  ;;  %9985 = vst [vmem:[#allocation23_spill] sm:$0xff] %v8824_v23 }
 0x15a   : > { %6786 = vmatprep.mubr.bf16.mxu1 %v8758_v30  ;;  %v4182_v51 = vsel %vm7246_vm6, %v4177_v1, %v4181_v7  ;;  %v2962_v41 = vor.u32 %v2961_v49, %v2958_v34  ;;  %v4203_v48 = vshll.u32 %v8805_v29, 16  ;;  %v2977_v25 = vrot.slane %v2975_v11, 5  ;;  %v8830_v1 = vpop.f32.mrf.mxu0 }
 0x15b   : > { %v4192_v30 = vsel %vm7246_vm6, %v4187_v43, %v4191_v33  ;;  %v2972_v3 = vor.u32 %v2971_v19, %v2967_v21  ;;  %v4196_v32 = vrot.slane %v4194_v36, 4  ;;  %v5983_v12 = vcombine.low %v2944_v13, %v2954_v35  ;;  %v8834_v36 = vld [vmem:[#allocation2 + $0xc0] sm:$0xf] }
 0x15c   : > { %v6039_v7 = vcombine.low %v4182_v51, %v4192_v30  ;;  %v2963_v50 = vrot.slane %v2962_v41, 4  ;;  %v4199_v17 = vrot.slane %v4197_v9, 5  ;;  %v4205_v22 = vrot.slane %v4203_v48, 5  ;;  %v8836_v51 = vpop.f32.mrf.mxu1  ;;  %v8838_v30 = vld [vmem:[#allocation2 + $0xc4] sm:$0xf] }
 0x15d   : > { %v2973_v38 = vrot.slane %v2972_v3, 4  ;;  %v4207_v40 = vshrl.u32 %v8805_v29, 16  ;;  %v4213_v34 = vshll.u32 %v8816_v56, 16  ;;  %v2980_v49 = vshrl.u32 %v2637_v10, 16  ;;  %9986 = vst [vmem:[#allocation21_spill] sm:$0xff] %v8836_v51 }
 0x15e   : > { %6838 = vmatprep.mubr.bf16.mxu0 %v6039_v7  ;;  %v2968_v33 = vsel %vm7246_vm6, %v2963_v50, %v2967_v21  ;;  %v4200_v31 = vor.u32 %v4199_v17, %v4196_v32  ;;  %v2983_v43 = vshll.u32 %v2637_v10, 16  ;;  %v2989_v11 = vshll.u32 %v7137_v24, 16  ;;  %v8842_v17 = vpop.f32.mrf.mxu0 }
 0x15f   : > { %v2978_v13 = vsel %vm7246_vm6, %v2973_v38, %v2977_v25  ;;  %v4209_v35 = vrot.slane %v4207_v40, 4  ;;  %v4215_v19 = vrot.slane %v4213_v34, 5  ;;  %v2982_v21 = vrot.slane %v2980_v49, 4  ;;  %v7138_v25 = vld [vmem:[#allocation2 + $0xbc] sm:$0x1] }
 0x160   : > { %v5984_v41 = vcombine.low %v2968_v33, %v2978_v13  ;;  %v4201_v9 = vrot.slane %v4200_v31, 4  ;;  %v2985_v48 = vrot.slane %v2983_v43, 5  ;;  %v2991_v32 = vrot.slane %v2989_v11, 5  ;;  %v8844_v38 = vld [vmem:[#allocation2 + $0xc8] sm:$0x1]  ;;  %v8849_v43 = vpop.f32.mrf.mxu1 }
 0x161   : > { %6787 = vmatmul.mubr.bf16.gmra.mxu1 %v5982_v20  ;;  %v4210_v3 = vor.u32 %v4209_v35, %v4205_v22  ;;  %v2993_v10 = vshrl.u32 %v7137_v24, 16  ;;  %v2999_v7 = vshll.u32 %v7138_v25, 16  ;;  %v4218_v40 = vshrl.u32 %v8834_v36, 16  ;;  %9987 = vst [vmem:[#allocation24_spill] sm:$0xff] %v8849_v43  ;;  %v2640_v11 = vld [vmem:[#allocation2 + $0xc0] sm:$0xf]  ;;  %v8857_v43 = vpop.f32.mrf.mxu0 }
 0x162   : > { %6790 = vmatprep.mubr.bf16.mxu1 %v5983_v12  ;;  %v4206_v50 = vsel %vm7246_vm6, %v4201_v9, %v4205_v22  ;;  %v2986_v20 = vor.u32 %v2985_v48, %v2982_v21  ;;  %v4221_v34 = vshll.u32 %v8834_v36, 16  ;;  %v4227_v49 = vshll.u32 %v8838_v30, 16  ;;  %v8859_v8 = vpop.f32.mrf.mxu1 }
 0x163   : > { %v4211_v33 = vrot.slane %v4210_v3, 4  ;;  %v2995_v31 = vrot.slane %v2993_v10, 4  ;;  %v3001_v12 = vrot.slane %v2999_v7, 5  ;;  %v4220_v35 = vrot.slane %v4218_v40, 4  ;;  %9988 = vst [vmem:[#allocation25_spill] sm:$0xff] %v8859_v8 }
 0x164   : > { %v2987_v13 = vrot.slane %v2986_v20, 4  ;;  %v4223_v24 = vrot.slane %v4221_v34, 5  ;;  %v4231_v22 = vshrl.u32 %v8838_v30, 16  ;;  %v4229_v48 = vrot.slane %v4227_v49, 5 }
 0x165   : > { %v4216_v9 = vsel %vm7246_vm6, %v4211_v33, %v4215_v19  ;;  %v2996_v21 = vor.u32 %v2995_v31, %v2991_v32  ;;  %v4237_v25 = vshll.u32 %v8844_v38, 16  ;;  %v3004_v34 = vshrl.u32 %v2640_v11, 16  ;;  %v7139_v31 = vld [vmem:[#allocation2 + $0xc4] sm:$0xf] }
 0x166   : > { %v6040_v3 = vcombine.low %v4206_v50, %v4216_v9  ;;  %v2992_v10 = vsel %vm7246_vm6, %v2987_v13, %v2991_v32  ;;  %v4224_v7 = vor.u32 %v4223_v24, %v4220_v35  ;;  %v4233_v51 = vrot.slane %v4231_v22, 4  ;;  %v8861_v9 = vld [vmem:[#allocation2 + $0xcc] sm:$0xf]  ;;  %v8863_v32 = vpop.f32.mrf.mxu0  ;;  %v7140_v22 = vld [vmem:[#allocation2 + $0xc8] sm:$0x1] }
 0x167   : > { %v2997_v20 = vrot.slane %v2996_v21, 4  ;;  %v4239_v40 = vrot.slane %v4237_v25, 5  ;;  %v3007_v23 = vshll.u32 %v2640_v11, 16  ;;  %v3013_v49 = vshll.u32 %v7139_v31, 16 }
 0x168   : > { %6839 = vmatmul.mubr.bf16.gmra.mxu0 %v6040_v3  ;;  %v4225_v19 = vrot.slane %v4224_v7, 4  ;;  %v4234_v33 = vor.u32 %v4233_v51, %v4229_v48  ;;  %v3017_v50 = vshrl.u32 %v7139_v31, 16  ;;  %v3006_v35 = vrot.slane %v3004_v34, 4  ;;  %v8871_v7 = vpop.f32.mrf.mxu0 }
 0x169   : > { %6791 = vmatmul.mubr.bf16.gmra.mxu1 %v5984_v41  ;;  %v3002_v13 = vsel %vm7246_vm6, %v2997_v20, %v3001_v12  ;;  %v3009_v24 = vrot.slane %v3007_v23, 5  ;;  %v3023_v11 = vshll.u32 %v7140_v22, 16  ;;  %v8867_v41 = vld [vmem:[#allocation2 + $0xd0] sm:$0xf]  ;;  %v3015_v3 = vrot.slane %v3013_v49, 5  ;;  %v8876_v23 = vpop.f32.mrf.mxu1 }
 0x16a   : > { %v5985_v21 = vcombine.low %v2992_v10, %v3002_v13  ;;  %v4230_v51 = vsel %vm7246_vm6, %v4225_v19, %v4229_v48  ;;  %v4235_v25 = vrot.slane %v4234_v33, 4  ;;  %v3019_v8 = vrot.slane %v3017_v50, 4  ;;  %v8883_v19 = vpop.f32.mrf.mxu0 }
 0x16b   : > { %v3010_v31 = vor.u32 %v3009_v24, %v3006_v35  ;;  %v3025_v28 = vrot.slane %v3023_v11, 5  ;;  %v4242_v12 = vshrl.u32 %v8861_v9, 16  ;;  %v4245_v20 = vshll.u32 %v8861_v9, 16  ;;  %v4892_v35 = vld [vmem:[#allocation2 + $0x18] sm:$0xe]  ;;  %v8890_v5 = vpop.f32.mrf.mxu1 }
 0x16c   : > { %6794 = vmatprep.mubr.bf16.mxu1 %v5985_v21  ;;  %v4240_v10 = vsel %vm7246_vm6, %v4235_v25, %v4239_v40  ;;  %v4251_v48 = vshll.u32 %v8867_v41, 16  ;;  %v4255_v34 = vshrl.u32 %v8867_v41, 16  ;;  %v3020_v50 = vor.u32 %v3019_v8, %v3015_v3  ;;  %v8886_v27 = vpop.f32.mrf.mxu0 }
 0x16d   : > { %v6041_v33 = vcombine.low %v4230_v51, %v4240_v10  ;;  %v3011_v49 = vrot.slane %v3010_v31, 4  ;;  %v4244_v13 = vrot.slane %v4242_v12, 4  ;;  %v4247_v24 = vrot.slane %v4245_v20, 5  ;;  %9989 = vst [vmem:[#allocation35_spill] sm:$0xff] %v8886_v27  ;;  %v7141_v20 = vld [vmem:[#allocation2 + $0x18] sm:$0xf]  ;;  %v8896_v57 = vpop.f32.mrf.mxu1 }
 0x16e   : > { %v4253_v22 = vrot.slane %v4251_v48, 5  ;;  %v4257_v11 = vrot.slane %v4255_v34, 4  ;;  %v4261_v21 = vshll.u32 %v8873_v15, 16  ;;  %v3021_v25 = vrot.slane %v3020_v50, 4  ;;  %v8892_v12 = vpop.f32.mrf.mxu0  ;;  %v7142_v48 = vld [vmem:[#allocation2 + $0x1c] sm:$0xf] }
 0x16f   : > { %6842 = vmatprep.mubr.bf16.mxu0 %v6041_v33  ;;  %v3016_v40 = vsel %vm7246_vm6, %v3011_v49, %v3015_v3  ;;  %v4248_v60 = vor.u32 %v4247_v24, %v4244_v13  ;;  %v6075_v8 = vrot.slane %v4892_v35, 9  ;;  %9990 = vst [vmem:[#allocation37_spill] sm:$0xff] %v8892_v12  ;;  %v6051_v34 = vcombine.low %v7141_v20, %v7142_v48  ;;  %v7143_v33 = vld [vmem:[#allocation2 + $0x20] sm:$0x1]  ;;  %v4894_v35 = vld [vmem:[#allocation2 + $0x30] sm:$0xe] }
 0x170   : > { %v4258_v51 = vor.u32 %v4257_v11, %v4253_v22  ;;  %v4263_v31 = vrot.slane %v4261_v21, 5  ;;  %v3026_v10 = vsel %vm7246_vm6, %v3021_v25, %v3025_v28  ;;  %v4942_v6 = vrot.slane %v7142_v48, 5  ;;  %v8898_v13 = vpop.f32.mrf.mxu0  ;;  %v7144_v24 = vld [vmem:[#allocation2 + $0x2c] sm:$0x1]  ;;  %v7145_v25 = vld [vmem:[#allocation2 + $0x28] sm:$0xf] }
 0x171   : > { %v4945_v18 = vrot.slane %v7143_v33, 5  ;;  %v5986_v3 = vcombine.low %v3016_v40, %v3026_v10  ;;  %v4249_v49 = vrot.slane %v4248_v60, 4  ;;  %9991 = vst [vmem:[#allocation28_spill] sm:$0xff] %v8898_v13  ;;  %v4952_v11 = vrot.slane %v7144_v24, 5  ;;  %v8906_v40 = vpop.f32.mrf.mxu1  ;;  %v7146_v33 = vld [vmem:[#allocation2 + $0x34] sm:$0xf] }
 0x172   : > { %v4259_v50 = vrot.slane %v4258_v51, 4  ;;  %v4943_v28 = vsel %vm7730_vm13, %v6075_v8, %v4942_v6  ;;  %v4944_v21 = vrot.slane %v4942_v6, 4  ;;  %v4949_v20 = vrot.slane %v7145_v25, 5  ;;  %9992 = vst [vmem:[#allocation30_spill] sm:$0xff] %v8906_v40  ;;  %v8908_v10 = vpop.f32.mrf.mxu0  ;;  %v4897_v12 = vld [vmem:[#allocation2 + $0x54] sm:$0xe] }
 0x173   : > { %6795 = vmatmul.mubr.bf16.gmra.mxu1 %v5986_v3  ;;  %v4254_v48 = vsel %vm7246_vm6, %v4249_v49, %v4253_v22  ;;  %v6076_v51 = vrot.slane %v4893_v62, 9  ;;  %9993 = vst [vmem:[#allocation26_spill] sm:$0xff] %v8908_v10  ;;  %v4956_v24 = vrot.slane %v7146_v33, 5  ;;  %v6077_v3 = vrot.slane %v4894_v35, 9  ;;  %v8912_v13 = vpop.f32.mrf.mxu1  ;;  %v7148_v10 = vld [vmem:[#allocation2 + $0x24] sm:$0xf] }
 0x174   : > { %v4264_v60 = vsel %vm7246_vm6, %v4259_v50, %v4263_v31  ;;  %6862 = vmatprep.mubr.bf16.mxu1 %v6051_v34  ;;  %v4946_v6 = vsel %vm7730_vm13, %v4944_v21, %v4945_v18  ;;  %v4951_v8 = vrot.slane %v4949_v20, 4  ;;  %9994 = vst [vmem:[#allocation27_spill] sm:$0xff] %v8912_v13  ;;  %v4959_v31 = vrot.slane %v7147_v47, 5  ;;  %v8914_v50 = vpop.f32.mrf.mxu0  ;;  %v8922_v35 = vld [vmem:[#allocation2 + $0x40] sm:$0xf] }
 0x175   : > { %v6042_v53 = vcombine.low %v4254_v48, %v4264_v60  ;;  %v6107_v22 = vcombine.low %v4943_v28, %v4946_v6  ;;  %v4958_v49 = vrot.slane %v4956_v24, 4  ;;  %9995 = vst [vmem:[#allocation39_spill] sm:$0xff] %v8914_v50  ;;  %v8916_v62 = vpop.f32.mrf.mxu1  ;;  %v6052_v48 = vcombine.low %v7148_v10, %v7145_v25  ;;  %v7150_v60 = vld [vmem:[#allocation2 + $0x30] sm:$0xf]  ;;  %v4895_v10 = vld [vmem:[#allocation2 + $0x3c] sm:$0xe] }
 0x176   : > { %9996 = vst [vmem:[#allocation29_spill] sm:$0xff] %v8916_v62  ;;  %v4950_v34 = vsel %vm7730_vm13, %v6076_v51, %v4949_v20  ;;  %v4953_v18 = vsel %vm7730_vm13, %v4951_v8, %v4952_v11  ;;  %v4963_v28 = vrot.slane %v8922_v35, 5  ;;  %v8925_v21 = vpop.f32.mrf.mxu0  ;;  %v6053_v6 = vcombine.low %v7150_v60, %v7146_v33  ;;  %v8935_v11 = vld [vmem:[#allocation2 + $0x4c] sm:$0xf]  ;;  %v7152_v47 = vld [vmem:[#allocation2 + $0x44] sm:$0x1] }
 0x177   : > { %6843 = vmatmul.mubr.bf16.gmra.mxu0 %v6042_v53  ;;  %9997 = vst [vmem:[#allocation32_spill] sm:$0xff] %v8925_v21  ;;  %v4957_v53 = vsel %vm7730_vm13, %v6077_v3, %v4956_v24  ;;  %v4960_v25 = vsel %vm7730_vm13, %v4958_v49, %v4959_v31  ;;  %v8931_v20 = vpop.f32.mrf.mxu1  ;;  %v4970_v8 = vrot.slane %v8935_v11, 5  ;;  %v4966_v21 = vrot.slane %v7152_v47, 5  ;;  %v8938_v33 = vld [vmem:[#allocation2 + $0x58] sm:$0xf] }
 0x178   : > { %6910 = vmatprep.mubr.bf16.mxu0 %v6107_v22  ;;  %v4896_v22 = vld [vmem:[#allocation2 + $0x48] sm:$0xe]  ;;  %9998 = vst [vmem:[#allocation33_spill] sm:$0xff] %v8931_v20  ;;  %v8933_v51 = vpop.f32.mrf.mxu0  ;;  %v6108_v50 = vcombine.low %v4950_v34, %v4953_v18  ;;  %v4977_v24 = vrot.slane %v8938_v33, 5  ;;  %v6109_v49 = vcombine.low %v4957_v53, %v4960_v25  ;;  %v6078_v31 = vrot.slane %v4895_v10, 9 }
 0x179   : > { %9999 = vst [vmem:[#allocation34_spill] sm:$0xff] %v8933_v51  ;;  %v8941_v3 = vpop.f32.mrf.mxu1  ;;  %v4965_v60 = vrot.slane %v4963_v28, 4  ;;  %v6079_v51 = vrot.slane %v4896_v22, 9  ;;  %v4972_v20 = vrot.slane %v4970_v8, 4  ;;  %v4973_v27 = vrot.slane %v7154_v46, 5 }
 0x17a   : > { %10000 = vst [vmem:[#allocation36_spill] sm:$0xff] %v8941_v3  ;;  %v8943_v14 = vpop.f32.mrf.mxu0  ;;  %v4898_v47 = vld [vmem:[#allocation2 + $0x60] sm:$0xe]  ;;  %v8945_v34 = vld [vmem:[#allocation2 + $0x64] sm:$0xf]  ;;  %v4979_v46 = vrot.slane %v4977_v24, 4  ;;  %v4964_v13 = vsel %vm7730_vm13, %v6078_v31, %v4963_v28 }
 0x17b   : > { %6863 = vmatmul.mubr.bf16.vlgmr.msra.gmra.mxu1 %v6052_v48  ;;  %10001 = vst [vmem:[#allocation38_spill] sm:$0xff] %v8943_v14  ;;  %v4984_v18 = vrot.slane %v8945_v34, 5  ;;  %v7156_v62 = vld [vmem:[#allocation2 + $0x5c] sm:$0x1]  ;;  %v8948_v0 = vpop.f32.mrf.mxu1  ;;  %v7158_v22 = vld [vmem:[#allocation2 + $0x48] sm:$0xf] }
 0x17c   : > { %6866 = vmatprep.mubr.bf16.mxu1 %v6053_v6  ;;  %v4980_v48 = vrot.slane %v7156_v62, 5  ;;  %10002 = vst [vmem:[#allocation17_spill] sm:$0xff] %v8948_v0  ;;  %v8950_v53 = vpop.f32.mrf.mxu0  ;;  %v7157_v25 = vld [vmem:[#allocation2 + $0x3c] sm:$0xf]  ;;  %v6055_v6 = vcombine.low %v7158_v22, %v8935_v11  ;;  %v6080_v14 = vrot.slane %v4897_v12, 9  ;;  %v4967_v62 = vsel %vm7730_vm13, %v4965_v60, %v4966_v21 }
 0x17d   : > { %10003 = vst [vmem:[#allocation42_spill] sm:$0xff] %v8950_v53  ;;  %v6054_v10 = vcombine.low %v7157_v25, %v8922_v35  ;;  %v8954_v3 = vpop.f32.mrf.mxu1  ;;  %v6081_v35 = vrot.slane %v4898_v47, 9  ;;  %v4899_v25 = vld [vmem:[#allocation2 + $0x6c] sm:$0xe]  ;;  %v4974_v12 = vsel %vm7730_vm13, %v4972_v20, %v4973_v27  ;;  %v4986_v11 = vrot.slane %v4984_v18, 4 }
 0x17e   : > { %10004 = vst [vmem:[#allocation40_spill] sm:$0xff] %v8954_v3  ;;  %v8962_v53 = vpop.f32.mrf.mxu0  ;;  %v8966_v3 = vld [vmem:[#allocation2 + $0x70] sm:$0xf]  ;;  %v4900_v31 = vld [vmem:[#allocation2 + $0x78] sm:$0xe]  ;;  %v6110_v27 = vcombine.low %v4964_v13, %v4967_v62  ;;  %v8978_v20 = vsel %vm7730_vm13, %v6080_v14, %v4977_v24  ;;  %v6082_v13 = vrot.slane %v4899_v25, 9 }
 0x17f   : > { %6911 = vmatmul.mubr.bf16.vlgmr.msra.gmra.mxu0 %v6108_v50  ;;  %v4971_v50 = vsel %vm7730_vm13, %v6079_v51, %v4970_v8  ;;  %10005 = vst [vmem:[#allocation41_spill] sm:$0xff] %v8962_v53  ;;  %v4991_v28 = vrot.slane %v8966_v3, 5  ;;  %v7161_v0 = vld [vmem:[#allocation2 + $0x74] sm:$0x1]  ;;  %v8972_v47 = vpop.f32.mrf.mxu1  ;;  %v6083_v62 = vrot.slane %v4900_v31, 9 }
 0x180   : > { %6914 = vmatprep.mubr.bf16.mxu0 %v6109_v49  ;;  %v7159_v49 = vld [vmem:[#allocation2 + $0x68] sm:$0x1]  ;;  %v4994_v21 = vrot.slane %v7161_v0, 5  ;;  %10006 = vst [vmem:[#allocation6_spill] sm:$0xff] %v8972_v47  ;;  %v8974_v53 = vpop.f32.mrf.mxu0  ;;  %v4998_v0 = vrot.slane %v8584_v37, 5  ;;  %v6111_v51 = vcombine.low %v4971_v50, %v4974_v12  ;;  %v5001_v12 = vrot.slane %v8597_v45, 5 }
 0x181   : > { %v4987_v22 = vrot.slane %v7159_v49, 5  ;;  %10007 = vst [vmem:[#allocation5_spill] sm:$0xff] %v8974_v53  ;;  %v8982_v49 = vsel %vm7730_vm13, %v4979_v46, %v4980_v48  ;;  %v8985_v60 = vpop.f32.mrf.mxu1  ;;  %v7162_v8 = vld [vmem:[#allocation2 + $0x54] sm:$0xf]  ;;  %v4903_v53 = vld [vmem:[#allocation2 + $0x9c] sm:$0xe]  ;;  %v8993_v48 = vsel %vm7730_vm13, %v6081_v35, %v4984_v18  ;;  %v9023_v35 = vsel %vm7730_vm13, %v6082_v13, %v4991_v28 }
 0x182   : > { %v6056_v47 = vcombine.low %v7162_v8, %v8938_v33  ;;  %v8988_v40 = vpop.f32.mrf.mxu0  ;;  %v7163_v14 = vld [vmem:[#allocation2 + $0x60] sm:$0xf]  ;;  %v6112_v33 = vcombine.low %v8978_v20, %v8982_v49  ;;  %v9003_v25 = vld [vmem:[#allocation2 + $0x6c] sm:$0xf]  ;;  %v9009_v18 = vld [vmem:[#allocation2 + $0x7c] sm:$0xf] }
 0x183   : > { %6867 = vmatmul.mubr.bf16.gmra.mxu1 %v6054_v10  ;;  %v6057_v24 = vcombine.low %v7163_v14, %v8945_v34  ;;  %v8997_v37 = vsel %vm7730_vm13, %v4986_v11, %v4987_v22  ;;  %v4993_v10 = vrot.slane %v4991_v28, 4  ;;  %v1648_v46 = vpop.f32.mrf.mxu1  ;;  %v4904_v11 = vld [vmem:[#allocation2 + $0xa8] sm:$0xe]  ;;  %v5000_v31 = vrot.slane %v4998_v0, 4  ;;  %v4905_v13 = vld [vmem:[#allocation2 + $0xb4] sm:$0xe] }
 0x184   : > { %6870 = vmatprep.mubr.bf16.mxu1 %v6055_v6  ;;  %v9001_v50 = vpop.f32.mrf.mxu0  ;;  %v9007_v6 = vld [vmem:[#allocation2 + $0x78] sm:$0xf]  ;;  %v9015_v22 = vadd.f32 %v1648_v46, %v8787_v61  ;;  %v6086_v20 = vrot.slane %v4903_v53, 9  ;;  %v6113_v14 = vcombine.low %v8993_v48, %v8997_v37  ;;  %v9029_v61 = vsel %vm7730_vm13, %v6083_v62, %v4998_v0  ;;  %v4906_v8 = vld [vmem:[#allocation2 + $0xc0] sm:$0xe] }
 0x185   : > { %v6584_v49 = vpop.f32.mrf.mxu1  ;;  %v9037_v53 = vsel %vm7730_vm13, %v4993_v10, %v4994_v21  ;;  %v6087_v28 = vrot.slane %v4904_v11, 9  ;;  %v9054_v10 = vsel %vm7730_vm13, %v5000_v31, %v5001_v12  ;;  %v5029_v11 = vrot.slane %v8783_v44, 5 }
 0x186   : > { %v9025_v45 = vpop.f32.mrf.mxu0  ;;  %v9033_v46 = vadd.f32 %v6584_v49, %v8798_v52  ;;  %v5026_v49 = vrot.slane %v8772_v2, 5  ;;  %v6088_v44 = vrot.slane %v4905_v13, 9  ;;  %v6089_v13 = vrot.slane %v4906_v8, 9 }
 0x187   : > { %6915 = vmatmul.mubr.bf16.gmra.mxu0 %v6110_v27  ;;  %v5019_v27 = vrot.slane %v8727_v55, 5  ;;  %v1661_v48 = vpop.f32.mrf.mxu1 }
 0x188   : > { %6918 = vmatprep.mubr.bf16.mxu0 %v6111_v51  ;;  %v9041_v37 = vpop.f32.mrf.mxu0  ;;  %v9050_v21 = vadd.f32 %v1661_v48, %v8820_v63  ;;  %v9069_v12 = vsel %vm7730_vm13, %v6087_v28, %v5026_v49  ;;  %v5028_v31 = vrot.slane %v5026_v49, 4  ;;  %v5033_v51 = vrot.slane %v8805_v29, 5  ;;  %v4901_v49 = vld [vmem:[#allocation2 + $0x84] sm:$0xe] }
 0x189   : > { %v9046_v62 = vsel %vm7730_vm13, %v6086_v20, %v5019_v27  ;;  %v5021_v52 = vrot.slane %v5019_v27, 4  ;;  %v6585_v0 = vpop.f32.mrf.mxu1  ;;  %v10009_v27 = vrot.slane %v8735_v16, 5 }
 0x18a   : > { %v9059_v20 = vpop.f32.mrf.mxu0  ;;  %v9072_v48 = vadd.f32 %v6585_v0, %v8830_v1  ;;  %v9083_v28 = vsel %vm7730_vm13, %v5028_v31, %v5029_v11  ;;  %v5040_v1 = vrot.slane %v8838_v30, 5  ;;  %v9094_v16 = vsel %vm7730_vm13, %v6088_v44, %v5033_v51  ;;  %v4902_v44 = vld [vmem:[#allocation2 + $0x90] sm:$0xe] }
 0x18b   : > { %6871 = vmatmul.mubr.bf16.gmra.mxu1 %v6056_v47  ;;  %10008 = vst [vmem:[#allocation7_spill] sm:$0xff] %v9059_v20  ;;  %v9065_v63 = vsel %vm7730_vm13, %v5021_v52, %v10009_v27  ;;  %v4907_v52 = vld [vmem:[#allocation2 + $0xcc] sm:$0xe]  ;;  %v1664_v27 = vpop.f32.mrf.mxu1  ;;  %v5035_v47 = vrot.slane %v5033_v51, 4  ;;  %v5012_v51 = vrot.slane %v8680_v58, 5 }
 0x18c   : > { %6874 = vmatprep.mubr.bf16.mxu1 %v6057_v24  ;;  %v9079_v34 = vpop.f32.mrf.mxu0  ;;  %v5043_v24 = vrot.slane %v8844_v38, 5  ;;  %v9088_v0 = vadd.f32 %v1664_v27, %v8842_v17  ;;  %v9100_v8 = vsel %vm7730_vm13, %v6089_v13, %v5040_v1  ;;  %v5042_v38 = vrot.slane %v5040_v1, 4  ;;  %v7167_v1 = vld [vmem:[#allocation2 + $0x8c] sm:$0x1] }
 0x18d   : > { %10010 = vst [vmem:[#allocation8_spill] sm:$0xff] %v9079_v34  ;;  %v6588_v11 = vpop.f32.mrf.mxu1  ;;  %v5047_v13 = vrot.slane %v8867_v41, 5  ;;  %v5008_v34 = vrot.slane %v7167_v1, 5 }
 0x18e   : > { %v9096_v31 = vpop.f32.mrf.mxu0  ;;  %v9105_v27 = vadd.f32 %v6588_v11, %v8857_v43 }
 0x18f   : > { %6919 = vmatmul.mubr.bf16.gmra.mxu0 %v6112_v33  ;;  %10011 = vst [vmem:[#allocation11_spill] sm:$0xff] %v9096_v31  ;;  %v6090_v33 = vrot.slane %v4907_v52, 9  ;;  %v6114_v52 = vcombine.low %v9023_v35, %v9037_v53  ;;  %v1677_v17 = vpop.f32.mrf.mxu1  ;;  %v5049_v35 = vrot.slane %v5047_v13, 4  ;;  %v10014_v53 = vcombine.low %v9003_v25, %v8966_v3 }
 0x190   : > { %6922 = vmatprep.mubr.bf16.mxu0 %v6113_v14  ;;  %v10012_v14 = vrot.slane %v8816_v56, 5  ;;  %v9117_v43 = vpop.f32.mrf.mxu0  ;;  %v9123_v56 = vsel %vm7730_vm13, %v5042_v38, %v5043_v24  ;;  %v6115_v24 = vcombine.low %v9029_v61, %v9054_v10  ;;  %v6084_v38 = vrot.slane %v4901_v49, 9 }
 0x191   : > { %10013 = vst [vmem:[#allocation43_spill] sm:$0xff] %v9117_v43  ;;  %v9132_v1 = vsel %vm7730_vm13, %v6090_v33, %v5047_v13  ;;  %v6589_v11 = vpop.f32.mrf.mxu1  ;;  %v10016_v33 = vcombine.low %v9007_v6, %v9009_v18  ;;  %v5014_v3 = vrot.slane %v5012_v51, 4  ;;  %v5015_v25 = vrot.slane %v8692_v59, 5  ;;  %v7168_v59 = vld [vmem:[#allocation2 + $0x84] sm:$0xf] }
 0x192   : > { %v9112_v31 = vsel %vm7730_vm13, %v5035_v47, %v10012_v14  ;;  %v9126_v47 = vadd.f32 %v1677_v17, %v8863_v32  ;;  %v10015_v32 = vrot.slane %v8626_v54, 5  ;;  %v9141_v43 = vpop.f32.mrf.mxu0  ;;  %v6085_v14 = vrot.slane %v4902_v44, 9  ;;  %v7169_v18 = vld [vmem:[#allocation2 + $0x88] sm:$0xf] }
 0x193   : > { %6875 = vmatmul.mubr.bf16.gmra.mxu1 %v10014_v53  ;;  %v9144_v20 = vadd.f32 %v6589_v11, %v8871_v7  ;;  %v10017_v13 = vrot.slane %v8873_v15, 5  ;;  %v1680_v10 = vpop.f32.mrf.mxu1  ;;  %v6060_v15 = vcombine.low %v7168_v59, %v7169_v18 }
 0x194   : > { %v5007_v17 = vrot.slane %v10015_v32, 4  ;;  %6878 = vmatprep.mubr.bf16.mxu1 %v10016_v33  ;;  %v9156_v49 = vpop.f32.mrf.mxu0  ;;  %v9161_v44 = vadd.f32 %v1680_v10, %v8883_v19  ;;  %v10018_v11 = vmov %v10015_v32  ;;  %v5016_v33 = vsel %vm7730_vm13, %v5014_v3, %v5015_v25 }
 0x195   : > { %v9154_v61 = vsel %vm7730_vm13, %v5049_v35, %v10017_v13  ;;  %v9163_v6 = vpop.f32.mrf.mxu1  ;;  %v5006_v35 = vsel %vm7730_vm13, %v6084_v38, %v10018_v11  ;;  %v10019_v25 = vcombine.low %v8712_v4, %v8727_v55  ;;  %v10020_v11 = vcombine.low %v8770_v39, %v8772_v2 }
 0x196   : > { %v6122_v7 = vcombine.low %v9132_v1, %v9154_v61  ;;  %v5009_v53 = vsel %vm7730_vm13, %v5007_v17, %v5008_v34  ;;  %v9171_v32 = vpop.f32.mrf.mxu0  ;;  %v10022_v4 = vcombine.low %v9069_v12, %v9083_v28  ;;  %v10023_v2 = vcombine.low %v8800_v26, %v8805_v29  ;;  %v10043_v1 = vld [vmem:[#allocation37_spill] sm:$0xff] }
 0x197   : > { %6923 = vmatmul.mubr.bf16.gmra.mxu0 %v6114_v52  ;;  %v7170_v52 = vld [vmem:[#allocation2 + $0x90] sm:$0xf]  ;;  %v9178_v13 = vpop.f32.mrf.mxu1  ;;  %v6116_v10 = vcombine.low %v5006_v35, %v5009_v53  ;;  %v10027_v26 = vcombine.low %v9100_v8, %v9123_v56 }
 0x198   : > { %6926 = vmatprep.mubr.bf16.mxu0 %v6115_v24  ;;  %v6061_v19 = vcombine.low %v7170_v52, %v8680_v58  ;;  %v5013_v24 = vsel %vm7730_vm13, %v6085_v14, %v5012_v51  ;;  %v9180_v54 = vpop.f32.mrf.mxu0  ;;  %v10021_v52 = vcombine.low %v9046_v62, %v9065_v63  ;;  %v10024_v63 = vcombine.low %v8834_v36, %v8838_v30  ;;  %v10032_v8 = vld [vmem:[#allocation30_spill] sm:$0xff] }
 0x199   : > { %v9182_v38 = vpop.f32.mrf.mxu1  ;;  %v6117_v34 = vcombine.low %v5013_v24, %v5016_v33 }
 0x19a   : > { %v9184_v17 = vpop.f32.mrf.mxu0 }
 0x19b   : > { %6879 = vmatmul.mubr.bf16.gmra.mxu1 %v6060_v15  ;;  %v9186_v59 = vpop.f32.mrf.mxu1 }
 0x19c   : > { %6882 = vmatprep.mubr.bf16.mxu1 %v6061_v19  ;;  %v9188_v58 = vpop.f32.mrf.mxu0 }
 0x19d   : > { %v9190_v42 = vpop.f32.mrf.mxu1 }
 0x19e   : > { %v9192_v51 = vpop.f32.mrf.mxu0 }
 0x19f   : > { %6927 = vmatmul.mubr.bf16.gmra.mxu0 %v6116_v10  ;;  %v9194_v14 = vpop.f32.mrf.mxu1  ;;  %v10026_v10 = vcombine.low %v9094_v16, %v9112_v31 }
 0x1a0   : > { %6930 = vmatprep.mubr.bf16.mxu0 %v6117_v34  ;;  %v9196_v3 = vpop.f32.mrf.mxu0 }
 0x1a1   : > { %v9201_v18 = vpop.f32.mrf.mxu1 }
 0x1a2   : > { %v9203_v15 = vpop.f32.mrf.mxu0 }
 0x1a3   : > { %6883 = vmatmul.mubr.bf16.gmra.mxu1 %v10019_v25  ;;  %v9208_v35 = vpop.f32.mrf.mxu1 }
 0x1a4   : > { %6886 = vmatprep.mubr.bf16.mxu1 %v10020_v11  ;;  %v9210_v53 = vpop.f32.mrf.mxu0 }
 0x1a5   : > { %v9218_v55 = vpop.f32.mrf.mxu1 }
 0x1a6   : > { %v9220_v19 = vpop.f32.mrf.mxu0 }
 0x1a7   : > { %6931 = vmatmul.mubr.bf16.gmra.mxu0 %v10021_v52  ;;  %v9222_v24 = vpop.f32.mrf.mxu1 }
 0x1a8   : > { %6934 = vmatprep.mubr.bf16.mxu0 %v10022_v4  ;;  %v9224_v39 = vpop.f32.mrf.mxu0 }
 0x1a9   : > { %v9229_v33 = vpop.f32.mrf.mxu1 }
 0x1aa   : > { %v9231_v62 = vpop.f32.mrf.mxu0 }
 0x1ab   : > { %6887 = vmatmul.mubr.bf16.gmra.mxu1 %v10023_v2  ;;  %v1728_v12 = vpop.f32.mrf.mxu1 }
 0x1ac   : > { %6890 = vmatprep.mubr.bf16.mxu1 %v10024_v63  ;;  %v9236_v28 = vpop.f32.mrf.mxu0  ;;  %v9242_v34 = vadd.f32 %v1728_v12, %v8876_v23  ;;  %v10030_v23 = vcombine.low %v8861_v9, %v8867_v41  ;;  %v10036_v9 = vld [vmem:[#allocation12_spill] sm:$0xff]  ;;  %v10037_v41 = vld [vmem:[#allocation29_spill] sm:$0xff] }
 0x1ad   : > { %10025 = vst [vmem:[#allocation44_spill] sm:$0xff] %v9236_v28  ;;  %v6604_v29 = vpop.f32.mrf.mxu1  ;;  %v10051_v28 = vld [vmem:[#allocation17_spill] sm:$0xff] }
 0x1ae   : > { %v9247_v25 = vpop.f32.mrf.mxu0  ;;  %v9250_v36 = vadd.f32 %v6604_v29, %v8890_v5  ;;  %v10034_v5 = vld [vmem:[#allocation27_spill] sm:$0xff] }
 0x1af   : > { %6935 = vmatmul.mubr.bf16.gmra.mxu0 %v10026_v10  ;;  %10028 = vst [vmem:[#allocation45_spill] sm:$0xff] %v9247_v25  ;;  %v1741_v30 = vpop.f32.mrf.mxu1  ;;  %v1638_v10 = vadd.f32 %v10037_v41, %v10036_v9  ;;  %v10048_v9 = vld [vmem:[#allocation28_spill] sm:$0xff] }
 0x1b0   : > { %6938 = vmatprep.mubr.bf16.mxu0 %v10027_v26  ;;  %v9252_v11 = vpop.f32.mrf.mxu0  ;;  %v9255_v52 = vadd.f32 %v1741_v30, %v8896_v57  ;;  %v10038_v26 = vld [vmem:[#allocation35_spill] sm:$0xff] }
 0x1b1   : > { %10029 = vst [vmem:[#allocation46_spill] sm:$0xff] %v9252_v11  ;;  %v6605_v16 = vpop.f32.mrf.mxu1 }
 0x1b2   : > { %v9260_v31 = vpop.f32.mrf.mxu0  ;;  %v9263_v56 = vadd.f32 %v6605_v16, %v10032_v8  ;;  %v10040_v16 = vld [vmem:[#allocation13_spill] sm:$0xff] }
 0x1b3   : > { %6891 = vmatmul.mubr.bf16.gmra.mxu1 %v10030_v23  ;;  %10031 = vst [vmem:[#allocation47_spill] sm:$0xff] %v9260_v31  ;;  %v1744_v4 = vpop.f32.mrf.mxu1  ;;  %v10041_v8 = vld [vmem:[#allocation33_spill] sm:$0xff] }
 0x1b4   : > { %v9265_v2 = vpop.f32.mrf.mxu0  ;;  %v9271_v57 = vadd.f32 %v1744_v4, %v10034_v5  ;;  %v1630_v31 = vadd.f32 %v10041_v8, %v10040_v16  ;;  %v10045_v5 = vld [vmem:[#allocation4_spill] sm:$0xff] }
 0x1b5   : > { %10033 = vst [vmem:[#allocation30_spill] sm:$0xff] %v9265_v2  ;;  %v6672_v63 = vpop.f32.mrf.mxu1 }
 0x1b6   : > { %v9273_v12 = vpop.f32.mrf.mxu0  ;;  %v2445_v29 = vadd.f32 %v6672_v63, %v10038_v26 }
 0x1b7   : > { %6939 = vmatmul.mubr.bf16.gmra.mxu0 %v6122_v7  ;;  %10035 = vst [vmem:[#allocation27_spill] sm:$0xff] %v9273_v12  ;;  %v2436_v30 = vpop.f32.mrf.mxu1  ;;  %v10046_v12 = vld [vmem:[#allocation36_spill] sm:$0xff] }
 0x1b8   : > { %v9278_v23 = vpop.f32.mrf.mxu0  ;;  %v9282_v11 = vadd.f32 %v2445_v29, %v1638_v10  ;;  %v2437_v61 = vadd.f32 %v2436_v30, %v10043_v1  ;;  %v1641_v2 = vadd.f32 %v10046_v12, %v10045_v5  ;;  %v10053_v29 = vld [vmem:[#allocation26_spill] sm:$0xff] }
 0x1b9   : > { %10039 = vst [vmem:[#allocation12_spill] sm:$0xff] %v9278_v23  ;;  %v6673_v7 = vpop.f32.mrf.mxu1  ;;  %v10050_v23 = vld [vmem:[#allocation9_spill] sm:$0xff] }
 0x1ba   : > { %10042 = vst [vmem:[#allocation29_spill] sm:$0xff] %v9282_v11  ;;  %v9285_v4 = vpop.f32.mrf.mxu0  ;;  %v9289_v25 = vadd.f32 %v2437_v61, %v1630_v31  ;;  %v2448_v63 = vadd.f32 %v6673_v7, %v10048_v9  ;;  %v1633_v16 = vadd.f32 %v10051_v28, %v10050_v23  ;;  %v10055_v11 = vld [vmem:[#allocation40_spill] sm:$0xff]  ;;  %v10056_v61 = vld [vmem:[#allocation39_spill] sm:$0xff] }
 0x1bb   : > { %10044 = vst [vmem:[#allocation35_spill] sm:$0xff] %v9285_v4  ;;  %v2439_v41 = vpop.f32.mrf.mxu1  ;;  %v10054_v4 = vld [vmem:[#allocation3_spill] sm:$0xff]  ;;  %v10060_v23 = vld [vmem:[#allocation32_spill] sm:$0xff] }
 0x1bc   : > { %10047 = vst [vmem:[#allocation13_spill] sm:$0xff] %v9289_v25  ;;  %v9292_v26 = vpop.f32.mrf.mxu0  ;;  %v9296_v10 = vadd.f32 %v2448_v63, %v1641_v2  ;;  %v2440_v30 = vadd.f32 %v2439_v41, %v10053_v29  ;;  %v1654_v12 = vadd.f32 %v10055_v11, %v10054_v4  ;;  %v10059_v25 = vld [vmem:[#allocation6_spill] sm:$0xff] }
 0x1bd   : > { %10049 = vst [vmem:[#allocation33_spill] sm:$0xff] %v9292_v26  ;;  %v6676_v8 = vpop.f32.mrf.mxu1  ;;  %v10058_v26 = vld [vmem:[#allocation10_spill] sm:$0xff] }
 0x1be   : > { %10052 = vst [vmem:[#allocation37_spill] sm:$0xff] %v9296_v10  ;;  %v9299_v1 = vpop.f32.mrf.mxu0  ;;  %v9303_v31 = vadd.f32 %v2440_v30, %v1633_v16  ;;  %v2461_v7 = vadd.f32 %v6676_v8, %v10056_v61  ;;  %v1646_v28 = vadd.f32 %v10059_v25, %v10058_v26  ;;  %v10062_v10 = vld [vmem:[#allocation19_spill] sm:$0xff]  ;;  %v10063_v16 = vld [vmem:[#allocation34_spill] sm:$0xff] }
 0x1bf   : > { %v2452_v5 = vpop.f32.mrf.mxu1  ;;  %v1657_v11 = vadd.f32 %v8985_v60, %v10062_v10  ;;  %v10064_v25 = vld [vmem:[#allocation38_spill] sm:$0xff] }
 0x1c0   : > { %v9306_v9 = vpop.f32.mrf.mxu0  ;;  %v9310_v2 = vadd.f32 %v2461_v7, %v1654_v12  ;;  %v2453_v63 = vadd.f32 %v2452_v5, %v10060_v23  ;;  %v10065_v23 = vld [vmem:[#allocation42_spill] sm:$0xff] }
 0x1c1   : > { %10057 = vst [vmem:[#allocation4_spill] sm:$0xff] %v9306_v9  ;;  %v6677_v41 = vpop.f32.mrf.mxu1 }
 0x1c2   : > { %v9313_v29 = vpop.f32.mrf.mxu0  ;;  %v9317_v4 = vadd.f32 %v2453_v63, %v1646_v28  ;;  %v2464_v30 = vadd.f32 %v6677_v41, %v10063_v16  ;;  %v10067_v63 = vld [vmem:[#allocation41_spill] sm:$0xff] }
 0x1c3   : > { %10061 = vst [vmem:[#allocation36_spill] sm:$0xff] %v9313_v29  ;;  %v2455_v8 = vpop.f32.mrf.mxu1 }
 0x1c4   : > { %v9320_v61 = vpop.f32.mrf.mxu0  ;;  %v9322_v9 = vadd.f32 %v2464_v30, %v1657_v11  ;;  %v2456_v26 = vadd.f32 %v2455_v8, %v10064_v25  ;;  %v10069_v8 = vld [vmem:[#allocation5_spill] sm:$0xff] }
 0x1c5   : > { %v6680_v12 = vpop.f32.mrf.mxu1 }
 0x1c6   : > { %v9325_v7 = vpop.f32.mrf.mxu0  ;;  %v9328_v5 = vadd.f32 %v2456_v26, %v9015_v22  ;;  %v2477_v29 = vadd.f32 %v6680_v12, %v10065_v23 }
 0x1c7   : > { %v2468_v60 = vpop.f32.mrf.mxu1 }
 0x1c8   : > { %v9331_v10 = vpop.f32.mrf.mxu0  ;;  %v9334_v28 = vadd.f32 %v2477_v29, %v9033_v46  ;;  %v2469_v41 = vadd.f32 %v2468_v60, %v10067_v63 }
 0x1c9   : > { %10066 = vst [vmem:[#allocation28_spill] sm:$0xff] %v9331_v10  ;;  %v6681_v11 = vpop.f32.mrf.mxu1 }
 0x1ca   : > { %v9337_v16 = vpop.f32.mrf.mxu0  ;;  %v9340_v30 = vadd.f32 %v2469_v41, %v9050_v21  ;;  %v2480_v25 = vadd.f32 %v6681_v11, %v10069_v8 }
 0x1cb   : > { %10068 = vst [vmem:[#allocation9_spill] sm:$0xff] %v9337_v16  ;;  %v2471_v22 = vpop.f32.mrf.mxu1  ;;  %v10078_v16 = vld [vmem:[#allocation15_spill] sm:$0xff] }
 0x1cc   : > { %v9343_v26 = vpop.f32.mrf.mxu0  ;;  %v9346_v12 = vadd.f32 %v2480_v25, %v9072_v48  ;;  %v2472_v23 = vadd.f32 %v2471_v22, %v8988_v40 }
 0x1ce   : > { %v6684_v46 = vpop.f32.mrf.mxu1  ;;  %v9349_v29 = vpop.f32.mrf.mxu0  ;;  %v9352_v60 = vadd.f32 %v2472_v23, %v9088_v0 }
 0x1cf   : > { %v2493_v63 = vadd.f32 %v6684_v46, %v9001_v50  ;;  %v10074_v46 = vld [vmem:[#allocation7_spill] sm:$0xff] }
 0x1d0   : > { %10070 = vst [vmem:[#allocation17_spill] sm:$0xff] %v9352_v60  ;;  %v2484_v21 = vpop.f32.mrf.mxu1  ;;  %v9355_v41 = vpop.f32.mrf.mxu0  ;;  %v10081_v60 = vld [vmem:[#allocation16_spill] sm:$0xff] }
 0x1d1   : > { %10071 = vst [vmem:[#allocation26_spill] sm:$0xff] %v9355_v41  ;;  %v9358_v11 = vadd.f32 %v2493_v63, %v9105_v27  ;;  %v2485_v8 = vadd.f32 %v2484_v21, %v9025_v45  ;;  %v10075_v45 = vld [vmem:[#allocation14_spill] sm:$0xff] }
 0x1d2   : > { %v6685_v48 = vpop.f32.mrf.mxu1  ;;  %v9361_v25 = vpop.f32.mrf.mxu0  ;;  %v1702_v21 = vadd.f32 %v9163_v6, %v10075_v45  ;;  %v1705_v6 = vadd.f32 %v9182_v38, %v10081_v60 }
 0x1d3   : > { %10072 = vst [vmem:[#allocation3_spill] sm:$0xff] %v9361_v25  ;;  %v9364_v40 = vadd.f32 %v2485_v8, %v9126_v47  ;;  %v2496_v22 = vadd.f32 %v6685_v48, %v9041_v37  ;;  %v10076_v47 = vld [vmem:[#allocation8_spill] sm:$0xff] }
 0x1d4   : > { %v2487_v0 = vpop.f32.mrf.mxu1 }
 0x1d5   : > { %v9367_v23 = vpop.f32.mrf.mxu0  ;;  %v9370_v50 = vadd.f32 %v2496_v22, %v9144_v20  ;;  %v2488_v41 = vadd.f32 %v2487_v0, %v10074_v46  ;;  %v1694_v20 = vadd.f32 %v9178_v13, %v10078_v16  ;;  %v10079_v0 = vld [vmem:[#allocation11_spill] sm:$0xff] }
 0x1d7   : > { %10073 = vst [vmem:[#allocation40_spill] sm:$0xff] %v9370_v50  ;;  %v6688_v27 = vpop.f32.mrf.mxu1  ;;  %v9373_v63 = vpop.f32.mrf.mxu0  ;;  %v9378_v25 = vadd.f32 %v2488_v41, %v9161_v44  ;;  %v10082_v41 = vld [vmem:[#allocation43_spill] sm:$0xff] }
 0x1d8   : > { %v2509_v8 = vadd.f32 %v6688_v27, %v10076_v47 }
 0x1d9   : > { %v2500_v37 = vpop.f32.mrf.mxu1  ;;  %v9381_v48 = vpop.f32.mrf.mxu0 }
 0x1da   : > { %10077 = vst [vmem:[#allocation39_spill] sm:$0xff] %v9381_v48  ;;  %v9385_v22 = vadd.f32 %v2509_v8, %v1702_v21  ;;  %v2501_v46 = vadd.f32 %v2500_v37, %v10079_v0  ;;  %v10083_v48 = vld [vmem:[#allocation18_spill] sm:$0xff]  ;;  %v10085_v0 = vld [vmem:[#allocation20_spill] sm:$0xff] }
 0x1db   : > { %v6689_v50 = vpop.f32.mrf.mxu1  ;;  %v9388_v10 = vpop.f32.mrf.mxu0  ;;  %v1697_v13 = vadd.f32 %v9186_v59, %v10083_v48  ;;  %v1718_v38 = vadd.f32 %v9190_v42, %v10085_v0  ;;  %v10091_v0 = vld [vmem:[#allocation23_spill] sm:$0xff] }
 0x1dc   : > { %10080 = vst [vmem:[#allocation10_spill] sm:$0xff] %v9388_v10  ;;  %v9392_v44 = vadd.f32 %v2501_v46, %v1694_v20  ;;  %v2512_v27 = vadd.f32 %v6689_v50, %v10082_v41  ;;  %v10088_v41 = vld [vmem:[#allocation31_spill] sm:$0xff] }
 0x1dd   : > { %v2503_v45 = vpop.f32.mrf.mxu1  ;;  %v1710_v59 = vadd.f32 %v9194_v14, %v10088_v41  ;;  %v1713_v14 = vadd.f32 %v9208_v35, %v10091_v0  ;;  %v10093_v41 = vld [vmem:[#allocation21_spill] sm:$0xff] }
 0x1de   : > { %v9395_v47 = vpop.f32.mrf.mxu0  ;;  %v9399_v16 = vadd.f32 %v2512_v27, %v1705_v6  ;;  %v2504_v21 = vadd.f32 %v2503_v45, %v9141_v43  ;;  %v10090_v45 = vld [vmem:[#allocation22_spill] sm:$0xff]  ;;  %v10098_v0 = vld [vmem:[#allocation25_spill] sm:$0xff] }
 0x1df   : > { %v1721_v42 = vadd.f32 %v9201_v18, %v10090_v45  ;;  %v1734_v18 = vadd.f32 %v9218_v55, %v10093_v41  ;;  %v10096_v45 = vld [vmem:[#allocation24_spill] sm:$0xff]  ;;  %v1737_v55 = vadd.f32 %v9229_v33, %v10098_v0 }
 0x1e0   : > { %10084 = vst [vmem:[#allocation6_spill] sm:$0xff] %v9399_v16  ;;  %v6692_v8 = vpop.f32.mrf.mxu1  ;;  %v9402_v37 = vpop.f32.mrf.mxu0  ;;  %v9406_v60 = vadd.f32 %v2504_v21, %v1697_v13  ;;  %v1726_v35 = vadd.f32 %v9222_v24, %v10096_v45 }
 0x1e1   : > { %v2525_v50 = vadd.f32 %v6692_v8, %v9156_v49 }
 0x1e2   : > { %10086 = vst [vmem:[#allocation32_spill] sm:$0xff] %v9406_v60  ;;  %v2516_v20 = vpop.f32.mrf.mxu1  ;;  %v9409_v46 = vpop.f32.mrf.mxu0 }
 0x1e3   : > { %10087 = vst [vmem:[#allocation19_spill] sm:$0xff] %v9409_v46  ;;  %v9413_v48 = vadd.f32 %v2525_v50, %v1718_v38  ;;  %v2517_v43 = vadd.f32 %v2516_v20, %v9171_v32 }
 0x1e4   : > { %v6693_v6 = vpop.f32.mrf.mxu1  ;;  %v9416_v27 = vpop.f32.mrf.mxu0 }
 0x1e5   : > { %10089 = vst [vmem:[#allocation34_spill] sm:$0xff] %v9416_v27  ;;  %v9420_v13 = vadd.f32 %v2517_v43, %v1710_v59  ;;  %v2528_v49 = vadd.f32 %v6693_v6, %v9180_v54  ;;  %v10109_v27 = vld [vmem:[#allocation33_spill] sm:$0xff] }
 0x1e6   : > { %v2519_v21 = vpop.f32.mrf.mxu1  ;;  %v9423_v8 = vpop.f32.mrf.mxu0 }
 0x1e7   : > { %v9427_v38 = vadd.f32 %v2528_v49, %v1721_v42  ;;  %v2520_v32 = vadd.f32 %v2519_v21, %v9184_v17 }
 0x1e8   : > { %v9430_v20 = vpop.f32.mrf.mxu0 }
 0x1e9   : > { %10092 = vst [vmem:[#allocation38_spill] sm:$0xff] %v9427_v38  ;;  %v6696_v50 = vpop.f32.mrf.mxu1  ;;  %v9434_v59 = vadd.f32 %v2520_v32, %v1713_v14 }
 0x1ea   : > { %v2541_v54 = vadd.f32 %v6696_v50, %v9188_v58  ;;  %v9437_v6 = vpop.f32.mrf.mxu0 }
 0x1eb   : > { %10094 = vst [vmem:[#allocation42_spill] sm:$0xff] %v9434_v59  ;;  %v2532_v43 = vpop.f32.mrf.mxu1  ;;  %10095 = vst [vmem:[#allocation41_spill] sm:$0xff] %v9437_v6 }
 0x1ec   : > { %v9441_v42 = vadd.f32 %v2541_v54, %v1734_v18  ;;  %v2533_v17 = vadd.f32 %v2532_v43, %v9192_v51  ;;  %v9444_v21 = vpop.f32.mrf.mxu0 }
 0x1ed   : > { %v6697_v49 = vpop.f32.mrf.mxu1  ;;  %10097 = vst [vmem:[#allocation5_spill] sm:$0xff] %v9444_v21 }
 0x1ee   : > { %v9448_v14 = vadd.f32 %v2533_v17, %v1726_v35  ;;  %v2544_v58 = vadd.f32 %v6697_v49, %v9196_v3  ;;  %v9451_v50 = vpop.f32.mrf.mxu0 }
 0x1ef   : > { %v2535_v32 = vpop.f32.mrf.mxu1 }
 0x1f0   : > { %v9453_v41 = vadd.f32 %v2544_v58, %v1737_v55  ;;  %v2536_v24 = vadd.f32 %v2535_v32, %v9203_v15  ;;  %v9456_v54 = vpop.f32.mrf.mxu0 }
 0x1f1   : > { %v6700_v18 = vpop.f32.mrf.mxu1 }
 0x1f2   : > { %10099 = vst [vmem:[#allocation7_spill] sm:$0xff] %v9453_v41  ;;  %v9459_v51 = vadd.f32 %v2536_v24, %v9242_v34  ;;  %v2557_v43 = vadd.f32 %v6700_v18, %v9210_v53  ;;  %v9462_v45 = vpop.f32.mrf.mxu0  ;;  %v10103_v24 = vld [vmem:[#allocation44_spill] sm:$0xff] }
 0x1f3   : > { %v2548_v33 = vpop.f32.mrf.mxu1 }
 0x1f4   : > { %10100 = vst [vmem:[#allocation14_spill] sm:$0xff] %v9459_v51  ;;  %v9465_v3 = vadd.f32 %v2557_v43, %v9250_v36  ;;  %v2549_v35 = vadd.f32 %v2548_v33, %v9220_v19  ;;  %v9468_v49 = vpop.f32.mrf.mxu0 }
 0x1f5   : > { %v6701_v17 = vpop.f32.mrf.mxu1 }
 0x1f6   : > { %v9471_v15 = vadd.f32 %v2549_v35, %v9255_v52  ;;  %v2560_v0 = vadd.f32 %v6701_v17, %v9224_v39  ;;  %v9474_v55 = vpop.f32.mrf.mxu0  ;;  %v10104_v39 = vld [vmem:[#allocation29_spill] sm:$0xff] }
 0x1f7   : > { %v2551_v34 = vpop.f32.mrf.mxu1  ;;  %v10105_v35 = vld [vmem:[#allocation45_spill] sm:$0xff] }
 0x1f8   : > { %v9477_v53 = vadd.f32 %v2560_v0, %v9263_v56  ;;  %v2552_v58 = vadd.f32 %v2551_v34, %v9231_v62  ;;  %v9480_v32 = vpop.f32.mrf.mxu0  ;;  %v10106_v62 = vld [vmem:[#allocation13_spill] sm:$0xff] }
 0x1f9   : > { %v6768_v36 = vpop.f32.mrf.mxu1 }
 0x1fa   : > { %10101 = vst [vmem:[#allocation8_spill] sm:$0xff] %v9477_v53  ;;  %v9483_v19 = vadd.f32 %v2552_v58, %v9271_v57  ;;  %v3665_v18 = vadd.f32 %v6768_v36, %v10103_v24  ;;  %v9486_v43 = vpop.f32.mrf.mxu0  ;;  %v10107_v24 = vld [vmem:[#allocation30_spill] sm:$0xff] }
 0x1fb   : > { %v3656_v52 = vpop.f32.mrf.mxu1 }
 0x1fc   : > { %10102 = vst [vmem:[#allocation15_spill] sm:$0xff] %v9483_v19  ;;  %v9489_v33 = vadd.f32 %v3665_v18, %v10104_v39  ;;  %v3657_v17 = vadd.f32 %v3656_v52, %v10105_v35  ;;  %v9494_v0 = vpop.f32.mrf.mxu0  ;;  %v10108_v35 = vld [vmem:[#allocation27_spill] sm:$0xff] }
 0x1fd   : > { %v9492_v56 = vpop.f32.mrf.mxu1 }
 0x1fe   : > { %v9497_v34 = vadd.f32 %v3657_v17, %v10106_v62  ;;  %v9501_v57 = vpop.f32.mrf.mxu0 }
 0x1ff   : > { %v9499_v53 = vpop.f32.mrf.mxu1 }
 0x200   : > { %v9503_v36 = vpop.f32.mrf.mxu0 }
 0x201   : > { %v6772_v58 = vpop.f32.mrf.mxu1 }
 0x202   : > { %v3681_v19 = vadd.f32 %v6772_v58, %v10107_v24  ;;  %v9506_v39 = vpop.f32.mrf.mxu0 }
 0x203   : > { %v3672_v18 = vpop.f32.mrf.mxu1 }
 0x204   : > { %v9509_v52 = vadd.f32 %v3681_v19, %v9310_v2  ;;  %v3673_v21 = vadd.f32 %v3672_v18, %v10108_v35  ;;  %v9514_v17 = vpop.f32.mrf.mxu0 }
 0x205   : > { %v9512_v6 = vpop.f32.mrf.mxu1 }
 0x206   : > { %v9517_v62 = vadd.f32 %v3673_v21, %v9317_v4  ;;  %v9521_v41 = vpop.f32.mrf.mxu0 }
 0x207   : > { %v9519_v51 = vpop.f32.mrf.mxu1 }
 0x208   : > { %v9523_v24 = vpop.f32.mrf.mxu0 }
 0x209   : > { %v6776_v58 = vpop.f32.mrf.mxu1 }
 0x20a   : > { %v3697_v46 = vadd.f32 %v6776_v58, %v10109_v27  ;;  %v9526_v19 = vpop.f32.mrf.mxu0 }
 0x20b   : > { %v3688_v2 = vpop.f32.mrf.mxu1 }
 0x20c   : > { %v9529_v18 = vadd.f32 %v3697_v46, %v9334_v28  ;;  %v3689_v35 = vadd.f32 %v3688_v2, %v9299_v1  ;;  %v9534_v4 = vpop.f32.mrf.mxu0 }
 0x20d   : > { %v9532_v59 = vpop.f32.mrf.mxu1  ;;  %10110 = vst [vmem:[#allocation11_spill] sm:$0xff] %v9534_v4 }
 0x20e   : > { %v9537_v21 = vadd.f32 %v3689_v35, %v9340_v30  ;;  %v9541_v10 = vpop.f32.mrf.mxu0 }
 0x20f   : > { %v9539_v38 = vpop.f32.mrf.mxu1  ;;  %10111 = vst [vmem:[#allocation16_spill] sm:$0xff] %v9541_v10 }
 0x210   : > { %v9543_v58 = vpop.f32.mrf.mxu0 }
 0x211   : > { %v6780_v27 = vpop.f32.mrf.mxu1  ;;  %10112 = vst [vmem:[#allocation43_spill] sm:$0xff] %v9543_v58 }
 0x212   : > { %v3713_v60 = vadd.f32 %v6780_v27, %v9320_v61  ;;  %v9546_v46 = vpop.f32.mrf.mxu0 }
 0x213   : > { %v3704_v28 = vpop.f32.mrf.mxu1  ;;  %10113 = vst [vmem:[#allocation18_spill] sm:$0xff] %v9546_v46 }
 0x214   : > { %v9549_v1 = vadd.f32 %v3713_v60, %v9358_v11  ;;  %v3705_v2 = vadd.f32 %v3704_v28, %v9325_v7  ;;  %v9554_v30 = vpop.f32.mrf.mxu0 }
 0x215   : > { %v9552_v16 = vpop.f32.mrf.mxu1  ;;  %10114 = vst [vmem:[#allocation20_spill] sm:$0xff] %v9554_v30 }
 0x216   : > { %v9557_v35 = vadd.f32 %v3705_v2, %v9364_v40  ;;  %v9561_v4 = vpop.f32.mrf.mxu0 }
 0x217   : > { %v9559_v10 = vpop.f32.mrf.mxu1  ;;  %10115 = vst [vmem:[#allocation31_spill] sm:$0xff] %v9561_v4 }
 0x218   : > { %v9570_v28 = vpop.f32.mrf.mxu0 }
 0x219   : > { %v6784_v58 = vpop.f32.mrf.mxu1  ;;  %10116 = vst [vmem:[#allocation22_spill] sm:$0xff] %v9570_v28 }
 0x21a   : > { %v3729_v61 = vadd.f32 %v6784_v58, %v9343_v26  ;;  %v9577_v46 = vpop.f32.mrf.mxu0 }
 0x21b   : > { %v3720_v27 = vpop.f32.mrf.mxu1 }
 0x21c   : > { %v9565_v11 = vadd.f32 %v3729_v61, %v9385_v22  ;;  %v3721_v7 = vadd.f32 %v3720_v27, %v9349_v29  ;;  %v9586_v27 = vpop.f32.mrf.mxu0 }
 0x21d   : > { %v9568_v60 = vpop.f32.mrf.mxu1  ;;  %10117 = vst [vmem:[#allocation23_spill] sm:$0xff] %v9586_v27 }
 0x21e   : > { %v9573_v40 = vadd.f32 %v3721_v7, %v9392_v44 }
 0x21f   : > { %v9575_v2 = vpop.f32.mrf.mxu1 }
 0x221   : > { %v6788_v30 = vpop.f32.mrf.mxu1 }
 0x222   : > { %v3745_v26 = vadd.f32 %v6788_v30, %v9367_v23 }
 0x223   : > { %v3736_v58 = vpop.f32.mrf.mxu1 }
 0x224   : > { %v9581_v22 = vadd.f32 %v3745_v26, %v9413_v48  ;;  %v3737_v29 = vadd.f32 %v3736_v58, %v9373_v63 }
 0x225   : > { %v9584_v61 = vpop.f32.mrf.mxu1 }
 0x226   : > { %v9589_v44 = vadd.f32 %v3737_v29, %v9420_v13 }
 0x227   : > { %v9591_v7 = vpop.f32.mrf.mxu1 }
 0x228   : > { %v9593_v4 = vpop.f32.mrf.mxu0 }
 0x229   : > { %v6792_v28 = vpop.f32.mrf.mxu1  ;;  %10118 = vst [vmem:[#allocation21_spill] sm:$0xff] %v9593_v4 }
 0x22a   : > { %v3761_v23 = vadd.f32 %v6792_v28, %v9395_v47  ;;  %v9600_v26 = vpop.f32.mrf.mxu0 }
 0x22b   : > { %v3752_v30 = vpop.f32.mrf.mxu1  ;;  %10120 = vst [vmem:[#allocation25_spill] sm:$0xff] %v9600_v26 }
 0x22c   : > { %v9597_v48 = vadd.f32 %v3761_v23, %v9441_v42  ;;  %v3753_v63 = vadd.f32 %v3752_v30, %v9402_v37  ;;  %v9607_v29 = vpop.f32.mrf.mxu0 }
 0x22d   : > { %v9602_v58 = vpop.f32.mrf.mxu1  ;;  %10122 = vst [vmem:[#allocation29_spill] sm:$0xff] %v9607_v29 }
 0x22e   : > { %10119 = vst [vmem:[#allocation24_spill] sm:$0xff] %v9597_v48  ;;  %v9605_v13 = vadd.f32 %v3753_v63, %v9448_v14  ;;  %v9611_v4 = vpop.f32.mrf.mxu0 }
 0x22f   : > { %v9609_v27 = vpop.f32.mrf.mxu1  ;;  %10123 = vst [vmem:[#allocation45_spill] sm:$0xff] %v9611_v4 }
 0x230   : > { %10121 = vst [vmem:[#allocation44_spill] sm:$0xff] %v9605_v13 }
 0x233   : > { %v6796_v47 = vpop.f32.mrf.mxu1 }
 0x234   : > { %v3777_v28 = vadd.f32 %v6796_v47, %v9423_v8  ;;  %v10131_v47 = vld [vmem:[#allocation46_spill] sm:$0xff] }
 0x235   : > { %v3768_v42 = vpop.f32.mrf.mxu1 }
 0x236   : > { %v9615_v23 = vadd.f32 %v3777_v28, %v9465_v3  ;;  %v3769_v30 = vadd.f32 %v3768_v42, %v9430_v20  ;;  %v3668_v3 = vadd.f32 %v9492_v56, %v10131_v47  ;;  %v10133_v42 = vld [vmem:[#allocation47_spill] sm:$0xff] }
 0x237   : > { %v9617_v37 = vpop.f32.mrf.mxu0  ;;  %v9620_v26 = vpop.f32.mrf.mxu1 }
 0x238   : > { %10124 = vst [vmem:[#allocation13_spill] sm:$0xff] %v9615_v23  ;;  %10125 = vst [vmem:[#allocation30_spill] sm:$0xff] %v9617_v37  ;;  %v9623_v14 = vadd.f32 %v3769_v30, %v9471_v15  ;;  %v3660_v37 = vadd.f32 %v9499_v53, %v10133_v42 }
 0x239   : > { %10126 = vst [vmem:[#allocation27_spill] sm:$0xff] %v9620_v26  ;;  %v9625_v63 = vpop.f32.mrf.mxu0  ;;  %v9627_v29 = vpop.f32.mrf.mxu1 }
 0x23a   : > { %10127 = vst [vmem:[#allocation33_spill] sm:$0xff] %v9623_v14  ;;  %10128 = vst [vmem:[#allocation48_spill] sm:$0xff] %v9625_v63 }
 0x23b   : > { %10129 = vst [vmem:[#allocation49_spill] sm:$0xff] %v9627_v29  ;;  %v9629_v4 = vpop.f32.mrf.mxu0  ;;  %v6864_v8 = vpop.f32.mrf.mxu1  ;;  %v10134_v29 = vld [vmem:[#allocation37_spill] sm:$0xff] }
 0x23c   : > { %10130 = vst [vmem:[#allocation50_spill] sm:$0xff] %v9629_v4  ;;  %v4742_v23 = vadd.f32 %v6864_v8, %v9451_v50  ;;  %v3786_v4 = vadd.f32 %v3668_v3, %v10134_v29  ;;  %v3784_v50 = vadd.f32 %v3660_v37, %v9303_v31  ;;  %v10136_v3 = vld [vmem:[#allocation35_spill] sm:$0xff] }
 0x23d   : > { %v9633_v28 = vpop.f32.mrf.mxu0  ;;  %v4733_v20 = vpop.f32.mrf.mxu1 }
 0x23e   : > { %10132 = vst [vmem:[#allocation46_spill] sm:$0xff] %v9633_v28  ;;  %v4862_v15 = vadd.f32 %v4742_v23, %v9489_v33  ;;  %v4734_v14 = vadd.f32 %v4733_v20, %v9456_v54 }
 0x23f   : > { %v6912_v30 = vpop.f32.mrf.mxu0  ;;  %v6865_v63 = vpop.f32.mrf.mxu1 }
 0x240   : > { %v4860_v26 = vadd.f32 %v4734_v14, %v9497_v34  ;;  %v4745_v56 = vadd.f32 %v6865_v63, %v9462_v45  ;;  %v5344_v33 = vadd.f32 %v6912_v30, %v4862_v15  ;;  %v10135_v34 = vld [vmem:[#allocation12_spill] sm:$0xff]  ;;  %v3676_v45 = vadd.f32 %v9519_v51, %v10136_v3 }
 0x241   : > { %v5215_v13 = vpop.f32.mrf.mxu0  ;;  %v4736_v47 = vpop.f32.mrf.mxu1  ;;  %v3684_v14 = vadd.f32 %v9512_v6, %v10135_v34 }
 0x242   : > { %v4863_v8 = vadd.f32 %v4745_v56, %v3786_v4  ;;  %v4737_v53 = vadd.f32 %v4736_v47, %v9468_v49  ;;  %v5342_v42 = vadd.f32 %v5215_v13, %v4860_v26  ;;  %v3788_v56 = vadd.f32 %v3676_v45, %v9328_v5 }
 0x243   : > { %v6913_v28 = vpop.f32.mrf.mxu0  ;;  %v6868_v23 = vpop.f32.mrf.mxu1  ;;  %v3790_v30 = vadd.f32 %v3684_v14, %v9322_v9 }
 0x244   : > { %v5345_v54 = vadd.f32 %v6913_v28, %v4863_v8  ;;  %v4861_v20 = vadd.f32 %v4737_v53, %v3784_v50  ;;  %v4758_v29 = vadd.f32 %v6868_v23, %v9474_v55  ;;  %v5571_v37 = vmul.f32 %v5342_v42, %v5342_v42 }
 0x245   : > { %v5218_v48 = vpop.f32.mrf.mxu0  ;;  %v4749_v31 = vpop.f32.mrf.mxu1  ;;  %v5573_v50 = vmul.f32 %v5344_v33, %v5344_v33 }
 0x246   : > { %v6207_v49 = vpack.c.bf16 %v5345_v54, %v5344_v33  ;;  %v5343_v4 = vadd.f32 %v5218_v48, %v4861_v20  ;;  %v4866_v26 = vadd.f32 %v4758_v29, %v9509_v52  ;;  %v4750_v13 = vadd.f32 %v4749_v31, %v9480_v32  ;;  %v10137_v20 = vld [vmem:[#allocation4_spill] sm:$0xff] }
 0x247   : > { %v6916_v55 = vpop.f32.mrf.mxu0  ;;  %v6869_v6 = vpop.f32.mrf.mxu1  ;;  %v5574_v29 = vmul.f32 %v5345_v54, %v5345_v54  ;;  %v10138_v31 = vld [vmem:[#allocation36_spill] sm:$0xff] }
 0x248   : > { %6279 = vst [vmem:[%s9655_s21 + $0x8] sm:$0xff] %v6207_v49   ;;  %v6202_v51 = vpack.c.bf16 %v5343_v4, %v5342_v42  ;;  %v5534_v63 = vadd.f32 %v5343_v4, %v5342_v42  ;;  %v5572_v28 = vmul.f32 %v5343_v4, %v5343_v4  ;;  %v4864_v47 = vadd.f32 %v4750_v13, %v9517_v62 }
 0x249   : > { %v5231_v15 = vpop.f32.mrf.mxu0  ;;  %v4761_v48 = vadd.f32 %v6869_v6, %v9486_v43  ;;  %v4752_v52 = vpop.f32.mrf.mxu1  ;;  %v3700_v42 = vadd.f32 %v9532_v59, %v10137_v20  ;;  %v5348_v49 = vadd.f32 %v6916_v55, %v4866_v26  ;;  %v10140_v20 = vld [vmem:[#allocation28_spill] sm:$0xff] }
 0x24a   : > { %6203 = vst [vmem:[%s9655_s21] sm:$0xff] %v6202_v51   ;;  %v5535_v8 = vadd.f32 %v5534_v63, %v5344_v33  ;;  %v5603_v32 = vadd.f32 %v5572_v28, %v5571_v37  ;;  %v4753_v23 = vadd.f32 %v4752_v52, %v9494_v0  ;;  %v5346_v34 = vadd.f32 %v5231_v15, %v4864_v47  ;;  %v10139_v47 = vld [vmem:[#allocation17_spill] sm:$0xff] }
 0x24b   : > { %v6917_v53 = vpop.f32.mrf.mxu0  ;;  %v4867_v9 = vadd.f32 %v4761_v48, %v3790_v30  ;;  %v6872_v14 = vpop.f32.mrf.mxu1  ;;  %v3692_v33 = vadd.f32 %v9539_v38, %v10138_v31  ;;  %v3794_v55 = vadd.f32 %v3700_v42, %v9346_v12 }
 0x24c   : > { %v5604_v5 = vadd.f32 %v5603_v32, %v5573_v50  ;;  %v5536_v3 = vadd.f32 %v5535_v8, %v5345_v54  ;;  %v4865_v62 = vadd.f32 %v4753_v23, %v3788_v56  ;;  %v4774_v43 = vadd.f32 %v6872_v14, %v9501_v57 }
 0x24d   : > { %v5234_v45 = vpop.f32.mrf.mxu0  ;;  %v5575_v4 = vmul.f32 %v5346_v34, %v5346_v34  ;;  %v5349_v13 = vadd.f32 %v6917_v53, %v4867_v9  ;;  %v4765_v0 = vpop.f32.mrf.mxu1  ;;  %v3792_v48 = vadd.f32 %v3692_v33, %v10139_v47  ;;  %v5577_v8 = vmul.f32 %v5348_v49, %v5348_v49  ;;  %v10143_v47 = vld [vmem:[#allocation11_spill] sm:$0xff] }
 0x24e   : > { %v5537_v6 = vadd.f32 %v5536_v3, %v5346_v34  ;;  %v5605_v59 = vadd.f32 %v5604_v5, %v5574_v29  ;;  %v5347_v37 = vadd.f32 %v5234_v45, %v4865_v62  ;;  %v4870_v51 = vadd.f32 %v4774_v43, %v9529_v18  ;;  %v10141_v62 = vld [vmem:[#allocation9_spill] sm:$0xff] }
 0x24f   : > { %v6920_v63 = vpop.f32.mrf.mxu0  ;;  %v6217_v54 = vpack.c.bf16 %v5349_v13, %v5348_v49  ;;  %v4766_v28 = vadd.f32 %v4765_v0, %v9503_v36  ;;  %v6873_v15 = vpop.f32.mrf.mxu1  ;;  %v3716_v29 = vadd.f32 %v9552_v16, %v10140_v20  ;;  %v3708_v45 = vadd.f32 %v9559_v10, %v10141_v62 }
 0x250   : > { %v5606_v57 = vadd.f32 %v5605_v59, %v5575_v4  ;;  %v6212_v30 = vpack.c.bf16 %v5347_v37, %v5346_v34  ;;  %v5538_v56 = vadd.f32 %v5537_v6, %v5347_v37  ;;  %v5576_v38 = vmul.f32 %v5347_v37, %v5347_v37 }
 0x251   : > { %v5247_v26 = vpop.f32.mrf.mxu0  ;;  %6281 = vst [vmem:[%s9655_s21 + $0x18] sm:$0xff] %v6217_v54   ;;  %v4868_v52 = vadd.f32 %v4766_v28, %v9537_v21  ;;  %v4777_v18 = vadd.f32 %v6873_v15, %v9506_v39  ;;  %v4768_v50 = vpop.f32.mrf.mxu1  ;;  %v5578_v34 = vmul.f32 %v5349_v13, %v5349_v13  ;;  %v5352_v43 = vadd.f32 %v6920_v63, %v4870_v51  ;;  %v10142_v63 = vld [vmem:[#allocation40_spill] sm:$0xff] }
 0x252   : > { %6280 = vst [vmem:[%s9655_s21 + $0x10] sm:$0xff] %v6212_v30   ;;  %v5539_v32 = vadd.f32 %v5538_v56, %v5348_v49  ;;  %v5607_v36 = vadd.f32 %v5606_v57, %v5576_v38  ;;  %v4769_v23 = vadd.f32 %v4768_v50, %v9514_v17  ;;  %v3798_v15 = vadd.f32 %v3716_v29, %v10142_v63  ;;  %v10146_v29 = vld [vmem:[#allocation3_spill] sm:$0xff]  ;;  %v10151_v63 = vld [vmem:[#allocation20_spill] sm:$0xff] }
 0x253   : > { %v6921_v53 = vpop.f32.mrf.mxu0  ;;  %v5350_v12 = vadd.f32 %v5247_v26, %v4868_v52  ;;  %v4871_v42 = vadd.f32 %v4777_v18, %v3794_v55  ;;  %v6876_v9 = vpop.f32.mrf.mxu1  ;;  %v3796_v57 = vadd.f32 %v3708_v45, %v9378_v25  ;;  %v5581_v38 = vmul.f32 %v5352_v43, %v5352_v43  ;;  %v10144_v52 = vld [vmem:[#allocation26_spill] sm:$0xff]  ;;  %v10147_v45 = vld [vmem:[#allocation43_spill] sm:$0xff] }
 0x254   : > { %v5608_v14 = vadd.f32 %v5607_v36, %v5577_v8  ;;  %v5540_v5 = vadd.f32 %v5539_v32, %v5349_v13  ;;  %v4869_v21 = vadd.f32 %v4769_v23, %v3792_v48  ;;  %v4790_v39 = vadd.f32 %v6876_v9, %v9521_v41 }
 0x255   : > { %v5250_v3 = vpop.f32.mrf.mxu0  ;;  %v5579_v31 = vmul.f32 %v5350_v12, %v5350_v12  ;;  %v5353_v33 = vadd.f32 %v6921_v53, %v4871_v42  ;;  %v4781_v17 = vpop.f32.mrf.mxu1  ;;  %v3732_v18 = vadd.f32 %v9568_v60, %v10144_v52 }
 0x256   : > { %v5541_v49 = vadd.f32 %v5540_v5, %v5350_v12  ;;  %v5609_v16 = vadd.f32 %v5608_v14, %v5578_v34  ;;  %v5351_v4 = vadd.f32 %v5250_v3, %v4869_v21  ;;  %v4874_v0 = vadd.f32 %v4790_v39, %v9549_v1 }
 0x257   : > { %v6924_v6 = vpop.f32.mrf.mxu0  ;;  %v6227_v13 = vpack.c.bf16 %v5353_v33, %v5352_v43  ;;  %v4782_v59 = vadd.f32 %v4781_v17, %v9523_v24  ;;  %v6877_v37 = vpop.f32.mrf.mxu1  ;;  %v5582_v50 = vmul.f32 %v5353_v33, %v5353_v33  ;;  %v3724_v34 = vadd.f32 %v9575_v2, %v10146_v29  ;;  %v10155_v29 = vld [vmem:[#allocation22_spill] sm:$0xff] }
 0x258   : > { %v5610_v41 = vadd.f32 %v5609_v16, %v5579_v31  ;;  %v6222_v54 = vpack.c.bf16 %v5351_v4, %v5350_v12  ;;  %v5542_v28 = vadd.f32 %v5541_v49, %v5351_v4  ;;  %v5580_v10 = vmul.f32 %v5351_v4, %v5351_v4  ;;  %v10148_v4 = vld [vmem:[#allocation6_spill] sm:$0xff] }
 0x259   : > { %v5263_v51 = vpop.f32.mrf.mxu0  ;;  %6283 = vst [vmem:[%s9655_s21 + $0x28] sm:$0xff] %v6227_v13   ;;  %v4872_v30 = vadd.f32 %v4782_v59, %v9557_v35  ;;  %v4793_v1 = vadd.f32 %v6877_v37, %v9526_v19  ;;  %v4784_v56 = vpop.f32.mrf.mxu1  ;;  %v10145_v19 = vld [vmem:[#allocation16_spill] sm:$0xff]  ;;  %v5356_v12 = vadd.f32 %v6924_v6, %v4874_v0  ;;  %v3802_v0 = vadd.f32 %v3732_v18, %v10148_v4  ;;  %v10150_v37 = vld [vmem:[#allocation18_spill] sm:$0xff] }
 0x25a   : > { %6282 = vst [vmem:[%s9655_s21 + $0x20] sm:$0xff] %v6222_v54   ;;  %v5543_v26 = vadd.f32 %v5542_v28, %v5352_v43  ;;  %v5611_v24 = vadd.f32 %v5610_v41, %v5580_v10  ;;  %v4785_v48 = vadd.f32 %v4784_v56, %v10143_v47  ;;  %v10149_v6 = vld [vmem:[#allocation32_spill] sm:$0xff]  ;;  %v10154_v18 = vld [vmem:[#allocation10_spill] sm:$0xff] }
 0x25b   : > { %v6925_v55 = vpop.f32.mrf.mxu0  ;;  %v5354_v8 = vadd.f32 %v5263_v51, %v4872_v30  ;;  %v4875_v32 = vadd.f32 %v4793_v1, %v3798_v15  ;;  %v6880_v25 = vpop.f32.mrf.mxu1  ;;  %v3800_v13 = vadd.f32 %v3724_v34, %v10149_v6  ;;  %v5585_v54 = vmul.f32 %v5356_v12, %v5356_v12 }
 0x25c   : > { %v5612_v36 = vadd.f32 %v5611_v24, %v5581_v38  ;;  %v5544_v53 = vadd.f32 %v5543_v26, %v5353_v33  ;;  %v4873_v35 = vadd.f32 %v4785_v48, %v3796_v57  ;;  %v4806_v20 = vadd.f32 %v6880_v25, %v10145_v19  ;;  %v10152_v57 = vld [vmem:[#allocation39_spill] sm:$0xff] }
 0x25d   : > { %v5266_v23 = vpop.f32.mrf.mxu0  ;;  %v5583_v42 = vmul.f32 %v5354_v8, %v5354_v8  ;;  %v5357_v9 = vadd.f32 %v6925_v55, %v4875_v32  ;;  %v4797_v14 = vpop.f32.mrf.mxu1  ;;  %v3748_v30 = vadd.f32 %v9584_v61, %v10152_v57  ;;  %v10153_v48 = vld [vmem:[#allocation31_spill] sm:$0xff] }
 0x25e   : > { %v5545_v5 = vadd.f32 %v5544_v53, %v5354_v8  ;;  %v5613_v60 = vadd.f32 %v5612_v36, %v5582_v50  ;;  %v5355_v21 = vadd.f32 %v5266_v23, %v4873_v35  ;;  %v4878_v3 = vadd.f32 %v4806_v20, %v9565_v11 }
 0x25f   : > { %v6928_v39 = vpop.f32.mrf.mxu0  ;;  %v6237_v62 = vpack.c.bf16 %v5357_v9, %v5356_v12  ;;  %v4798_v43 = vadd.f32 %v4797_v14, %v10147_v45  ;;  %v6881_v31 = vpop.f32.mrf.mxu1  ;;  %v5586_v1 = vmul.f32 %v5357_v9, %v5357_v9  ;;  %v3740_v50 = vadd.f32 %v9591_v7, %v10154_v18 }
 0x260   : > { %v5614_v33 = vadd.f32 %v5613_v60, %v5583_v42  ;;  %v6232_v17 = vpack.c.bf16 %v5355_v21, %v5354_v8  ;;  %v5546_v49 = vadd.f32 %v5545_v5, %v5355_v21  ;;  %v5584_v2 = vmul.f32 %v5355_v21, %v5355_v21  ;;  %v10156_v60 = vld [vmem:[#allocation38_spill] sm:$0xff] }
 0x261   : > { %v5279_v16 = vpop.f32.mrf.mxu0  ;;  %6285 = vst [vmem:[%s9655_s21 + $0x38] sm:$0xff] %v6237_v62   ;;  %v4876_v59 = vadd.f32 %v4798_v43, %v9573_v40  ;;  %v4809_v11 = vadd.f32 %v6881_v31, %v10150_v37  ;;  %v4800_v41 = vpop.f32.mrf.mxu1  ;;  %v5360_v8 = vadd.f32 %v6928_v39, %v4878_v3  ;;  %v3806_v21 = vadd.f32 %v3748_v30, %v10156_v60  ;;  %v10157_v3 = vld [vmem:[#allocation42_spill] sm:$0xff] }
 0x262   : > { %6284 = vst [vmem:[%s9655_s21 + $0x30] sm:$0xff] %v6232_v17   ;;  %v5547_v28 = vadd.f32 %v5546_v49, %v5356_v12  ;;  %v5615_v10 = vadd.f32 %v5614_v33, %v5584_v2  ;;  %v4801_v15 = vadd.f32 %v4800_v41, %v10151_v63  ;;  %v3804_v39 = vadd.f32 %v3740_v50, %v10157_v3  ;;  %v10158_v49 = vld [vmem:[#allocation23_spill] sm:$0xff] }
 0x263   : > { %v6929_v51 = vpop.f32.mrf.mxu0  ;;  %v5358_v56 = vadd.f32 %v5279_v16, %v4876_v59  ;;  %v4879_v38 = vadd.f32 %v4809_v11, %v3802_v0  ;;  %v6884_v26 = vpop.f32.mrf.mxu1  ;;  %v5589_v43 = vmul.f32 %v5360_v8, %v5360_v8  ;;  %v10159_v16 = vld [vmem:[#allocation19_spill] sm:$0xff] }
 0x264   : > { %v5616_v24 = vadd.f32 %v5615_v10, %v5585_v54  ;;  %v5548_v55 = vadd.f32 %v5547_v28, %v5357_v9  ;;  %v4877_v40 = vadd.f32 %v4801_v15, %v3800_v13  ;;  %v4822_v52 = vadd.f32 %v6884_v26, %v10153_v48  ;;  %v10161_v28 = vld [vmem:[#allocation34_spill] sm:$0xff] }
 0x265   : > { %v5282_v47 = vpop.f32.mrf.mxu0  ;;  %v5587_v32 = vmul.f32 %v5358_v56, %v5358_v56  ;;  %v5361_v25 = vadd.f32 %v6929_v51, %v4879_v38  ;;  %v4813_v36 = vpop.f32.mrf.mxu1  ;;  %v3764_v4 = vadd.f32 %v9602_v58, %v10159_v16  ;;  %v3756_v10 = vadd.f32 %v9609_v27, %v10161_v28 }
 0x266   : > { %v5549_v53 = vadd.f32 %v5548_v55, %v5358_v56  ;;  %v5617_v61 = vadd.f32 %v5616_v24, %v5586_v1  ;;  %v5359_v35 = vadd.f32 %v5282_v47, %v4877_v40  ;;  %v4882_v23 = vadd.f32 %v4822_v52, %v9581_v22  ;;  %v10163_v55 = vld [vmem:[#allocation25_spill] sm:$0xff] }
 0x267   : > { %v6932_v19 = vpop.f32.mrf.mxu0  ;;  %v6247_v20 = vpack.c.bf16 %v5361_v25, %v5360_v8  ;;  %v4814_v34 = vadd.f32 %v4813_v36, %v10155_v29  ;;  %v6885_v12 = vpop.f32.mrf.mxu1  ;;  %v5590_v0 = vmul.f32 %v5361_v25, %v5361_v25 }
 0x268   : > { %v5618_v42 = vadd.f32 %v5617_v61, %v5587_v32  ;;  %v6242_v9 = vpack.c.bf16 %v5359_v35, %v5358_v56  ;;  %v5550_v14 = vadd.f32 %v5549_v53, %v5359_v35  ;;  %v5588_v7 = vmul.f32 %v5359_v35, %v5359_v35  ;;  %v10162_v56 = vld [vmem:[#allocation24_spill] sm:$0xff]  ;;  %v10167_v35 = vld [vmem:[#allocation29_spill] sm:$0xff] }
 0x269   : > { %v5295_v5 = vpop.f32.mrf.mxu0  ;;  %6287 = vst [vmem:[%s9655_s21 + $0x48] sm:$0xff] %v6247_v20   ;;  %v4880_v62 = vadd.f32 %v4814_v34, %v9589_v44  ;;  %v4825_v22 = vadd.f32 %v6885_v12, %v9577_v46  ;;  %v4816_v45 = vpop.f32.mrf.mxu1  ;;  %v10160_v46 = vld [vmem:[#allocation21_spill] sm:$0xff]  ;;  %v5364_v51 = vadd.f32 %v6932_v19, %v4882_v23  ;;  %v10166_v53 = vld [vmem:[#allocation44_spill] sm:$0xff] }
 0x26a   : > { %6286 = vst [vmem:[%s9655_s21 + $0x40] sm:$0xff] %v6242_v9   ;;  %v5551_v31 = vadd.f32 %v5550_v14, %v5360_v8  ;;  %v5619_v33 = vadd.f32 %v5618_v42, %v5588_v7  ;;  %v4817_v2 = vadd.f32 %v4816_v45, %v10158_v49  ;;  %v10164_v8 = vld [vmem:[#allocation7_spill] sm:$0xff]  ;;  %v10168_v42 = vld [vmem:[#allocation45_spill] sm:$0xff] }
 0x26b   : > { %v6933_v17 = vpop.f32.mrf.mxu0  ;;  %v5362_v6 = vadd.f32 %v5295_v5, %v4880_v62  ;;  %v4883_v13 = vadd.f32 %v4825_v22, %v3806_v21  ;;  %v6888_v59 = vpop.f32.mrf.mxu1  ;;  %v3810_v32 = vadd.f32 %v3764_v4, %v10164_v8  ;;  %v5593_v20 = vmul.f32 %v5364_v51, %v5364_v51  ;;  %v10169_v14 = vld [vmem:[#allocation41_spill] sm:$0xff]  ;;  %v10170_v7 = vld [vmem:[#allocation27_spill] sm:$0xff] }
 0x26c   : > { %v5620_v37 = vadd.f32 %v5619_v33, %v5589_v43  ;;  %v5552_v11 = vadd.f32 %v5551_v31, %v5361_v25  ;;  %v4881_v44 = vadd.f32 %v4817_v2, %v3804_v39  ;;  %v4838_v54 = vadd.f32 %v6888_v59, %v10160_v46  ;;  %v10165_v25 = vld [vmem:[#allocation14_spill] sm:$0xff]  ;;  %v10173_v49 = vld [vmem:[#allocation49_spill] sm:$0xff] }
 0x26d   : > { %v5298_v41 = vpop.f32.mrf.mxu0  ;;  %v5591_v63 = vmul.f32 %v5362_v6, %v5362_v6  ;;  %v5365_v15 = vadd.f32 %v6933_v17, %v4883_v13  ;;  %v4829_v57 = vpop.f32.mrf.mxu1  ;;  %v3808_v36 = vadd.f32 %v3756_v10, %v10165_v25  ;;  %v3780_v5 = vadd.f32 %v10170_v7, %v10169_v14  ;;  %v10171_v31 = vld [vmem:[#allocation30_spill] sm:$0xff]  ;;  %v10172_v17 = vld [vmem:[#allocation5_spill] sm:$0xff] }
 0x26e   : > { %v5553_v30 = vadd.f32 %v5552_v11, %v5362_v6  ;;  %v5621_v58 = vadd.f32 %v5620_v37, %v5590_v0  ;;  %v5363_v1 = vadd.f32 %v5298_v41, %v4881_v44  ;;  %v4886_v38 = vadd.f32 %v4838_v54, %v10162_v56  ;;  %v10174_v11 = vld [vmem:[#allocation13_spill] sm:$0xff]  ;;  %v10175_v54 = vld [vmem:[#allocation48_spill] sm:$0xff]  ;;  %v10177_v56 = vld [vmem:[#allocation15_spill] sm:$0xff] }
 0x26f   : > { %v6936_v26 = vpop.f32.mrf.mxu0  ;;  %v6257_v24 = vpack.c.bf16 %v5365_v15, %v5364_v51  ;;  %v4830_v40 = vadd.f32 %v4829_v57, %v10163_v55  ;;  %v6889_v47 = vpop.f32.mrf.mxu1  ;;  %v5594_v60 = vmul.f32 %v5365_v15, %v5365_v15  ;;  %v3772_v2 = vadd.f32 %v10173_v49, %v10172_v17  ;;  %v10179_v55 = vld [vmem:[#allocation50_spill] sm:$0xff] }
 0x270   : > { %v5622_v48 = vadd.f32 %v5621_v58, %v5591_v63  ;;  %v6252_v52 = vpack.c.bf16 %v5363_v1, %v5362_v6  ;;  %v5554_v18 = vadd.f32 %v5553_v30, %v5363_v1  ;;  %v5592_v27 = vmul.f32 %v5363_v1, %v5363_v1  ;;  %v10176_v58 = vld [vmem:[#allocation8_spill] sm:$0xff] }
 0x271   : > { %v5311_v50 = vpop.f32.mrf.mxu0  ;;  %6289 = vst [vmem:[%s9655_s21 + $0x58] sm:$0xff] %v6257_v24   ;;  %v4884_v61 = vadd.f32 %v4830_v40, %v10166_v53  ;;  %v4841_v23 = vadd.f32 %v6889_v47, %v10167_v35  ;;  %v4832_v19 = vpop.f32.mrf.mxu1  ;;  %v5368_v16 = vadd.f32 %v6936_v26, %v4886_v38  ;;  %v3814_v1 = vadd.f32 %v3780_v5, %v10176_v58  ;;  %v10178_v26 = vld [vmem:[#allocation33_spill] sm:$0xff] }
 0x272   : > { %6288 = vst [vmem:[%s9655_s21 + $0x50] sm:$0xff] %v6252_v52   ;;  %v5555_v29 = vadd.f32 %v5554_v18, %v5364_v51  ;;  %v5623_v34 = vadd.f32 %v5622_v48, %v5592_v27  ;;  %v4833_v9 = vadd.f32 %v4832_v19, %v10168_v42  ;;  %v3812_v38 = vadd.f32 %v3772_v2, %v10177_v56 }
 0x273   : > { %v6937_v12 = vpop.f32.mrf.mxu0  ;;  %v5366_v21 = vadd.f32 %v5311_v50, %v4884_v61  ;;  %v4887_v3 = vadd.f32 %v4841_v23, %v3810_v32  ;;  %v6892_v39 = vpop.f32.mrf.mxu1  ;;  %v5597_v48 = vmul.f32 %v5368_v16, %v5368_v16  ;;  %v10180_v50 = vld [vmem:[#allocation46_spill] sm:$0xff] }
 0x274   : > { %v5624_v62 = vadd.f32 %v5623_v34, %v5593_v20  ;;  %v5556_v22 = vadd.f32 %v5555_v29, %v5365_v15  ;;  %v4885_v45 = vadd.f32 %v4833_v9, %v3808_v36  ;;  %v4854_v33 = vadd.f32 %v6892_v39, %v10171_v31 }
 0x275   : > { %v5314_v43 = vpop.f32.mrf.mxu0  ;;  %v5595_v4 = vmul.f32 %v5366_v21, %v5366_v21  ;;  %v5369_v0 = vadd.f32 %v6937_v12, %v4887_v3  ;;  %v4845_v6 = vpop.f32.mrf.mxu1 }
 0x276   : > { %v5557_v13 = vadd.f32 %v5556_v22, %v5366_v21  ;;  %v5625_v59 = vadd.f32 %v5624_v62, %v5594_v60  ;;  %v5367_v37 = vadd.f32 %v5314_v43, %v4885_v45  ;;  %v4890_v44 = vadd.f32 %v4854_v33, %v10174_v11 }
 0x277   : > { %v6940_v41 = vpop.f32.mrf.mxu0  ;;  %v6267_v46 = vpack.c.bf16 %v5369_v0, %v5368_v16  ;;  %v4846_v28 = vadd.f32 %v4845_v6, %v10175_v54  ;;  %v6893_v10 = vpop.f32.mrf.mxu1  ;;  %v5598_v36 = vmul.f32 %v5369_v0, %v5369_v0 }
 0x278   : > { %v5626_v51 = vadd.f32 %v5625_v59, %v5595_v4  ;;  %v6262_v63 = vpack.c.bf16 %v5367_v37, %v5366_v21  ;;  %v5558_v15 = vadd.f32 %v5557_v13, %v5367_v37  ;;  %v5596_v57 = vmul.f32 %v5367_v37, %v5367_v37 }
 0x279   : > { %v5327_v30 = vpop.f32.mrf.mxu0  ;;  %6291 = vst [vmem:[%s9655_s21 + $0x68] sm:$0xff] %v6267_v46   ;;  %v4888_v24 = vadd.f32 %v4846_v28, %v10178_v26  ;;  %v4857_v40 = vadd.f32 %v6893_v10, %v10179_v55  ;;  %v4848_v47 = vpop.f32.mrf.mxu1  ;;  %v5372_v23 = vadd.f32 %v6940_v41, %v4890_v44 }
 0x27a   : > { %6290 = vst [vmem:[%s9655_s21 + $0x60] sm:$0xff] %v6262_v63   ;;  %v5559_v52 = vadd.f32 %v5558_v15, %v5368_v16  ;;  %v5627_v18 = vadd.f32 %v5626_v51, %v5596_v57  ;;  %v4849_v8 = vadd.f32 %v4848_v47, %v10180_v50 }
 0x27b   : > { %v6941_v27 = vpop.f32.mrf.mxu0  ;;  %v5370_v32 = vadd.f32 %v5327_v30, %v4888_v24  ;;  %v4891_v25 = vadd.f32 %v4857_v40, %v3814_v1  ;;  %v5601_v21 = vmul.f32 %v5372_v23, %v5372_v23 }
 0x27c   : > { %v5628_v53 = vadd.f32 %v5627_v18, %v5597_v48  ;;  %v5560_v61 = vadd.f32 %v5559_v52, %v5369_v0  ;;  %v4889_v35 = vadd.f32 %v4849_v8, %v3812_v38 }
 0x27d   : > { %v5373_v19 = vadd.f32 %v6941_v27, %v4891_v25  ;;  %v5330_v20 = vpop.f32.mrf.mxu0  ;;  %v5599_v34 = vmul.f32 %v5370_v32, %v5370_v32 }
 0x27e   : > { %v5561_v29 = vadd.f32 %v5560_v61, %v5370_v32  ;;  %v5629_v12 = vadd.f32 %v5628_v53, %v5598_v36  ;;  %v5371_v42 = vadd.f32 %v5330_v20, %v4889_v35 }
 0x27f   : > { %v6277_v9 = vpack.c.bf16 %v5373_v19, %v5372_v23  ;;  %v5602_v62 = vmul.f32 %v5373_v19, %v5373_v19 }
 0x280   : > { %v5630_v14 = vadd.f32 %v5629_v12, %v5599_v34  ;;  %v6272_v7 = vpack.c.bf16 %v5371_v42, %v5370_v32  ;;  %v5562_v5 = vadd.f32 %v5561_v29, %v5371_v42  ;;  %v5600_v60 = vmul.f32 %v5371_v42, %v5371_v42 }
 0x281   : > { %6293 = vst [vmem:[%s9655_s21 + $0x78] sm:$0xff] %v6277_v9  }
 0x282   : > { %6292 = vst [vmem:[%s9655_s21 + $0x70] sm:$0xff] %v6272_v7   ;;  %v5563_v3 = vadd.f32 %v5562_v5, %v5372_v23  ;;  %v5631_v39 = vadd.f32 %v5630_v14, %v5600_v60 }
 0x284   : > { %v5564_v22 = vadd.f32 %v5563_v3, %v5373_v19  ;;  %v5632_v45 = vadd.f32 %v5631_v39, %v5601_v21 }
 0x286   : > { %v5565_v43 = vrot.slane %v5564_v22, 4  ;;  %v5633_v31 = vadd.f32 %v5632_v45, %v5602_v62 }
 0x288   : > { %v5566_v33 = vadd.f32 %v5565_v43, %v5564_v22  ;;  %v5634_v17 = vrot.slane %v5633_v31, 4 }
 0x28a   : > { %v5567_v49 = vrot.slane %v5566_v33, 2  ;;  %v5635_v2 = vadd.f32 %v5634_v17, %v5633_v31 }
 0x28c   : > { %v5568_v16 = vadd.f32 %v5567_v49, %v5566_v33  ;;  %v5636_v4 = vrot.slane %v5635_v2, 2 }
 0x28e   : > { %v5569_v0 = vrot.slane %v5568_v16, 1  ;;  %v5637_v6 = vadd.f32 %v5636_v4, %v5635_v2 }
 0x290   : > { %v5638_v13 = vrot.slane %v5637_v6, 1  ;;  %v5570_v59 = vadd.f32 %v5569_v0, %v5568_v16 }
 0x292   : > { %v5639_v37 = vadd.f32 %v5638_v13, %v5637_v6 }
 0x294   : > { %v5641_v11 = vsel %vm600_vm2, %v5570_v59, %v5639_v37 }
 0x295   : > { %5642 = vst [vmem:[%s181_s23] sm:$0x3] %v5641_v11 }
 0x296 PF: > { %s14_s12 = sadd.s32 1, %s7177_s12  }
 0x297   : > { %p11_p4 = scmp.ge.s32.totalorder %s14_s12, 4  }
 0x299   :  { %13 = sbr.rel (!%p11_p4) target bundleno = 1 (0x1), region = 80 }

// kernel: basic_block_forward.4
= control target key start
LH: loop header
LB: loop body
LE: loop exit
PB: predicated region body
PF: predicated region fallthrough
CT: control target
= control target key end

     0   :  { %s7369_s18 = smov 0   ;;  %s9983_s0 = inlined_call_operand.vmem [shape: bf16[2,16,16,128], index: 0, kind: input, shape index: {}]   ;;  %s9984_s1 = inlined_call_operand.vmem [shape: f32[1,128], index: 1, kind: input, shape index: {}]   ;;  %s9985_s2 = inlined_call_operand.vmem [shape: f32[1,128], index: 2, kind: input, shape index: {}]   ;;  %s9986_s3 = inlined_call_operand.vmem [shape: bf16[9,128,128], index: 3, kind: input, shape index: {}]   ;;  %s9987_s4 = inlined_call_operand.vmem [shape: f32[2,256,128], index: 4, kind: output, shape index: {0}]   ;;  %s9988_s5 = inlined_call_operand.vmem [shape: f32[2,2,128], index: 5, kind: output, shape index: {1}]  }
   0x1 LB: > { %s5893_s19 = sadd.s32 4294967295, %s7336_s18   ;;  %p5897_p0 = scmp.ge.s32.totalorder %s7336_s18, 1  ;;  %s7336_s18 = sphi %s7369_s18, %s16_s18  }
   0x2   : > { %p190_p1 = scmp.lt.s32.totalorder %s7336_s18, 3 }
   0x4   : > { %p191_p2 = pnand %p5897_p0, %p190_p1 }
   0x6   : > { %194 = sbr.rel (%p191_p2) target bundleno = 696 (0x2b8), region = 36 }
   0xb   : > { %v7117_v0 = vld [vmem:[%s9986_s3 + $0x78] sm:$0xff]   ;;  %v7383_v1 = vld [vmem:[%s9986_s3 + $0x70] sm:$0xff]   ;;  %v7338_v2 = vmov 0   ;;  %p222_p3 = scmp.lt.s32.totalorder %s5893_s19, 1  ;;  %v7119_v3 = vld [vmem:[%s9986_s3 + $0x68] sm:$0xff]   ;;  %vm885_vm4 = vcmask 1043456  }
   0xc   : > { %411 = vst [vmem:[#allocation2] sm:$0xf] %v7338_v2  ;;  %412 = vst [vmem:[#allocation2 + $0x4] sm:$0xf] %v7338_v2  ;;  %6660 = vmatprep.subr.bf16.mxu0 %v7117_v0  ;;  %7092 = vmatprep.subr.bf16.mxu1 %v7117_v0  ;;  %v7120_v4 = vld [vmem:[%s9986_s3 + $0x60] sm:$0xff]   ;;  %v7121_v18 = vld [vmem:[%s9986_s3 + $0x58] sm:$0xff]  }
   0xd   : > { %413 = vst [vmem:[#allocation2 + $0x8] sm:$0x1] %v7338_v2  ;;  %414 = vst [vmem:[#allocation2 + $0xc] sm:$0xf] %v7338_v2  ;;  %6661 = vmatpush3.bf16.msra.mxu0 %v7117_v0  ;;  %7100 = vmatpush3.bf16.msra.mxu1 %v7117_v0  ;;  %s10442_s19 = smov (!%p222_p3, %s5893_s19), 1  ;;  %vm892_vm5 = vcmask 1040384  }
   0xe   : > { %415 = vst [vmem:[#allocation2 + $0x10] sm:$0xf] %v7338_v2  ;;  %416 = vst [vmem:[#allocation2 + $0x14] sm:$0x1] %v7338_v2  ;;  %6662 = vmatprep.subr.bf16.mxu0 %v7383_v1  ;;  %7093 = vmatprep.subr.bf16.mxu1 %v7383_v1  ;;  %s6331_s26 = sshll.u32 %s10442_s19, 7  ;;  %v7122_v33 = vld [vmem:[%s9986_s3 + $0x50] sm:$0xff]  }
   0xf   : > { %417 = vst [vmem:[#allocation2 + $0x18] sm:$0xf] %v7338_v2  ;;  %418 = vst [vmem:[#allocation2 + $0x1c] sm:$0xf] %v7338_v2  ;;  %s7405_s6 = scalar_lea.vmem %s9983_s0, %s6331_s26  ;;  %vm1066_vm0 = vsmask.f32 3328 }
  0x10   : > { %419 = vst [vmem:[#allocation2 + $0x20] sm:$0x1] %v7338_v2  ;;  %420 = vst [vmem:[#allocation2 + $0x24] sm:$0xf] %v7338_v2  ;;  %vm1067_vm1 = vsmask.f32 7440 }
  0x11   : > { %421 = vst [vmem:[#allocation2 + $0x28] sm:$0xf] %v7338_v2  ;;  %422 = vst [vmem:[#allocation2 + $0x2c] sm:$0x1] %v7338_v2  ;;  %6663 = vmatpush3.bf16.msra.mxu0 %v7383_v1  ;;  %7101 = vmatpush3.bf16.msra.mxu1 %v7383_v1  ;;  %v7410_v15 = vld [vmem:[%s9984_s1] ss:$0 sm:$0xff] }
  0x12   : > { %423 = vst [vmem:[#allocation2 + $0x30] sm:$0xf] %v7338_v2  ;;  %424 = vst [vmem:[#allocation2 + $0x34] sm:$0xf] %v7338_v2  ;;  %6664 = vmatprep.subr.bf16.mxu0 %v7119_v3  ;;  %7094 = vmatprep.subr.bf16.mxu1 %v7119_v3  ;;  %v6366_v16 = vld [vmem:[%s7405_s6] sm:$0xff]   ;;  %v6435_v17 = vld [vmem:[%s7405_s6 + $0x38] sm:$0xff]  }
  0x13   : > { %425 = vst [vmem:[#allocation2 + $0x38] sm:$0x1] %v7338_v2  ;;  %426 = vst [vmem:[#allocation2 + $0x3c] sm:$0xf] %v7338_v2  ;;  %v1002_v5 = vld [vmem:[#allocation2] sm:$0xf]  ;;  %v6367_v21 = vunpack.c.l.bf16 %v6366_v16  ;;  %v6368_v25 = vunpack.c.h.bf16 %v6366_v16  ;;  %v6395_v29 = vunpack.c.l.bf16 %v6435_v17  ;;  %v6396_v32 = vunpack.c.h.bf16 %v6435_v17 }
  0x14   : > { %427 = vst [vmem:[#allocation2 + $0x40] sm:$0xf] %v7338_v2  ;;  %428 = vst [vmem:[#allocation2 + $0x44] sm:$0x1] %v7338_v2  ;;  %v1003_v6 = vld [vmem:[#allocation2 + $0x4] sm:$0xf] }
  0x15   : > { %429 = vst [vmem:[#allocation2 + $0x48] sm:$0xf] %v7338_v2  ;;  %430 = vst [vmem:[#allocation2 + $0x4c] sm:$0xf] %v7338_v2  ;;  %v1050_v7 = vld [vmem:[#allocation2 + $0x8] sm:$0x1]  ;;  %6665 = vmatpush3.bf16.msra.mxu0 %v7119_v3  ;;  %7102 = vmatpush3.bf16.msra.mxu1 %v7119_v3  ;;  %v309_v28 = vmul.f32 %v6367_v21, %v7410_v15  ;;  %v310_v31 = vmul.f32 %v6368_v25, %v7410_v15 }
  0x16   : > { %431 = vst [vmem:[#allocation2 + $0x50] sm:$0x1] %v7338_v2  ;;  %432 = vst [vmem:[#allocation2 + $0x54] sm:$0xf] %v7338_v2  ;;  %v1070_v8 = vshrl.u32 %v1002_v5, 16  ;;  %v1073_v9 = vshll.u32 %v1002_v5, 16  ;;  %6666 = vmatprep.subr.bf16.mxu0 %v7120_v4  ;;  %7095 = vmatprep.subr.bf16.mxu1 %v7120_v4  ;;  %v323_v36 = vmul.f32 %v6395_v29, %v7410_v15 }
  0x17   : > { %433 = vst [vmem:[#allocation2 + $0x58] sm:$0xf] %v7338_v2  ;;  %434 = vst [vmem:[#allocation2 + $0x5c] sm:$0x1] %v7338_v2  ;;  %v1079_v10 = vshll.u32 %v1003_v6, 16  ;;  %v1083_v11 = vshrl.u32 %v1003_v6, 16  ;;  %v324_v39 = vmul.f32 %v6396_v32, %v7410_v15 }
  0x18   : > { %435 = vst [vmem:[#allocation2 + $0x60] sm:$0xf] %v7338_v2  ;;  %436 = vst [vmem:[#allocation2 + $0x64] sm:$0xf] %v7338_v2  ;;  %v1089_v12 = vshll.u32 %v1050_v7, 16  ;;  %v1072_v13 = vrot.slane %v1070_v8, 4 }
  0x19   : > { %437 = vst [vmem:[#allocation2 + $0x68] sm:$0x1] %v7338_v2  ;;  %438 = vst [vmem:[#allocation2 + $0x6c] sm:$0xf] %v7338_v2  ;;  %v1075_v14 = vrot.slane %v1073_v9, 5  ;;  %v1081_v19 = vrot.slane %v1079_v10, 5  ;;  %6667 = vmatpush3.bf16.msra.mxu0 %v7120_v4  ;;  %7103 = vmatpush3.bf16.msra.mxu1 %v7120_v4 }
  0x1a   : > { %439 = vst [vmem:[#allocation2 + $0x70] sm:$0xf] %v7338_v2  ;;  %440 = vst [vmem:[#allocation2 + $0x74] sm:$0x1] %v7338_v2  ;;  %v1085_v20 = vrot.slane %v1083_v11, 4  ;;  %v1091_v23 = vrot.slane %v1089_v12, 5  ;;  %6668 = vmatprep.subr.bf16.mxu0 %v7121_v18  ;;  %7096 = vmatprep.subr.bf16.mxu1 %v7121_v18 }
  0x1b   : > { %441 = vst [vmem:[#allocation2 + $0x78] sm:$0xf] %v7338_v2  ;;  %442 = vst [vmem:[#allocation2 + $0x7c] sm:$0xf] %v7338_v2  ;;  %v1076_v22 = vor.u32 %v1075_v14, %v1072_v13  ;;  %v7420_v24 = vld [vmem:[%s9985_s2] ss:$0 sm:$0xff] }
  0x1c   : > { %443 = vst [vmem:[#allocation2 + $0x80] sm:$0x1] %v7338_v2  ;;  %444 = vst [vmem:[#allocation2 + $0x84] sm:$0xf] %v7338_v2  ;;  %v1086_v27 = vor.u32 %v1085_v20, %v1081_v19  ;;  %vm561_vm3 = vsmask.f32 256  ;;  %v347_v35 = vadd.f32 %v7420_v24, %v309_v28  ;;  %v348_v38 = vadd.f32 %v7420_v24, %v310_v31 }
  0x1d   : > { %445 = vst [vmem:[#allocation2 + $0x88] sm:$0xf] %v7338_v2  ;;  %446 = vst [vmem:[#allocation2 + $0x8c] sm:$0x1] %v7338_v2  ;;  %v1077_v30 = vrot.slane %v1076_v22, 4  ;;  %v6436_v40 = vld [vmem:[%s7405_s6 + $0x40] sm:$0xff]   ;;  %v361_v43 = vadd.f32 %v7420_v24, %v323_v36  ;;  %6669 = vmatpush3.bf16.msra.mxu0 %v7121_v18  ;;  %7104 = vmatpush3.bf16.msra.mxu1 %v7121_v18  ;;  %v362_v48 = vadd.f32 %v7420_v24, %v324_v39 }
  0x1e   : > { %447 = vst [vmem:[#allocation2 + $0x90] sm:$0xf] %v7338_v2  ;;  %448 = vst [vmem:[#allocation2 + $0x94] sm:$0xf] %v7338_v2  ;;  %v1087_v34 = vrot.slane %v1086_v27, 4  ;;  %v379_v42 = vmax.f32 %v347_v35, 0.0  ;;  %v6399_v44 = vunpack.c.l.bf16 %v6436_v40  ;;  %v6400_v49 = vunpack.c.h.bf16 %v6436_v40  ;;  %6670 = vmatprep.subr.bf16.mxu0 %v7122_v33  ;;  %7097 = vmatprep.subr.bf16.mxu1 %v7122_v33 }
  0x1f   : > { %449 = vst [vmem:[#allocation2 + $0x98] sm:$0x1] %v7338_v2  ;;  %450 = vst [vmem:[#allocation2 + $0x9c] sm:$0xf] %v7338_v2  ;;  %vm562_vm6 = vsmask.f32 4368 }
  0x20   : > { %451 = vst [vmem:[#allocation2 + $0xa0] sm:$0xf] %v7338_v2  ;;  %452 = vst [vmem:[#allocation2 + $0xa4] sm:$0x1] %v7338_v2  ;;  %v7123_v45 = vld [vmem:[%s9986_s3 + $0x48] sm:$0xff]   ;;  %v380_v47 = vmax.f32 %v348_v38, 0.0  ;;  %v6333_v50 = vpack.c.bf16 %v379_v42, %v379_v42  ;;  %v325_v52 = vmul.f32 %v6399_v44, %v7410_v15  ;;  %v326_v56 = vmul.f32 %v6400_v49, %v7410_v15 }
  0x21   : > { %453 = vst [vmem:[#allocation2 + $0xa8] sm:$0xf] %v7338_v2  ;;  %454 = vst [vmem:[#allocation2 + $0xac] sm:$0xf] %v7338_v2  ;;  %vm886_vm7 = vsmask.f32 7938  ;;  %6671 = vmatpush3.bf16.msra.mxu0 %v7122_v33  ;;  %7105 = vmatpush3.bf16.msra.mxu1 %v7122_v33 }
  0x22   : > { %455 = vst [vmem:[#allocation2 + $0xb0] sm:$0x1] %v7338_v2  ;;  %456 = vst [vmem:[#allocation2 + $0xb4] sm:$0xf] %v7338_v2  ;;  %v393_v51 = vmax.f32 %v361_v43, 0.0  ;;  %v7449_v53 = vld [vmem:[%s7405_s6 + $0x8] sm:$0xff]   ;;  %v6334_v54 = vpack.c.bf16 %v380_v47, %v380_v47  ;;  %v363_v61 = vadd.f32 %v7420_v24, %v325_v52  ;;  %v364_v3 = vadd.f32 %v7420_v24, %v326_v56 }
  0x23   : > { %457 = vst [vmem:[#allocation2 + $0xb8] sm:$0xf] %v7338_v2  ;;  %458 = vst [vmem:[#allocation2 + $0xbc] sm:$0x1] %v7338_v2  ;;  %v394_v55 = vmax.f32 %v362_v48, 0.0  ;;  %v6371_v57 = vunpack.c.l.bf16 %v7449_v53  ;;  %v565_v58 = vshrl.u32 %v6333_v50, 16  ;;  %6672 = vmatprep.subr.bf16.mxu0 %v7123_v45  ;;  %7098 = vmatprep.subr.bf16.mxu1 %v7123_v45  ;;  %v6372_v49 = vunpack.c.h.bf16 %v7449_v53 }
  0x24   : > { %459 = vst [vmem:[#allocation2 + $0xc0] sm:$0xf] %v7338_v2  ;;  %460 = vst [vmem:[#allocation2 + $0xc4] sm:$0xf] %v7338_v2  ;;  %v568_v59 = vshll.u32 %v6333_v50, 16  ;;  %v6347_v60 = vpack.c.bf16 %v393_v51, %v393_v51  ;;  %v7124_v62 = vld [vmem:[%s9986_s3 + $0x40] sm:$0xff]  }
  0x25   : > { %461 = vst [vmem:[#allocation2 + $0xc8] sm:$0x1] %v7338_v2  ;;  %462 = vst [vmem:[#allocation2 + $0xcc] sm:$0xf] %v7338_v2  ;;  %v573_v63 = vshrl.u32 %v6334_v54, 16  ;;  %v576_v0 = vshll.u32 %v6334_v54, 16  ;;  %6673 = vmatpush3.bf16.msra.mxu0 %v7123_v45  ;;  %7106 = vmatpush3.bf16.msra.mxu1 %v7123_v45  ;;  %v311_v54 = vmul.f32 %v6371_v57, %v7410_v15 }
  0x26   : > { %463 = vst [vmem:[#allocation2 + $0xd0] sm:$0xf] %v7338_v2  ;;  %464 = vst [vmem:[#allocation2 + $0xd4] sm:$0x1] %v7338_v2  ;;  %v888_v1 = vld [vmem:[#allocation2 + $0xc] sm:$0xf]  ;;  %v6348_v2 = vpack.c.bf16 %v394_v55, %v394_v55  ;;  %6674 = vmatprep.subr.bf16.mxu0 %v7124_v62  ;;  %7099 = vmatprep.subr.bf16.mxu1 %v7124_v62  ;;  %v312_v56 = vmul.f32 %v6372_v49, %v7410_v15 }
  0x27   : > { %vm7424_vm2 = vmor %vm1066_vm0, %vm1067_vm1  ;;  %v567_v5 = vrot.slane %v565_v58, 7  ;;  %v894_v6 = vld [vmem:[#allocation2 + $0x14] sm:$0x1]  ;;  %v684_v7 = vshrl.u32 %v6347_v60, 16  ;;  %v687_v8 = vshll.u32 %v6347_v60, 16  ;;  %v395_v9 = vmax.f32 %v363_v61, 0.0 }
  0x28   : > { %v1082_v37 = vsel %vm7424_vm2, %v1077_v30, %v1081_v19  ;;  %v1092_v41 = vsel %vm7424_vm2, %v1087_v34, %v1091_v23  ;;  %vm7460_vm8 = vmor %vm561_vm3, %vm562_vm6  ;;  %v575_v10 = vrot.slane %v573_v63, 7  ;;  %v692_v12 = vshrl.u32 %v6348_v2, 16  ;;  %v939_v25 = vld [vmem:[#allocation2 + $0x60] sm:$0xf]  ;;  %v943_v27 = vld [vmem:[#allocation2 + $0x68] sm:$0x1] }
  0x29   : > { %v5953_v46 = vcombine.low %v1082_v37, %v1092_v41  ;;  %vm7466_vm9 = vmand %vm885_vm4, %vm886_vm7  ;;  %v695_v13 = vshll.u32 %v6348_v2, 16  ;;  %v396_v14 = vmax.f32 %v364_v3, 0.0  ;;  %v570_v16 = vor.u32 %v568_v59, %v567_v5  ;;  %v7481_v32 = vld [vmem:[%s9986_s3 + $0x38] sm:$0xff]   ;;  %v6430_v39 = vld [vmem:[%s7405_s6 + $0x10] sm:$0xff]   ;;  %6675 = vmatpush3.bf16.msra.mxu0 %v7124_v62  ;;  %7107 = vmatpush3.bf16.msra.mxu1 %v7124_v62  ;;  %s6332_s20 = sshll.u32 %s10442_s19, 8  ;;  %s5902_s24 = sshll.u32 %s10442_s19, 1 }
  0x2a   : > { %v571_v17 = vrot.slane %v567_v5, 4  ;;  %vm7472_vm10 = vmand %vm892_vm5, %vm561_vm3  ;;  %v10044_v18 = vmov 0  ;;  %v686_v19 = vrot.slane %v684_v7, 7  ;;  %v6349_v20 = vpack.c.bf16 %v395_v9, %v395_v9  ;;  %v7486_v33 = vld [vmem:[%s9986_s3 + $0xf8] sm:$0xff]   ;;  %v6437_v44 = vld [vmem:[%s7405_s6 + $0x48] sm:$0xff]   ;;  %6708 = vmatprep.subr.bf16.mxu1 %v7481_v32  ;;  %s9825_s23 = scalar_lea.vmem %s9987_s4, %s6332_s20  ;;  %s235_s27 = scalar_lea.vmem %s9988_s5, %s5902_s24 }
  0x2b   : > { %6676 = vmatprep.mubr.bf16.mxu0 %v5953_v46  ;;  %v10045_v18 = vsel %vm7472_vm10, 4294967295, %v10044_v18  ;;  %v578_v21 = vor.u32 %v576_v0, %v575_v10  ;;  %v580_v22 = vrot.slane %v575_v10, 4  ;;  %v694_v23 = vrot.slane %v692_v12, 7  ;;  %v946_v48 = vld [vmem:[#allocation2 + $0x6c] sm:$0xf]  ;;  %6756 = vmatprep.subr.bf16.mxu0 %v7486_v33 }
  0x2c   : > { %10046 = vst [vmem:[#allocation3_spill] sm:$0xff] %v10045_v18  ;;  %v6350_v28 = vpack.c.bf16 %v396_v14, %v396_v14  ;;  %v889_v29 = vsel %vm7466_vm9, %v570_v16, %v888_v1  ;;  %v689_v30 = vor.u32 %v687_v8, %v686_v19  ;;  %v690_v31 = vrot.slane %v686_v19, 4  ;;  %v950_v55 = vld [vmem:[#allocation2 + $0x74] sm:$0x1]  ;;  %v995_v18 = vld [vmem:[#allocation2 + $0xc0] sm:$0xf] }
  0x2d   : > { %v701_v34 = vshrl.u32 %v6349_v20, 16  ;;  %v579_v35 = vsel %vm7460_vm8, %v571_v17, %v578_v21  ;;  %890 = vst [vmem:[#allocation2 + $0xc] sm:$0xf] %v889_v29  ;;  %v895_v36 = vsel %vm7472_vm10, %v580_v22, %v894_v6  ;;  %v697_v37 = vor.u32 %v695_v13, %v694_v23 }
  0x2e   : > { %v699_v38 = vrot.slane %v694_v23, 4  ;;  %891 = vst [vmem:[#allocation2 + $0x10] sm:$0xf] %v579_v35  ;;  %896 = vst [vmem:[#allocation2 + $0x14] sm:$0x1] %v895_v36  ;;  %v940_v40 = vsel %vm7466_vm9, %v689_v30, %v939_v25  ;;  %v704_v42 = vshll.u32 %v6349_v20, 16  ;;  %v6375_v58 = vunpack.c.l.bf16 %v6430_v39 }
  0x2f   : > { %v703_v41 = vrot.slane %v701_v34, 7  ;;  %v709_v43 = vshrl.u32 %v6350_v28, 16  ;;  %v698_v45 = vsel %vm7460_vm8, %v690_v31, %v697_v37  ;;  %941 = vst [vmem:[#allocation2 + $0x60] sm:$0xf] %v940_v40  ;;  %v712_v47 = vshll.u32 %v6350_v28, 16 }
  0x30   : > { %v944_v46 = vsel %vm7472_vm10, %v699_v38, %v943_v27  ;;  %942 = vst [vmem:[#allocation2 + $0x64] sm:$0xf] %v698_v45  ;;  %v6376_v59 = vunpack.c.h.bf16 %v6430_v39  ;;  %v6403_v60 = vunpack.c.l.bf16 %v6437_v44  ;;  %v349_v0 = vadd.f32 %v7420_v24, %v311_v54 }
  0x31   : > { %945 = vst [vmem:[#allocation2 + $0x68] sm:$0x1] %v944_v46  ;;  %v706_v50 = vor.u32 %v704_v42, %v703_v41  ;;  %v707_v51 = vrot.slane %v703_v41, 4  ;;  %v711_v52 = vrot.slane %v709_v43, 7  ;;  %v313_v1 = vmul.f32 %v6375_v58, %v7410_v15 }
  0x32   : > { %v314_v2 = vmul.f32 %v6376_v59, %v7410_v15  ;;  %v381_v5 = vmax.f32 %v349_v0, 0.0  ;;  %v6404_v6 = vunpack.c.h.bf16 %v6437_v44  ;;  %v7517_v12 = vadd.f32 %v7420_v24, %v312_v56 }
  0x33   : > { %v714_v61 = vor.u32 %v712_v47, %v711_v52  ;;  %v716_v62 = vrot.slane %v711_v52, 4  ;;  %v947_v63 = vsel %vm7466_vm9, %v706_v50, %v946_v48  ;;  %v327_v13 = vmul.f32 %v6403_v60, %v7410_v15 }
  0x34   : > { %948 = vst [vmem:[#allocation2 + $0x6c] sm:$0xf] %v947_v63  ;;  %v1004_v53 = vld [vmem:[#allocation2 + $0xc] sm:$0xf]  ;;  %v7521_v20 = vadd.f32 %v7420_v24, %v313_v1  ;;  %v7523_v27 = vpack.c.bf16 %v381_v5, %v381_v5  ;;  %v7526_v28 = vadd.f32 %v7420_v24, %v314_v2  ;;  %v328_v34 = vmul.f32 %v6404_v6, %v7410_v15 }
  0x35   : > { %v715_v57 = vsel %vm7460_vm8, %v707_v51, %v714_v61  ;;  %v951_v3 = vsel %vm7472_vm10, %v716_v62, %v950_v55  ;;  %v1005_v7 = vld [vmem:[#allocation2 + $0x10] sm:$0xf]  ;;  %v1051_v8 = vld [vmem:[#allocation2 + $0x14] sm:$0x1]  ;;  %v1094_v9 = vshrl.u32 %v1004_v53, 16  ;;  %v1097_v10 = vshll.u32 %v1004_v53, 16 }
  0x36   : > { %949 = vst [vmem:[#allocation2 + $0x70] sm:$0xf] %v715_v57  ;;  %952 = vst [vmem:[#allocation2 + $0x74] sm:$0x1] %v951_v3  ;;  %v1103_v14 = vshll.u32 %v1005_v7, 16  ;;  %v1107_v16 = vshrl.u32 %v1005_v7, 16  ;;  %v7530_v52 = vadd.f32 %v7420_v24, %v327_v13  ;;  %v7533_v54 = vadd.f32 %v7420_v24, %v328_v34 }
  0x37   : > { %v1113_v17 = vshll.u32 %v1051_v8, 16  ;;  %v1018_v19 = vld [vmem:[#allocation2 + $0x60] sm:$0xf]  ;;  %v1096_v21 = vrot.slane %v1094_v9, 4  ;;  %v1099_v22 = vrot.slane %v1097_v10, 5  ;;  %v7128_v57 = vld [vmem:[%s9986_s3 + $0xf0] sm:$0xff]  }
  0x38   : > { %v1019_v23 = vld [vmem:[#allocation2 + $0x64] sm:$0xf]  ;;  %v1058_v25 = vld [vmem:[#allocation2 + $0x68] sm:$0x1]  ;;  %v1105_v29 = vrot.slane %v1103_v14, 5  ;;  %v1109_v30 = vrot.slane %v1107_v16, 4 }
  0x39   : > { %v1262_v31 = vshrl.u32 %v1018_v19, 16  ;;  %v1100_v35 = vor.u32 %v1099_v22, %v1096_v21  ;;  %v1265_v36 = vshll.u32 %v1018_v19, 16  ;;  %v1271_v37 = vshll.u32 %v1019_v23, 16  ;;  %v897_v21 = vld [vmem:[#allocation2 + $0x18] sm:$0xf] }
  0x3a   : > { %v1275_v38 = vshrl.u32 %v1019_v23, 16  ;;  %v1110_v39 = vor.u32 %v1109_v30, %v1105_v29  ;;  %v1115_v40 = vrot.slane %v1113_v17, 5  ;;  %v1281_v42 = vshll.u32 %v1058_v25, 16 }
  0x3b   : > { %v1264_v41 = vrot.slane %v1262_v31, 4  ;;  %v1020_v43 = vld [vmem:[#allocation2 + $0x6c] sm:$0xf]  ;;  %v1101_v44 = vrot.slane %v1100_v35, 4  ;;  %v1267_v45 = vrot.slane %v1265_v36, 5  ;;  %v1273_v46 = vrot.slane %v1271_v37, 5 }
  0x3c   : > { %v1277_v47 = vrot.slane %v1275_v38, 4  ;;  %v1111_v48 = vrot.slane %v1110_v39, 4  ;;  %v1283_v49 = vrot.slane %v1281_v42, 5  ;;  %v1286_v59 = vshrl.u32 %v1020_v43, 16  ;;  %v7127_v39 = vld [vmem:[%s9986_s3 + $0x30] sm:$0xff]  }
  0x3d   : > { %v1021_v50 = vld [vmem:[#allocation2 + $0x70] sm:$0xf]  ;;  %v1059_v51 = vld [vmem:[#allocation2 + $0x74] sm:$0x1]  ;;  %v1106_v55 = vsel %vm7424_vm2, %v1101_v44, %v1105_v29  ;;  %v1268_v56 = vor.u32 %v1267_v45, %v1264_v41  ;;  %v1289_v61 = vshll.u32 %v1020_v43, 16  ;;  %v382_v10 = vmax.f32 %v7517_v12, 0.0 }
  0x3e   : > { %v1278_v58 = vor.u32 %v1277_v47, %v1273_v46  ;;  %v1116_v60 = vsel %vm7424_vm2, %v1111_v48, %v1115_v40  ;;  %v1295_v62 = vshll.u32 %v1021_v50, 16  ;;  %v1299_v63 = vshrl.u32 %v1021_v50, 16  ;;  %v7130_v12 = vld [vmem:[%s9986_s3 + $0xe8] sm:$0xff]   ;;  %v901_v40 = vld [vmem:[#allocation2 + $0x20] sm:$0x1] }
  0x3f   : > { %v5954_v0 = vcombine.low %v1106_v55, %v1116_v60  ;;  %v1269_v1 = vrot.slane %v1268_v56, 4  ;;  %v1288_v53 = vrot.slane %v1286_v59, 4  ;;  %v1291_v3 = vrot.slane %v1289_v61, 5  ;;  %v7132_v47 = vld [vmem:[%s9986_s3 + $0xe0] sm:$0xff]  }
  0x40   : > { %v1279_v2 = vrot.slane %v1278_v58, 4  ;;  %v1297_v5 = vrot.slane %v1295_v62, 5  ;;  %v1301_v6 = vrot.slane %v1299_v63, 4  ;;  %v1305_v7 = vshll.u32 %v1059_v51, 16  ;;  %v904_v56 = vld [vmem:[#allocation2 + $0x24] sm:$0xf] }
  0x41   : > { %6677 = vmatmul.mubr.bf16.vlgmr.msra.gmra.mxu0 %v5954_v0  ;;  %v1274_v8 = vsel %vm7424_vm2, %v1269_v1, %v1273_v46  ;;  %v582_v13 = vshrl.u32 %v7523_v27, 16  ;;  %v1292_v16 = vor.u32 %v1291_v3, %v1288_v53  ;;  %v6336_v22 = vpack.c.bf16 %v382_v10, %v382_v10  ;;  %v6438_v46 = vld [vmem:[%s7405_s6 + $0x50] sm:$0xff]   ;;  %v908_v58 = vld [vmem:[#allocation2 + $0x2c] sm:$0x1] }
  0x42   : > { %v1284_v9 = vsel %vm7424_vm2, %v1279_v2, %v1283_v49  ;;  %v1302_v17 = vor.u32 %v1301_v6, %v1297_v5  ;;  %v1307_v19 = vrot.slane %v1305_v7, 5  ;;  %6757 = vmatpush3.bf16.msra.mxu0 %v7486_v33  ;;  %v585_v25 = vshll.u32 %v7523_v27, 16 }
  0x43   : > { %v5961_v14 = vcombine.low %v1274_v8, %v1284_v9  ;;  %6758 = vmatprep.subr.bf16.mxu0 %v7128_v57  ;;  %v584_v23 = vrot.slane %v582_v13, 7  ;;  %v383_v29 = vmax.f32 %v7521_v20, 0.0  ;;  %v1293_v30 = vrot.slane %v1292_v16, 4  ;;  %v953_v8 = vld [vmem:[#allocation2 + $0x78] sm:$0xf] }
  0x44   : > { %v1303_v31 = vrot.slane %v1302_v17, 4  ;;  %v384_v34 = vmax.f32 %v7526_v28, 0.0  ;;  %v397_v35 = vmax.f32 %v7530_v52, 0.0  ;;  %v590_v37 = vshrl.u32 %v6336_v22, 16  ;;  %v6431_v16 = vld [vmem:[%s7405_s6 + $0x18] sm:$0xff]  }
  0x45   : > { %6692 = vmatprep.mubr.bf16.mxu1 %v5961_v14  ;;  %v587_v33 = vor.u32 %v585_v25, %v584_v23  ;;  %v588_v36 = vrot.slane %v584_v23, 4  ;;  %v593_v38 = vshll.u32 %v6336_v22, 16  ;;  %v1298_v27 = vsel %vm7424_vm2, %v1293_v30, %v1297_v5  ;;  %v957_v22 = vld [vmem:[#allocation2 + $0x80] sm:$0x1] }
  0x46   : > { %v1308_v20 = vsel %vm7424_vm2, %v1303_v31, %v1307_v19  ;;  %6759 = vmatpush3.bf16.msra.mxu0 %v7128_v57  ;;  %v6337_v28 = vpack.c.bf16 %v383_v29, %v383_v29  ;;  %v6338_v41 = vpack.c.bf16 %v384_v34, %v384_v34  ;;  %v592_v43 = vrot.slane %v590_v37, 7  ;;  %v7129_v57 = vld [vmem:[%s9986_s3 + $0x28] sm:$0xff]   ;;  %v7131_v25 = vld [vmem:[%s9986_s3 + $0x20] sm:$0xff]  }
  0x47   : > { %v5962_v42 = vcombine.low %v1298_v27, %v1308_v20  ;;  %v898_v44 = vsel %vm7466_vm9, %v587_v33, %v897_v21  ;;  %v398_v45 = vmax.f32 %v7533_v54, 0.0  ;;  %6760 = vmatprep.subr.bf16.mxu0 %v7130_v12  ;;  %v6351_v59 = vpack.c.bf16 %v397_v35, %v397_v35  ;;  %v7136_v35 = vld [vmem:[%s9986_s3 + $0xd0] sm:$0xff]  }
  0x48   : > { %899 = vst [vmem:[#allocation2 + $0x18] sm:$0xf] %v898_v44  ;;  %v599_v48 = vshrl.u32 %v6337_v28, 16  ;;  %v602_v49 = vshll.u32 %v6337_v28, 16  ;;  %v607_v50 = vshrl.u32 %v6338_v41, 16  ;;  %v610_v51 = vshll.u32 %v6338_v41, 16 }
  0x49   : > { %6693 = vmatmul.mubr.bf16.vlgmr.msra.gmra.mxu1 %v5962_v42  ;;  %v595_v52 = vor.u32 %v593_v38, %v592_v43  ;;  %v597_v55 = vrot.slane %v592_v43, 4  ;;  %v6352_v60 = vpack.c.bf16 %v398_v45, %v398_v45  ;;  %v6407_v62 = vunpack.c.l.bf16 %v6438_v46  ;;  %v7133_v44 = vld [vmem:[%s9986_s3 + $0x18] sm:$0xff]  }
  0x4a   : > { %6709 = vmatpush3.bf16.msra.mxu1 %v7481_v32  ;;  %v601_v54 = vrot.slane %v599_v48, 7  ;;  %v609_v61 = vrot.slane %v607_v50, 7  ;;  %v6408_v63 = vunpack.c.h.bf16 %v6438_v46  ;;  %6761 = vmatpush3.bf16.msra.mxu0 %v7130_v12  ;;  %v718_v2 = vshrl.u32 %v6351_v59, 16  ;;  %v7134_v32 = vld [vmem:[%s9986_s3 + $0xd8] sm:$0xff]  }
  0x4b   : > { %6710 = vmatprep.subr.bf16.mxu1 %v7127_v39  ;;  %v596_v0 = vsel %vm7460_vm8, %v588_v36, %v595_v52  ;;  %v902_v1 = vsel %vm7472_vm10, %v597_v55, %v901_v40  ;;  %v721_v53 = vshll.u32 %v6351_v59, 16  ;;  %6762 = vmatprep.subr.bf16.mxu0 %v7132_v47  ;;  %v726_v10 = vshrl.u32 %v6352_v60, 16 }
  0x4c   : > { %900 = vst [vmem:[#allocation2 + $0x1c] sm:$0xf] %v596_v0  ;;  %903 = vst [vmem:[#allocation2 + $0x20] sm:$0x1] %v902_v1  ;;  %v604_v3 = vor.u32 %v602_v49, %v601_v54  ;;  %v605_v5 = vrot.slane %v601_v54, 4  ;;  %v612_v6 = vor.u32 %v610_v51, %v609_v61  ;;  %v614_v7 = vrot.slane %v609_v61, 4 }
  0x4d   : > { %v720_v9 = vrot.slane %v718_v2, 7  ;;  %v729_v13 = vshll.u32 %v6352_v60, 16  ;;  %v329_v14 = vmul.f32 %v6407_v62, %v7410_v15  ;;  %v330_v23 = vmul.f32 %v6408_v63, %v7410_v15  ;;  %v7135_v61 = vld [vmem:[%s9986_s3 + $0x10] sm:$0xff]   ;;  %v7138_v62 = vld [vmem:[%s9986_s3 + $0xc8] sm:$0xff]  }
  0x4e   : > { %6711 = vmatpush3.bf16.msra.mxu1 %v7127_v39  ;;  %v613_v17 = vsel %vm7460_vm8, %v605_v5, %v612_v6  ;;  %v905_v19 = vsel %vm7466_vm9, %v604_v3, %v904_v56  ;;  %v909_v21 = vsel %vm7472_vm10, %v614_v7, %v908_v58  ;;  %v728_v31 = vrot.slane %v726_v10, 7  ;;  %6763 = vmatpush3.bf16.msra.mxu0 %v7132_v47 }
  0x4f   : > { %v1006_v29 = vld [vmem:[#allocation2 + $0x18] sm:$0xf]  ;;  %906 = vst [vmem:[#allocation2 + $0x24] sm:$0xf] %v905_v19  ;;  %907 = vst [vmem:[#allocation2 + $0x28] sm:$0xf] %v613_v17  ;;  %v723_v12 = vor.u32 %v721_v53, %v720_v9  ;;  %6712 = vmatprep.subr.bf16.mxu1 %v7129_v57  ;;  %v367_v34 = vadd.f32 %v7420_v24, %v329_v14  ;;  %v368_v37 = vadd.f32 %v7420_v24, %v330_v23 }
  0x50   : > { %910 = vst [vmem:[#allocation2 + $0x2c] sm:$0x1] %v909_v21  ;;  %v724_v30 = vrot.slane %v720_v9, 4  ;;  %v1118_v33 = vshrl.u32 %v1006_v29, 16  ;;  %v1121_v36 = vshll.u32 %v1006_v29, 16  ;;  %v6379_v38 = vunpack.c.l.bf16 %v6431_v16  ;;  %6764 = vmatprep.subr.bf16.mxu0 %v7134_v32 }
  0x51   : > { %v731_v27 = vor.u32 %v729_v13, %v728_v31  ;;  %v733_v20 = vrot.slane %v728_v31, 4  ;;  %v954_v39 = vsel %vm7466_vm9, %v723_v12, %v953_v8  ;;  %v399_v40 = vmax.f32 %v367_v34, 0.0  ;;  %v7140_v8 = vld [vmem:[%s9986_s3 + $0xc0] sm:$0xff]  }
  0x52   : > { %v1120_v28 = vrot.slane %v1118_v33, 4  ;;  %v1123_v41 = vrot.slane %v1121_v36, 5  ;;  %955 = vst [vmem:[#allocation2 + $0x78] sm:$0xf] %v954_v39  ;;  %v400_v42 = vmax.f32 %v368_v37, 0.0  ;;  %6713 = vmatpush3.bf16.msra.mxu1 %v7129_v57  ;;  %v6380_v43 = vunpack.c.h.bf16 %v6431_v16  ;;  %6765 = vmatpush3.bf16.msra.mxu0 %v7134_v32 }
  0x53   : > { %v1007_v45 = vld [vmem:[#allocation2 + $0x1c] sm:$0xf]  ;;  %v1052_v46 = vld [vmem:[#allocation2 + $0x20] sm:$0x1]  ;;  %v732_v47 = vsel %vm7460_vm8, %v724_v30, %v731_v27  ;;  %v958_v48 = vsel %vm7472_vm10, %v733_v20, %v957_v22  ;;  %v6353_v49 = vpack.c.bf16 %v399_v40, %v399_v40  ;;  %6714 = vmatprep.subr.bf16.mxu1 %v7131_v25  ;;  %v315_v50 = vmul.f32 %v6379_v38, %v7410_v15  ;;  %v7137_v30 = vld [vmem:[%s9986_s3 + $0x8] sm:$0xff]  }
  0x54   : > { %v1124_v51 = vor.u32 %v1123_v41, %v1120_v28  ;;  %v1127_v52 = vshll.u32 %v1007_v45, 16  ;;  %v1131_v55 = vshrl.u32 %v1007_v45, 16  ;;  %v1137_v56 = vshll.u32 %v1052_v46, 16  ;;  %956 = vst [vmem:[#allocation2 + $0x7c] sm:$0xf] %v732_v47  ;;  %6766 = vmatprep.subr.bf16.mxu0 %v7136_v35 }
  0x55   : > { %959 = vst [vmem:[#allocation2 + $0x80] sm:$0x1] %v958_v48  ;;  %v7608_v58 = vpack.c.bf16 %v400_v42, %v400_v42  ;;  %v735_v59 = vshrl.u32 %v6353_v49, 16  ;;  %v738_v60 = vshll.u32 %v6353_v49, 16  ;;  %v316_v54 = vmul.f32 %v6380_v43, %v7410_v15  ;;  %v960_v38 = vld [vmem:[#allocation2 + $0x84] sm:$0xf] }
  0x56   : > { %v1125_v63 = vrot.slane %v1124_v51, 4  ;;  %v1129_v0 = vrot.slane %v1127_v52, 5  ;;  %v1133_v1 = vrot.slane %v1131_v55, 4  ;;  %v1139_v2 = vrot.slane %v1137_v56, 5  ;;  %v1008_v53 = vld [vmem:[#allocation2 + $0x24] sm:$0xf]  ;;  %6715 = vmatpush3.bf16.msra.mxu1 %v7131_v25  ;;  %6767 = vmatpush3.bf16.msra.mxu0 %v7136_v35 }
  0x57   : > { %v1009_v57 = vld [vmem:[#allocation2 + $0x28] sm:$0xf]  ;;  %v1053_v32 = vld [vmem:[#allocation2 + $0x2c] sm:$0x1]  ;;  %v1142_v3 = vshrl.u32 %v1008_v53, 16  ;;  %v1145_v5 = vshll.u32 %v1008_v53, 16  ;;  %v7618_v6 = vadd.f32 %v7420_v24, %v315_v50  ;;  %v7621_v7 = vadd.f32 %v7420_v24, %v316_v54  ;;  %6716 = vmatprep.subr.bf16.mxu1 %v7133_v44  ;;  %6768 = vmatprep.subr.bf16.mxu0 %v7138_v62 }
  0x58   : > { %v1130_v9 = vsel %vm7424_vm2, %v1125_v63, %v1129_v0  ;;  %v1134_v10 = vor.u32 %v1133_v1, %v1129_v0  ;;  %v1151_v13 = vshll.u32 %v1009_v57, 16  ;;  %v1155_v14 = vshrl.u32 %v1009_v57, 16  ;;  %v6432_v49 = vld [vmem:[%s7405_s6 + $0x20] sm:$0xff]   ;;  %v7653_v63 = vld [vmem:[%s7405_s6 + $0x58] sm:$0xff]  }
  0x59   : > { %v1144_v16 = vrot.slane %v1142_v3, 4  ;;  %v1147_v17 = vrot.slane %v1145_v5, 5  ;;  %v1161_v19 = vshll.u32 %v1053_v32, 16  ;;  %v1022_v21 = vld [vmem:[#allocation2 + $0x78] sm:$0xf]  ;;  %v7628_v22 = vrot.slane %v735_v59, 7 }
  0x5a   : > { %v1135_v23 = vrot.slane %v1134_v10, 4  ;;  %v1153_v25 = vrot.slane %v1151_v13, 5  ;;  %v1157_v29 = vrot.slane %v1155_v14, 4  ;;  %v1310_v12 = vshrl.u32 %v1022_v21, 16  ;;  %6717 = vmatpush3.bf16.msra.mxu1 %v7133_v44  ;;  %6769 = vmatpush3.bf16.msra.mxu0 %v7138_v62  ;;  %v7146_v44 = vld [vmem:[%s9986_s3 + $0x178] sm:$0xff]   ;;  %v7139_v50 = vld [vmem:[%s9986_s3] sm:$0xff]  }
  0x5b   : > { %v1148_v31 = vor.u32 %v1147_v17, %v1144_v16  ;;  %v1163_v34 = vrot.slane %v1161_v19, 5  ;;  %v1023_v33 = vld [vmem:[#allocation2 + $0x7c] sm:$0xf]  ;;  %v1313_v36 = vshll.u32 %v1022_v21, 16  ;;  %v740_v37 = vor.u32 %v738_v60, %v7628_v22  ;;  %6718 = vmatprep.subr.bf16.mxu1 %v7135_v61  ;;  %6770 = vmatprep.subr.bf16.mxu0 %v7140_v8  ;;  %v964_v62 = vld [vmem:[#allocation2 + $0x8c] sm:$0x1] }
  0x5c   : > { %v1060_v35 = vld [vmem:[#allocation2 + $0x80] sm:$0x1]  ;;  %v1140_v27 = vsel %vm7424_vm2, %v1135_v23, %v1139_v2  ;;  %v1158_v20 = vor.u32 %v1157_v29, %v1153_v25  ;;  %v1312_v39 = vrot.slane %v1310_v12, 4  ;;  %v1319_v40 = vshll.u32 %v1023_v33, 16  ;;  %v7144_v57 = vld [vmem:[%s9986_s3 + $0xb8] sm:$0xff]  }
  0x5d   : > { %v5955_v28 = vcombine.low %v1130_v9, %v1140_v27  ;;  %v1149_v41 = vrot.slane %v1148_v31, 4  ;;  %v1315_v42 = vrot.slane %v1313_v36, 5  ;;  %v1323_v43 = vshrl.u32 %v1023_v33, 16  ;;  %v7672_v23 = vld [vmem:[%s7405_s6 + $0x60] sm:$0xff]   ;;  %v911_v31 = vld [vmem:[#allocation2 + $0x30] sm:$0xf] }
  0x5e   : > { %v1159_v45 = vrot.slane %v1158_v20, 4  ;;  %v1321_v46 = vrot.slane %v1319_v40, 5  ;;  %v1329_v47 = vshll.u32 %v1060_v35, 16  ;;  %v741_v48 = vrot.slane %v7628_v22, 4  ;;  %6719 = vmatpush3.bf16.msra.mxu1 %v7135_v61  ;;  %6771 = vmatpush3.bf16.msra.mxu0 %v7140_v8  ;;  %v7682_v20 = vld [vmem:[%s9984_s1] ss:$0 sm:$0xff] }
  0x5f   : > { %6680 = vmatprep.mubr.bf16.mxu0 %v5955_v28  ;;  %v1154_v51 = vsel %vm7424_vm2, %v1149_v41, %v1153_v25  ;;  %v1316_v52 = vor.u32 %v1315_v42, %v1312_v39  ;;  %v1325_v55 = vrot.slane %v1323_v43, 4  ;;  %v743_v56 = vshrl.u32 %v7608_v58, 16  ;;  %6720 = vmatprep.subr.bf16.mxu1 %v7137_v30 }
  0x60   : > { %v1164_v59 = vsel %vm7424_vm2, %v1159_v45, %v1163_v34  ;;  %v1331_v60 = vrot.slane %v1329_v47, 5  ;;  %v746_v54 = vshll.u32 %v7608_v58, 16  ;;  %v961_v61 = vsel %vm7466_vm9, %v740_v37, %v960_v38  ;;  %6852 = vmatprep.subr.bf16.mxu0 %v7146_v44  ;;  %v915_v34 = vld [vmem:[#allocation2 + $0x38] sm:$0x1] }
  0x61   : > { %v5956_v0 = vcombine.low %v1154_v51, %v1164_v59  ;;  %v1317_v1 = vrot.slane %v1316_v52, 4  ;;  %v1326_v2 = vor.u32 %v1325_v55, %v1321_v46  ;;  %v745_v53 = vrot.slane %v743_v56, 7  ;;  %962 = vst [vmem:[#allocation2 + $0x84] sm:$0xf] %v961_v61 }
  0x62   : > { %v385_v32 = vmax.f32 %v7618_v6, 0.0  ;;  %v386_v58 = vmax.f32 %v7621_v7, 0.0  ;;  %v6383_v3 = vunpack.c.l.bf16 %v6432_v49  ;;  %v6384_v5 = vunpack.c.h.bf16 %v6432_v49  ;;  %6721 = vmatpush3.bf16.msra.mxu1 %v7137_v30 }
  0x63   : > { %6681 = vmatmul.mubr.bf16.gmra.mxu0 %v5956_v0  ;;  %v1322_v8 = vsel %vm7424_vm2, %v1317_v1, %v1321_v46  ;;  %v1327_v9 = vrot.slane %v1326_v2, 4  ;;  %v748_v10 = vor.u32 %v746_v54, %v745_v53  ;;  %v750_v13 = vrot.slane %v745_v53, 4  ;;  %6722 = vmatprep.subr.bf16.mxu1 %v7139_v50 }
  0x64   : > { %v6339_v14 = vpack.c.bf16 %v385_v32, %v385_v32  ;;  %v6340_v16 = vpack.c.bf16 %v386_v58, %v386_v58  ;;  %v317_v17 = vmul.f32 %v6383_v3, %v7410_v15  ;;  %v318_v6 = vmul.f32 %v6384_v5, %v7410_v15  ;;  %v918_v32 = vld [vmem:[#allocation2 + $0x3c] sm:$0xf] }
  0x65   : > { %v1332_v7 = vsel %vm7424_vm2, %v1327_v9, %v1331_v60  ;;  %v749_v19 = vsel %vm7460_vm8, %v741_v48, %v748_v10  ;;  %v965_v21 = vsel %vm7472_vm10, %v750_v13, %v964_v62  ;;  %v6411_v22 = vunpack.c.l.bf16 %v7653_v63 }
  0x66   : > { %v5963_v25 = vcombine.low %v1322_v8, %v1332_v7  ;;  %963 = vst [vmem:[#allocation2 + $0x88] sm:$0xf] %v749_v19  ;;  %966 = vst [vmem:[#allocation2 + $0x8c] sm:$0x1] %v965_v21  ;;  %v616_v29 = vshrl.u32 %v6339_v14, 16  ;;  %v619_v12 = vshll.u32 %v6339_v14, 16  ;;  %6723 = vmatpush3.bf16.msra.mxu1 %v7139_v50  ;;  %v355_v33 = vadd.f32 %v7420_v24, %v317_v17 }
  0x67   : > { %v624_v30 = vshrl.u32 %v6340_v16, 16  ;;  %v627_v15 = vshll.u32 %v6340_v16, 16  ;;  %v356_v35 = vadd.f32 %v7420_v24, %v318_v6  ;;  %v6412_v36 = vunpack.c.h.bf16 %v7653_v63  ;;  %6804 = vmatprep.subr.bf16.mxu1 %v7144_v57  ;;  %v7700_v63 = vld [vmem:[%s9985_s2] ss:$0 sm:$0xff]  ;;  %v922_v8 = vld [vmem:[#allocation2 + $0x44] sm:$0x1] }
  0x68   : > { %6696 = vmatprep.mubr.bf16.mxu1 %v5963_v25  ;;  %v7677_v37 = vld [vmem:[#allocation2 + $0x84] sm:$0xf]  ;;  %v618_v38 = vrot.slane %v616_v29, 7  ;;  %v331_v39 = vmul.f32 %v7682_v20, %v6411_v22  ;;  %v6415_v40 = vunpack.c.l.bf16 %v7672_v23  ;;  %v387_v41 = vmax.f32 %v355_v33, 0.0 }
  0x69   : > { %10047 = vst [vmem:[#allocation4_spill] sm:$0xff] %v7677_v37  ;;  %v626_v27 = vrot.slane %v624_v30, 7  ;;  %v1334_v28 = vshrl.u32 %v7677_v37, 16  ;;  %v1337_v24 = vshll.u32 %v7677_v37, 16  ;;  %v388_v42 = vmax.f32 %v356_v35, 0.0 }
  0x6a   : > { %v621_v43 = vor.u32 %v619_v12, %v618_v38  ;;  %v622_v44 = vrot.slane %v618_v38, 4  ;;  %v6341_v49 = vpack.c.bf16 %v387_v41, %v387_v41  ;;  %v332_v56 = vmul.f32 %v7682_v20, %v6412_v36 }
  0x6b   : > { %v629_v45 = vor.u32 %v627_v15, %v626_v27  ;;  %v631_v46 = vrot.slane %v626_v27, 4  ;;  %v1336_v47 = vrot.slane %v1334_v28, 4  ;;  %v1339_v48 = vrot.slane %v1337_v24, 5 }
  0x6c   : > { %v6342_v50 = vpack.c.bf16 %v388_v42, %v388_v42  ;;  %v912_v52 = vsel %vm7466_vm9, %v621_v43, %v911_v31  ;;  %v633_v61 = vshrl.u32 %v6341_v49, 16  ;;  %v636_v62 = vshll.u32 %v6341_v49, 16  ;;  %v6433_v49 = vld [vmem:[%s7405_s6 + $0x28] sm:$0xff]  }
  0x6d   : > { %v630_v51 = vsel %vm7460_vm8, %v622_v44, %v629_v45  ;;  %v916_v55 = vsel %vm7472_vm10, %v631_v46, %v915_v34  ;;  %v7695_v59 = vld [vmem:[#allocation2 + $0x88] sm:$0xf]  ;;  %v1061_v60 = vld [vmem:[#allocation2 + $0x8c] sm:$0x1]  ;;  %v1340_v54 = vor.u32 %v1339_v48, %v1336_v47  ;;  %913 = vst [vmem:[#allocation2 + $0x30] sm:$0xf] %v912_v52  ;;  %v369_v0 = vadd.f32 %v7700_v63, %v331_v39 }
  0x6e   : > { %10048 = vst [vmem:[#allocation5_spill] sm:$0xff] %v7695_v59  ;;  %914 = vst [vmem:[#allocation2 + $0x34] sm:$0xf] %v630_v51  ;;  %v1343_v1 = vshll.u32 %v7695_v59, 16  ;;  %v1347_v2 = vshrl.u32 %v7695_v59, 16  ;;  %v1353_v53 = vshll.u32 %v1061_v60, 16  ;;  %v370_v9 = vadd.f32 %v7700_v63, %v332_v56 }
  0x6f   : > { %917 = vst [vmem:[#allocation2 + $0x38] sm:$0x1] %v916_v55  ;;  %v641_v57 = vshrl.u32 %v6342_v50, 16  ;;  %v1341_v58 = vrot.slane %v1340_v54, 4  ;;  %v635_v3 = vrot.slane %v633_v61, 7  ;;  %v644_v5 = vshll.u32 %v6342_v50, 16 }
  0x70   : > { %v1345_v10 = vrot.slane %v1343_v1, 5  ;;  %v1349_v13 = vrot.slane %v1347_v2, 4  ;;  %v1355_v14 = vrot.slane %v1353_v53, 5  ;;  %v401_v7 = vmax.f32 %v369_v0, 0.0  ;;  %v967_v54 = vld [vmem:[#allocation2 + $0x90] sm:$0xf] }
  0x71   : > { %v643_v16 = vrot.slane %v641_v57, 7  ;;  %v638_v17 = vor.u32 %v636_v62, %v635_v3  ;;  %v639_v6 = vrot.slane %v635_v3, 4  ;;  %v402_v19 = vmax.f32 %v370_v9, 0.0 }
  0x72   : > { %v1346_v21 = vsel %vm7424_vm2, %v1341_v58, %v1345_v10  ;;  %v1350_v22 = vor.u32 %v1349_v13, %v1345_v10  ;;  %v6355_v30 = vpack.c.bf16 %v401_v7, %v401_v7  ;;  %v6416_v31 = vunpack.c.h.bf16 %v7672_v23 }
  0x73   : > { %v646_v25 = vor.u32 %v644_v5, %v643_v16  ;;  %v648_v29 = vrot.slane %v643_v16, 4  ;;  %v919_v12 = vsel %vm7466_vm9, %v638_v17, %v918_v32  ;;  %v6356_v15 = vpack.c.bf16 %v402_v19, %v402_v19 }
  0x74   : > { %v1351_v34 = vrot.slane %v1350_v22, 4  ;;  %v7711_v33 = vld [vmem:[#allocation2 + $0x30] sm:$0xf]  ;;  %920 = vst [vmem:[#allocation2 + $0x3c] sm:$0xf] %v919_v12  ;;  %v333_v27 = vmul.f32 %v7682_v20, %v6415_v40  ;;  %v752_v44 = vshrl.u32 %v6355_v30, 16  ;;  %v334_v61 = vmul.f32 %v7682_v20, %v6416_v31 }
  0x75   : > { %v7713_v35 = vld [vmem:[#allocation2 + $0x34] sm:$0xf]  ;;  %v647_v36 = vsel %vm7460_vm8, %v639_v6, %v646_v25  ;;  %v923_v38 = vsel %vm7472_vm10, %v648_v29, %v922_v8  ;;  %v1166_v28 = vshrl.u32 %v7711_v33, 16  ;;  %v1169_v23 = vshll.u32 %v7711_v33, 16  ;;  %v971_v12 = vld [vmem:[#allocation2 + $0x98] sm:$0x1] }
  0x76   : > { %v1054_v39 = vld [vmem:[#allocation2 + $0x38] sm:$0x1]  ;;  %v1175_v24 = vshll.u32 %v7713_v35, 16  ;;  %v1179_v41 = vshrl.u32 %v7713_v35, 16  ;;  %921 = vst [vmem:[#allocation2 + $0x40] sm:$0xf] %v647_v36  ;;  %v1356_v42 = vsel %vm7424_vm2, %v1351_v34, %v1355_v14  ;;  %v371_v62 = vadd.f32 %v7700_v63, %v333_v27 }
  0x77   : > { %924 = vst [vmem:[#allocation2 + $0x44] sm:$0x1] %v923_v38  ;;  %v1185_v43 = vshll.u32 %v1054_v39, 16  ;;  %v755_v45 = vshll.u32 %v6355_v30, 16  ;;  %v5964_v46 = vcombine.low %v1346_v21, %v1356_v42  ;;  %v1168_v40 = vrot.slane %v1166_v28, 4  ;;  %v6434_v28 = vld [vmem:[%s7405_s6 + $0x30] sm:$0xff]  }
  0x78   : > { %v1171_v47 = vrot.slane %v1169_v23, 5  ;;  %v1177_v48 = vrot.slane %v1175_v24, 5  ;;  %v1181_v50 = vrot.slane %v1179_v41, 4  ;;  %v754_v52 = vrot.slane %v752_v44, 7 }
  0x79   : > { %v1187_v51 = vrot.slane %v1185_v43, 5  ;;  %v760_v55 = vshrl.u32 %v6356_v15, 16  ;;  %6697 = vmatmul.mubr.bf16.gmra.mxu1 %v5964_v46  ;;  %v763_v60 = vshll.u32 %v6356_v15, 16  ;;  %v372_v58 = vadd.f32 %v7700_v63, %v334_v61 }
  0x7a   : > { %v1172_v56 = vor.u32 %v1171_v47, %v1168_v40  ;;  %v1182_v0 = vor.u32 %v1181_v50, %v1177_v48  ;;  %v757_v1 = vor.u32 %v755_v45, %v754_v52  ;;  %v758_v2 = vrot.slane %v754_v52, 4 }
  0x7b   : > { %v762_v53 = vrot.slane %v760_v55, 7  ;;  %v7729_v32 = vld [vmem:[#allocation2 + $0x3c] sm:$0xf]  ;;  %v403_v3 = vmax.f32 %v371_v62, 0.0  ;;  %v6387_v5 = vunpack.c.l.bf16 %v6433_v49  ;;  %v404_v27 = vmax.f32 %v372_v58, 0.0 }
  0x7c   : > { %v1173_v57 = vrot.slane %v1172_v56, 4  ;;  %v1183_v8 = vrot.slane %v1182_v0, 4  ;;  %v1190_v13 = vshrl.u32 %v7729_v32, 16  ;;  %v968_v16 = vsel %vm7466_vm9, %v757_v1, %v967_v54  ;;  %v974_v0 = vld [vmem:[#allocation2 + $0x9c] sm:$0xf] }
  0x7d   : > { %v7732_v9 = vld [vmem:[#allocation2 + $0x40] sm:$0xf]  ;;  %v765_v14 = vor.u32 %v763_v60, %v762_v53  ;;  %v1193_v6 = vshll.u32 %v7729_v32, 16  ;;  %969 = vst [vmem:[#allocation2 + $0x90] sm:$0xf] %v968_v16  ;;  %v767_v38 = vrot.slane %v762_v53, 4  ;;  %v6357_v39 = vpack.c.bf16 %v403_v3, %v403_v3 }
  0x7e   : > { %v1055_v10 = vld [vmem:[#allocation2 + $0x44] sm:$0x1]  ;;  %v1178_v17 = vsel %vm7424_vm2, %v1173_v57, %v1177_v48  ;;  %v1199_v7 = vshll.u32 %v7732_v9, 16  ;;  %v1203_v19 = vshrl.u32 %v7732_v9, 16  ;;  %v1188_v21 = vsel %vm7424_vm2, %v1183_v8, %v1187_v51 }
  0x7f   : > { %v1192_v22 = vrot.slane %v1190_v13, 4  ;;  %v1209_v25 = vshll.u32 %v1055_v10, 16  ;;  %v766_v29 = vsel %vm7460_vm8, %v758_v2, %v765_v14  ;;  %v5957_v30 = vcombine.low %v1178_v17, %v1188_v21  ;;  %v978_v13 = vld [vmem:[#allocation2 + $0xa4] sm:$0x1] }
  0x80   : > { %v1195_v15 = vrot.slane %v1193_v6, 5  ;;  %v1201_v31 = vrot.slane %v1199_v7, 5  ;;  %v1205_v34 = vrot.slane %v1203_v19, 4  ;;  %970 = vst [vmem:[#allocation2 + $0x94] sm:$0xf] %v766_v29  ;;  %v6388_v41 = vunpack.c.h.bf16 %v6433_v49 }
  0x81   : > { %v1211_v36 = vrot.slane %v1209_v25, 5  ;;  %6684 = vmatprep.mubr.bf16.mxu0 %v5957_v30  ;;  %v319_v42 = vmul.f32 %v7682_v20, %v6387_v5  ;;  %v972_v43 = vsel %vm7472_vm10, %v767_v38, %v971_v12  ;;  %v6358_v44 = vpack.c.bf16 %v404_v27, %v404_v27  ;;  %v7768_v25 = vld [vmem:[%s7405_s6 + $0x68] sm:$0xff]  }
  0x82   : > { %v1196_v23 = vor.u32 %v1195_v15, %v1192_v22  ;;  %v1206_v24 = vor.u32 %v1205_v34, %v1201_v31  ;;  %v769_v45 = vshrl.u32 %v6357_v39, 16  ;;  %v772_v46 = vshll.u32 %v6357_v39, 16  ;;  %973 = vst [vmem:[#allocation2 + $0x98] sm:$0x1] %v972_v43 }
  0x83   : > { %v320_v48 = vmul.f32 %v7682_v20, %v6388_v41  ;;  %v357_v50 = vadd.f32 %v7700_v63, %v319_v42  ;;  %v777_v55 = vshrl.u32 %v6358_v44, 16  ;;  %v780_v49 = vshll.u32 %v6358_v44, 16 }
  0x84   : > { %v1197_v40 = vrot.slane %v1196_v23, 4  ;;  %v1207_v47 = vrot.slane %v1206_v24, 4  ;;  %v7752_v51 = vld [vmem:[#allocation2 + $0x90] sm:$0xf]  ;;  %v771_v52 = vrot.slane %v769_v45, 7  ;;  %v6391_v56 = vunpack.c.l.bf16 %v6434_v28 }
  0x85   : > { %10049 = vst [vmem:[#allocation6_spill] sm:$0xff] %v7752_v51  ;;  %v1358_v61 = vshrl.u32 %v7752_v51, 16  ;;  %v1361_v62 = vshll.u32 %v7752_v51, 16  ;;  %v779_v58 = vrot.slane %v777_v55, 7  ;;  %v358_v6 = vadd.f32 %v7700_v63, %v320_v48 }
  0x86   : > { %v1202_v60 = vsel %vm7424_vm2, %v1197_v40, %v1201_v31  ;;  %v1212_v54 = vsel %vm7424_vm2, %v1207_v47, %v1211_v36  ;;  %v774_v53 = vor.u32 %v772_v46, %v771_v52  ;;  %v775_v57 = vrot.slane %v771_v52, 4  ;;  %v925_v52 = vld [vmem:[#allocation2 + $0x48] sm:$0xf] }
  0x87   : > { %v5958_v1 = vcombine.low %v1202_v60, %v1212_v54  ;;  %v7760_v2 = vld [vmem:[#allocation2 + $0x94] sm:$0xf]  ;;  %v1360_v3 = vrot.slane %v1358_v61, 4  ;;  %v1363_v5 = vrot.slane %v1361_v62, 5  ;;  %v782_v14 = vor.u32 %v780_v49, %v779_v58 }
  0x88   : > { %10050 = vst [vmem:[#allocation7_spill] sm:$0xff] %v7760_v2  ;;  %v1367_v8 = vshll.u32 %v7760_v2, 16  ;;  %v1371_v10 = vshrl.u32 %v7760_v2, 16  ;;  %v784_v16 = vrot.slane %v779_v58, 4  ;;  %v975_v17 = vsel %vm7466_vm9, %v774_v53, %v974_v0  ;;  %v929_v58 = vld [vmem:[#allocation2 + $0x50] sm:$0x1] }
  0x89   : > { %6685 = vmatmul.mubr.bf16.gmra.mxu0 %v5958_v1  ;;  %v1364_v7 = vor.u32 %v1363_v5, %v1360_v3  ;;  %976 = vst [vmem:[#allocation2 + $0x9c] sm:$0xf] %v975_v17  ;;  %v389_v22 = vmax.f32 %v357_v50, 0.0  ;;  %v1062_v29 = vld [vmem:[#allocation2 + $0x98] sm:$0x1]  ;;  %v783_v12 = vsel %vm7460_vm8, %v775_v57, %v782_v14  ;;  %v390_v15 = vmax.f32 %v358_v6, 0.0 }
  0x8a   : > { %v1369_v19 = vrot.slane %v1367_v8, 5  ;;  %v1373_v21 = vrot.slane %v1371_v10, 4  ;;  %v979_v30 = vsel %vm7472_vm10, %v784_v16, %v978_v13  ;;  %v6392_v31 = vunpack.c.h.bf16 %v6434_v28  ;;  %977 = vst [vmem:[#allocation2 + $0xa0] sm:$0xf] %v783_v12  ;;  %v3336_v2 = vld [vmem:[#allocation2 + $0xc] sm:$0xe] }
  0x8b   : > { %v1365_v34 = vrot.slane %v1364_v7, 4  ;;  %v1377_v38 = vshll.u32 %v1062_v29, 16  ;;  %980 = vst [vmem:[#allocation2 + $0xa4] sm:$0x1] %v979_v30  ;;  %v6343_v27 = vpack.c.bf16 %v389_v22, %v389_v22  ;;  %v6344_v39 = vpack.c.bf16 %v390_v15, %v390_v15 }
  0x8c   : > { %v1374_v36 = vor.u32 %v1373_v21, %v1369_v19  ;;  %v321_v23 = vmul.f32 %v7682_v20, %v6391_v56  ;;  %v322_v24 = vmul.f32 %v7682_v20, %v6392_v31  ;;  %v6419_v41 = vunpack.c.l.bf16 %v7768_v25  ;;  %v6442_v31 = vld [vmem:[%s7405_s6 + $0x70] sm:$0xff]  }
  0x8d   : > { %v1370_v42 = vsel %vm7424_vm2, %v1365_v34, %v1369_v19  ;;  %v1379_v44 = vrot.slane %v1377_v38, 5  ;;  %v650_v45 = vshrl.u32 %v6343_v27, 16  ;;  %v653_v28 = vshll.u32 %v6343_v27, 16 }
  0x8e   : > { %v1375_v43 = vrot.slane %v1374_v36, 4  ;;  %v658_v46 = vshrl.u32 %v6344_v39, 16  ;;  %v661_v40 = vshll.u32 %v6344_v39, 16  ;;  %v359_v47 = vadd.f32 %v7700_v63, %v321_v23 }
  0x8f   : > { %v652_v50 = vrot.slane %v650_v45, 7  ;;  %v360_v55 = vadd.f32 %v7700_v63, %v322_v24  ;;  %v6420_v49 = vunpack.c.h.bf16 %v7768_v25  ;;  %v335_v62 = vmul.f32 %v7682_v20, %v6419_v41 }
  0x90   : > { %v1380_v48 = vsel %vm7424_vm2, %v1375_v43, %v1379_v44  ;;  %v7784_v60 = vld [vmem:[#allocation2 + $0x9c] sm:$0xf]  ;;  %v660_v54 = vrot.slane %v658_v46, 7  ;;  %v391_v61 = vmax.f32 %v359_v47, 0.0  ;;  %v932_v43 = vld [vmem:[#allocation2 + $0x54] sm:$0xf] }
  0x91   : > { %v5965_v56 = vcombine.low %v1370_v42, %v1380_v48  ;;  %v1382_v0 = vshrl.u32 %v7784_v60, 16  ;;  %v1385_v1 = vshll.u32 %v7784_v60, 16  ;;  %v655_v53 = vor.u32 %v653_v28, %v652_v50  ;;  %v7789_v3 = vld [vmem:[#allocation2 + $0xa0] sm:$0xf]  ;;  %v936_v48 = vld [vmem:[#allocation2 + $0x5c] sm:$0x1] }
  0x92   : > { %v656_v57 = vrot.slane %v652_v50, 4  ;;  %10051 = vst [vmem:[#allocation8_spill] sm:$0xff] %v7789_v3  ;;  %v1063_v5 = vld [vmem:[#allocation2 + $0xa4] sm:$0x1]  ;;  %v663_v8 = vor.u32 %v661_v40, %v660_v54  ;;  %v665_v10 = vrot.slane %v660_v54, 4  ;;  %v392_v13 = vmax.f32 %v360_v55, 0.0 }
  0x93   : > { %6700 = vmatprep.mubr.bf16.mxu1 %v5965_v56  ;;  %v6345_v14 = vpack.c.bf16 %v391_v61, %v391_v61  ;;  %v1384_v16 = vrot.slane %v1382_v0, 4  ;;  %v1387_v17 = vrot.slane %v1385_v1, 5  ;;  %v1391_v6 = vshll.u32 %v7789_v3, 16 }
  0x94   : > { %v1395_v7 = vshrl.u32 %v7789_v3, 16  ;;  %v1401_v19 = vshll.u32 %v1063_v5, 16  ;;  %v664_v21 = vsel %vm7460_vm8, %v656_v57, %v663_v8  ;;  %v926_v22 = vsel %vm7466_vm9, %v655_v53, %v925_v52  ;;  %v7994_v3 = vld [vmem:[#allocation2 + $0x28] sm:$0xf] }
  0x95   : > { %v930_v25 = vsel %vm7472_vm10, %v665_v10, %v929_v58  ;;  %v1388_v29 = vor.u32 %v1387_v17, %v1384_v16  ;;  %v1393_v12 = vrot.slane %v1391_v6, 5  ;;  %927 = vst [vmem:[#allocation2 + $0x48] sm:$0xf] %v926_v22  ;;  %928 = vst [vmem:[#allocation2 + $0x4c] sm:$0xf] %v664_v21  ;;  %v6346_v15 = vpack.c.bf16 %v392_v13, %v392_v13 }
  0x96   : > { %v1397_v30 = vrot.slane %v1395_v7, 4  ;;  %931 = vst [vmem:[#allocation2 + $0x50] sm:$0x1] %v930_v25  ;;  %v1403_v34 = vrot.slane %v1401_v19, 5  ;;  %v667_v36 = vshrl.u32 %v6345_v14, 16  ;;  %v670_v38 = vshll.u32 %v6345_v14, 16 }
  0x97   : > { %v336_v27 = vmul.f32 %v7682_v20, %v6420_v49  ;;  %v1389_v39 = vrot.slane %v1388_v29, 4  ;;  %v675_v24 = vshrl.u32 %v6346_v15, 16  ;;  %v678_v41 = vshll.u32 %v6346_v15, 16  ;;  %10064 = vst [vmem:[#allocation19_spill] sm:$0xff] %v7994_v3 }
  0x98   : > { %v1398_v23 = vor.u32 %v1397_v30, %v1393_v12  ;;  %v669_v42 = vrot.slane %v667_v36, 7  ;;  %v373_v44 = vadd.f32 %v7700_v63, %v335_v62  ;;  %v6423_v28 = vunpack.c.l.bf16 %v6442_v31 }
  0x99   : > { %v374_v45 = vadd.f32 %v7700_v63, %v336_v27  ;;  %v1394_v46 = vsel %vm7424_vm2, %v1389_v39, %v1393_v12  ;;  %v677_v47 = vrot.slane %v675_v24, 7  ;;  %v6424_v50 = vunpack.c.h.bf16 %v6442_v31  ;;  %v981_v39 = vld [vmem:[#allocation2 + $0xa8] sm:$0xf] }
  0x9a   : > { %v1399_v40 = vrot.slane %v1398_v23, 4  ;;  %v672_v52 = vor.u32 %v670_v38, %v669_v42  ;;  %v673_v55 = vrot.slane %v669_v42, 4  ;;  %v405_v49 = vmax.f32 %v373_v44, 0.0 }
  0x9b   : > { %v406_v56 = vmax.f32 %v374_v45, 0.0  ;;  %v680_v61 = vor.u32 %v678_v41, %v677_v47  ;;  %v682_v0 = vrot.slane %v677_v47, 4  ;;  %v337_v62 = vmul.f32 %v7682_v20, %v6423_v28  ;;  %v985_v28 = vld [vmem:[#allocation2 + $0xb0] sm:$0x1] }
  0x9c   : > { %v1404_v54 = vsel %vm7424_vm2, %v1399_v40, %v1403_v34  ;;  %v7808_v53 = vld [vmem:[#allocation2 + $0x48] sm:$0xf]  ;;  %v7810_v57 = vld [vmem:[#allocation2 + $0x4c] sm:$0xf]  ;;  %v933_v5 = vsel %vm7466_vm9, %v672_v52, %v932_v43  ;;  %v6359_v8 = vpack.c.bf16 %v405_v49, %v405_v49  ;;  %v338_v23 = vmul.f32 %v7682_v20, %v6424_v50 }
  0x9d   : > { %v5966_v1 = vcombine.low %v1394_v46, %v1404_v54  ;;  %v7812_v58 = vld [vmem:[#allocation2 + $0x50] sm:$0x1]  ;;  %v6360_v10 = vpack.c.bf16 %v406_v56, %v406_v56  ;;  %v1214_v13 = vshrl.u32 %v7808_v53, 16  ;;  %v1217_v14 = vshll.u32 %v7808_v53, 16  ;;  %934 = vst [vmem:[#allocation2 + $0x54] sm:$0xf] %v933_v5 }
  0x9e   : > { %v1223_v16 = vshll.u32 %v7810_v57, 16  ;;  %v1227_v17 = vshrl.u32 %v7810_v57, 16  ;;  %v1233_v6 = vshll.u32 %v7812_v58, 16  ;;  %v681_v7 = vsel %vm7460_vm8, %v673_v55, %v680_v61 }
  0x9f   : > { %6701 = vmatmul.mubr.bf16.gmra.mxu1 %v5966_v1  ;;  %v937_v19 = vsel %vm7472_vm10, %v682_v0, %v936_v48  ;;  %v786_v21 = vshrl.u32 %v6359_v8, 16  ;;  %v1216_v22 = vrot.slane %v1214_v13, 4  ;;  %v1219_v25 = vrot.slane %v1217_v14, 5  ;;  %935 = vst [vmem:[#allocation2 + $0x58] sm:$0xf] %v681_v7 }
  0xa0   : > { %v1225_v29 = vrot.slane %v1223_v16, 5  ;;  %v1229_v12 = vrot.slane %v1227_v17, 4  ;;  %938 = vst [vmem:[#allocation2 + $0x5c] sm:$0x1] %v937_v19  ;;  %v1235_v30 = vrot.slane %v1233_v6, 5  ;;  %v789_v31 = vshll.u32 %v6359_v8, 16 }
  0xa1   : > { %v788_v15 = vrot.slane %v786_v21, 7  ;;  %v794_v34 = vshrl.u32 %v6360_v10, 16  ;;  %v1220_v36 = vor.u32 %v1219_v25, %v1216_v22  ;;  %v797_v27 = vshll.u32 %v6360_v10, 16  ;;  %v7849_v25 = vld [vmem:[#allocation2 + $0x8] sm:$0x1] }
  0xa2   : > { %v1230_v38 = vor.u32 %v1229_v12, %v1225_v29  ;;  %v375_v43 = vadd.f32 %v7700_v63, %v337_v62  ;;  %v376_v46 = vadd.f32 %v7700_v63, %v338_v23  ;;  %vm2096_vm11 = vcmask 1042432  }
  0xa3   : > { %v791_v24 = vor.u32 %v789_v31, %v788_v15  ;;  %v792_v41 = vrot.slane %v788_v15, 4  ;;  %v796_v42 = vrot.slane %v794_v34, 7  ;;  %v1221_v44 = vrot.slane %v1220_v36, 4 }
  0xa4   : > { %v1231_v45 = vrot.slane %v1230_v38, 4  ;;  %v7828_v40 = vld [vmem:[#allocation2 + $0x54] sm:$0xf]  ;;  %v407_v55 = vmax.f32 %v375_v43, 0.0  ;;  %v408_v8 = vmax.f32 %v376_v46, 0.0  ;;  %vm2097_vm12 = vcmask 1046532  }
  0xa5   : > { %v799_v47 = vor.u32 %v797_v27, %v796_v42  ;;  %v801_v48 = vrot.slane %v796_v42, 4  ;;  %v982_v52 = vsel %vm7466_vm9, %v791_v24, %v981_v39  ;;  %v1226_v50 = vsel %vm7424_vm2, %v1221_v44, %v1225_v29  ;;  %v988_v24 = vld [vmem:[#allocation2 + $0xb4] sm:$0xf]  ;;  %vm7984_vm13 = vmor %vm2096_vm11, %vm2097_vm12 }
  0xa6   : > { %v1236_v49 = vsel %vm7424_vm2, %v1231_v45, %v1235_v30  ;;  %v1238_v56 = vshrl.u32 %v7828_v40, 16  ;;  %v1241_v54 = vshll.u32 %v7828_v40, 16  ;;  %983 = vst [vmem:[#allocation2 + $0xa8] sm:$0xf] %v982_v52  ;;  %v7838_v0 = vld [vmem:[#allocation2 + $0x58] sm:$0xf]  ;;  %v6361_v6 = vpack.c.bf16 %v407_v55, %v407_v55 }
  0xa7   : > { %v5959_v61 = vcombine.low %v1226_v50, %v1236_v49  ;;  %v7840_v62 = vld [vmem:[#allocation2 + $0x5c] sm:$0x1]  ;;  %v800_v1 = vsel %vm7460_vm8, %v792_v41, %v799_v47  ;;  %v986_v5 = vsel %vm7472_vm10, %v801_v48, %v985_v28  ;;  %v1247_v14 = vshll.u32 %v7838_v0, 16 }
  0xa8   : > { %v1240_v10 = vrot.slane %v1238_v56, 4  ;;  %v1243_v13 = vrot.slane %v1241_v54, 5  ;;  %v1251_v16 = vshrl.u32 %v7838_v0, 16  ;;  %984 = vst [vmem:[#allocation2 + $0xac] sm:$0xf] %v800_v1  ;;  %v1257_v17 = vshll.u32 %v7840_v62, 16 }
  0xa9   : > { %987 = vst [vmem:[#allocation2 + $0xb0] sm:$0x1] %v986_v5  ;;  %6688 = vmatprep.mubr.bf16.mxu0 %v5959_v61  ;;  %v6362_v7 = vpack.c.bf16 %v408_v8, %v408_v8  ;;  %v1249_v21 = vrot.slane %v1247_v14, 5  ;;  %v803_v12 = vshrl.u32 %v6361_v6, 16  ;;  %v806_v30 = vshll.u32 %v6361_v6, 16  ;;  %v7141_v61 = vld [vmem:[#allocation2 + $0xc] sm:$0xff]  }
  0xaa   : > { %v1244_v19 = vor.u32 %v1243_v13, %v1240_v10  ;;  %v1253_v22 = vrot.slane %v1251_v16, 4  ;;  %v1259_v36 = vrot.slane %v1257_v17, 5  ;;  %v992_v45 = vld [vmem:[#allocation2 + $0xbc] sm:$0x1]  ;;  %v7873_v6 = vld [vmem:[#allocation2 + $0x14] sm:$0x1] }
  0xab   : > { %v811_v15 = vshrl.u32 %v6362_v7, 16  ;;  %v814_v38 = vshll.u32 %v6362_v7, 16  ;;  %v805_v39 = vrot.slane %v803_v12, 7  ;;  %v7879_v12 = vld [vmem:[#allocation2] sm:$0xf]  ;;  %v7256_v7 = vld [vmem:[%s9986_s3 + $0x178] sm:$0xff]  }
  0xac   : > { %v1245_v31 = vrot.slane %v1244_v19, 4  ;;  %v1254_v34 = vor.u32 %v1253_v22, %v1249_v21  ;;  %v7876_v19 = vld [vmem:[#allocation2 + $0x68] sm:$0x1]  ;;  %v10067_v11 = vrot.slane %v7849_v25, 5 }
  0xad   : > { %v7852_v27 = vld [vmem:[#allocation2 + $0xa8] sm:$0xf]  ;;  %v813_v23 = vrot.slane %v811_v15, 7  ;;  %v808_v47 = vor.u32 %v806_v30, %v805_v39  ;;  %v809_v48 = vrot.slane %v805_v39, 4  ;;  %v7881_v30 = vld [vmem:[#allocation2 + $0x4] sm:$0xf] }
  0xae   : > { %v1250_v41 = vsel %vm7424_vm2, %v1245_v31, %v1249_v21  ;;  %v1255_v42 = vrot.slane %v1254_v34, 4  ;;  %v1406_v43 = vshrl.u32 %v7852_v27, 16  ;;  %v1409_v44 = vshll.u32 %v7852_v27, 16  ;;  %v6443_v31 = vld [vmem:[%s7405_s6 + $0x78] sm:$0xff]   ;;  %v7164_v15 = vld [vmem:[%s9986_s3 + $0x160] sm:$0xff]  }
  0xaf   : > { %v7858_v28 = vld [vmem:[#allocation2 + $0xac] sm:$0xf]  ;;  %v816_v52 = vor.u32 %v814_v38, %v813_v23  ;;  %v818_v55 = vrot.slane %v813_v23, 4  ;;  %v989_v16 = vsel %vm7466_vm9, %v808_v47, %v988_v24  ;;  %v7888_v38 = vld [vmem:[#allocation2 + $0x10] sm:$0xf]  ;;  %v2101_v37 = vrot.slane %v7881_v30, 5 }
  0xb0   : > { %v7860_v46 = vld [vmem:[#allocation2 + $0xb0] sm:$0x1]  ;;  %v1260_v50 = vsel %vm7424_vm2, %v1255_v42, %v1259_v36  ;;  %v1408_v49 = vrot.slane %v1406_v43, 4  ;;  %v1411_v56 = vrot.slane %v1409_v44, 5  ;;  %v1415_v54 = vshll.u32 %v7858_v28, 16 }
  0xb1   : > { %10052 = vst [vmem:[#allocation9_spill] sm:$0xff] %v7860_v46  ;;  %v5960_v1 = vcombine.low %v1250_v41, %v1260_v50  ;;  %v1419_v5 = vshrl.u32 %v7858_v28, 16  ;;  %v1425_v8 = vshll.u32 %v7860_v46, 16  ;;  %v817_v10 = vsel %vm7460_vm8, %v809_v48, %v816_v52  ;;  %990 = vst [vmem:[#allocation2 + $0xb4] sm:$0xf] %v989_v16 }
  0xb2   : > { %v1412_v13 = vor.u32 %v1411_v56, %v1408_v49  ;;  %v1417_v14 = vrot.slane %v1415_v54, 5  ;;  %991 = vst [vmem:[#allocation2 + $0xb8] sm:$0xf] %v817_v10  ;;  %v993_v17 = vsel %vm7472_vm10, %v818_v55, %v992_v45  ;;  %v7886_v36 = vld [vmem:[#allocation2 + $0xc] sm:$0xf]  ;;  %v6427_v49 = vunpack.c.l.bf16 %v6443_v31 }
  0xb3   : > { %6689 = vmatmul.mubr.bf16.gmra.mxu0 %v5960_v1  ;;  %v1421_v22 = vrot.slane %v1419_v5, 4  ;;  %994 = vst [vmem:[#allocation2 + $0xbc] sm:$0x1] %v993_v17  ;;  %v7892_v23 = vld [vmem:[#allocation2 + $0x18] sm:$0xf]  ;;  %v1427_v47 = vrot.slane %v1425_v8, 5  ;;  %v6428_v56 = vunpack.c.h.bf16 %v6443_v31 }
  0xb4   : > { %v1413_v34 = vrot.slane %v1412_v13, 4  ;;  %6772 = vmatprep.mubr.bf16.mxu0 %v7141_v61  ;;  %v7894_v24 = vld [vmem:[#allocation2 + $0x1c] sm:$0xf]  ;;  %v7898_v42 = vld [vmem:[#allocation2 + $0x24] sm:$0xf]  ;;  %v339_v50 = vmul.f32 %v7682_v20, %v6427_v49 }
  0xb5   : > { %v7900_v43 = vld [vmem:[#allocation2 + $0x28] sm:$0xf]  ;;  %v1422_v45 = vor.u32 %v1421_v22, %v1417_v14  ;;  %v7143_v1 = vld [vmem:[#allocation2 + $0x18] sm:$0xff]   ;;  %v7914_v5 = vld [vmem:[#allocation2 + $0x60] sm:$0xf]  ;;  %v340_v21 = vmul.f32 %v7682_v20, %v6428_v56 }
  0xb6   : > { %v1418_v54 = vsel %vm7424_vm2, %v1413_v34, %v1417_v14  ;;  %v7916_v8 = vld [vmem:[#allocation2 + $0x64] sm:$0xf]  ;;  %v7920_v13 = vld [vmem:[#allocation2 + $0x6c] sm:$0xf]  ;;  %v7922_v16 = vld [vmem:[#allocation2 + $0x70] sm:$0xf]  ;;  %v377_v56 = vadd.f32 %v7700_v63, %v339_v50 }
  0xb7   : > { %v1423_v61 = vrot.slane %v1422_v45, 4  ;;  %10053 = vst [vmem:[#allocation10_spill] sm:$0xff] %v7920_v13  ;;  %v7147_v22 = vld [vmem:[#allocation2 + $0x24] sm:$0xff]   ;;  %v7152_v14 = vld [vmem:[%s9986_s3 + $0x170] sm:$0xff]   ;;  %v7929_v31 = vld [vmem:[#allocation2 + $0x78] sm:$0xf] }
  0xb8   : > { %10054 = vst [vmem:[#allocation11_spill] sm:$0xff] %v7929_v31  ;;  %v7931_v34 = vld [vmem:[#allocation2 + $0x7c] sm:$0xf]  ;;  %v7939_v17 = vld [vmem:[#allocation2 + $0x10] sm:$0xf]  ;;  %v7158_v50 = vld [vmem:[%s9986_s3 + $0x168] sm:$0xff]  }
  0xb9   : > { %10055 = vst [vmem:[#allocation12_spill] sm:$0xff] %v7939_v17  ;;  %v1428_v55 = vsel %vm7424_vm2, %v1423_v61, %v1427_v47  ;;  %v7943_v52 = vld [vmem:[#allocation2 + $0xb8] sm:$0xf]  ;;  %v7947_v44 = vld [vmem:[#allocation2 + $0xb4] sm:$0xf]  ;;  %v409_v29 = vmax.f32 %v377_v56, 0.0 }
  0xba   : > { %10056 = vst [vmem:[#allocation13_spill] sm:$0xff] %v7943_v52  ;;  %v5967_v45 = vcombine.low %v1418_v54, %v1428_v55  ;;  %10057 = vst [vmem:[#allocation14_spill] sm:$0xff] %v7947_v44  ;;  %v7949_v10 = vld [vmem:[#allocation2 + $0xbc] sm:$0x1]  ;;  %v1439_v49 = vshll.u32 %v7943_v52, 16  ;;  %v1443_v20 = vshrl.u32 %v7943_v52, 16  ;;  %v378_v55 = vadd.f32 %v7700_v63, %v340_v21 }
  0xbb   : > { %10058 = vst [vmem:[#allocation15_spill] sm:$0xff] %v7949_v10  ;;  %v7954_v41 = vld [vmem:[#allocation2 + $0x14] sm:$0x1]  ;;  %v1430_v47 = vshrl.u32 %v7947_v44, 16  ;;  %v1433_v61 = vshll.u32 %v7947_v44, 16  ;;  %v1449_v48 = vshll.u32 %v7949_v10, 16  ;;  %6773 = vmatmul.mubr.bf16.vlgmr.msra.gmra.mxu0 %v7143_v1  ;;  %v6363_v59 = vpack.c.bf16 %v409_v29, %v409_v29 }
  0xbc   : > { %10059 = vst [vmem:[#allocation16_spill] sm:$0xff] %v7954_v41  ;;  %6704 = vmatprep.mubr.bf16.mxu1 %v5967_v45  ;;  %v1441_v54 = vrot.slane %v1439_v49, 5  ;;  %v1445_v39 = vrot.slane %v1443_v20, 4  ;;  %6853 = vmatpush3.bf16.msra.mxu0 %v7256_v7  ;;  %v410_v63 = vmax.f32 %v378_v55, 0.0  ;;  %v3402_v21 = vrot.slane %v7939_v17, 5  ;;  %v7149_v7 = vld [vmem:[#allocation2 + $0x30] sm:$0xff]  }
  0xbd   : > { %v1432_v1 = vrot.slane %v1430_v47, 4  ;;  %v1435_v51 = vrot.slane %v1433_v61, 5  ;;  %6776 = vmatprep.mubr.bf16.mxu0 %v7147_v22  ;;  %6854 = vmatprep.subr.bf16.mxu0 %v7152_v14  ;;  %v2048_v45 = vld [vmem:[#allocation2] sm:$0xe]  ;;  %v1451_v20 = vrot.slane %v1449_v48, 5  ;;  %v6113_v61 = vrot.slane %v3336_v2, 9 }
  0xbe   : > { %v1446_v49 = vor.u32 %v1445_v39, %v1441_v54  ;;  %v7153_v10 = vld [vmem:[#allocation2 + $0x3c] sm:$0xff]   ;;  %v6364_v47 = vpack.c.bf16 %v410_v63, %v410_v63  ;;  %v3405_v22 = vrot.slane %v7954_v41, 5  ;;  %v820_v48 = vshrl.u32 %v6363_v59, 16  ;;  %v3337_v52 = vld [vmem:[#allocation2 + $0x18] sm:$0xe] }
  0xbf   : > { %v1436_v56 = vor.u32 %v1435_v51, %v1432_v1  ;;  %v7974_v55 = vld [vmem:[#allocation2 + $0x1c] sm:$0xf]  ;;  %v7976_v44 = vld [vmem:[#allocation2 + $0x20] sm:$0x1]  ;;  %v823_v17 = vshll.u32 %v6363_v59, 16  ;;  %v6001_v29 = vrot.slane %v2048_v45, 9 }
  0xc0   : > { %10060 = vst [vmem:[#allocation17_spill] sm:$0xff] %v7974_v55  ;;  %10061 = vst [vmem:[#allocation18_spill] sm:$0xff] %v7976_v44  ;;  %v1447_v39 = vrot.slane %v1446_v49, 4  ;;  %6855 = vmatpush3.bf16.msra.mxu0 %v7152_v14  ;;  %v828_v51 = vshrl.u32 %v6364_v47, 16  ;;  %v831_v1 = vshll.u32 %v6364_v47, 16  ;;  %v3404_v31 = vrot.slane %v3402_v21, 4 }
  0xc1   : > { %v1437_v46 = vrot.slane %v1436_v56, 4  ;;  %6856 = vmatprep.subr.bf16.mxu0 %v7158_v50  ;;  %v2049_v63 = vld [vmem:[#allocation2 + $0xc] sm:$0xe]  ;;  %v822_v13 = vrot.slane %v820_v48, 7  ;;  %v2103_v14 = vrot.slane %v2101_v37, 4  ;;  %v6114_v56 = vrot.slane %v3337_v52, 9 }
  0xc2   : > { %v1452_v2 = vsel %vm7424_vm2, %v1447_v39, %v1451_v20  ;;  %v7990_v49 = vrot.slane %v828_v51, 7  ;;  %v3409_v20 = vrot.slane %v7974_v55, 5  ;;  %v3412_v41 = vrot.slane %v7976_v44, 5  ;;  %v7260_v44 = vld [vmem:[#allocation2 + $0x34] sm:$0xf] }
  0xc3   : > { %v1442_v45 = vsel %vm7424_vm2, %v1437_v46, %v1441_v54  ;;  %6777 = vmatmul.mubr.bf16.gmra.mxu0 %v7149_v7  ;;  %v825_v39 = vor.u32 %v823_v17, %v822_v13  ;;  %v826_v48 = vrot.slane %v822_v13, 4  ;;  %v7170_v46 = vld [vmem:[%s9986_s3 + $0x158] sm:$0xff]   ;;  %v8002_v52 = vsel %vm7984_vm13, %v6113_v61, %v3402_v21  ;;  %v2895_v17 = vld [vmem:[#allocation2 + $0x2c] sm:$0x1]  ;;  %v2897_v61 = vld [vmem:[#allocation2 + $0x34] sm:$0xf] }
  0xc4   : > { %v5968_v47 = vcombine.low %v1442_v45, %v1452_v2  ;;  %6780 = vmatprep.mubr.bf16.mxu0 %v7153_v10  ;;  %6857 = vmatpush3.bf16.msra.mxu0 %v7158_v50  ;;  %v833_v54 = vor.u32 %v831_v1, %v7990_v49  ;;  %v8006_v10 = vsel %vm7984_vm13, %v6001_v29, %v2101_v37  ;;  %v3411_v13 = vrot.slane %v3409_v20, 4  ;;  %v3338_v50 = vld [vmem:[#allocation2 + $0x24] sm:$0xe]  ;;  %v2050_v21 = vld [vmem:[#allocation2 + $0x18] sm:$0xe]  ;;  %v7155_v29 = vld [vmem:[#allocation2 + $0x48] sm:$0xff]  }
  0xc5   : > { %6858 = vmatprep.subr.bf16.mxu0 %v7164_v15  ;;  %10065 = vst [vmem:[#allocation20_spill] sm:$0xff] %v8006_v10  ;;  %v996_v7 = vsel %vm7466_vm9, %v825_v39, %v995_v18  ;;  %v8012_v51 = vsel %vm7984_vm13, %v3404_v31, %v3405_v22  ;;  %v6002_v1 = vrot.slane %v2049_v63, 9  ;;  %v2108_v2 = vrot.slane %v7888_v38, 5  ;;  %v2898_v63 = vld [vmem:[#allocation2 + $0x38] sm:$0x1] }
  0xc6   : > { %6705 = vmatmul.mubr.bf16.gmra.mxu1 %v5968_v47  ;;  %v10066_v37 = vcombine.low %v7879_v12, %v7881_v30  ;;  %v834_v45 = vsel %vm7460_vm8, %v826_v48, %v833_v54  ;;  %997 = vst [vmem:[#allocation2 + $0xc0] sm:$0xf] %v996_v7  ;;  %v8024_v18 = vsel %vm7984_vm13, %v2103_v14, %v10067_v11  ;;  %v3416_v22 = vrot.slane %v7994_v3, 5  ;;  %v3339_v12 = vld [vmem:[#allocation2 + $0x30] sm:$0xe]  ;;  %v7159_v30 = vld [vmem:[#allocation2 + $0x54] sm:$0xff]  }
  0xc7   : > { %10068 = vst [vmem:[#allocation21_spill] sm:$0xff] %v8024_v18  ;;  %v8028_v31 = vsel %vm7984_vm13, %v6114_v56, %v3409_v20  ;;  %998 = vst [vmem:[#allocation2 + $0xc4] sm:$0xf] %v834_v45  ;;  %v8033_v4 = vsel %vm7984_vm13, %v3411_v13, %v3412_v41  ;;  %v2110_v25 = vrot.slane %v2108_v2, 4  ;;  %v6115_v47 = vrot.slane %v3338_v50, 9  ;;  %v7176_v14 = vld [vmem:[%s9986_s3 + $0x150] sm:$0xff]  }
  0xc8   : > { %6724 = vmatprep.mubr.bf16.mxu1 %v10066_v37  ;;  %6859 = vmatpush3.bf16.msra.mxu0 %v7164_v15  ;;  %v3419_v39 = vrot.slane %v2895_v17, 5  ;;  %v8040_v56 = vsel %vm7984_vm13, %v6002_v1, %v2108_v2  ;;  %v3418_v20 = vrot.slane %v3416_v22, 4  ;;  %v6003_v48 = vrot.slane %v2050_v21, 9  ;;  %v8043_v54 = vld [vmem:[#allocation2 + $0x24] sm:$0xe] }
  0xc9   : > { %6860 = vmatprep.subr.bf16.mxu0 %v7170_v46  ;;  %10069 = vst [vmem:[#allocation22_spill] sm:$0xff] %v8040_v56  ;;  %v2115_v15 = vrot.slane %v7894_v24, 5  ;;  %v10070_v41 = vrot.slane %v7873_v6, 5  ;;  %v7257_v17 = vld [vmem:[#allocation2 + $0x20] sm:$0x1]  ;;  %v6116_v7 = vrot.slane %v3339_v12, 9  ;;  %v8066_v12 = vsel %vm7984_vm13, %v6115_v47, %v3416_v22 }
  0xca   : > { %v2118_v50 = vrot.slane %v7257_v17, 5  ;;  %v3423_v37 = vrot.slane %v2897_v61, 5  ;;  %v8051_v45 = vld [vmem:[#allocation2 + $0x40] sm:$0xf]  ;;  %v3426_v11 = vrot.slane %v2898_v63, 5  ;;  %v7150_v6 = vld [vmem:[%s9986_s3 + $0xb0] sm:$0xff]   ;;  %v8077_v61 = vsel %vm7984_vm13, %v3418_v20, %v3419_v39 }
  0xcb   : > { %v8049_v13 = vsel %vm7984_vm13, %v2110_v25, %v10070_v41  ;;  %6781 = vmatmul.mubr.bf16.gmra.mxu0 %v7155_v29  ;;  %v2117_v21 = vrot.slane %v2115_v15, 4  ;;  %v8068_v41 = vld [vmem:[#allocation2 + $0x44] sm:$0x1]  ;;  %v3340_v63 = vld [vmem:[#allocation2 + $0x3c] sm:$0xe]  ;;  %v8081_v22 = vsel %vm7984_vm13, %v6003_v48, %v2115_v15  ;;  %v2122_v47 = vrot.slane %v7900_v43, 5 }
  0xcc   : > { %10071 = vst [vmem:[#allocation23_spill] sm:$0xff] %v8049_v13  ;;  %6784 = vmatprep.mubr.bf16.mxu0 %v7159_v30  ;;  %6861 = vmatpush3.bf16.msra.mxu0 %v7170_v46  ;;  %v3425_v25 = vrot.slane %v3423_v37, 4  ;;  %v7161_v17 = vld [vmem:[#allocation2 + $0x60] sm:$0xff]   ;;  %v7182_v46 = vld [vmem:[%s9986_s3 + $0x148] sm:$0xff]   ;;  %10072 = vst [vmem:[#allocation24_spill] sm:$0xff] %v8081_v22  ;;  %v10073_v2 = vcombine.low %v7886_v36, %v7888_v38  ;;  %v8098_v20 = vsel %vm7984_vm13, %v6116_v7, %v3423_v37 }
  0xcd   : > { %6862 = vmatprep.subr.bf16.mxu0 %v7176_v14  ;;  %v2052_v1 = vld [vmem:[#allocation2 + $0x30] sm:$0xe]  ;;  %v2903_v29 = vld [vmem:[#allocation2 + $0x4c] sm:$0xf]  ;;  %v8094_v39 = vsel %vm7984_vm13, %v2117_v21, %v2118_v50  ;;  %v6004_v48 = vrot.slane %v8043_v54, 9  ;;  %v3430_v15 = vrot.slane %v8051_v45, 5  ;;  %v10075_v38 = vcombine.low %v7892_v23, %v7894_v24 }
  0xce   : > { %6725 = vmatmul.mubr.bf16.vlgmr.msra.gmra.mxu1 %v10073_v2  ;;  %v8090_v30 = vld [vmem:[%s9986_s3 + $0xa8] sm:$0xff]   ;;  %10074 = vst [vmem:[#allocation25_spill] sm:$0xff] %v8094_v39  ;;  %v7258_v36 = vld [vmem:[%s9986_s3 + $0xb8] sm:$0xff]   ;;  %v8110_v2 = vsel %vm7984_vm13, %v3425_v25, %v3426_v11  ;;  %v2124_v7 = vrot.slane %v2122_v47, 4  ;;  %v6117_v21 = vrot.slane %v3340_v63, 9  ;;  %v6005_v3 = vrot.slane %v2052_v1, 9 }
  0xcf   : > { %v3341_v13 = vld [vmem:[#allocation2 + $0x48] sm:$0xe]  ;;  %6805 = vmatpush3.bf16.msra.mxu1 %v7258_v36  ;;  %6728 = vmatprep.mubr.bf16.mxu1 %v10075_v38  ;;  %v7165_v50 = vld [vmem:[#allocation2 + $0x6c] sm:$0xff]   ;;  %v8112_v45 = vld [vmem:[#allocation2 + $0x3c] sm:$0xe]  ;;  %v3432_v56 = vrot.slane %v3430_v15, 4  ;;  %v8126_v1 = vsel %vm7984_vm13, %v6004_v48, %v2122_v47 }
  0xd0   : > { %v7259_v37 = vld [vmem:[#allocation2 + $0x2c] sm:$0x1]  ;;  %6806 = vmatprep.subr.bf16.mxu1 %v7150_v6  ;;  %6863 = vmatpush3.bf16.msra.mxu0 %v7176_v14  ;;  %v3433_v36 = vrot.slane %v8068_v41, 5  ;;  %v2129_v23 = vrot.slane %v7260_v44, 5  ;;  %v2904_v24 = vld [vmem:[#allocation2 + $0x50] sm:$0x1] }
  0xd1   : > { %v2125_v54 = vrot.slane %v7259_v37, 5  ;;  %6864 = vmatprep.subr.bf16.mxu0 %v7182_v46  ;;  %v7261_v25 = vld [vmem:[#allocation2 + $0x38] sm:$0x1]  ;;  %v6118_v18 = vrot.slane %v3341_v13, 9  ;;  %v3437_v37 = vrot.slane %v2903_v29, 5  ;;  %v7188_v14 = vld [vmem:[%s9986_s3 + $0x140] sm:$0xff]   ;;  %v8134_v29 = vsel %vm7984_vm13, %v6117_v21, %v3430_v15 }
  0xd2   : > { %v2132_v38 = vrot.slane %v7261_v25, 5  ;;  %v2054_v63 = vld [vmem:[#allocation2 + $0x48] sm:$0xe]  ;;  %v2131_v11 = vrot.slane %v2129_v23, 4  ;;  %v2906_v10 = vld [vmem:[#allocation2 + $0x58] sm:$0xf]  ;;  %v8151_v48 = vsel %vm7984_vm13, %v6005_v3, %v2129_v23  ;;  %v10079_v3 = vcombine.low %v7898_v42, %v7900_v43 }
  0xd3   : > { %v3342_v25 = vld [vmem:[#allocation2 + $0x54] sm:$0xe]  ;;  %6807 = vmatpush3.bf16.msra.mxu1 %v7150_v6  ;;  %6785 = vmatmul.mubr.bf16.gmra.mxu0 %v7161_v17  ;;  %v8130_v13 = vsel %vm7984_vm13, %v2124_v7, %v2125_v54  ;;  %v3439_v41 = vrot.slane %v3437_v37, 4  ;;  %v3440_v39 = vrot.slane %v2904_v24, 5  ;;  %v2907_v44 = vld [vmem:[#allocation2 + $0x5c] sm:$0x1]  ;;  %v8147_v17 = vsel %vm7984_vm13, %v3432_v56, %v3433_v36 }
  0xd4   : > { %10076 = vst [vmem:[#allocation26_spill] sm:$0xff] %v8130_v13  ;;  %6808 = vmatprep.subr.bf16.mxu1 %v8090_v30  ;;  %v7162_v47 = vld [vmem:[%s9986_s3 + $0xa0] sm:$0xff]   ;;  %6788 = vmatprep.mubr.bf16.mxu0 %v7165_v50  ;;  %v8143_v6 = vld [vmem:[%s9986_s3 + $0x1f8] sm:$0xff]   ;;  %10077 = vst [vmem:[#allocation27_spill] sm:$0xff] %v8151_v48  ;;  %v6006_v15 = vrot.slane %v8112_v45, 9  ;;  %v8156_v50 = vsel %vm7984_vm13, %v2131_v11, %v2132_v38  ;;  %v8160_v24 = vsel %vm7984_vm13, %v6118_v18, %v3437_v37 }
  0xd5   : > { %v7262_v7 = vld [vmem:[#allocation2 + $0x40] sm:$0xf]  ;;  %v7167_v21 = vld [vmem:[#allocation2 + $0x78] sm:$0xff]   ;;  %6865 = vmatpush3.bf16.msra.mxu0 %v7182_v46  ;;  %10078 = vst [vmem:[#allocation28_spill] sm:$0xff] %v8156_v50  ;;  %v7263_v56 = vld [vmem:[#allocation2 + $0x44] sm:$0x1]  ;;  %v10080_v18 = vcombine.low %v7711_v33, %v7713_v35  ;;  %v8176_v42 = vsel %vm7984_vm13, %v3439_v41, %v3440_v39 }
  0xd6   : > { %v2136_v54 = vrot.slane %v7262_v7, 5  ;;  %v2139_v36 = vrot.slane %v7263_v56, 5  ;;  %v3444_v22 = vrot.slane %v2906_v10, 5  ;;  %v8162_v55 = vld [vmem:[#allocation2 + $0x64] sm:$0xf]  ;;  %6729 = vmatmul.mubr.bf16.gmra.mxu1 %v10079_v3  ;;  %v7168_v46 = vld [vmem:[%s9986_s3 + $0x98] sm:$0xff]   ;;  %6866 = vmatprep.subr.bf16.mxu0 %v7188_v14 }
  0xd7   : > { %v6119_v23 = vrot.slane %v3342_v25, 9  ;;  %v3447_v11 = vrot.slane %v2907_v44, 5  ;;  %v6007_v38 = vrot.slane %v2054_v63, 9  ;;  %6732 = vmatprep.mubr.bf16.mxu1 %v10080_v18  ;;  %6809 = vmatpush3.bf16.msra.mxu1 %v8090_v30  ;;  %v7171_v10 = vld [vmem:[#allocation2 + $0x84] sm:$0xff]   ;;  %v2143_v37 = vrot.slane %v7810_v57, 5 }
  0xd8   : > { %v2138_v45 = vrot.slane %v2136_v54, 4  ;;  %v3446_v43 = vrot.slane %v3444_v22, 4  ;;  %v2146_v7 = vrot.slane %v7812_v58, 5  ;;  %v2055_v56 = vld [vmem:[#allocation2 + $0x54] sm:$0xe]  ;;  %6810 = vmatprep.subr.bf16.mxu1 %v7162_v47  ;;  %v8188_v30 = vsel %vm7984_vm13, %v6006_v15, %v2136_v54 }
  0xd9   : > { %10081 = vst [vmem:[#allocation29_spill] sm:$0xff] %v8188_v30  ;;  %v2910_v39 = vld [vmem:[#allocation2 + $0x68] sm:$0x1]  ;;  %v3343_v41 = vld [vmem:[#allocation2 + $0x60] sm:$0xe]  ;;  %6867 = vmatpush3.bf16.msra.mxu0 %v7188_v14  ;;  %v8198_v25 = vsel %vm7984_vm13, %v6007_v38, %v2143_v37  ;;  %v2145_v3 = vrot.slane %v2143_v37, 4  ;;  %v8206_v14 = vsel %vm7984_vm13, %v6119_v23, %v3444_v22 }
  0xda   : > { %v8190_v44 = vld [vmem:[#allocation2 + $0x70] sm:$0xf]  ;;  %v8194_v58 = vsel %vm7984_vm13, %v2138_v45, %v2139_v36  ;;  %10083 = vst [vmem:[#allocation31_spill] sm:$0xff] %v8198_v25  ;;  %v3451_v18 = vrot.slane %v8162_v55, 5  ;;  %v2913_v35 = vld [vmem:[#allocation2 + $0x74] sm:$0x1]  ;;  %6948 = vmatprep.subr.bf16.mxu0 %v8143_v6  ;;  %v8210_v54 = vsel %vm7984_vm13, %v3446_v43, %v3447_v11 }
  0xdb   : > { %10082 = vst [vmem:[#allocation30_spill] sm:$0xff] %v8194_v58  ;;  %v3344_v63 = vld [vmem:[#allocation2 + $0x6c] sm:$0xe]  ;;  %v6008_v36 = vrot.slane %v2055_v56, 9  ;;  %v2056_v45 = vld [vmem:[#allocation2 + $0x60] sm:$0xe]  ;;  %6811 = vmatpush3.bf16.msra.mxu1 %v7162_v47  ;;  %6789 = vmatmul.mubr.bf16.gmra.mxu0 %v7167_v21  ;;  %v8219_v37 = vsel %vm7984_vm13, %v2145_v3, %v2146_v7 }
  0xdc   : > { %v8212_v38 = vld [vmem:[#allocation2 + $0x7c] sm:$0xf]  ;;  %v7174_v55 = vld [vmem:[%s9986_s3 + $0x90] sm:$0xff]   ;;  %10084 = vst [vmem:[#allocation32_spill] sm:$0xff] %v8219_v37  ;;  %v6120_v22 = vrot.slane %v3343_v41, 9  ;;  %v2150_v23 = vrot.slane %v7838_v0, 5  ;;  %6812 = vmatprep.subr.bf16.mxu1 %v7168_v46  ;;  %6792 = vmatprep.mubr.bf16.mxu0 %v7171_v10  ;;  %v10086_v10 = vcombine.low %v7729_v32, %v7732_v9 }
  0xdd   : > { %v2153_v11 = vrot.slane %v7840_v62, 5  ;;  %v2916_v43 = vld [vmem:[#allocation2 + $0x80] sm:$0x1]  ;;  %v3345_v56 = vld [vmem:[#allocation2 + $0x78] sm:$0xe]  ;;  %v3454_v15 = vrot.slane %v2910_v39, 5 }
  0xde   : > { %v3458_v33 = vrot.slane %v8190_v44, 5  ;;  %v3453_v41 = vrot.slane %v3451_v18, 4  ;;  %v8232_v62 = vsel %vm7984_vm13, %v6008_v36, %v2150_v23  ;;  %v2152_v3 = vrot.slane %v2150_v23, 4  ;;  %v2057_v50 = vld [vmem:[#allocation2 + $0x6c] sm:$0xe]  ;;  %6733 = vmatmul.mubr.bf16.gmra.mxu1 %v10086_v10  ;;  %v7173_v7 = vld [vmem:[#allocation2 + $0x90] sm:$0xff]  }
  0xdf   : > { %10085 = vst [vmem:[#allocation33_spill] sm:$0xff] %v8232_v62  ;;  %v6121_v47 = vrot.slane %v3344_v63, 9  ;;  %v3461_v21 = vrot.slane %v2913_v35, 5  ;;  %v2157_v39 = vrot.slane %v7916_v8, 5  ;;  %v10087_v44 = vcombine.low %v7808_v53, %v7810_v57  ;;  %6813 = vmatpush3.bf16.msra.mxu1 %v7168_v46  ;;  %v7180_v36 = vld [vmem:[%s9986_s3 + $0x88] sm:$0xff]   ;;  %v7177_v53 = vld [vmem:[#allocation2 + $0x9c] sm:$0xff]  }
  0xe0   : > { %v3460_v58 = vrot.slane %v3458_v33, 4  ;;  %v8246_v23 = vsel %vm7984_vm13, %v6120_v22, %v3451_v18  ;;  %v8250_v32 = vsel %vm7984_vm13, %v2152_v3, %v2153_v11  ;;  %v6009_v9 = vrot.slane %v2056_v45, 9  ;;  %v2918_v35 = vld [vmem:[#allocation2 + $0x88] sm:$0xf]  ;;  %6814 = vmatprep.subr.bf16.mxu1 %v7174_v55  ;;  %v3346_v37 = vld [vmem:[#allocation2 + $0x84] sm:$0xe] }
  0xe1   : > { %6736 = vmatprep.mubr.bf16.mxu1 %v10087_v44  ;;  %10088 = vst [vmem:[#allocation34_spill] sm:$0xff] %v8250_v32  ;;  %v3465_v63 = vrot.slane %v8212_v38, 5  ;;  %v2159_v46 = vrot.slane %v2157_v39, 4  ;;  %v6122_v10 = vrot.slane %v3345_v56, 9  ;;  %v3468_v44 = vrot.slane %v2916_v43, 5 }
  0xe2   : > { %v8257_v18 = vsel %vm7984_vm13, %v3453_v41, %v3454_v15  ;;  %v6010_v11 = vrot.slane %v2057_v50, 9  ;;  %v2164_v45 = vrot.slane %v7922_v16, 5  ;;  %v2919_v3 = vld [vmem:[#allocation2 + $0x8c] sm:$0x1]  ;;  %v8262_v38 = vsel %vm7984_vm13, %v6121_v47, %v3458_v33  ;;  %v7264_v56 = vld [vmem:[#allocation2 + $0x74] sm:$0x1] }
  0xe3   : > { %v3467_v22 = vrot.slane %v3465_v63, 4  ;;  %v8266_v57 = vsel %vm7984_vm13, %v3460_v58, %v3461_v21  ;;  %v2167_v43 = vrot.slane %v7264_v56, 5  ;;  %v3472_v32 = vrot.slane %v2918_v35, 5  ;;  %v8268_v62 = vld [vmem:[#allocation2 + $0x78] sm:$0xe]  ;;  %6793 = vmatmul.mubr.bf16.gmra.mxu0 %v7173_v7  ;;  %6815 = vmatpush3.bf16.msra.mxu1 %v7174_v55  ;;  %v7186_v55 = vld [vmem:[%s9986_s3 + $0x80] sm:$0xff]  }
  0xe4   : > { %v8270_v15 = vld [vmem:[#allocation2 + $0x94] sm:$0xf]  ;;  %v8274_v50 = vsel %vm7984_vm13, %v6009_v9, %v2157_v39  ;;  %v10090_v33 = vrot.slane %v7876_v19, 5  ;;  %v2166_v58 = vrot.slane %v2164_v45, 4  ;;  %v6123_v21 = vrot.slane %v3346_v37, 9  ;;  %6796 = vmatprep.mubr.bf16.mxu0 %v7177_v53  ;;  %6816 = vmatprep.subr.bf16.mxu1 %v7180_v36 }
  0xe5   : > { %10089 = vst [vmem:[#allocation35_spill] sm:$0xff] %v8274_v50  ;;  %v3347_v41 = vld [vmem:[#allocation2 + $0x90] sm:$0xe]  ;;  %v8290_v19 = vsel %vm7984_vm13, %v6122_v10, %v3465_v63  ;;  %v8294_v39 = vsel %vm7984_vm13, %v3467_v22, %v3468_v44  ;;  %v2922_v37 = vld [vmem:[#allocation2 + $0x98] sm:$0x1]  ;;  %v2171_v63 = vrot.slane %v7931_v34, 5  ;;  %v10096_v44 = vcombine.low %v7828_v40, %v7838_v0 }
  0xe6   : > { %v8280_v47 = vsel %vm7984_vm13, %v2159_v46, %v10090_v33  ;;  %10092 = vst [vmem:[#allocation37_spill] sm:$0xff] %v8290_v19  ;;  %10093 = vst [vmem:[#allocation38_spill] sm:$0xff] %v8294_v39  ;;  %v2059_v9 = vld [vmem:[#allocation2 + $0x84] sm:$0xe]  ;;  %v8300_v46 = vsel %vm7984_vm13, %v6010_v11, %v2164_v45  ;;  %v8304_v56 = vsel %vm7984_vm13, %v2166_v58, %v2167_v43  ;;  %v2924_v10 = vld [vmem:[#allocation2 + $0xa0] sm:$0xf] }
  0xe7   : > { %10091 = vst [vmem:[#allocation36_spill] sm:$0xff] %v8280_v47  ;;  %10094 = vst [vmem:[#allocation39_spill] sm:$0xff] %v8300_v46  ;;  %6737 = vmatmul.mubr.bf16.gmra.mxu1 %v10096_v44  ;;  %v7179_v22 = vld [vmem:[#allocation2 + $0xa8] sm:$0xff]   ;;  %v8313_v33 = vld [vmem:[%s9986_s3 + $0x138] sm:$0xff]   ;;  %v3474_v45 = vrot.slane %v3472_v32, 4  ;;  %v3475_v53 = vrot.slane %v2919_v3, 5  ;;  %v10097_v7 = vcombine.low %v7914_v5, %v7916_v8  ;;  %v8325_v0 = vsel %vm7984_vm13, %v6123_v21, %v3472_v32 }
  0xe8   : > { %10095 = vst [vmem:[#allocation40_spill] sm:$0xff] %v8304_v56  ;;  %v3479_v43 = vrot.slane %v8270_v15, 5  ;;  %v2925_v58 = vld [vmem:[#allocation2 + $0xa4] sm:$0x1]  ;;  %6817 = vmatpush3.bf16.msra.mxu1 %v7180_v36  ;;  %v6011_v44 = vrot.slane %v8268_v62, 9  ;;  %v6124_v11 = vrot.slane %v3347_v41, 9 }
  0xe9   : > { %6740 = vmatprep.mubr.bf16.mxu1 %v10097_v7  ;;  %v3348_v35 = vld [vmem:[#allocation2 + $0x9c] sm:$0xe]  ;;  %v2060_v3 = vld [vmem:[#allocation2 + $0x90] sm:$0xe]  ;;  %v7183_v47 = vld [vmem:[#allocation2 + $0xb4] sm:$0xff]   ;;  %6818 = vmatprep.subr.bf16.mxu1 %v7186_v55  ;;  %v2173_v5 = vrot.slane %v2171_v63, 4  ;;  %v8332_v62 = vsel %vm7984_vm13, %v3474_v45, %v3475_v53 }
  0xea   : > { %v7265_v8 = vld [vmem:[#allocation2 + $0x80] sm:$0x1]  ;;  %v7266_v7 = vld [vmem:[#allocation2 + $0x88] sm:$0xf]  ;;  %v2927_v40 = vld [vmem:[#allocation2 + $0xac] sm:$0xf] }
  0xeb   : > { %v2174_v36 = vrot.slane %v7265_v8, 5  ;;  %v2178_v50 = vrot.slane %v7266_v7, 5  ;;  %v3481_v25 = vrot.slane %v3479_v43, 4  ;;  %v3482_v30 = vrot.slane %v2922_v37, 5  ;;  %v2928_v39 = vld [vmem:[#allocation2 + $0xb0] sm:$0x1]  ;;  %6797 = vmatmul.mubr.bf16.gmra.mxu0 %v7179_v22 }
  0xec   : > { %v6012_v32 = vrot.slane %v2059_v9, 9  ;;  %v3486_v21 = vrot.slane %v2924_v10, 5  ;;  %v7267_v19 = vld [vmem:[#allocation2 + $0x8c] sm:$0x1]  ;;  %v6125_v13 = vrot.slane %v3348_v35, 9  ;;  %6819 = vmatpush3.bf16.msra.mxu1 %v7186_v55  ;;  %v8336_v8 = vsel %vm7984_vm13, %v6011_v44, %v2171_v63  ;;  %6800 = vmatprep.mubr.bf16.mxu0 %v7183_v47  ;;  %v10101_v44 = vld [vmem:[#allocation10_spill] sm:$0xff] }
  0xed   : > { %v2180_v41 = vrot.slane %v2178_v50, 4  ;;  %v2181_v48 = vrot.slane %v7267_v19, 5  ;;  %v3349_v15 = vld [vmem:[#allocation2 + $0xa8] sm:$0xe]  ;;  %10098 = vst [vmem:[#allocation41_spill] sm:$0xff] %v8336_v8  ;;  %v8340_v37 = vsel %vm7984_vm13, %v6124_v11, %v3479_v43  ;;  %v3489_v10 = vrot.slane %v2925_v58, 5  ;;  %6900 = vmatprep.subr.bf16.mxu1 %v8313_v33 }
  0xee   : > { %v3488_v9 = vrot.slane %v3486_v21, 4  ;;  %v2061_v7 = vld [vmem:[#allocation2 + $0x9c] sm:$0xe]  ;;  %v8345_v35 = vsel %vm7984_vm13, %v2173_v5, %v2174_v36  ;;  %v6013_v19 = vrot.slane %v2060_v3, 9  ;;  %v7268_v55 = vld [vmem:[#allocation2 + $0x94] sm:$0xf]  ;;  %v8349_v45 = vsel %vm7984_vm13, %v3481_v25, %v3482_v30 }
  0xef   : > { %10099 = vst [vmem:[#allocation42_spill] sm:$0xff] %v8345_v35  ;;  %v2185_v53 = vrot.slane %v7268_v55, 5  ;;  %v7269_v22 = vld [vmem:[#allocation2 + $0x98] sm:$0x1]  ;;  %v8353_v11 = vsel %vm7984_vm13, %v6012_v32, %v2178_v50  ;;  %v6126_v47 = vrot.slane %v3349_v15, 9  ;;  %v3493_v43 = vrot.slane %v2927_v40, 5 }
  0xf0   : > { %v2188_v63 = vrot.slane %v7269_v22, 5  ;;  %10100 = vst [vmem:[#allocation43_spill] sm:$0xff] %v8353_v11  ;;  %v2930_v58 = vld [vmem:[#allocation2 + $0xb8] sm:$0xf]  ;;  %v10102_v5 = vcombine.low %v10101_v44, %v7922_v16  ;;  %v8360_v3 = vsel %vm7984_vm13, %v2180_v41, %v2181_v48  ;;  %v8364_v36 = vsel %vm7984_vm13, %v6125_v13, %v3486_v21  ;;  %v3350_v55 = vld [vmem:[#allocation2 + $0xb4] sm:$0xe] }
  0xf1   : > { %10103 = vst [vmem:[#allocation10_spill] sm:$0xff] %v8360_v3  ;;  %v2187_v30 = vrot.slane %v2185_v53, 4  ;;  %v3496_v25 = vrot.slane %v2928_v39, 5  ;;  %v10104_v50 = vld [vmem:[#allocation11_spill] sm:$0xff]  ;;  %v7185_v40 = vld [vmem:[#allocation2 + $0xc0] sm:$0xff]   ;;  %v8371_v16 = vsel %vm7984_vm13, %v3488_v9, %v3489_v10  ;;  %v8375_v48 = vsel %vm7984_vm13, %v6013_v19, %v2185_v53 }
  0xf2   : > { %6741 = vmatmul.mubr.bf16.gmra.mxu1 %v10102_v5  ;;  %v10105_v15 = vcombine.low %v10104_v50, %v7931_v34  ;;  %10106 = vst [vmem:[#allocation11_spill] sm:$0xff] %v8375_v48  ;;  %v3495_v32 = vrot.slane %v3493_v43, 4  ;;  %v7270_v41 = vld [vmem:[#allocation2 + $0xa0] sm:$0xf]  ;;  %v8383_v34 = vsel %vm7984_vm13, %v6126_v47, %v3493_v43  ;;  %v6014_v21 = vrot.slane %v2061_v7, 9  ;;  %v10117_v11 = vld [vmem:[#allocation15_spill] sm:$0xff] }
  0xf3   : > { %v2192_v13 = vrot.slane %v7270_v41, 5  ;;  %v8379_v39 = vsel %vm7984_vm13, %v2187_v30, %v2188_v63  ;;  %v2931_v22 = vld [vmem:[#allocation2 + $0xbc] sm:$0x1]  ;;  %v3500_v44 = vrot.slane %v2930_v58, 5  ;;  %v7271_v19 = vld [vmem:[#allocation2 + $0xa4] sm:$0x1]  ;;  %6801 = vmatmul.mubr.bf16.gmra.mxu0 %v7185_v40 }
  0xf4   : > { %6744 = vmatprep.mubr.bf16.mxu1 %v10105_v15  ;;  %10107 = vst [vmem:[#allocation44_spill] sm:$0xff] %v8379_v39  ;;  %v8387_v9 = vsel %vm7984_vm13, %v3495_v32, %v3496_v25  ;;  %v2195_v53 = vrot.slane %v7271_v19, 5  ;;  %v6127_v5 = vrot.slane %v3350_v55, 9  ;;  %v999_v50 = vld [vmem:[#allocation2 + $0xc8] sm:$0x1]  ;;  %v3503_v15 = vrot.slane %v2931_v22, 5 }
  0xf5   : > { %10108 = vst [vmem:[#allocation45_spill] sm:$0xff] %v8387_v9  ;;  %v2194_v10 = vrot.slane %v2192_v13, 4  ;;  %v2062_v43 = vld [vmem:[#allocation2 + $0xa8] sm:$0xe]  ;;  %v2063_v58 = vld [vmem:[#allocation2 + $0xb4] sm:$0xe]  ;;  %v10109_v19 = vcombine.low %v8002_v52, %v8012_v51  ;;  %v8409_v40 = vsel %vm7984_vm13, %v6014_v21, %v2192_v13 }
  0xf6   : > { %v3502_v55 = vrot.slane %v3500_v44, 4  ;;  %v2199_v32 = vrot.slane %v7858_v28, 5  ;;  %v4108_v41 = vld [vmem:[#allocation2 + $0x18] sm:$0xf]  ;;  %v10110_v25 = vrot.slane %v7990_v49, 4  ;;  %v6015_v30 = vrot.slane %v2062_v43, 9 }
  0xf7   : > { %6868 = vmatprep.mubr.bf16.mxu0 %v10109_v19  ;;  %v8415_v63 = vld [vmem:[#allocation2 + $0xc0] sm:$0xe]  ;;  %v4109_v3 = vld [vmem:[#allocation2 + $0x1c] sm:$0xf]  ;;  %v4157_v52 = vld [vmem:[#allocation2 + $0x20] sm:$0x1]  ;;  %v8419_v51 = vsel %vm7984_vm13, %v2194_v10, %v2195_v53  ;;  %v8423_v19 = vsel %vm7984_vm13, %v6127_v5, %v3500_v44 }
  0xf8   : > { %v1000_v7 = vsel %vm7472_vm10, %v10110_v25, %v999_v50  ;;  %v10112_v13 = vld [vmem:[#allocation9_spill] sm:$0xff]  ;;  %v2933_v49 = vld [vmem:[#allocation2 + $0xc4] sm:$0xf]  ;;  %v6016_v25 = vrot.slane %v2063_v58, 9  ;;  %v2209_v35 = vrot.slane %v10117_v11, 5  ;;  %v4174_v10 = vshrl.u32 %v4108_v41, 16 }
  0xf9   : > { %v2202_v21 = vrot.slane %v10112_v13, 5  ;;  %1001 = vst [vmem:[#allocation2 + $0xc8] sm:$0x1] %v1000_v7  ;;  %v10113_v47 = vld [vmem:[#allocation4_spill] sm:$0xff]  ;;  %v10114_v22 = vld [vmem:[#allocation5_spill] sm:$0xff]  ;;  %v10118_v53 = vld [vmem:[#allocation6_spill] sm:$0xff]  ;;  %v8436_v44 = vsel %vm7984_vm13, %v3502_v55, %v3503_v15 }
  0xfa   : > { %v10115_v50 = vcombine.low %v10113_v47, %v10114_v22  ;;  %v10116_v39 = vld [vmem:[#allocation13_spill] sm:$0xff]  ;;  %v10119_v8 = vld [vmem:[#allocation7_spill] sm:$0xff]  ;;  %v2201_v5 = vrot.slane %v2199_v32, 4  ;;  %v6128_v7 = vrot.slane %v8415_v63, 9  ;;  %v4177_v43 = vshll.u32 %v4108_v41, 16 }
  0xfb   : > { %v2206_v48 = vrot.slane %v10116_v39, 5  ;;  %v10120_v56 = vcombine.low %v10118_v53, %v10119_v8  ;;  %v2887_v47 = vld [vmem:[#allocation2 + $0xc] sm:$0xf]  ;;  %v3507_v13 = vrot.slane %v2933_v49, 5  ;;  %v4176_v22 = vrot.slane %v4174_v10, 4  ;;  %v10121_v53 = vld [vmem:[#allocation12_spill] sm:$0xff] }
  0xfc   : > { %6745 = vmatmul.mubr.bf16.gmra.mxu1 %v10115_v50  ;;  %v4179_v8 = vrot.slane %v4177_v43, 5  ;;  %v4183_v50 = vshll.u32 %v4109_v3, 16  ;;  %v4187_v55 = vshrl.u32 %v4109_v3, 16  ;;  %v4193_v15 = vshll.u32 %v4157_v52, 16  ;;  %v4110_v3 = vld [vmem:[#allocation2 + $0x24] sm:$0xf] }
  0xfd   : > { %6748 = vmatprep.mubr.bf16.mxu1 %v10120_v56  ;;  %v8441_v58 = vsel %vm7984_vm13, %v6016_v25, %v2206_v48  ;;  %v2208_v11 = vrot.slane %v2206_v48, 4  ;;  %v7192_v56 = vld [vmem:[%s9986_s3 + $0x1f0] sm:$0xff]   ;;  %v2936_v41 = vshrl.u32 %v2887_v47, 16  ;;  %v2939_v49 = vshll.u32 %v2887_v47, 16  ;;  %v10134_v25 = vld [vmem:[#allocation21_spill] sm:$0xff] }
  0xfe   : > { %v2945_v46 = vshll.u32 %v10121_v53, 16  ;;  %v10122_v48 = vcombine.low %v8028_v31, %v8033_v4  ;;  %v4180_v10 = vor.u32 %v4179_v8, %v4176_v22  ;;  %v4185_v43 = vrot.slane %v4183_v50, 5  ;;  %v7194_v22 = vld [vmem:[%s9986_s3 + $0x1e8] sm:$0xff]  }
  0xff   : > { %v8448_v63 = vsel %vm7984_vm13, %v2208_v11, %v2209_v35  ;;  %v4189_v9 = vrot.slane %v4187_v55, 4  ;;  %v10123_v35 = vcombine.low %v8066_v12, %v8077_v61  ;;  %v8462_v52 = vsel %vm7984_vm13, %v6015_v30, %v2199_v32  ;;  %v10124_v12 = vld [vmem:[#allocation8_spill] sm:$0xff] }
 0x100   : > { %6869 = vmatmul.mubr.bf16.vlgmr.msra.gmra.mxu0 %v10122_v48  ;;  %v2934_v47 = vld [vmem:[#allocation2 + $0xc8] sm:$0x1]  ;;  %v3509_v31 = vrot.slane %v3507_v13, 4  ;;  %v2938_v4 = vrot.slane %v2936_v41, 4  ;;  %v2941_v11 = vrot.slane %v2939_v49, 5  ;;  %v2949_v61 = vshrl.u32 %v10121_v53, 16 }
 0x101   : > { %6949 = vmatpush3.bf16.msra.mxu0 %v8143_v6  ;;  %6872 = vmatprep.mubr.bf16.mxu0 %v10123_v35  ;;  %v4111_v48 = vld [vmem:[#allocation2 + $0x28] sm:$0xf]  ;;  %v3510_v8 = vrot.slane %v2934_v47, 5  ;;  %v4181_v6 = vrot.slane %v4180_v10, 4  ;;  %v4190_v50 = vor.u32 %v4189_v9, %v4185_v43  ;;  %v10125_v55 = vcombine.low %v7784_v60, %v10124_v12 }
 0x102   : > { %6950 = vmatprep.subr.bf16.mxu0 %v7192_v56  ;;  %v8473_v30 = vsel %vm7984_vm13, %v2201_v5, %v2202_v21  ;;  %v4195_v32 = vrot.slane %v4193_v15, 5  ;;  %v4198_v41 = vshrl.u32 %v4110_v3, 16  ;;  %v4201_v49 = vshll.u32 %v4110_v3, 16  ;;  %v10127_v15 = vld [vmem:[#allocation16_spill] sm:$0xff]  ;;  %v2890_v3 = vld [vmem:[#allocation2 + $0x18] sm:$0xf] }
 0x103   : > { %v10126_v35 = vcombine.low %v7852_v27, %v7858_v28  ;;  %v4191_v47 = vrot.slane %v4190_v50, 4  ;;  %v2942_v10 = vor.u32 %v2941_v11, %v2938_v4  ;;  %v8478_v9 = vrot.slane %v2945_v46, 5  ;;  %v7196_v28 = vld [vmem:[%s9986_s3 + $0x1e0] sm:$0xff]   ;;  %v4158_v4 = vld [vmem:[#allocation2 + $0x2c] sm:$0x1] }
 0x104   : > { %6749 = vmatmul.mubr.bf16.gmra.mxu1 %v10125_v55  ;;  %v2951_v53 = vrot.slane %v2949_v61, 4  ;;  %v6086_v60 = vcombine.low %v8409_v40, %v8419_v51  ;;  %v8484_v21 = vsel %vm7984_vm13, %v6128_v7, %v3507_v13  ;;  %v8488_v5 = vsel %vm7984_vm13, %v3509_v31, %v3510_v8 }
 0x105   : > { %6752 = vmatprep.mubr.bf16.mxu1 %v10126_v35  ;;  %6951 = vmatpush3.bf16.msra.mxu0 %v7192_v56  ;;  %v2955_v27 = vshll.u32 %v10127_v15, 16  ;;  %v6159_v46 = vcombine.low %v8423_v19, %v8436_v44  ;;  %v4186_v7 = vsel %vm7424_vm2, %v4181_v6, %v4185_v43  ;;  %v4207_v13 = vshll.u32 %v4111_v48, 16 }
 0x106   : > { %6952 = vmatprep.subr.bf16.mxu0 %v7194_v22  ;;  %v4196_v31 = vsel %vm7424_vm2, %v4191_v47, %v4195_v32  ;;  %v4200_v11 = vrot.slane %v4198_v41, 4  ;;  %v4203_v8 = vrot.slane %v4201_v49, 5  ;;  %v4211_v50 = vshrl.u32 %v4111_v48, 16 }
 0x107   : > { %v10128_v61 = vcombine.low %v8098_v20, %v8110_v2  ;;  %v6160_v12 = vcombine.low %v8484_v21, %v8488_v5  ;;  %v8507_v55 = vrot.slane %v2942_v10, 4  ;;  %v2952_v43 = vor.u32 %v2951_v53, %v8478_v9  ;;  %v4112_v20 = vld [vmem:[#allocation2 + $0x30] sm:$0xf]  ;;  %v7198_v2 = vld [vmem:[%s9986_s3 + $0x1d8] sm:$0xff]   ;;  %v10130_v53 = vld [vmem:[#allocation17_spill] sm:$0xff] }
 0x108   : > { %v8510_v6 = vrot.slane %v4207_v13, 5  ;;  %v10129_v32 = vcombine.low %v8134_v29, %v8147_v17  ;;  %v2957_v41 = vrot.slane %v2955_v27, 5  ;;  %v4213_v48 = vrot.slane %v4211_v50, 4  ;;  %v4113_v29 = vld [vmem:[#allocation2 + $0x34] sm:$0xf]  ;;  %v10179_v21 = vld [vmem:[#allocation43_spill] sm:$0xff] }
 0x109   : > { %6873 = vmatmul.mubr.bf16.gmra.mxu0 %v10128_v61  ;;  %v2960_v49 = vshrl.u32 %v2890_v3, 16  ;;  %v2963_v35 = vshll.u32 %v2890_v3, 16  ;;  %v8518_v47 = vcombine.low %v4186_v7, %v4196_v31  ;;  %v4217_v10 = vshll.u32 %v4158_v4, 16  ;;  %v10131_v17 = vld [vmem:[#allocation14_spill] sm:$0xff] }
 0x10a   : > { %6876 = vmatprep.mubr.bf16.mxu0 %v10129_v32  ;;  %6953 = vmatpush3.bf16.msra.mxu0 %v7194_v22  ;;  %v2969_v15 = vshll.u32 %v10130_v53, 16  ;;  %v2973_v13 = vshrl.u32 %v10130_v53, 16  ;;  %v10132_v22 = vcombine.low %v10131_v17, %v10116_v39  ;;  %v4204_v27 = vor.u32 %v4203_v8, %v4200_v11  ;;  %v10133_v32 = vld [vmem:[#allocation20_spill] sm:$0xff]  ;;  %v10136_v8 = vld [vmem:[#allocation18_spill] sm:$0xff]  ;;  %v4159_v17 = vld [vmem:[#allocation2 + $0x38] sm:$0x1] }
 0x10b   : > { %6954 = vmatprep.subr.bf16.mxu0 %v7196_v28  ;;  %v4214_v3 = vor.u32 %v4213_v48, %v8510_v6  ;;  %v2962_v50 = vrot.slane %v2960_v49, 4  ;;  %v2965_v61 = vrot.slane %v2963_v35, 5  ;;  %v10135_v56 = vcombine.low %v10133_v32, %v10134_v25  ;;  %v2893_v39 = vld [vmem:[#allocation2 + $0x24] sm:$0xf]  ;;  %v7200_v25 = vld [vmem:[%s9986_s3 + $0x1d0] sm:$0xff]  }
 0x10c   : > { %6753 = vmatmul.mubr.bf16.gmra.mxu1 %v10132_v22  ;;  %v2948_v7 = vsel %vm7424_vm2, %v8507_v55, %v8478_v9  ;;  %v2953_v31 = vrot.slane %v2952_v43, 4  ;;  %v8533_v4 = vrot.slane %v2969_v15, 5  ;;  %v2975_v53 = vrot.slane %v2973_v13, 4  ;;  %v10180_v5 = vld [vmem:[#allocation10_spill] sm:$0xff] }
 0x10d   : > { %6820 = vmatprep.mubr.bf16.mxu1 %v10135_v56  ;;  %v2966_v11 = vor.u32 %v2965_v61, %v2962_v50  ;;  %v2979_v48 = vshll.u32 %v10136_v8, 16  ;;  %v4222_v49 = vshrl.u32 %v4112_v20, 16  ;;  %v4225_v35 = vshll.u32 %v4112_v20, 16 }
 0x10e   : > { %6955 = vmatpush3.bf16.msra.mxu0 %v7196_v28  ;;  %v8539_v56 = vrot.slane %v4217_v10, 5  ;;  %v2976_v9 = vor.u32 %v2975_v53, %v8533_v4  ;;  %v4231_v55 = vshll.u32 %v4113_v29, 16  ;;  %v4235_v43 = vshrl.u32 %v4113_v29, 16  ;;  %v7191_v29 = vld [vmem:[%s9986_s3 + $0x130] sm:$0xff]  }
 0x10f   : > { %6956 = vmatprep.subr.bf16.mxu0 %v7198_v2  ;;  %v4205_v15 = vrot.slane %v4204_v27, 4  ;;  %v4215_v13 = vrot.slane %v4214_v3, 4  ;;  %v4224_v28 = vrot.slane %v4222_v49, 4  ;;  %v4227_v22 = vrot.slane %v4225_v35, 5  ;;  %v10139_v49 = vld [vmem:[#allocation19_spill] sm:$0xff] }
 0x110   : > { %v10137_v50 = vcombine.low %v8160_v24, %v8176_v42  ;;  %v2958_v20 = vsel %vm7424_vm2, %v2953_v31, %v2957_v41  ;;  %v2967_v61 = vrot.slane %v2966_v11, 4  ;;  %v8547_v32 = vrot.slane %v4231_v55, 5  ;;  %v7202_v41 = vld [vmem:[%s9986_s3 + $0x1c8] sm:$0xff]   ;;  %v4114_v55 = vld [vmem:[#allocation2 + $0x3c] sm:$0xf] }
 0x111   : > { %v4237_v10 = vrot.slane %v4235_v43, 4  ;;  %v10138_v27 = vcombine.low %v8206_v14, %v8210_v54  ;;  %v2977_v3 = vrot.slane %v2976_v9, 4  ;;  %v2981_v53 = vrot.slane %v2979_v48, 5  ;;  %v10140_v43 = vld [vmem:[#allocation22_spill] sm:$0xff]  ;;  %v10141_v14 = vld [vmem:[#allocation23_spill] sm:$0xff] }
 0x112   : > { %6877 = vmatmul.mubr.bf16.gmra.mxu0 %v10137_v50  ;;  %v4228_v24 = vor.u32 %v4227_v22, %v4224_v28  ;;  %v2984_v42 = vshrl.u32 %v2893_v39, 16  ;;  %v4241_v11 = vshll.u32 %v4159_v17, 16  ;;  %v2987_v8 = vshll.u32 %v2893_v39, 16  ;;  %v4115_v17 = vld [vmem:[#allocation2 + $0x40] sm:$0xf]  ;;  %v10144_v22 = vld [vmem:[#allocation25_spill] sm:$0xff] }
 0x113   : > { %6880 = vmatprep.mubr.bf16.mxu0 %v10138_v27  ;;  %6957 = vmatpush3.bf16.msra.mxu0 %v7198_v2  ;;  %v4238_v31 = vor.u32 %v4237_v10, %v8547_v32  ;;  %v2993_v35 = vshll.u32 %v10139_v49, 16  ;;  %v10142_v54 = vcombine.low %v10140_v43, %v10141_v14  ;;  %v8563_v2 = vcombine.low %v2948_v7, %v2958_v20  ;;  %v10143_v39 = vld [vmem:[#allocation24_spill] sm:$0xff]  ;;  %v2896_v43 = vld [vmem:[#allocation2 + $0x30] sm:$0xf] }
 0x114   : > { %6958 = vmatprep.subr.bf16.mxu0 %v7200_v25  ;;  %v4210_v48 = vsel %vm7424_vm2, %v4205_v15, %v8510_v6  ;;  %v4220_v9 = vsel %vm7424_vm2, %v4215_v13, %v8539_v56  ;;  %v2986_v28 = vrot.slane %v2984_v42, 4  ;;  %v10145_v50 = vcombine.low %v10143_v39, %v10144_v22  ;;  %v7272_v6 = vld [vmem:[#allocation2 + $0x28] sm:$0xf]  ;;  %v4160_v27 = vld [vmem:[#allocation2 + $0x44] sm:$0x1] }
 0x115   : > { %6821 = vmatmul.mubr.bf16.vlgmr.msra.gmra.mxu1 %v10142_v54  ;;  %v2972_v7 = vsel %vm7424_vm2, %v2967_v61, %v8533_v4  ;;  %v2989_v20 = vrot.slane %v2987_v8, 5  ;;  %v8578_v10 = vrot.slane %v2993_v35, 5  ;;  %v2997_v15 = vshrl.u32 %v7272_v6, 16  ;;  %v7193_v56 = vld [vmem:[%s9986_s3 + $0x128] sm:$0xff]   ;;  %v7204_v14 = vld [vmem:[%s9986_s3 + $0x1c0] sm:$0xff]  }
 0x116   : > { %6901 = vmatpush3.bf16.msra.mxu1 %v8313_v33  ;;  %6824 = vmatprep.mubr.bf16.mxu1 %v10145_v50  ;;  %v2982_v33 = vsel %vm7424_vm2, %v2977_v3, %v2981_v53  ;;  %v8585_v13 = vrot.slane %v4228_v24, 4  ;;  %v4246_v42 = vshrl.u32 %v4114_v55, 16  ;;  %v4249_v49 = vshll.u32 %v4114_v55, 16 }
 0x117   : > { %6902 = vmatprep.subr.bf16.mxu1 %v7191_v29  ;;  %6959 = vmatpush3.bf16.msra.mxu0 %v7200_v25  ;;  %v4239_v4 = vrot.slane %v4238_v31, 4  ;;  %v4243_v61 = vrot.slane %v4241_v11, 5  ;;  %v2999_v8 = vrot.slane %v2997_v15, 4  ;;  %v4255_v35 = vshll.u32 %v4115_v17, 16  ;;  %v7273_v25 = vld [vmem:[#allocation2 + $0x2c] sm:$0x1] }
 0x118   : > { %6960 = vmatprep.subr.bf16.mxu0 %v7202_v41  ;;  %v2990_v54 = vor.u32 %v2989_v20, %v2986_v28  ;;  %v3003_v39 = vshll.u32 %v7273_v25, 16  ;;  %v4248_v22 = vrot.slane %v4246_v42, 4  ;;  %v4251_v3 = vrot.slane %v4249_v49, 5  ;;  %v7195_v28 = vld [vmem:[%s9986_s3 + $0x120] sm:$0xff]   ;;  %v10148_v20 = vld [vmem:[#allocation26_spill] sm:$0xff] }
 0x119   : > { %v10146_v53 = vcombine.low %v8246_v23, %v8257_v18  ;;  %v8593_v24 = vcombine.low %v4210_v48, %v4220_v9  ;;  %v3000_v31 = vor.u32 %v2999_v8, %v8578_v10  ;;  %v8596_v11 = vrot.slane %v4255_v35, 5  ;;  %v8609_v9 = vld [vmem:[%s9986_s3 + $0x238] sm:$0xff]   ;;  %v4116_v49 = vld [vmem:[#allocation2 + $0x48] sm:$0xf] }
 0x11a   : > { %6903 = vmatpush3.bf16.msra.mxu1 %v7191_v29  ;;  %v4259_v55 = vshrl.u32 %v4115_v17, 16  ;;  %v10147_v50 = vcombine.low %v8262_v38, %v8266_v57  ;;  %v8604_v29 = vcombine.low %v2972_v7, %v2982_v33  ;;  %v4252_v23 = vor.u32 %v4251_v3, %v4248_v22  ;;  %v10150_v8 = vld [vmem:[#allocation27_spill] sm:$0xff] }
 0x11b   : > { %6881 = vmatmul.mubr.bf16.gmra.mxu0 %v10146_v53  ;;  %6904 = vmatprep.subr.bf16.mxu1 %v7193_v56  ;;  %v4265_v18 = vshll.u32 %v4160_v27, 16  ;;  %v3008_v48 = vshrl.u32 %v2896_v43, 16  ;;  %v4234_v17 = vsel %vm7424_vm2, %v8585_v13, %v8547_v32  ;;  %v4244_v57 = vsel %vm7424_vm2, %v4239_v4, %v4243_v61  ;;  %v7274_v27 = vld [vmem:[#allocation2 + $0x34] sm:$0xf]  ;;  %v10151_v32 = vld [vmem:[#allocation28_spill] sm:$0xff] }
 0x11c   : > { %6884 = vmatprep.mubr.bf16.mxu0 %v10147_v50  ;;  %6961 = vmatpush3.bf16.msra.mxu0 %v7202_v41  ;;  %v4261_v38 = vrot.slane %v4259_v55, 4  ;;  %v3011_v7 = vshll.u32 %v2896_v43, 16  ;;  %v10149_v6 = vcombine.low %v8126_v1, %v10148_v20  ;;  %v8620_v41 = vrot.slane %v2990_v54, 4  ;;  %v4117_v43 = vld [vmem:[#allocation2 + $0x4c] sm:$0xf]  ;;  %v7197_v54 = vld [vmem:[%s9986_s3 + $0x118] sm:$0xff]  }
 0x11d   : > { %6962 = vmatprep.subr.bf16.mxu0 %v7204_v14  ;;  %v8622_v15 = vrot.slane %v3003_v39, 5  ;;  %v3010_v33 = vrot.slane %v3008_v48, 4  ;;  %v3017_v42 = vshll.u32 %v7274_v27, 16  ;;  %v10152_v13 = vcombine.low %v10150_v8, %v10151_v32  ;;  %v7275_v3 = vld [vmem:[#allocation2 + $0x38] sm:$0x1] }
 0x11e   : > { %6825 = vmatmul.mubr.bf16.gmra.mxu1 %v10149_v6  ;;  %v3001_v4 = vrot.slane %v3000_v31, 4  ;;  %v4262_v61 = vor.u32 %v4261_v38, %v8596_v11  ;;  %v3013_v35 = vrot.slane %v3011_v7, 5  ;;  %v3021_v1 = vshrl.u32 %v7274_v27, 16  ;;  %v2899_v6 = vld [vmem:[#allocation2 + $0x3c] sm:$0xf] }
 0x11f   : > { %6828 = vmatprep.mubr.bf16.mxu1 %v10152_v13  ;;  %6905 = vmatpush3.bf16.msra.mxu1 %v7193_v56  ;;  %v4253_v25 = vrot.slane %v4252_v23, 4  ;;  %v4267_v39 = vrot.slane %v4265_v18, 5  ;;  %v8631_v22 = vrot.slane %v3017_v42, 5  ;;  %v3027_v53 = vshll.u32 %v7275_v3, 16  ;;  %v10153_v23 = vld [vmem:[#allocation37_spill] sm:$0xff]  ;;  %v10154_v18 = vld [vmem:[#allocation38_spill] sm:$0xff] }
 0x120   : > { %6906 = vmatprep.subr.bf16.mxu1 %v7195_v28  ;;  %6963 = vmatpush3.bf16.msra.mxu0 %v7204_v14  ;;  %v4263_v55 = vrot.slane %v4262_v61, 4  ;;  %v3014_v56 = vor.u32 %v3013_v35, %v3010_v33  ;;  %v3023_v31 = vrot.slane %v3021_v1, 4  ;;  %v4270_v50 = vshrl.u32 %v4116_v49, 16 }
 0x121   : > { %7044 = vmatprep.subr.bf16.mxu0 %v8609_v9  ;;  %v8634_v48 = vcombine.low %v4234_v17, %v4244_v57  ;;  %v4273_v38 = vshll.u32 %v4116_v49, 16  ;;  %v4279_v7 = vshll.u32 %v4117_v43, 16  ;;  %v4283_v20 = vshrl.u32 %v4117_v43, 16  ;;  %v4161_v57 = vld [vmem:[#allocation2 + $0x50] sm:$0x1] }
 0x122   : > { %v10155_v27 = vcombine.low %v10153_v23, %v10154_v18  ;;  %v2996_v14 = vsel %vm7424_vm2, %v8620_v41, %v8578_v10  ;;  %v3006_v33 = vsel %vm7424_vm2, %v3001_v4, %v8622_v15  ;;  %v3024_v17 = vor.u32 %v3023_v31, %v8631_v22  ;;  %v7199_v49 = vld [vmem:[%s9986_s3 + $0x110] sm:$0xff]  }
 0x123   : > { %6907 = vmatpush3.bf16.msra.mxu1 %v7195_v28  ;;  %v4272_v42 = vrot.slane %v4270_v50, 4  ;;  %v10156_v28 = vcombine.low %v8325_v0, %v8332_v62  ;;  %v3015_v8 = vrot.slane %v3014_v56, 4  ;;  %v4275_v32 = vrot.slane %v4273_v38, 5  ;;  %v10157_v0 = vld [vmem:[#allocation29_spill] sm:$0xff]  ;;  %v10158_v62 = vld [vmem:[#allocation30_spill] sm:$0xff]  ;;  %v10160_v38 = vld [vmem:[#allocation31_spill] sm:$0xff] }
 0x124   : > { %6885 = vmatmul.mubr.bf16.gmra.mxu0 %v10155_v27  ;;  %6908 = vmatprep.subr.bf16.mxu1 %v7197_v54  ;;  %v8653_v10 = vrot.slane %v4279_v7, 5  ;;  %v4285_v41 = vrot.slane %v4283_v20, 4  ;;  %v4258_v15 = vsel %vm7424_vm2, %v4253_v25, %v8596_v11  ;;  %v4268_v13 = vsel %vm7424_vm2, %v4263_v55, %v4267_v39  ;;  %v7276_v56 = vld [vmem:[#allocation2 + $0x40] sm:$0xf]  ;;  %v4118_v50 = vld [vmem:[#allocation2 + $0x54] sm:$0xf] }
 0x125   : > { %6888 = vmatprep.mubr.bf16.mxu0 %v10156_v28  ;;  %v3029_v4 = vrot.slane %v3027_v53, 5  ;;  %v3032_v61 = vshrl.u32 %v2899_v6, 16  ;;  %v10159_v35 = vcombine.low %v10157_v0, %v10158_v62  ;;  %v3025_v1 = vrot.slane %v3024_v17, 4  ;;  %v10161_v7 = vld [vmem:[#allocation32_spill] sm:$0xff]  ;;  %v7201_v55 = vld [vmem:[%s9986_s3 + $0x108] sm:$0xff]  }
 0x126   : > { %v4289_v43 = vshll.u32 %v4161_v57, 16  ;;  %v3035_v3 = vshll.u32 %v2899_v6, 16  ;;  %v3041_v31 = vshll.u32 %v7276_v56, 16  ;;  %v10162_v20 = vcombine.low %v10160_v38, %v10161_v7  ;;  %v7277_v57 = vld [vmem:[#allocation2 + $0x44] sm:$0x1]  ;;  %v10165_v38 = vld [vmem:[#allocation33_spill] sm:$0xff] }
 0x127   : > { %6829 = vmatmul.mubr.bf16.gmra.mxu1 %v10159_v35  ;;  %v4276_v11 = vor.u32 %v4275_v32, %v4272_v42  ;;  %v4286_v25 = vor.u32 %v4285_v41, %v8653_v10  ;;  %v3034_v39 = vrot.slane %v3032_v61, 4  ;;  %v3045_v53 = vshrl.u32 %v7276_v56, 16  ;;  %v4119_v28 = vld [vmem:[#allocation2 + $0x58] sm:$0xf]  ;;  %v10166_v7 = vld [vmem:[#allocation34_spill] sm:$0xff] }
 0x128   : > { %6832 = vmatprep.mubr.bf16.mxu1 %v10162_v20  ;;  %6909 = vmatpush3.bf16.msra.mxu1 %v7197_v54  ;;  %v8670_v23 = vcombine.low %v2996_v14, %v3006_v33  ;;  %v8672_v6 = vcombine.low %v4258_v15, %v4268_v13  ;;  %v3020_v18 = vsel %vm7424_vm2, %v3015_v8, %v8631_v22  ;;  %v3037_v27 = vrot.slane %v3035_v3, 5  ;;  %v4162_v33 = vld [vmem:[#allocation2 + $0x5c] sm:$0x1]  ;;  %v2902_v13 = vld [vmem:[#allocation2 + $0x48] sm:$0xf] }
 0x129   : > { %6910 = vmatprep.subr.bf16.mxu1 %v7199_v49  ;;  %v8677_v54 = vrot.slane %v3041_v31, 5  ;;  %v3047_v17 = vrot.slane %v3045_v53, 4  ;;  %v3051_v42 = vshll.u32 %v7277_v57, 16  ;;  %v4294_v32 = vshrl.u32 %v4118_v50, 16  ;;  %v10168_v53 = vld [vmem:[#allocation35_spill] sm:$0xff] }
 0x12a   : > { %v3030_v41 = vsel %vm7424_vm2, %v3025_v1, %v3029_v4  ;;  %v8681_v61 = vrot.slane %v4289_v43, 5  ;;  %v3038_v14 = vor.u32 %v3037_v27, %v3034_v39  ;;  %v4297_v15 = vshll.u32 %v4118_v50, 16  ;;  %v7203_v1 = vld [vmem:[%s9986_s3 + $0x100] sm:$0xff]  }
 0x12b   : > { %v10163_v22 = vcombine.low %v8340_v37, %v8349_v45  ;;  %v8686_v8 = vrot.slane %v4276_v11, 4  ;;  %v8688_v0 = vrot.slane %v4286_v25, 4  ;;  %v3048_v62 = vor.u32 %v3047_v17, %v8677_v54  ;;  %v4120_v39 = vld [vmem:[#allocation2 + $0x60] sm:$0xf] }
 0x12c   : > { %6911 = vmatpush3.bf16.msra.mxu1 %v7199_v49  ;;  %v4296_v35 = vrot.slane %v4294_v32, 4  ;;  %v10164_v4 = vcombine.low %v8364_v36, %v8371_v16  ;;  %v8697_v43 = vrot.slane %v3038_v14, 4  ;;  %v4299_v37 = vrot.slane %v4297_v15, 5  ;;  %v10169_v27 = vld [vmem:[#allocation36_spill] sm:$0xff]  ;;  %v8718_v32 = vld [vmem:[%s9986_s3 + $0x1b8] sm:$0xff]  }
 0x12d   : > { %6889 = vmatmul.mubr.bf16.gmra.mxu0 %v10163_v22  ;;  %6912 = vmatprep.subr.bf16.mxu1 %v7201_v55  ;;  %v4303_v45 = vshll.u32 %v4119_v28, 16  ;;  %v4307_v49 = vshrl.u32 %v4119_v28, 16  ;;  %v8699_v3 = vcombine.low %v3020_v18, %v3030_v41  ;;  %v3053_v56 = vrot.slane %v3051_v42, 5  ;;  %v7278_v14 = vld [vmem:[#allocation2 + $0x4c] sm:$0xf] }
 0x12e   : > { %6892 = vmatprep.mubr.bf16.mxu0 %v10164_v4  ;;  %v4313_v31 = vshll.u32 %v4162_v33, 16  ;;  %v3056_v50 = vshrl.u32 %v2902_v13, 16  ;;  %v10167_v20 = vcombine.low %v10165_v38, %v10166_v7  ;;  %v3049_v36 = vrot.slane %v3048_v62, 4  ;;  %v4163_v4 = vld [vmem:[#allocation2 + $0x68] sm:$0x1] }
 0x12f   : > { %v4300_v16 = vor.u32 %v4299_v37, %v4296_v35  ;;  %v4305_v11 = vrot.slane %v4303_v45, 5  ;;  %v4309_v25 = vrot.slane %v4307_v49, 4  ;;  %v10170_v17 = vcombine.low %v10168_v53, %v10169_v27  ;;  %v10171_v45 = vld [vmem:[#allocation45_spill] sm:$0xff]  ;;  %v2905_v7 = vld [vmem:[#allocation2 + $0x54] sm:$0xf]  ;;  %v10173_v53 = vld [vmem:[#allocation39_spill] sm:$0xff] }
 0x130   : > { %6833 = vmatmul.mubr.bf16.gmra.mxu1 %v10167_v20  ;;  %v4282_v18 = vsel %vm7424_vm2, %v8686_v8, %v8653_v10  ;;  %v4292_v57 = vsel %vm7424_vm2, %v8688_v0, %v8681_v61  ;;  %v3058_v42 = vrot.slane %v3056_v50, 4  ;;  %v3059_v28 = vshll.u32 %v2902_v13, 16  ;;  %v4121_v8 = vld [vmem:[#allocation2 + $0x64] sm:$0xf] }
 0x131   : > { %6836 = vmatprep.mubr.bf16.mxu1 %v10170_v17  ;;  %6913 = vmatpush3.bf16.msra.mxu1 %v7201_v55  ;;  %v3044_v55 = vsel %vm7424_vm2, %v8697_v43, %v8677_v54  ;;  %v4301_v41 = vrot.slane %v4300_v16, 4  ;;  %v4310_v10 = vor.u32 %v4309_v25, %v4305_v11  ;;  %v3065_v33 = vshll.u32 %v7278_v14, 16  ;;  %v10174_v27 = vld [vmem:[#allocation40_spill] sm:$0xff] }
 0x132   : > { %6914 = vmatprep.subr.bf16.mxu1 %v7203_v1  ;;  %v4315_v15 = vrot.slane %v4313_v31, 5  ;;  %v3061_v22 = vrot.slane %v3059_v28, 5  ;;  %v3069_v61 = vshrl.u32 %v7278_v14, 16  ;;  %v4318_v13 = vshrl.u32 %v4120_v39, 16  ;;  %v7279_v31 = vld [vmem:[#allocation2 + $0x50] sm:$0x1] }
 0x133   : > { %v3054_v0 = vsel %vm7424_vm2, %v3049_v36, %v3053_v56  ;;  %v4311_v62 = vrot.slane %v4310_v10, 4  ;;  %v8726_v35 = vrot.slane %v3065_v33, 5  ;;  %v4321_v37 = vshll.u32 %v4120_v39, 16  ;;  %v10177_v28 = vld [vmem:[#allocation42_spill] sm:$0xff] }
 0x134   : > { %v10172_v54 = vcombine.low %v8383_v34, %v10171_v45  ;;  %v3062_v43 = vor.u32 %v3061_v22, %v3058_v42  ;;  %v3071_v49 = vrot.slane %v3069_v61, 4  ;;  %v3075_v50 = vshll.u32 %v7279_v31, 16  ;;  %v10176_v42 = vld [vmem:[#allocation41_spill] sm:$0xff]  ;;  %v4123_v31 = vld [vmem:[#allocation2 + $0x70] sm:$0xf] }
 0x135   : > { %6915 = vmatpush3.bf16.msra.mxu1 %v7203_v1  ;;  %v4320_v38 = vrot.slane %v4318_v13, 4  ;;  %v4306_v56 = vsel %vm7424_vm2, %v4301_v41, %v4305_v11  ;;  %v4323_v20 = vrot.slane %v4321_v37, 5  ;;  %v4327_v36 = vshll.u32 %v4121_v8, 16  ;;  %v7280_v13 = vld [vmem:[#allocation2 + $0x58] sm:$0xf] }
 0x136   : > { %6893 = vmatmul.mubr.bf16.gmra.mxu0 %v10172_v54  ;;  %6996 = vmatprep.subr.bf16.mxu1 %v8718_v32  ;;  %v4331_v34 = vshrl.u32 %v4121_v8, 16  ;;  %v4316_v1 = vsel %vm7424_vm2, %v4311_v62, %v4315_v15  ;;  %v8739_v16 = vrot.slane %v3062_v43, 4  ;;  %v3072_v25 = vor.u32 %v3071_v49, %v8726_v35  ;;  %v7281_v43 = vld [vmem:[#allocation2 + $0x5c] sm:$0x1] }
 0x137   : > { %6896 = vmatprep.mubr.bf16.mxu0 %v6159_v46  ;;  %v4337_v39 = vshll.u32 %v4163_v4, 16  ;;  %v10175_v19 = vcombine.low %v10173_v53, %v10174_v27  ;;  %v4324_v44 = vor.u32 %v4323_v20, %v4320_v38  ;;  %v8745_v46 = vrot.slane %v4327_v36, 5  ;;  %v4122_v4 = vld [vmem:[#allocation2 + $0x6c] sm:$0xf] }
 0x138   : > { %v4333_v17 = vrot.slane %v4331_v34, 4  ;;  %v3080_v11 = vshrl.u32 %v2905_v7, 16  ;;  %v10178_v41 = vcombine.low %v10176_v42, %v10177_v28  ;;  %v8750_v10 = vcombine.low %v4282_v18, %v4292_v57  ;;  %v10183_v42 = vld [vmem:[#allocation44_spill] sm:$0xff] }
 0x139   : > { %6837 = vmatmul.mubr.bf16.gmra.mxu1 %v10175_v19  ;;  %v8752_v14 = vcombine.low %v3044_v55, %v3054_v0  ;;  %v3077_v33 = vrot.slane %v3075_v50, 5  ;;  %v3083_v15 = vshll.u32 %v2905_v7, 16  ;;  %v3073_v22 = vrot.slane %v3072_v25, 4 }
 0x13a   : > { %6840 = vmatprep.mubr.bf16.mxu1 %v10178_v41  ;;  %v4334_v61 = vor.u32 %v4333_v17, %v8745_v46  ;;  %v3082_v8 = vrot.slane %v3080_v11, 4  ;;  %v3089_v62 = vshll.u32 %v7280_v13, 16  ;;  %v8755_v37 = vcombine.low %v4306_v56, %v4316_v1  ;;  %v4164_v56 = vld [vmem:[#allocation2 + $0x74] sm:$0x1]  ;;  %v10182_v11 = vld [vmem:[#allocation11_spill] sm:$0xff] }
 0x13b   : > { %v3085_v45 = vrot.slane %v3083_v15, 5  ;;  %v3093_v54 = vshrl.u32 %v7280_v13, 16  ;;  %v3099_v49 = vshll.u32 %v7281_v43, 16  ;;  %v3068_v18 = vsel %vm7424_vm2, %v8739_v16, %v8726_v35  ;;  %v2908_v16 = vld [vmem:[#allocation2 + $0x60] sm:$0xf] }
 0x13c   : > { %v4325_v57 = vrot.slane %v4324_v44, 4  ;;  %v4339_v55 = vrot.slane %v4337_v39, 5  ;;  %v3091_v0 = vrot.slane %v3089_v62, 5  ;;  %v4335_v50 = vrot.slane %v4334_v61, 4  ;;  %v4124_v62 = vld [vmem:[#allocation2 + $0x78] sm:$0xf] }
 0x13d   : > { %v3086_v38 = vor.u32 %v3085_v45, %v3082_v8  ;;  %v3095_v7 = vrot.slane %v3093_v54, 4  ;;  %v4342_v20 = vshrl.u32 %v4122_v4, 16  ;;  %v3078_v36 = vsel %vm7424_vm2, %v3073_v22, %v3077_v33  ;;  %v7282_v43 = vld [vmem:[#allocation2 + $0x64] sm:$0xf] }
 0x13e   : > { %6897 = vmatmul.mubr.bf16.gmra.mxu0 %v6160_v12  ;;  %v4345_v34 = vshll.u32 %v4122_v4, 16  ;;  %v4351_v1 = vshll.u32 %v4123_v31, 16  ;;  %v4355_v35 = vshrl.u32 %v4123_v31, 16  ;;  %v3101_v53 = vrot.slane %v3099_v49, 5  ;;  %v7208_v4 = vld [vmem:[%s9986_s3 + $0x230] sm:$0xff]  }
 0x13f   : > { %6964 = vmatprep.mubr.bf16.mxu0 %v8518_v47  ;;  %v3087_v25 = vrot.slane %v3086_v38, 4  ;;  %v3096_v39 = vor.u32 %v3095_v7, %v3091_v0  ;;  %v4344_v27 = vrot.slane %v4342_v20, 4  ;;  %v10181_v12 = vcombine.low %v10179_v21, %v10180_v5  ;;  %v8807_v21 = vld [vmem:[#allocation2 + $0x80] sm:$0x1] }
 0x140   : > { %v4330_v19 = vsel %vm7424_vm2, %v4325_v57, %v8745_v46  ;;  %v4347_v47 = vrot.slane %v4345_v34, 5  ;;  %v8773_v44 = vrot.slane %v4351_v1, 5  ;;  %v4357_v17 = vrot.slane %v4355_v35, 4  ;;  %v8797_v34 = vld [vmem:[#allocation2 + $0x7c] sm:$0xf] }
 0x141   : > { %6841 = vmatmul.mubr.bf16.gmra.mxu1 %v10181_v12  ;;  %v10184_v28 = vcombine.low %v10182_v11, %v10183_v42  ;;  %v4340_v41 = vsel %vm7424_vm2, %v4335_v50, %v4339_v55  ;;  %v3097_v33 = vrot.slane %v3096_v39, 4  ;;  %v4361_v15 = vshll.u32 %v4164_v56, 16  ;;  %v7283_v56 = vld [vmem:[#allocation2 + $0x68] sm:$0x1] }
 0x142   : > { %v3104_v22 = vshrl.u32 %v2908_v16, 16  ;;  %v3092_v61 = vsel %vm7424_vm2, %v3087_v25, %v3091_v0  ;;  %v4348_v8 = vor.u32 %v4347_v47, %v4344_v27  ;;  %v4358_v46 = vor.u32 %v4357_v17, %v8773_v44  ;;  %v2911_v25 = vld [vmem:[#allocation2 + $0x6c] sm:$0xf] }
 0x143   : > { %6844 = vmatprep.mubr.bf16.mxu1 %v10184_v28  ;;  %v3107_v13 = vshll.u32 %v2908_v16, 16  ;;  %v3102_v45 = vsel %vm7424_vm2, %v3097_v33, %v3101_v53  ;;  %v3113_v49 = vshll.u32 %v7282_v43, 16  ;;  %v3117_v31 = vshrl.u32 %v7282_v43, 16  ;;  %v4126_v33 = vld [vmem:[#allocation2 + $0x84] sm:$0xf] }
 0x144   : > { %v3106_v54 = vrot.slane %v3104_v22, 4  ;;  %v8788_v57 = vcombine.low %v3068_v18, %v3078_v36  ;;  %v8790_v55 = vcombine.low %v4330_v19, %v4340_v41  ;;  %v8792_v0 = vrot.slane %v4348_v8, 4  ;;  %v7285_v43 = vld [vmem:[#allocation2 + $0x74] sm:$0x1] }
 0x145   : > { %v3109_v50 = vrot.slane %v3107_v13, 5  ;;  %v8795_v38 = vrot.slane %v3113_v49, 5  ;;  %v3119_v7 = vrot.slane %v3117_v31, 4  ;;  %v3123_v20 = vshll.u32 %v7283_v56, 16  ;;  %v7284_v13 = vld [vmem:[#allocation2 + $0x70] sm:$0xf] }
 0x146   : > { %6965 = vmatmul.mubr.bf16.vlgmr.msra.gmra.mxu0 %v8593_v24  ;;  %v4366_v1 = vshrl.u32 %v4124_v62, 16  ;;  %v8801_v18 = vcombine.low %v3092_v61, %v3102_v45  ;;  %v4363_v36 = vrot.slane %v4361_v15, 5  ;;  %v4369_v16 = vshll.u32 %v4124_v62, 16  ;;  %v7210_v24 = vld [vmem:[%s9986_s3 + $0x228] sm:$0xff]  }
 0x147   : > { %7045 = vmatpush3.bf16.msra.mxu0 %v8609_v9  ;;  %6968 = vmatprep.mubr.bf16.mxu0 %v8634_v48  ;;  %v3110_v35 = vor.u32 %v3109_v50, %v3106_v54  ;;  %v4359_v39 = vrot.slane %v4358_v46, 4  ;;  %v3120_v53 = vor.u32 %v3119_v7, %v8795_v38  ;;  %v3125_v27 = vrot.slane %v3123_v20, 5  ;;  %v8838_v31 = vld [vmem:[#allocation2 + $0x88] sm:$0xf]  ;;  %v8843_v56 = vld [vmem:[#allocation2 + $0x8c] sm:$0x1] }
 0x148   : > { %7046 = vmatprep.subr.bf16.mxu0 %v7208_v4  ;;  %v4368_v9 = vrot.slane %v4366_v1, 4  ;;  %v4371_v5 = vrot.slane %v4369_v16, 5  ;;  %v4375_v12 = vshll.u32 %v8797_v34, 16  ;;  %v4379_v19 = vshrl.u32 %v8797_v34, 16  ;;  %v7214_v16 = vld [vmem:[%s9986_s3 + $0x218] sm:$0xff]  }
 0x149   : > { %6845 = vmatmul.mubr.bf16.gmra.mxu1 %v6086_v60  ;;  %v3111_v48 = vrot.slane %v3110_v35, 4  ;;  %v10185_v47 = vcombine.low %v8462_v52, %v8473_v30  ;;  %v4354_v17 = vsel %vm7424_vm2, %v8792_v0, %v8773_v44  ;;  %v3121_v11 = vrot.slane %v3120_v53, 4  ;;  %v7212_v44 = vld [vmem:[%s9986_s3 + $0x220] sm:$0xff]  }
 0x14a   : > { %v3128_v42 = vshrl.u32 %v2911_v25, 16  ;;  %v3131_v28 = vshll.u32 %v2911_v25, 16  ;;  %v4372_v40 = vor.u32 %v4371_v5, %v4368_v9  ;;  %v8821_v51 = vrot.slane %v4375_v12, 5 }
 0x14b   : > { %6848 = vmatprep.mubr.bf16.mxu1 %v10185_v47  ;;  %7047 = vmatpush3.bf16.msra.mxu0 %v7208_v4  ;;  %v4381_v60 = vrot.slane %v4379_v19, 4  ;;  %v4385_v41 = vshll.u32 %v8807_v21, 16  ;;  %v4364_v52 = vsel %vm7424_vm2, %v4359_v39, %v4363_v36  ;;  %v3116_v30 = vsel %vm7424_vm2, %v3111_v48, %v8795_v38  ;;  %v8836_v4 = vpop.f32.mrf.mxu0 }
 0x14c   : > { %7048 = vmatprep.subr.bf16.mxu0 %v7210_v24  ;;  %v3130_v15 = vrot.slane %v3128_v42, 4  ;;  %v3133_v22 = vrot.slane %v3131_v28, 5  ;;  %v3126_v61 = vsel %vm7424_vm2, %v3121_v11, %v3125_v27  ;;  %v4373_v8 = vrot.slane %v4372_v40, 4  ;;  %v2914_v27 = vld [vmem:[#allocation2 + $0x78] sm:$0xf]  ;;  %v7216_v40 = vld [vmem:[%s9986_s3 + $0x210] sm:$0xff]  }
 0x14d   : > { %v4382_v46 = vor.u32 %v4381_v60, %v8821_v51  ;;  %v3137_v62 = vshll.u32 %v7284_v13, 16  ;;  %v3141_v54 = vshrl.u32 %v7284_v13, 16  ;;  %v3147_v49 = vshll.u32 %v7285_v43, 16  ;;  %v8879_v13 = vld [vmem:[#allocation2 + $0x94] sm:$0xf] }
 0x14e   : > { %6969 = vmatmul.mubr.bf16.gmra.mxu0 %v8672_v6  ;;  %v3134_v45 = vor.u32 %v3133_v22, %v3130_v15  ;;  %v4390_v0 = vshrl.u32 %v4126_v33, 16  ;;  %v4387_v38 = vrot.slane %v4385_v41, 5  ;;  %v4393_v20 = vshll.u32 %v4126_v33, 16  ;;  %v7286_v41 = vld [vmem:[#allocation2 + $0x7c] sm:$0xf] }
 0x14f   : > { %6972 = vmatprep.mubr.bf16.mxu0 %v8750_v10  ;;  %7049 = vmatpush3.bf16.msra.mxu0 %v7210_v24  ;;  %v4383_v50 = vrot.slane %v4382_v46, 4  ;;  %v8841_v7 = vrot.slane %v3137_v62, 5  ;;  %v8845_v6 = vcombine.low %v4354_v17, %v4364_v52  ;;  %v8847_v1 = vcombine.low %v3116_v30, %v3126_v61  ;;  %v4128_v30 = vld [vmem:[#allocation2 + $0x90] sm:$0xf]  ;;  %v7287_v61 = vld [vmem:[#allocation2 + $0x80] sm:$0x1] }
 0x150   : > { %7050 = vmatprep.subr.bf16.mxu0 %v7212_v44  ;;  %v3143_v36 = vrot.slane %v3141_v54, 4  ;;  %v4392_v35 = vrot.slane %v4390_v0, 4  ;;  %v10186_v10 = vcombine.low %v8441_v58, %v8448_v63  ;;  %v4378_v25 = vsel %vm7424_vm2, %v4373_v8, %v8821_v51  ;;  %v8867_v63 = vpop.f32.mrf.mxu0  ;;  %v7207_v62 = vld [vmem:[%s9986_s3 + $0x1b0] sm:$0xff]  }
 0x151   : > { %v4395_v24 = vrot.slane %v4393_v20, 5  ;;  %v4399_v39 = vshll.u32 %v8838_v31, 16  ;;  %v4403_v53 = vshrl.u32 %v8838_v31, 16  ;;  %v8861_v9 = vrot.slane %v3134_v45, 4  ;;  %10187 = vst [vmem:[#allocation3_spill] sm:$0xff] %v8867_v63  ;;  %v7218_v20 = vld [vmem:[%s9986_s3 + $0x208] sm:$0xff]  }
 0x152   : > { %6849 = vmatmul.mubr.bf16.gmra.mxu1 %v10186_v10  ;;  %v3144_v48 = vor.u32 %v3143_v36, %v8841_v7  ;;  %v8864_v5 = vrot.slane %v3147_v49, 5  ;;  %v4409_v58 = vshll.u32 %v8843_v56, 16  ;;  %v4388_v12 = vsel %vm7424_vm2, %v4383_v50, %v4387_v38  ;;  %v8877_v46 = vpop.f32.mrf.mxu0  ;;  %v5191_v63 = vld [vmem:[#allocation2 + $0x6c] sm:$0xe] }
 0x153   : > { %6916 = vmatprep.mubr.bf16.mxu1 %v8563_v2  ;;  %7051 = vmatpush3.bf16.msra.mxu0 %v7212_v44  ;;  %v4396_v19 = vor.u32 %v4395_v24, %v4392_v35  ;;  %v4401_v47 = vrot.slane %v4399_v39, 5  ;;  %v4405_v17 = vrot.slane %v4403_v53, 4  ;;  %v3152_v42 = vshrl.u32 %v2914_v27, 16  ;;  %10188 = vst [vmem:[#allocation9_spill] sm:$0xff] %v8877_v46 }
 0x154   : > { %v8871_v11 = vrot.slane %v3144_v48, 4  ;;  %v4411_v2 = vrot.slane %v4409_v58, 5  ;;  %v3155_v28 = vshll.u32 %v2914_v27, 16  ;;  %7052 = vmatprep.subr.bf16.mxu0 %v7214_v16  ;;  %v3161_v33 = vshll.u32 %v7286_v41, 16  ;;  %v7209_v48 = vld [vmem:[%s9986_s3 + $0x1a8] sm:$0xff]  }
 0x155   : > { %v4397_v51 = vrot.slane %v4396_v19, 4  ;;  %v4406_v60 = vor.u32 %v4405_v17, %v4401_v47  ;;  %v3165_v52 = vshrl.u32 %v7286_v41, 16  ;;  %v6233_v44 = vcombine.low %v4378_v25, %v4388_v12  ;;  %v2917_v25 = vld [vmem:[#allocation2 + $0x84] sm:$0xf] }
 0x156   : > { %6973 = vmatmul.mubr.bf16.gmra.mxu0 %v8755_v37  ;;  %v3154_v15 = vrot.slane %v3152_v42, 4  ;;  %v3157_v22 = vrot.slane %v3155_v28, 5  ;;  %v3171_v8 = vshll.u32 %v7287_v61, 16  ;;  %v3140_v37 = vsel %vm7424_vm2, %v8861_v9, %v8841_v7 }
 0x157   : > { %6976 = vmatprep.mubr.bf16.mxu0 %v8790_v55  ;;  %v3150_v45 = vsel %vm7424_vm2, %v8871_v11, %v8864_v5  ;;  %v4407_v54 = vrot.slane %v4406_v60, 4  ;;  %v8893_v43 = vrot.slane %v3161_v33, 5  ;;  %7053 = vmatpush3.bf16.msra.mxu0 %v7214_v16  ;;  %v4402_v49 = vsel %vm7424_vm2, %v4397_v51, %v4401_v47  ;;  %v8897_v55 = vld [vmem:[#allocation2 + $0x98] sm:$0x1]  ;;  %v7288_v60 = vld [vmem:[#allocation2 + $0x88] sm:$0xf] }
 0x158   : > { %v3158_v0 = vor.u32 %v3157_v22, %v3154_v15  ;;  %v3167_v50 = vrot.slane %v3165_v52, 4  ;;  %v4414_v38 = vshrl.u32 %v4128_v30, 16  ;;  %7054 = vmatprep.subr.bf16.mxu0 %v7216_v40  ;;  %v4417_v35 = vshll.u32 %v4128_v30, 16  ;;  %v8922_v33 = vld [vmem:[#allocation2 + $0x9c] sm:$0xf]  ;;  %v7220_v52 = vld [vmem:[%s9986_s3 + $0x200] sm:$0xff]  }
 0x159   : > { %v4412_v36 = vsel %vm7424_vm2, %v4407_v54, %v4411_v2  ;;  %v4423_v16 = vshll.u32 %v8879_v13, 16  ;;  %v4427_v10 = vshrl.u32 %v8879_v13, 16  ;;  %v8912_v53 = vrot.slane %v3171_v8, 5  ;;  %v8934_v8 = vld [vmem:[#allocation2 + $0xa0] sm:$0xf] }
 0x15a   : > { %6917 = vmatmul.mubr.bf16.vlgmr.msra.gmra.mxu1 %v8604_v29  ;;  %v8909_v24 = vrot.slane %v3158_v0, 4  ;;  %v3168_v39 = vor.u32 %v3167_v50, %v8893_v43  ;;  %v8914_v29 = vpop.f32.mrf.mxu0  ;;  %v4416_v27 = vrot.slane %v4414_v38, 4  ;;  %v4419_v58 = vrot.slane %v4417_v35, 5  ;;  %v7211_v54 = vld [vmem:[%s9986_s3 + $0x1a0] sm:$0xff]   ;;  %v7289_v38 = vld [vmem:[#allocation2 + $0x8c] sm:$0x1] }
 0x15b   : > { %6997 = vmatpush3.bf16.msra.mxu1 %v8718_v32  ;;  %6920 = vmatprep.mubr.bf16.mxu1 %v8670_v23  ;;  %10189 = vst [vmem:[#allocation4_spill] sm:$0xff] %v8914_v29  ;;  %v4425_v12 = vrot.slane %v4423_v16, 5  ;;  %v4429_v19 = vrot.slane %v4427_v10, 4  ;;  %v4433_v32 = vshll.u32 %v8897_v55, 16  ;;  %v8920_v23 = vcombine.low %v4402_v49, %v4412_v36  ;;  %v8946_v16 = vpop.f32.mrf.mxu1  ;;  %v7290_v5 = vld [vmem:[#allocation2 + $0x94] sm:$0xf] }
 0x15c   : > { %6998 = vmatprep.subr.bf16.mxu1 %v7207_v62  ;;  %7055 = vmatpush3.bf16.msra.mxu0 %v7216_v40  ;;  %v3169_v47 = vrot.slane %v3168_v39, 4  ;;  %v3176_v17 = vshrl.u32 %v2917_v25, 16  ;;  %v3179_v2 = vshll.u32 %v2917_v25, 16  ;;  %v4420_v42 = vor.u32 %v4419_v58, %v4416_v27  ;;  %v8932_v30 = vpop.f32.mrf.mxu0  ;;  %10191 = vst [vmem:[#allocation13_spill] sm:$0xff] %v8946_v16  ;;  %v8952_v25 = vld [vmem:[#allocation2 + $0xa4] sm:$0x1] }
 0x15d   : > { %7056 = vmatprep.subr.bf16.mxu0 %v7218_v20  ;;  %v4430_v28 = vor.u32 %v4429_v19, %v4425_v12  ;;  %v4435_v51 = vrot.slane %v4433_v32, 5  ;;  %v3185_v41 = vshll.u32 %v7288_v60, 16  ;;  %v3164_v40 = vsel %vm7424_vm2, %v8909_v24, %v8893_v43  ;;  %10190 = vst [vmem:[#allocation5_spill] sm:$0xff] %v8932_v30  ;;  %v2920_v58 = vld [vmem:[#allocation2 + $0x90] sm:$0xf]  ;;  %v7213_v19 = vld [vmem:[%s9986_s3 + $0x198] sm:$0xff]  }
 0x15e   : > { %6977 = vmatmul.mubr.bf16.gmra.mxu0 %v8845_v6  ;;  %v3178_v15 = vrot.slane %v3176_v17, 4  ;;  %v3181_v22 = vrot.slane %v3179_v2, 5  ;;  %v3189_v61 = vshrl.u32 %v7288_v60, 16  ;;  %v3174_v6 = vsel %vm7424_vm2, %v3169_v47, %v8912_v53 }
 0x15f   : > { %6999 = vmatpush3.bf16.msra.mxu1 %v7207_v62  ;;  %6980 = vmatprep.mubr.bf16.mxu0 %v6233_v44  ;;  %v4421_v62 = vrot.slane %v4420_v42, 4  ;;  %v4431_v49 = vrot.slane %v4430_v28, 4  ;;  %v8942_v43 = vrot.slane %v3185_v41, 5  ;;  %v3195_v36 = vshll.u32 %v7289_v38, 16 }
 0x160   : > { %7000 = vmatprep.subr.bf16.mxu1 %v7209_v48  ;;  %v3182_v0 = vor.u32 %v3181_v22, %v3178_v15  ;;  %v3191_v50 = vrot.slane %v3189_v61, 4  ;;  %v4438_v35 = vshrl.u32 %v8922_v33, 16  ;;  %7057 = vmatpush3.bf16.msra.mxu0 %v7218_v20  ;;  %v4441_v24 = vshll.u32 %v8922_v33, 16 }
 0x161   : > { %v4426_v44 = vsel %vm7424_vm2, %v4421_v62, %v4425_v12  ;;  %v4436_v10 = vsel %vm7424_vm2, %v4431_v49, %v4435_v51  ;;  %v4447_v39 = vshll.u32 %v8934_v8, 16  ;;  %7058 = vmatprep.subr.bf16.mxu0 %v7220_v52  ;;  %v8960_v27 = vrot.slane %v3195_v36, 5  ;;  %v8962_v12 = vpop.f32.mrf.mxu0  ;;  %v8983_v51 = vpop.f32.mrf.mxu1  ;;  %v9000_v62 = vld [vmem:[#allocation2 + $0xac] sm:$0xf] }
 0x162   : > { %6921 = vmatmul.mubr.bf16.gmra.mxu1 %v8699_v3  ;;  %v6235_v20 = vcombine.low %v4426_v44, %v4436_v10  ;;  %v8957_v3 = vrot.slane %v3182_v0, 4  ;;  %v3192_v53 = vor.u32 %v3191_v50, %v8942_v43  ;;  %10192 = vst [vmem:[#allocation15_spill] sm:$0xff] %v8962_v12  ;;  %v4440_v32 = vrot.slane %v4438_v35, 4  ;;  %10193 = vst [vmem:[#allocation6_spill] sm:$0xff] %v8983_v51  ;;  %v7291_v50 = vld [vmem:[#allocation2 + $0x98] sm:$0x1] }
 0x163   : > { %6924 = vmatprep.mubr.bf16.mxu1 %v8752_v14  ;;  %7001 = vmatpush3.bf16.msra.mxu1 %v7209_v48  ;;  %v4443_v47 = vrot.slane %v4441_v24, 5  ;;  %v4449_v17 = vrot.slane %v4447_v39, 5  ;;  %v4451_v14 = vshrl.u32 %v8934_v8, 16  ;;  %v8978_v48 = vcombine.low %v3140_v37, %v3150_v45  ;;  %v8993_v45 = vpop.f32.mrf.mxu0  ;;  %v9005_v36 = vpop.f32.mrf.mxu1  ;;  %v5185_v12 = vld [vmem:[#allocation2 + $0x24] sm:$0xe] }
 0x164   : > { %7002 = vmatprep.subr.bf16.mxu1 %v7211_v54  ;;  %v8980_v2 = vcombine.low %v3164_v40, %v3174_v6  ;;  %v3193_v42 = vrot.slane %v3192_v53, 4  ;;  %v4457_v28 = vshll.u32 %v8952_v25, 16  ;;  %7059 = vmatpush3.bf16.msra.mxu0 %v7220_v52  ;;  %v3200_v15 = vshrl.u32 %v2920_v58, 16  ;;  %10194 = vst [vmem:[#allocation7_spill] sm:$0xff] %v8993_v45  ;;  %v8995_v52 = vld [vmem:[#allocation2 + $0xa8] sm:$0xf] }
 0x165   : > { %v4444_v60 = vor.u32 %v4443_v47, %v4440_v32  ;;  %v4453_v41 = vrot.slane %v4451_v14, 4  ;;  %v3203_v22 = vshll.u32 %v2920_v58, 16  ;;  %v3188_v7 = vsel %vm7424_vm2, %v8957_v3, %v8942_v43  ;;  %10195 = vst [vmem:[#allocation12_spill] sm:$0xff] %v9005_v36  ;;  %v9015_v53 = vpop.f32.mrf.mxu0  ;;  %v2923_v58 = vld [vmem:[#allocation2 + $0x9c] sm:$0xf] }
 0x166   : > { %6981 = vmatmul.mubr.bf16.gmra.mxu0 %v8920_v23  ;;  %v3198_v9 = vsel %vm7424_vm2, %v3193_v42, %v8960_v27  ;;  %v3209_v11 = vshll.u32 %v7290_v5, 16  ;;  %v3213_v37 = vshrl.u32 %v7290_v5, 16  ;;  %v4459_v61 = vrot.slane %v4457_v28, 5  ;;  %10196 = vst [vmem:[#allocation8_spill] sm:$0xff] %v9015_v53  ;;  %v5184_v53 = vld [vmem:[#allocation2 + $0x18] sm:$0xe] }
 0x167   : > { %7003 = vmatpush3.bf16.msra.mxu1 %v7211_v54  ;;  %6984 = vmatprep.mubr.bf16.mxu0 %v6235_v20  ;;  %v4445_v40 = vrot.slane %v4444_v60, 4  ;;  %v4454_v23 = vor.u32 %v4453_v41, %v4449_v17  ;;  %v7215_v54 = vld [vmem:[%s9986_s3 + $0x190] sm:$0xff]   ;;  %v3202_v6 = vrot.slane %v3200_v15, 4  ;;  %v3205_v49 = vrot.slane %v3203_v22, 5  ;;  %v9026_v41 = vpop.f32.mrf.mxu1 }
 0x168   : > { %7004 = vmatprep.subr.bf16.mxu1 %v7213_v19  ;;  %v9002_v43 = vrot.slane %v3209_v11, 5  ;;  %v3215_v0 = vrot.slane %v3213_v37, 4  ;;  %v3219_v38 = vshll.u32 %v7291_v50, 16  ;;  %v4462_v10 = vshrl.u32 %v8995_v52, 16  ;;  %10197 = vst [vmem:[#allocation16_spill] sm:$0xff] %v9026_v41 }
 0x169   : > { %v4450_v35 = vsel %vm7424_vm2, %v4445_v40, %v4449_v17  ;;  %v4455_v44 = vrot.slane %v4454_v23, 4  ;;  %v4465_v24 = vshll.u32 %v8995_v52, 16  ;;  %v3206_v39 = vor.u32 %v3205_v49, %v3202_v6  ;;  %v9034_v23 = vpop.f32.mrf.mxu0  ;;  %v7292_v6 = vld [vmem:[#allocation2 + $0xa0] sm:$0xf] }
 0x16a   : > { %6925 = vmatmul.mubr.bf16.gmra.mxu1 %v8788_v57  ;;  %v3216_v20 = vor.u32 %v3215_v0, %v9002_v43  ;;  %v9013_v3 = vrot.slane %v3219_v38, 5  ;;  %v9017_v57 = vld [vmem:[#allocation2 + $0xb0] sm:$0x1]  ;;  %v4471_v27 = vshll.u32 %v9000_v62, 16  ;;  %v4464_v47 = vrot.slane %v4462_v10, 4  ;;  %10198 = vst [vmem:[#allocation17_spill] sm:$0xff] %v9034_v23 }
 0x16b   : > { %6928 = vmatprep.mubr.bf16.mxu1 %v8801_v18  ;;  %7005 = vmatpush3.bf16.msra.mxu1 %v7213_v19  ;;  %v4460_v32 = vsel %vm7424_vm2, %v4455_v44, %v4459_v61  ;;  %v4467_v17 = vrot.slane %v4465_v24, 5  ;;  %v4475_v18 = vshrl.u32 %v9000_v62, 16  ;;  %v7217_v19 = vld [vmem:[%s9986_s3 + $0x188] sm:$0xff]   ;;  %v3207_v42 = vrot.slane %v3206_v39, 4  ;;  %v9036_v0 = vld [vmem:[#allocation2 + $0xb4] sm:$0xf]  ;;  %v9047_v39 = vpop.f32.mrf.mxu1 }
 0x16c   : > { %7006 = vmatprep.subr.bf16.mxu1 %v7215_v54  ;;  %v6236_v14 = vcombine.low %v4450_v35, %v4460_v32  ;;  %v3217_v28 = vrot.slane %v3216_v20, 4  ;;  %v4473_v60 = vrot.slane %v4471_v27, 5  ;;  %v4481_v5 = vshll.u32 %v9017_v57, 16  ;;  %v9041_v35 = vld [vmem:[#allocation2 + $0xb8] sm:$0xf]  ;;  %10199 = vst [vmem:[#allocation14_spill] sm:$0xff] %v9047_v39 }
 0x16d   : > { %v4468_v15 = vor.u32 %v4467_v17, %v4464_v47  ;;  %v4477_v22 = vrot.slane %v4475_v18, 4  ;;  %v3224_v11 = vshrl.u32 %v2923_v58, 16  ;;  %v9029_v37 = vcombine.low %v3188_v7, %v3198_v9  ;;  %v7293_v27 = vld [vmem:[#allocation2 + $0xa4] sm:$0x1]  ;;  %v9053_v18 = vld [vmem:[#allocation2 + $0xbc] sm:$0x1] }
 0x16e   : > { %6985 = vmatmul.mubr.bf16.gmra.mxu0 %v6236_v14  ;;  %v3212_v40 = vsel %vm7424_vm2, %v3207_v42, %v9002_v43  ;;  %v3227_v61 = vshll.u32 %v2923_v58, 16  ;;  %v3233_v49 = vshll.u32 %v7292_v6, 16  ;;  %v3222_v50 = vsel %vm7424_vm2, %v3217_v28, %v9013_v3  ;;  %v9057_v42 = vpop.f32.mrf.mxu0 }
 0x16f   : > { %7007 = vmatpush3.bf16.msra.mxu1 %v7215_v54  ;;  %v4469_v38 = vrot.slane %v4468_v15, 4  ;;  %v4478_v7 = vor.u32 %v4477_v22, %v4473_v60  ;;  %v4483_v9 = vrot.slane %v4481_v5, 5  ;;  %v7219_v54 = vld [vmem:[%s9986_s3 + $0x180] sm:$0xff]   ;;  %v3226_v43 = vrot.slane %v3224_v11, 4  ;;  %10200 = vst [vmem:[#allocation20_spill] sm:$0xff] %v9057_v42 }
 0x170   : > { %7008 = vmatprep.subr.bf16.mxu1 %v7217_v19  ;;  %v3229_v44 = vrot.slane %v3227_v61, 5  ;;  %v3235_v10 = vrot.slane %v3233_v49, 5  ;;  %v3237_v24 = vshrl.u32 %v7292_v6, 16  ;;  %v3243_v58 = vshll.u32 %v7293_v27, 16  ;;  %v2926_v5 = vld [vmem:[#allocation2 + $0xa8] sm:$0xf]  ;;  %v9069_v27 = vpop.f32.mrf.mxu0 }
 0x171   : > { %v4474_v20 = vsel %vm7424_vm2, %v4469_v38, %v4473_v60  ;;  %v4479_v3 = vrot.slane %v4478_v7, 4  ;;  %v4486_v32 = vshrl.u32 %v9036_v0, 16  ;;  %v4489_v14 = vshll.u32 %v9036_v0, 16  ;;  %v9064_v38 = vpop.f32.mrf.mxu1  ;;  %10202 = vst [vmem:[#allocation18_spill] sm:$0xff] %v9069_v27 }
 0x172   : > { %6929 = vmatmul.mubr.bf16.gmra.mxu1 %v8847_v1  ;;  %v3230_v47 = vor.u32 %v3229_v44, %v3226_v43  ;;  %v3239_v17 = vrot.slane %v3237_v24, 4  ;;  %v4495_v1 = vshll.u32 %v9041_v35, 16  ;;  %v3245_v60 = vrot.slane %v3243_v58, 5  ;;  %10201 = vst [vmem:[#allocation21_spill] sm:$0xff] %v9064_v38 }
 0x173   : > { %6932 = vmatprep.mubr.bf16.mxu1 %v8978_v48  ;;  %7009 = vmatpush3.bf16.msra.mxu1 %v7217_v19  ;;  %v4484_v28 = vsel %vm7424_vm2, %v4479_v3, %v4483_v9  ;;  %v4488_v15 = vrot.slane %v4486_v32, 4  ;;  %v4499_v22 = vshrl.u32 %v9041_v35, 16  ;;  %v4491_v6 = vrot.slane %v4489_v14, 5 }
 0x174   : > { %7010 = vmatprep.subr.bf16.mxu1 %v7219_v54  ;;  %v6237_v48 = vcombine.low %v4474_v20, %v4484_v28  ;;  %v3231_v11 = vrot.slane %v3230_v47, 4  ;;  %v3240_v61 = vor.u32 %v3239_v17, %v3235_v10  ;;  %v9062_v49 = vcombine.low %v3212_v40, %v3222_v50  ;;  %v7294_v50 = vld [vmem:[#allocation2 + $0xac] sm:$0xf]  ;;  %v9071_v47 = vld [vmem:[#allocation2 + $0xc0] sm:$0xf] }
 0x175   : > { %v4497_v19 = vrot.slane %v4495_v1, 5  ;;  %v4501_v7 = vrot.slane %v4499_v22, 4  ;;  %v4505_v43 = vshll.u32 %v9053_v18, 16  ;;  %v4492_v24 = vor.u32 %v4491_v6, %v4488_v15  ;;  %v9078_v15 = vpop.f32.mrf.mxu1 }
 0x176   : > { %6988 = vmatprep.mubr.bf16.mxu0 %v6237_v48  ;;  %v3236_v9 = vsel %vm7424_vm2, %v3231_v11, %v3235_v10  ;;  %v3241_v44 = vrot.slane %v3240_v61, 4  ;;  %v3248_v3 = vshrl.u32 %v2926_v5, 16  ;;  %v3251_v40 = vshll.u32 %v2926_v5, 16  ;;  %v9075_v10 = vld [vmem:[#allocation2 + $0xc4] sm:$0xf]  ;;  %10203 = vst [vmem:[#allocation19_spill] sm:$0xff] %v9078_v15 }
 0x177   : > { %7011 = vmatpush3.bf16.msra.mxu1 %v7219_v54  ;;  %v4502_v20 = vor.u32 %v4501_v7, %v4497_v19  ;;  %v4507_v58 = vrot.slane %v4505_v43, 5  ;;  %v3257_v32 = vshll.u32 %v7294_v50, 16  ;;  %v4493_v14 = vrot.slane %v4492_v24, 4  ;;  %v9083_v7 = vpop.f32.mrf.mxu0 }
 0x178   : > { %v3246_v17 = vsel %vm7424_vm2, %v3241_v44, %v3245_v60  ;;  %v3250_v1 = vrot.slane %v3248_v3, 4  ;;  %v3261_v28 = vshrl.u32 %v7294_v50, 16  ;;  %v3253_v48 = vrot.slane %v3251_v40, 5  ;;  %v7295_v60 = vld [vmem:[#allocation2 + $0xb0] sm:$0x1] }
 0x179   : > { %v6181_v54 = vcombine.low %v3236_v9, %v3246_v17  ;;  %v4503_v22 = vrot.slane %v4502_v20, 4  ;;  %v3259_v5 = vrot.slane %v3257_v32, 5  ;;  %v4498_v11 = vsel %vm7424_vm2, %v4493_v14, %v4497_v19  ;;  %v9088_v9 = vld [vmem:[#allocation2 + $0xc8] sm:$0x1]  ;;  %v2929_v3 = vld [vmem:[#allocation2 + $0xb4] sm:$0xf]  ;;  %v9092_v32 = vpop.f32.mrf.mxu1 }
 0x17a   : > { %6933 = vmatmul.mubr.bf16.gmra.mxu1 %v8980_v2  ;;  %v3263_v61 = vrot.slane %v3261_v28, 4  ;;  %v3267_v6 = vshll.u32 %v7295_v60, 16  ;;  %v4510_v43 = vshrl.u32 %v9071_v47, 16  ;;  %v3254_v44 = vor.u32 %v3253_v48, %v3250_v1  ;;  %10204 = vst [vmem:[#allocation22_spill] sm:$0xff] %v9092_v32 }
 0x17b   : > { %6936 = vmatprep.mubr.bf16.mxu1 %v9029_v37  ;;  %v4508_v2 = vsel %vm7424_vm2, %v4503_v22, %v4507_v58  ;;  %v4513_v24 = vshll.u32 %v9071_v47, 16  ;;  %v4519_v37 = vshll.u32 %v9075_v10, 16  ;;  %v4523_v60 = vshrl.u32 %v9075_v10, 16  ;;  %v9096_v22 = vpop.f32.mrf.mxu0 }
 0x17c   : > { %v6238_v20 = vcombine.low %v4498_v11, %v4508_v2  ;;  %v3264_v19 = vor.u32 %v3263_v61, %v3259_v5  ;;  %v3269_v40 = vrot.slane %v3267_v6, 5  ;;  %v4512_v50 = vrot.slane %v4510_v43, 4  ;;  %v7296_v61 = vld [vmem:[#allocation2 + $0xb8] sm:$0xf]  ;;  %v9098_v43 = vld [vmem:[#allocation2 + $0xcc] sm:$0xf] }
 0x17d   : > { %v3255_v17 = vrot.slane %v3254_v44, 4  ;;  %v4515_v14 = vrot.slane %v4513_v24, 5  ;;  %v4521_v28 = vrot.slane %v4519_v37, 5  ;;  %v4529_v1 = vshll.u32 %v9088_v9, 16 }
 0x17e   : > { %6989 = vmatmul.mubr.bf16.gmra.mxu0 %v6238_v20  ;;  %v3265_v58 = vrot.slane %v3264_v19, 4  ;;  %v3272_v48 = vshrl.u32 %v2929_v3, 16  ;;  %v3275_v15 = vshll.u32 %v2929_v3, 16  ;;  %v4525_v11 = vrot.slane %v4523_v60, 4  ;;  %v9104_v20 = vld [vmem:[#allocation2 + $0xd0] sm:$0xf]  ;;  %v9106_v19 = vpop.f32.mrf.mxu0  ;;  %v9109_v3 = vpop.f32.mrf.mxu1 }
 0x17f   : > { %v4516_v38 = vor.u32 %v4515_v14, %v4512_v50  ;;  %v3281_v6 = vshll.u32 %v7296_v61, 16  ;;  %v3260_v2 = vsel %vm7424_vm2, %v3255_v17, %v3259_v5  ;;  %10205 = vst [vmem:[#allocation23_spill] sm:$0xff] %v9109_v3  ;;  %v4531_v60 = vrot.slane %v4529_v1, 5  ;;  %v7297_v17 = vld [vmem:[#allocation2 + $0xbc] sm:$0x1] }
 0x180   : > { %v3270_v44 = vsel %vm7424_vm2, %v3265_v58, %v3269_v40  ;;  %v3274_v24 = vrot.slane %v3272_v48, 4  ;;  %v3277_v37 = vrot.slane %v3275_v15, 5  ;;  %v4526_v14 = vor.u32 %v4525_v11, %v4521_v28  ;;  %v9112_v15 = vpop.f32.mrf.mxu0 }
 0x181   : > { %v4517_v50 = vrot.slane %v4516_v38, 4  ;;  %v3283_v32 = vrot.slane %v3281_v6, 5  ;;  %v3285_v5 = vshrl.u32 %v7296_v61, 16  ;;  %v3291_v41 = vshll.u32 %v7297_v17, 16  ;;  %v9122_v17 = vpop.f32.mrf.mxu1 }
 0x182   : > { %6937 = vmatmul.mubr.bf16.gmra.mxu1 %v9062_v49  ;;  %v3278_v39 = vor.u32 %v3277_v37, %v3274_v24  ;;  %v4534_v40 = vshrl.u32 %v9098_v43, 16  ;;  %v4527_v48 = vrot.slane %v4526_v14, 4  ;;  %v9116_v49 = vld [vmem:[#allocation2 + $0xd4] sm:$0x1]  ;;  %v4537_v38 = vshll.u32 %v9098_v43, 16  ;;  %v9120_v37 = vpop.f32.mrf.mxu0  ;;  %10206 = vst [vmem:[#allocation24_spill] sm:$0xff] %v9122_v17 }
 0x183   : > { %6940 = vmatprep.mubr.bf16.mxu1 %v6181_v54  ;;  %v4522_v58 = vsel %vm7424_vm2, %v4517_v50, %v4521_v28  ;;  %v4543_v1 = vshll.u32 %v9104_v20, 16  ;;  %v6182_v11 = vcombine.low %v3260_v2, %v3270_v44  ;;  %v3287_v6 = vrot.slane %v3285_v5, 4  ;;  %v2932_v24 = vld [vmem:[#allocation2 + $0xc0] sm:$0xf] }
 0x184   : > { %v3279_v54 = vrot.slane %v3278_v39, 4  ;;  %v4536_v61 = vrot.slane %v4534_v40, 4  ;;  %v4532_v3 = vsel %vm7424_vm2, %v4527_v48, %v4531_v60  ;;  %v4539_v28 = vrot.slane %v4537_v38, 5  ;;  %v9128_v39 = vpop.f32.mrf.mxu0  ;;  %v7298_v38 = vld [vmem:[#allocation2 + $0xc4] sm:$0xf] }
 0x185   : > { %v4545_v50 = vrot.slane %v4543_v1, 5  ;;  %v4547_v14 = vshrl.u32 %v9104_v20, 16  ;;  %v6239_v36 = vcombine.low %v4522_v58, %v4532_v3  ;;  %v3288_v51 = vor.u32 %v3287_v6, %v3283_v32  ;;  %10207 = vst [vmem:[#allocation25_spill] sm:$0xff] %v9128_v39 }
 0x186   : > { %v3293_v16 = vrot.slane %v3291_v41, 5  ;;  %v4553_v2 = vshll.u32 %v9116_v49, 16  ;;  %v3284_v44 = vsel %vm7424_vm2, %v3279_v54, %v3283_v32  ;;  %v4540_v5 = vor.u32 %v4539_v28, %v4536_v61  ;;  %v9132_v42 = vpop.f32.mrf.mxu0  ;;  %v9134_v41 = vpop.f32.mrf.mxu1 }
 0x187   : > { %v4549_v40 = vrot.slane %v4547_v14, 4  ;;  %v3296_v17 = vshrl.u32 %v2932_v24, 16  ;;  %6992 = vmatprep.mubr.bf16.mxu0 %v6239_v36  ;;  %v3289_v27 = vrot.slane %v3288_v51, 4  ;;  %v3299_v48 = vshll.u32 %v2932_v24, 16  ;;  %10208 = vst [vmem:[#allocation26_spill] sm:$0xff] %v9132_v42  ;;  %10209 = vst [vmem:[#allocation27_spill] sm:$0xff] %v9134_v41 }
 0x188   : > { %v4555_v60 = vrot.slane %v4553_v2, 5  ;;  %v3305_v1 = vshll.u32 %v7298_v38, 16  ;;  %v4541_v3 = vrot.slane %v4540_v5, 4  ;;  %v3309_v23 = vshrl.u32 %v7298_v38, 16  ;;  %v7299_v51 = vld [vmem:[#allocation2 + $0xc8] sm:$0x1]  ;;  %v9138_v24 = vpop.f32.mrf.mxu0 }
 0x189   : > { %v4550_v58 = vor.u32 %v4549_v40, %v4545_v50  ;;  %v3298_v6 = vrot.slane %v3296_v17, 4  ;;  %v3294_v32 = vsel %vm7424_vm2, %v3289_v27, %v3293_v16  ;;  %v3301_v54 = vrot.slane %v3299_v48, 5  ;;  %10210 = vst [vmem:[#allocation28_spill] sm:$0xff] %v9138_v24  ;;  %v7300_v5 = vld [vmem:[#allocation2 + $0x2c] sm:$0x1]  ;;  %v9144_v27 = vpop.f32.mrf.mxu1 }
 0x18a   : > { %6941 = vmatmul.mubr.bf16.gmra.mxu1 %v6182_v11  ;;  %v3307_v36 = vrot.slane %v3305_v1, 5  ;;  %v3315_v61 = vshll.u32 %v7299_v51, 16  ;;  %v6183_v28 = vcombine.low %v3284_v44, %v3294_v32  ;;  %v4546_v11 = vsel %vm7424_vm2, %v4541_v3, %v4545_v50  ;;  %v7301_v41 = vld [vmem:[#allocation2 + $0x1c] sm:$0xf]  ;;  %v9142_v16 = vpop.f32.mrf.mxu0  ;;  %v7302_v50 = vld [vmem:[#allocation2 + $0x20] sm:$0x1] }
 0x18b   : > { %v4551_v14 = vrot.slane %v4550_v58, 4  ;;  %v3311_v2 = vrot.slane %v3309_v23, 4  ;;  %v5244_v40 = vrot.slane %v7300_v5, 5  ;;  %v3302_v17 = vor.u32 %v3301_v54, %v3298_v6  ;;  %10211 = vst [vmem:[#allocation37_spill] sm:$0xff] %v9142_v16  ;;  %v5186_v23 = vld [vmem:[#allocation2 + $0x30] sm:$0xe] }
 0x18c   : > { %v6273_v38 = vrot.slane %v5184_v53, 9  ;;  %v5234_v45 = vrot.slane %v7301_v41, 5  ;;  %6944 = vmatprep.mubr.bf16.mxu1 %v6183_v28  ;;  %v3317_v1 = vrot.slane %v3315_v61, 5  ;;  %v5237_v3 = vrot.slane %v7302_v50, 5  ;;  %v9150_v54 = vpop.f32.mrf.mxu0  ;;  %v7303_v5 = vld [vmem:[#allocation2 + $0x18] sm:$0xf] }
 0x18d   : > { %v4556_v44 = vsel %vm7424_vm2, %v4551_v14, %v4555_v60  ;;  %v3312_v48 = vor.u32 %v3311_v2, %v3307_v36  ;;  %v3303_v32 = vrot.slane %v3302_v17, 4  ;;  %10212 = vst [vmem:[#allocation38_spill] sm:$0xff] %v9150_v54  ;;  %v6249_v30 = vcombine.low %v7303_v5, %v7301_v41  ;;  %v9152_v16 = vld [vmem:[#allocation2 + $0x28] sm:$0xf]  ;;  %v9159_v2 = vld [vmem:[#allocation2 + $0x34] sm:$0xf]  ;;  %v9164_v41 = vpop.f32.mrf.mxu1 }
 0x18e   : > { %v6240_v58 = vcombine.low %v4546_v11, %v4556_v44  ;;  %v5235_v53 = vsel %vm7984_vm13, %v6273_v38, %v5234_v45  ;;  %v5236_v6 = vrot.slane %v5234_v45, 4  ;;  %v6274_v28 = vrot.slane %v5185_v12, 9  ;;  %v9162_v17 = vpop.f32.mrf.mxu0  ;;  %v9220_v42 = vld [vmem:[#allocation2 + $0x70] sm:$0xf] }
 0x18f   : > { %v3313_v51 = vrot.slane %v3312_v48, 4  ;;  %v5241_v60 = vrot.slane %v9152_v16, 5  ;;  %v3308_v61 = vsel %vm7424_vm2, %v3303_v32, %v3307_v36  ;;  %v6275_v14 = vrot.slane %v5186_v23, 9  ;;  %10213 = vst [vmem:[#allocation29_spill] sm:$0xff] %v9162_v17  ;;  %v7306_v23 = vld [vmem:[#allocation2 + $0x38] sm:$0x1]  ;;  %v9174_v5 = vpop.f32.mrf.mxu1 }
 0x190   : > { %6993 = vmatmul.mubr.bf16.gmra.mxu0 %v6240_v58  ;;  %v5238_v11 = vsel %vm7984_vm13, %v5236_v6, %v5237_v3  ;;  %v5248_v45 = vrot.slane %v9159_v2, 5  ;;  %v5251_v58 = vrot.slane %v7306_v23, 5  ;;  %v5187_v32 = vld [vmem:[#allocation2 + $0x3c] sm:$0xe]  ;;  %v9172_v6 = vpop.f32.mrf.mxu0  ;;  %v7310_v17 = vld [vmem:[#allocation2 + $0x50] sm:$0x1]  ;;  %v6260_v59 = vcombine.low %v8922_v33, %v8934_v8 }
 0x191   : > { %v3318_v12 = vsel %vm7424_vm2, %v3313_v51, %v3317_v1  ;;  %v6305_v38 = vcombine.low %v5235_v53, %v5238_v11  ;;  %v5242_v44 = vsel %vm7984_vm13, %v6274_v28, %v5241_v60  ;;  %v5243_v36 = vrot.slane %v5241_v60, 4  ;;  %10214 = vst [vmem:[#allocation30_spill] sm:$0xff] %v9172_v6  ;;  %v9178_v1 = vld [vmem:[#allocation2 + $0x40] sm:$0xf]  ;;  %v5188_v51 = vld [vmem:[#allocation2 + $0x48] sm:$0xe] }
 0x192   : > { %v6184_v48 = vcombine.low %v3308_v61, %v3318_v12  ;;  %v5249_v50 = vsel %vm7984_vm13, %v6275_v14, %v5248_v45  ;;  %v5250_v3 = vrot.slane %v5248_v45, 4  ;;  %v5255_v53 = vrot.slane %v9178_v1, 5  ;;  %v7308_v28 = vld [vmem:[#allocation2 + $0x44] sm:$0x1]  ;;  %v9183_v14 = vpop.f32.mrf.mxu0  ;;  %v9185_v45 = vpop.f32.mrf.mxu1 }
 0x193   : > { %7060 = vmatprep.mubr.bf16.mxu0 %v6305_v38  ;;  %v5245_v26 = vsel %vm7984_vm13, %v5243_v36, %v5244_v40  ;;  %v5258_v60 = vrot.slane %v7308_v28, 5  ;;  %10215 = vst [vmem:[#allocation31_spill] sm:$0xff] %v9183_v14  ;;  %v6276_v38 = vrot.slane %v5187_v32, 9  ;;  %v9187_v36 = vld [vmem:[#allocation2 + $0x4c] sm:$0xf]  ;;  %v6277_v6 = vrot.slane %v5188_v51, 9 }
 0x194   : > { %6945 = vmatmul.mubr.bf16.gmra.mxu1 %v6184_v48  ;;  %v6306_v61 = vcombine.low %v5242_v44, %v5245_v26  ;;  %v5252_v11 = vsel %vm7984_vm13, %v5250_v3, %v5251_v58  ;;  %v5257_v40 = vrot.slane %v5255_v53, 4  ;;  %v5262_v23 = vrot.slane %v9187_v36, 5  ;;  %v9190_v48 = vpop.f32.mrf.mxu0  ;;  %v9192_v44 = vpop.f32.mrf.mxu1  ;;  %v7311_v58 = vld [vmem:[#allocation2 + $0x24] sm:$0xf] }
 0x195   : > { %7012 = vmatprep.mubr.bf16.mxu1 %v6249_v30  ;;  %v6307_v12 = vcombine.low %v5249_v50, %v5252_v11  ;;  %v5265_v28 = vrot.slane %v7310_v17, 5  ;;  %10216 = vst [vmem:[#allocation32_spill] sm:$0xff] %v9190_v48  ;;  %v6250_v26 = vcombine.low %v7311_v58, %v9152_v16  ;;  %v5189_v30 = vld [vmem:[#allocation2 + $0x54] sm:$0xe]  ;;  %v9195_v50 = vld [vmem:[#allocation2 + $0x58] sm:$0xf]  ;;  %v5256_v48 = vsel %vm7984_vm13, %v6276_v38, %v5255_v53 }
 0x196   : > { %v5264_v3 = vrot.slane %v5262_v23, 4  ;;  %v5269_v32 = vrot.slane %v9195_v50, 5  ;;  %v9198_v11 = vpop.f32.mrf.mxu0  ;;  %v9200_v14 = vpop.f32.mrf.mxu1  ;;  %v7313_v17 = vld [vmem:[#allocation2 + $0x30] sm:$0xf]  ;;  %v5190_v16 = vld [vmem:[#allocation2 + $0x60] sm:$0xe]  ;;  %v10234_v33 = vcombine.low %v8995_v52, %v9000_v62 }
 0x197   : > { %10217 = vst [vmem:[#allocation33_spill] sm:$0xff] %v9198_v11  ;;  %10218 = vst [vmem:[#allocation34_spill] sm:$0xff] %v9200_v14  ;;  %v6251_v51 = vcombine.low %v7313_v17, %v9159_v2  ;;  %v9207_v58 = vld [vmem:[#allocation2 + $0x64] sm:$0xf]  ;;  %v5263_v11 = vsel %vm7984_vm13, %v6277_v6, %v5262_v23  ;;  %v7315_v2 = vld [vmem:[#allocation2 + $0x5c] sm:$0x1] }
 0x198   : > { %7061 = vmatmul.mubr.bf16.vlgmr.msra.gmra.mxu0 %v6306_v61  ;;  %v5259_v61 = vsel %vm7984_vm13, %v5257_v40, %v5258_v60  ;;  %v5276_v54 = vrot.slane %v9207_v58, 5  ;;  %v9214_v29 = vpop.f32.mrf.mxu0  ;;  %v5272_v17 = vrot.slane %v7315_v2, 5  ;;  %v9216_v24 = vpop.f32.mrf.mxu1  ;;  %v6278_v53 = vrot.slane %v5189_v30, 9  ;;  %v7320_v14 = vld [vmem:[#allocation2 + $0x48] sm:$0xf] }
 0x199   : > { %7064 = vmatprep.mubr.bf16.mxu0 %v6307_v12  ;;  %v5266_v12 = vsel %vm7984_vm13, %v5264_v3, %v5265_v28  ;;  %10219 = vst [vmem:[#allocation35_spill] sm:$0xff] %v9214_v29  ;;  %10220 = vst [vmem:[#allocation36_spill] sm:$0xff] %v9216_v24  ;;  %v6308_v60 = vcombine.low %v5256_v48, %v5259_v61  ;;  %v5271_v38 = vrot.slane %v5269_v32, 4  ;;  %v6279_v46 = vrot.slane %v5190_v16, 9  ;;  %v7317_v29 = vld [vmem:[#allocation2 + $0x68] sm:$0x1] }
 0x19a   : > { %v9218_v40 = vpop.f32.mrf.mxu0  ;;  %v5283_v6 = vrot.slane %v9220_v42, 5  ;;  %v9223_v23 = vpop.f32.mrf.mxu1  ;;  %v6309_v28 = vcombine.low %v5263_v11, %v5266_v12  ;;  %v5278_v3 = vrot.slane %v5276_v54, 4  ;;  %v5279_v2 = vrot.slane %v7317_v29, 5  ;;  %v5192_v48 = vld [vmem:[#allocation2 + $0x78] sm:$0xe] }
 0x19b   : > { %10221 = vst [vmem:[#allocation45_spill] sm:$0xff] %v9218_v40  ;;  %v5290_v30 = vrot.slane %v8797_v34, 5  ;;  %v7318_v61 = vld [vmem:[#allocation2 + $0x74] sm:$0x1]  ;;  %v7319_v24 = vld [vmem:[#allocation2 + $0x3c] sm:$0xf]  ;;  %v5270_v11 = vsel %vm7984_vm13, %v6278_v53, %v5269_v32  ;;  %v5273_v34 = vsel %vm7984_vm13, %v5271_v38, %v5272_v17  ;;  %v5277_v29 = vsel %vm7984_vm13, %v6279_v46, %v5276_v54 }
 0x19c   : > { %7013 = vmatmul.mubr.bf16.vlgmr.msra.gmra.mxu1 %v6250_v26  ;;  %v9226_v26 = vpop.f32.mrf.mxu0  ;;  %v5286_v40 = vrot.slane %v7318_v61, 5  ;;  %v9228_v16 = vpop.f32.mrf.mxu1  ;;  %v6252_v39 = vcombine.low %v7319_v24, %v9178_v1  ;;  %v6280_v12 = vrot.slane %v5191_v63, 9  ;;  %v5285_v61 = vrot.slane %v5283_v6, 4  ;;  %v5196_v17 = vld [vmem:[#allocation2 + $0xa8] sm:$0xe] }
 0x19d   : > { %7016 = vmatprep.mubr.bf16.mxu1 %v6251_v51  ;;  %10222 = vst [vmem:[#allocation39_spill] sm:$0xff] %v9226_v26  ;;  %10223 = vst [vmem:[#allocation40_spill] sm:$0xff] %v9228_v16  ;;  %v6253_v51 = vcombine.low %v7320_v14, %v9187_v36  ;;  %v5280_v24 = vsel %vm7984_vm13, %v5278_v3, %v5279_v2  ;;  %v6281_v1 = vrot.slane %v5192_v48, 9  ;;  %v5292_v14 = vrot.slane %v5290_v30, 4  ;;  %v9262_v2 = vld [vmem:[#allocation2 + $0x84] sm:$0xe] }
 0x19e   : > { %v9238_v26 = vpop.f32.mrf.mxu0  ;;  %v9240_v16 = vpop.f32.mrf.mxu1  ;;  %v5293_v36 = vrot.slane %v8807_v21, 5  ;;  %v5328_v63 = vrot.slane %v9053_v18, 5  ;;  %v6311_v38 = vcombine.low %v5277_v29, %v5280_v24  ;;  %v9258_v21 = vsel %vm7984_vm13, %v5285_v61, %v5286_v40  ;;  %v7321_v29 = vld [vmem:[#allocation2 + $0x54] sm:$0xf]  ;;  %v7322_v61 = vld [vmem:[#allocation2 + $0x60] sm:$0xf] }
 0x19f   : > { %v10037_v18 = vrot.slane %v8838_v31, 5  ;;  %v5318_v40 = vrot.slane %v9000_v62, 5  ;;  %v6255_v24 = vcombine.low %v7322_v61, %v9207_v58  ;;  %v5325_v46 = vrot.slane %v9041_v35, 5 }
 0x1a0   : > { %7065 = vmatmul.mubr.bf16.gmra.mxu0 %v6308_v60  ;;  %v9245_v32 = vpop.f32.mrf.mxu0  ;;  %v9250_v54 = vpop.f32.mrf.mxu1  ;;  %v6310_v60 = vcombine.low %v5270_v11, %v5273_v34  ;;  %v6285_v11 = vrot.slane %v5196_v17, 9  ;;  %v5197_v34 = vld [vmem:[#allocation2 + $0xb4] sm:$0xe]  ;;  %v6282_v17 = vrot.slane %v9262_v2, 9  ;;  %v10238_v62 = vcombine.low %v9036_v0, %v9041_v35 }
 0x1a1   : > { %7068 = vmatprep.mubr.bf16.mxu0 %v6309_v28  ;;  %v9254_v28 = vsel %vm7984_vm13, %v6280_v12, %v5283_v6  ;;  %v9273_v6 = vsel %vm7984_vm13, %v5292_v14, %v5293_v36  ;;  %v6254_v12 = vcombine.low %v7321_v29, %v9195_v50  ;;  %v5320_v58 = vrot.slane %v5318_v40, 4 }
 0x1a2   : > { %v9260_v3 = vpop.f32.mrf.mxu0  ;;  %v9265_v48 = vpop.f32.mrf.mxu1  ;;  %v6312_v36 = vcombine.low %v9254_v28, %v9258_v21  ;;  %v9290_v50 = vsel %vm7984_vm13, %v6285_v11, %v5318_v40  ;;  %v5299_v29 = vrot.slane %v10037_v18, 4  ;;  %v5194_v21 = vld [vmem:[#allocation2 + $0x90] sm:$0xe]  ;;  %v5199_v11 = vld [vmem:[#allocation2 + $0xcc] sm:$0xe] }
 0x1a3   : > { %10224 = vst [vmem:[#allocation41_spill] sm:$0xff] %v9260_v3  ;;  %v6283_v18 = vrot.slane %v5194_v21, 9  ;;  %v7324_v21 = vld [vmem:[#allocation2 + $0x78] sm:$0xf] }
 0x1a4   : > { %7017 = vmatmul.mubr.bf16.gmra.mxu1 %v6252_v39  ;;  %v9269_v39 = vsel %vm7984_vm13, %v6281_v1, %v5290_v30  ;;  %v9278_v53 = vpop.f32.mrf.mxu0  ;;  %v5198_v1 = vld [vmem:[#allocation2 + $0xc0] sm:$0xe]  ;;  %v9283_v14 = vpop.f32.mrf.mxu1  ;;  %v6286_v30 = vrot.slane %v5197_v34, 9  ;;  %v5304_v34 = vrot.slane %v8879_v13, 5 }
 0x1a5   : > { %7020 = vmatprep.mubr.bf16.mxu1 %v6253_v51  ;;  %10225 = vst [vmem:[#allocation42_spill] sm:$0xff] %v9278_v53  ;;  %v5321_v51 = vrot.slane %v9017_v57, 5  ;;  %v6313_v57 = vcombine.low %v9269_v39, %v9273_v6  ;;  %v6287_v39 = vrot.slane %v5198_v1, 9  ;;  %v5332_v6 = vrot.slane %v9075_v10, 5 }
 0x1a6   : > { %v9296_v61 = vpop.f32.mrf.mxu0  ;;  %v9299_v28 = vpop.f32.mrf.mxu1  ;;  %v5339_v53 = vrot.slane %v9104_v20, 5 }
 0x1a7   : > { %10226 = vst [vmem:[#allocation43_spill] sm:$0xff] %v9296_v61  ;;  %v9303_v2 = vsel %vm7984_vm13, %v5320_v58, %v5321_v51  ;;  %v5327_v51 = vrot.slane %v5325_v46, 4  ;;  %v9321_v1 = vsel %vm7984_vm13, %v6287_v39, %v5332_v6  ;;  %v5335_v61 = vrot.slane %v9088_v9, 5  ;;  %v7325_v9 = vld [vmem:[#allocation2 + $0x7c] sm:$0xf] }
 0x1a8   : > { %7069 = vmatmul.mubr.bf16.gmra.mxu0 %v6310_v60  ;;  %v9308_v40 = vpop.f32.mrf.mxu0  ;;  %v9317_v58 = vpop.f32.mrf.mxu1  ;;  %v5334_v60 = vrot.slane %v5332_v6, 4  ;;  %v5307_v39 = vrot.slane %v8897_v55, 5  ;;  %v5341_v55 = vrot.slane %v5339_v53, 4 }
 0x1a9   : > { %7072 = vmatprep.mubr.bf16.mxu0 %v6311_v38  ;;  %10227 = vst [vmem:[#allocation10_spill] sm:$0xff] %v9308_v40  ;;  %v9315_v38 = vsel %vm7984_vm13, %v6286_v30, %v5325_v46  ;;  %v9330_v30 = vsel %vm7984_vm13, %v5327_v51, %v5328_v63  ;;  %v6288_v46 = vrot.slane %v5199_v11, 9  ;;  %v5306_v63 = vrot.slane %v5304_v34, 4 }
 0x1aa   : > { %v9326_v40 = vpop.f32.mrf.mxu0  ;;  %v9333_v3 = vpop.f32.mrf.mxu1  ;;  %v10230_v11 = vrot.slane %v9116_v49, 5 }
 0x1ab   : > { %10228 = vst [vmem:[#allocation11_spill] sm:$0xff] %v9326_v40  ;;  %v6257_v40 = vcombine.low %v7324_v21, %v7325_v9  ;;  %v5311_v21 = vrot.slane %v8934_v8, 5 }
 0x1ac   : > { %7021 = vmatmul.mubr.bf16.gmra.mxu1 %v6254_v12  ;;  %v9340_v12 = vsel %vm7984_vm13, %v5334_v60, %v5335_v61  ;;  %v9344_v6 = vpop.f32.mrf.mxu0  ;;  %v1956_v51 = vpop.f32.mrf.mxu1  ;;  %v7323_v61 = vld [vmem:[#allocation2 + $0x6c] sm:$0xf] }
 0x1ad   : > { %7024 = vmatprep.mubr.bf16.mxu1 %v6255_v24  ;;  %10229 = vst [vmem:[#allocation44_spill] sm:$0xff] %v9344_v6  ;;  %v9350_v24 = vsel %vm7984_vm13, %v6288_v46, %v5339_v53  ;;  %v9353_v13 = vadd.f32 %v1956_v51, %v9083_v7  ;;  %v6256_v60 = vcombine.low %v7323_v61, %v9220_v42  ;;  %v10231_v7 = vrot.slane %v8838_v31, 5 }
 0x1ae   : > { %v9356_v6 = vpop.f32.mrf.mxu0  ;;  %v9362_v46 = vsel %vm7984_vm13, %v5341_v55, %v10230_v11  ;;  %v6738_v53 = vpop.f32.mrf.mxu1  ;;  %v10232_v42 = vrot.slane %v8843_v56, 5  ;;  %v5308_v31 = vsel %vm7984_vm13, %v5306_v63, %v5307_v39 }
 0x1af   : > { %v6320_v49 = vcombine.low %v9350_v24, %v9362_v46  ;;  %v9376_v11 = vadd.f32 %v6738_v53, %v9096_v22  ;;  %v5314_v22 = vrot.slane %v8952_v25, 5 }
 0x1b0   : > { %7073 = vmatmul.mubr.bf16.gmra.mxu0 %v6312_v36  ;;  %v5298_v36 = vsel %vm7984_vm13, %v6282_v17, %v10231_v7  ;;  %v5301_v9 = vsel %vm7984_vm13, %v5299_v29, %v10232_v42  ;;  %v5195_v17 = vld [vmem:[#allocation2 + $0x9c] sm:$0xe]  ;;  %v9382_v55 = vpop.f32.mrf.mxu0  ;;  %v1969_v56 = vpop.f32.mrf.mxu1 }
 0x1b1   : > { %7076 = vmatprep.mubr.bf16.mxu0 %v6313_v57  ;;  %v5305_v57 = vsel %vm7984_vm13, %v6283_v18, %v5304_v34  ;;  %v9385_v29 = vadd.f32 %v1969_v56, %v9106_v19  ;;  %v6314_v51 = vcombine.low %v5298_v36, %v5301_v9  ;;  %v6284_v18 = vrot.slane %v5195_v17, 9  ;;  %v7326_v19 = vld [vmem:[#allocation2 + $0x84] sm:$0xf]  ;;  %v7327_v36 = vld [vmem:[#allocation2 + $0x88] sm:$0xf] }
 0x1b2   : > { %v9387_v61 = vpop.f32.mrf.mxu0  ;;  %v6739_v53 = vpop.f32.mrf.mxu1  ;;  %v6315_v7 = vcombine.low %v5305_v57, %v5308_v31  ;;  %v5313_v34 = vrot.slane %v5311_v21, 4  ;;  %v6258_v9 = vcombine.low %v7326_v19, %v7327_v36  ;;  %v7329_v57 = vld [vmem:[#allocation2 + $0x94] sm:$0xf] }
 0x1b3   : > { %v9391_v39 = vadd.f32 %v6739_v53, %v9112_v15  ;;  %v5312_v15 = vsel %vm7984_vm13, %v6284_v18, %v5311_v21  ;;  %v10233_v18 = vcombine.low %v9290_v50, %v9303_v2  ;;  %v10235_v50 = vcombine.low %v9315_v38, %v9330_v30 }
 0x1b4   : > { %7025 = vmatmul.mubr.bf16.gmra.mxu1 %v6256_v60  ;;  %v9393_v63 = vpop.f32.mrf.mxu0  ;;  %v1972_v42 = vpop.f32.mrf.mxu1  ;;  %v5315_v17 = vsel %vm7984_vm13, %v5313_v34, %v5314_v22  ;;  %v10240_v30 = vcombine.low %v9071_v47, %v9075_v10  ;;  %v10244_v10 = vcombine.low %v9098_v43, %v9104_v20  ;;  %v10248_v43 = vld [vmem:[#allocation34_spill] sm:$0xff] }
 0x1b5   : > { %7028 = vmatprep.mubr.bf16.mxu1 %v6257_v40  ;;  %v9396_v60 = vadd.f32 %v1972_v42, %v9120_v37  ;;  %v7328_v40 = vld [vmem:[#allocation2 + $0x90] sm:$0xf]  ;;  %v6316_v53 = vcombine.low %v5312_v15, %v5315_v17  ;;  %v10236_v17 = vcombine.low %v9321_v1, %v9340_v12  ;;  %v1930_v20 = vadd.f32 %v10248_v43, %v8836_v4  ;;  %v10256_v4 = vld [vmem:[#allocation28_spill] sm:$0xff] }
 0x1b6   : > { %v9398_v56 = vpop.f32.mrf.mxu0  ;;  %v9400_v25 = vpop.f32.mrf.mxu1  ;;  %v6259_v31 = vcombine.low %v7328_v40, %v7329_v57 }
 0x1b8   : > { %7077 = vmatmul.mubr.bf16.gmra.mxu0 %v6314_v51  ;;  %v9406_v37 = vpop.f32.mrf.mxu0  ;;  %v9408_v51 = vpop.f32.mrf.mxu1 }
 0x1b9   : > { %7080 = vmatprep.mubr.bf16.mxu0 %v6315_v7 }
 0x1ba   : > { %v9410_v42 = vpop.f32.mrf.mxu0  ;;  %v9412_v19 = vpop.f32.mrf.mxu1 }
 0x1bc   : > { %7029 = vmatmul.mubr.bf16.gmra.mxu1 %v6258_v9  ;;  %v9414_v7 = vpop.f32.mrf.mxu0  ;;  %v9416_v36 = vpop.f32.mrf.mxu1 }
 0x1bd   : > { %7032 = vmatprep.mubr.bf16.mxu1 %v6259_v31 }
 0x1be   : > { %v9420_v21 = vpop.f32.mrf.mxu0  ;;  %v9422_v22 = vpop.f32.mrf.mxu1 }
 0x1c0   : > { %7081 = vmatmul.mubr.bf16.gmra.mxu0 %v6316_v53  ;;  %v9427_v34 = vpop.f32.mrf.mxu0  ;;  %v9429_v9 = vpop.f32.mrf.mxu1 }
 0x1c1   : > { %7084 = vmatprep.mubr.bf16.mxu0 %v10233_v18 }
 0x1c2   : > { %v9431_v40 = vpop.f32.mrf.mxu0  ;;  %v9433_v57 = vpop.f32.mrf.mxu1 }
 0x1c4   : > { %7033 = vmatmul.mubr.bf16.gmra.mxu1 %v6260_v59  ;;  %v9438_v8 = vpop.f32.mrf.mxu0  ;;  %v9440_v31 = vpop.f32.mrf.mxu1 }
 0x1c5   : > { %7036 = vmatprep.mubr.bf16.mxu1 %v10234_v33 }
 0x1c6   : > { %v9445_v2 = vpop.f32.mrf.mxu0  ;;  %v9447_v15 = vpop.f32.mrf.mxu1 }
 0x1c8   : > { %7085 = vmatmul.mubr.bf16.gmra.mxu0 %v10235_v50  ;;  %v9452_v53 = vpop.f32.mrf.mxu0  ;;  %v9454_v52 = vpop.f32.mrf.mxu1 }
 0x1c9   : > { %7088 = vmatprep.mubr.bf16.mxu0 %v10236_v17  ;;  %10237 = vst [vmem:[#allocation46_spill] sm:$0xff] %v9452_v53  ;;  %v10259_v53 = vld [vmem:[#allocation40_spill] sm:$0xff] }
 0x1ca   : > { %v9459_v59 = vpop.f32.mrf.mxu0  ;;  %v9461_v38 = vpop.f32.mrf.mxu1 }
 0x1cb   : > { %10239 = vst [vmem:[#allocation47_spill] sm:$0xff] %v9459_v59 }
 0x1cc   : > { %7037 = vmatmul.mubr.bf16.gmra.mxu1 %v10238_v62  ;;  %v9466_v18 = vpop.f32.mrf.mxu0  ;;  %v2020_v1 = vpop.f32.mrf.mxu1 }
 0x1cd   : > { %7040 = vmatprep.mubr.bf16.mxu1 %v10240_v30  ;;  %10241 = vst [vmem:[#allocation48_spill] sm:$0xff] %v9466_v18  ;;  %v9469_v12 = vadd.f32 %v2020_v1, %v9144_v27 }
 0x1ce   : > { %v9474_v0 = vpop.f32.mrf.mxu0  ;;  %v6754_v35 = vpop.f32.mrf.mxu1 }
 0x1cf   : > { %10242 = vst [vmem:[#allocation49_spill] sm:$0xff] %v9474_v0  ;;  %v9477_v33 = vadd.f32 %v6754_v35, %v9164_v41 }
 0x1d0   : > { %7089 = vmatmul.mubr.bf16.gmra.mxu0 %v6320_v49  ;;  %v9479_v50 = vpop.f32.mrf.mxu0  ;;  %v2033_v47 = vpop.f32.mrf.mxu1 }
 0x1d1   : > { %10243 = vst [vmem:[#allocation50_spill] sm:$0xff] %v9479_v50  ;;  %v9485_v27 = vadd.f32 %v2033_v47, %v9174_v5  ;;  %v10249_v5 = vld [vmem:[#allocation25_spill] sm:$0xff] }
 0x1d2   : > { %v9487_v17 = vpop.f32.mrf.mxu0  ;;  %v6755_v24 = vpop.f32.mrf.mxu1 }
 0x1d3   : > { %10245 = vst [vmem:[#allocation51_spill] sm:$0xff] %v9487_v17  ;;  %v9490_v46 = vadd.f32 %v6755_v24, %v9185_v45  ;;  %v10251_v17 = vld [vmem:[#allocation3_spill] sm:$0xff]  ;;  %v10252_v45 = vld [vmem:[#allocation36_spill] sm:$0xff] }
 0x1d4   : > { %7041 = vmatmul.mubr.bf16.gmra.mxu1 %v10244_v10  ;;  %v9492_v49 = vpop.f32.mrf.mxu0  ;;  %v2036_v41 = vpop.f32.mrf.mxu1  ;;  %v1922_v24 = vadd.f32 %v10252_v45, %v10251_v17 }
 0x1d5   : > { %10246 = vst [vmem:[#allocation52_spill] sm:$0xff] %v9492_v49  ;;  %v9495_v62 = vadd.f32 %v2036_v41, %v9192_v44  ;;  %v10253_v49 = vld [vmem:[#allocation26_spill] sm:$0xff] }
 0x1d6   : > { %v9497_v30 = vpop.f32.mrf.mxu0  ;;  %v6822_v1 = vpop.f32.mrf.mxu1 }
 0x1d7   : > { %10247 = vst [vmem:[#allocation53_spill] sm:$0xff] %v9497_v30  ;;  %v2737_v35 = vadd.f32 %v6822_v1, %v10249_v5  ;;  %v10255_v30 = vld [vmem:[#allocation9_spill] sm:$0xff] }
 0x1d8   : > { %v9502_v47 = vpop.f32.mrf.mxu0  ;;  %v2728_v10 = vpop.f32.mrf.mxu1  ;;  %v1933_v18 = vadd.f32 %v9223_v23, %v10255_v30  ;;  %v10263_v30 = vld [vmem:[#allocation38_spill] sm:$0xff] }
 0x1d9   : > { %10250 = vst [vmem:[#allocation34_spill] sm:$0xff] %v9502_v47  ;;  %v9506_v50 = vadd.f32 %v2737_v35, %v1930_v20  ;;  %v2729_v0 = vadd.f32 %v2728_v10, %v10253_v49  ;;  %v10258_v47 = vld [vmem:[#allocation4_spill] sm:$0xff]  ;;  %v10260_v35 = vld [vmem:[#allocation37_spill] sm:$0xff] }
 0x1da   : > { %v9509_v44 = vpop.f32.mrf.mxu0  ;;  %v6823_v41 = vpop.f32.mrf.mxu1  ;;  %v1925_v17 = vadd.f32 %v10259_v53, %v10258_v47  ;;  %v10266_v47 = vld [vmem:[#allocation29_spill] sm:$0xff] }
 0x1db   : > { %10254 = vst [vmem:[#allocation25_spill] sm:$0xff] %v9509_v44  ;;  %v9513_v59 = vadd.f32 %v2729_v0, %v1922_v24  ;;  %v2740_v1 = vadd.f32 %v6823_v41, %v10256_v4  ;;  %v10262_v44 = vld [vmem:[#allocation5_spill] sm:$0xff] }
 0x1dc   : > { %v9516_v43 = vpop.f32.mrf.mxu0  ;;  %v2731_v5 = vpop.f32.mrf.mxu1  ;;  %v1946_v23 = vadd.f32 %v9240_v16, %v10262_v44 }
 0x1dd   : > { %10257 = vst [vmem:[#allocation3_spill] sm:$0xff] %v9516_v43  ;;  %v9520_v20 = vadd.f32 %v2740_v1, %v1933_v18  ;;  %v2732_v49 = vadd.f32 %v2731_v5, %v10260_v35  ;;  %v10265_v43 = vld [vmem:[#allocation15_spill] sm:$0xff] }
 0x1de   : > { %v9523_v10 = vpop.f32.mrf.mxu0  ;;  %v6826_v45 = vpop.f32.mrf.mxu1  ;;  %v1938_v53 = vadd.f32 %v9250_v54, %v10265_v43 }
 0x1df   : > { %10261 = vst [vmem:[#allocation36_spill] sm:$0xff] %v9523_v10  ;;  %v9527_v0 = vadd.f32 %v2732_v49, %v1925_v17  ;;  %v2753_v24 = vadd.f32 %v6826_v45, %v10263_v30  ;;  %v10268_v10 = vld [vmem:[#allocation7_spill] sm:$0xff]  ;;  %v10269_v17 = vld [vmem:[#allocation30_spill] sm:$0xff] }
 0x1e0   : > { %v9530_v41 = vpop.f32.mrf.mxu0  ;;  %v2744_v4 = vpop.f32.mrf.mxu1  ;;  %v1949_v16 = vadd.f32 %v9265_v48, %v10268_v10 }
 0x1e1   : > { %10264 = vst [vmem:[#allocation26_spill] sm:$0xff] %v9530_v41  ;;  %v9534_v18 = vadd.f32 %v2753_v24, %v1946_v23  ;;  %v2745_v1 = vadd.f32 %v2744_v4, %v10266_v47  ;;  %v10271_v41 = vld [vmem:[#allocation8_spill] sm:$0xff]  ;;  %v10272_v23 = vld [vmem:[#allocation31_spill] sm:$0xff] }
 0x1e2   : > { %v9537_v5 = vpop.f32.mrf.mxu0  ;;  %v6827_v35 = vpop.f32.mrf.mxu1  ;;  %v1941_v54 = vadd.f32 %v9283_v14, %v10271_v41 }
 0x1e3   : > { %10267 = vst [vmem:[#allocation9_spill] sm:$0xff] %v9537_v5  ;;  %v9541_v44 = vadd.f32 %v2745_v1, %v1938_v53  ;;  %v2756_v49 = vadd.f32 %v6827_v35, %v10269_v17  ;;  %v10274_v5 = vld [vmem:[#allocation17_spill] sm:$0xff]  ;;  %v10275_v53 = vld [vmem:[#allocation32_spill] sm:$0xff] }
 0x1e4   : > { %v9544_v45 = vpop.f32.mrf.mxu0  ;;  %v2747_v30 = vpop.f32.mrf.mxu1  ;;  %v1962_v48 = vadd.f32 %v9299_v28, %v10274_v5 }
 0x1e5   : > { %10270 = vst [vmem:[#allocation28_spill] sm:$0xff] %v9544_v45  ;;  %v9548_v43 = vadd.f32 %v2756_v49, %v1949_v16  ;;  %v2748_v24 = vadd.f32 %v2747_v30, %v10272_v23  ;;  %v10277_v45 = vld [vmem:[#allocation20_spill] sm:$0xff]  ;;  %v10278_v16 = vld [vmem:[#allocation33_spill] sm:$0xff] }
 0x1e6   : > { %v9551_v4 = vpop.f32.mrf.mxu0  ;;  %v1954_v14 = vadd.f32 %v9317_v58, %v10277_v45  ;;  %v10283_v58 = vld [vmem:[#allocation45_spill] sm:$0xff] }
 0x1e7   : > { %10273 = vst [vmem:[#allocation4_spill] sm:$0xff] %v9551_v4  ;;  %v6830_v47 = vpop.f32.mrf.mxu1  ;;  %v9555_v10 = vadd.f32 %v2748_v24, %v1941_v54  ;;  %v10280_v4 = vld [vmem:[#allocation18_spill] sm:$0xff]  ;;  %v10281_v54 = vld [vmem:[#allocation35_spill] sm:$0xff] }
 0x1e8   : > { %v2769_v1 = vadd.f32 %v6830_v47, %v10275_v53  ;;  %v9558_v35 = vpop.f32.mrf.mxu0  ;;  %v1965_v28 = vadd.f32 %v9333_v3, %v10280_v4 }
 0x1e9   : > { %10276 = vst [vmem:[#allocation40_spill] sm:$0xff] %v9558_v35  ;;  %v2760_v17 = vpop.f32.mrf.mxu1 }
 0x1ea   : > { %v9562_v41 = vadd.f32 %v2769_v1, %v1962_v48  ;;  %v2761_v49 = vadd.f32 %v2760_v17, %v10278_v16  ;;  %v9565_v30 = vpop.f32.mrf.mxu0  ;;  %v10285_v16 = vld [vmem:[#allocation39_spill] sm:$0xff] }
 0x1eb   : > { %10279 = vst [vmem:[#allocation37_spill] sm:$0xff] %v9565_v30  ;;  %v6831_v23 = vpop.f32.mrf.mxu1 }
 0x1ec   : > { %v9569_v5 = vadd.f32 %v2761_v49, %v1954_v14  ;;  %v2772_v24 = vadd.f32 %v6831_v23, %v10281_v54 }
 0x1ed   : > { %v9572_v47 = vpop.f32.mrf.mxu0  ;;  %v2763_v53 = vpop.f32.mrf.mxu1 }
 0x1ee   : > { %10282 = vst [vmem:[#allocation5_spill] sm:$0xff] %v9572_v47  ;;  %v9574_v35 = vadd.f32 %v2772_v24, %v1965_v28  ;;  %v2764_v45 = vadd.f32 %v2763_v53, %v10283_v58 }
 0x1ef   : > { %v9577_v48 = vpop.f32.mrf.mxu0 }
 0x1f0   : > { %10284 = vst [vmem:[#allocation38_spill] sm:$0xff] %v9577_v48  ;;  %v6834_v1 = vpop.f32.mrf.mxu1  ;;  %v9580_v17 = vadd.f32 %v2764_v45, %v9353_v13  ;;  %v10289_v45 = vld [vmem:[#allocation41_spill] sm:$0xff] }
 0x1f1   : > { %v2785_v30 = vadd.f32 %v6834_v1, %v10285_v16  ;;  %v9583_v3 = vpop.f32.mrf.mxu0 }
 0x1f2   : > { %10286 = vst [vmem:[#allocation15_spill] sm:$0xff] %v9583_v3  ;;  %v2776_v4 = vpop.f32.mrf.mxu1  ;;  %v10299_v3 = vld [vmem:[#allocation12_spill] sm:$0xff] }
 0x1f3   : > { %v9586_v14 = vadd.f32 %v2785_v30, %v9376_v11  ;;  %v2777_v49 = vadd.f32 %v2776_v4, %v9238_v26  ;;  %v9589_v23 = vpop.f32.mrf.mxu0  ;;  %v10291_v26 = vld [vmem:[#allocation13_spill] sm:$0xff] }
 0x1f4   : > { %10287 = vst [vmem:[#allocation29_spill] sm:$0xff] %v9589_v23  ;;  %v6835_v28 = vpop.f32.mrf.mxu1  ;;  %v1994_v16 = vadd.f32 %v9400_v25, %v10291_v26  ;;  %v1997_v25 = vadd.f32 %v9412_v19, %v10299_v3 }
 0x1f5   : > { %v9592_v54 = vadd.f32 %v2777_v49, %v9385_v29  ;;  %v2788_v24 = vadd.f32 %v6835_v28, %v9245_v32  ;;  %v10293_v29 = vld [vmem:[#allocation42_spill] sm:$0xff] }
 0x1f6   : > { %v9595_v13 = vpop.f32.mrf.mxu0  ;;  %v2779_v53 = vpop.f32.mrf.mxu1 }
 0x1f7   : > { %10288 = vst [vmem:[#allocation7_spill] sm:$0xff] %v9595_v13  ;;  %v9598_v58 = vadd.f32 %v2788_v24, %v9391_v39  ;;  %v2780_v1 = vadd.f32 %v2779_v53, %v10289_v45  ;;  %v10295_v13 = vld [vmem:[#allocation6_spill] sm:$0xff]  ;;  %v10297_v53 = vld [vmem:[#allocation43_spill] sm:$0xff] }
 0x1f8   : > { %v9601_v11 = vpop.f32.mrf.mxu0  ;;  %v1986_v39 = vadd.f32 %v9408_v51, %v10295_v13 }
 0x1f9   : > { %10290 = vst [vmem:[#allocation30_spill] sm:$0xff] %v9601_v11  ;;  %v6838_v30 = vpop.f32.mrf.mxu1  ;;  %v9606_v4 = vadd.f32 %v2780_v1, %v9396_v60  ;;  %v10301_v1 = vld [vmem:[#allocation10_spill] sm:$0xff] }
 0x1fa   : > { %v2801_v49 = vadd.f32 %v6838_v30, %v10293_v29  ;;  %v9609_v32 = vpop.f32.mrf.mxu0 }
 0x1fb   : > { %10292 = vst [vmem:[#allocation8_spill] sm:$0xff] %v9606_v4  ;;  %10294 = vst [vmem:[#allocation31_spill] sm:$0xff] %v9609_v32  ;;  %v2792_v28 = vpop.f32.mrf.mxu1  ;;  %v10303_v32 = vld [vmem:[#allocation16_spill] sm:$0xff] }
 0x1fc   : > { %v9613_v24 = vadd.f32 %v2801_v49, %v1994_v16  ;;  %v2793_v45 = vadd.f32 %v2792_v28, %v10297_v53  ;;  %v9616_v11 = vpop.f32.mrf.mxu0  ;;  %v1989_v51 = vadd.f32 %v9416_v36, %v10303_v32  ;;  %v10305_v16 = vld [vmem:[#allocation11_spill] sm:$0xff] }
 0x1fd   : > { %10298 = vst [vmem:[#allocation32_spill] sm:$0xff] %v9616_v11  ;;  %v6839_v23 = vpop.f32.mrf.mxu1  ;;  %v10307_v11 = vld [vmem:[#allocation14_spill] sm:$0xff] }
 0x1fe   : > { %10296 = vst [vmem:[#allocation17_spill] sm:$0xff] %v9613_v24  ;;  %v9620_v60 = vadd.f32 %v2793_v45, %v1986_v39  ;;  %v2804_v30 = vadd.f32 %v6839_v23, %v10301_v1  ;;  %v9623_v26 = vpop.f32.mrf.mxu0  ;;  %v2010_v19 = vadd.f32 %v9422_v22, %v10307_v11  ;;  %v10309_v39 = vld [vmem:[#allocation44_spill] sm:$0xff]  ;;  %v10362_v24 = vld [vmem:[#allocation46_spill] sm:$0xff] }
 0x1ff   : > { %10302 = vst [vmem:[#allocation33_spill] sm:$0xff] %v9623_v26  ;;  %v2795_v29 = vpop.f32.mrf.mxu1  ;;  %v10311_v26 = vld [vmem:[#allocation21_spill] sm:$0xff] }
 0x200   : > { %10300 = vst [vmem:[#allocation20_spill] sm:$0xff] %v9620_v60  ;;  %v9627_v13 = vadd.f32 %v2804_v30, %v1997_v25  ;;  %v2796_v49 = vadd.f32 %v2795_v29, %v10305_v16  ;;  %v9630_v28 = vpop.f32.mrf.mxu0  ;;  %v2002_v36 = vadd.f32 %v9429_v9, %v10311_v26  ;;  %v10314_v16 = vld [vmem:[#allocation19_spill] sm:$0xff] }
 0x201   : > { %10306 = vst [vmem:[#allocation35_spill] sm:$0xff] %v9630_v28  ;;  %v6842_v53 = vpop.f32.mrf.mxu1  ;;  %v2013_v22 = vadd.f32 %v9433_v57, %v10314_v16  ;;  %v10320_v16 = vld [vmem:[#allocation24_spill] sm:$0xff] }
 0x202   : > { %10304 = vst [vmem:[#allocation18_spill] sm:$0xff] %v9627_v13  ;;  %v9634_v3 = vadd.f32 %v2796_v49, %v1989_v51  ;;  %v2817_v23 = vadd.f32 %v6842_v53, %v10309_v39  ;;  %v9637_v45 = vpop.f32.mrf.mxu0  ;;  %v10316_v39 = vld [vmem:[#allocation22_spill] sm:$0xff] }
 0x203   : > { %10310 = vst [vmem:[#allocation39_spill] sm:$0xff] %v9637_v45  ;;  %v2808_v1 = vpop.f32.mrf.mxu1  ;;  %v2005_v9 = vadd.f32 %v9440_v31, %v10316_v39  ;;  %v2018_v31 = vadd.f32 %v9454_v52, %v10320_v16  ;;  %v10322_v39 = vld [vmem:[#allocation27_spill] sm:$0xff] }
 0x204   : > { %10308 = vst [vmem:[#allocation45_spill] sm:$0xff] %v9634_v3  ;;  %v9641_v32 = vadd.f32 %v2817_v23, %v2010_v19  ;;  %v2809_v25 = vadd.f32 %v2808_v1, %v9356_v6  ;;  %v9644_v30 = vpop.f32.mrf.mxu0  ;;  %v10318_v1 = vld [vmem:[#allocation23_spill] sm:$0xff] }
 0x205   : > { %10313 = vst [vmem:[#allocation13_spill] sm:$0xff] %v9644_v30  ;;  %v6843_v29 = vpop.f32.mrf.mxu1  ;;  %v2026_v57 = vadd.f32 %v9447_v15, %v10318_v1  ;;  %v2029_v15 = vadd.f32 %v9461_v38, %v10322_v39 }
 0x206   : > { %10312 = vst [vmem:[#allocation41_spill] sm:$0xff] %v9641_v32  ;;  %v9648_v11 = vadd.f32 %v2809_v25, %v2002_v36  ;;  %v2820_v51 = vadd.f32 %v6843_v29, %v9382_v55  ;;  %v9651_v49 = vpop.f32.mrf.mxu0 }
 0x207   : > { %v2811_v53 = vpop.f32.mrf.mxu1 }
 0x208   : > { %10315 = vst [vmem:[#allocation42_spill] sm:$0xff] %v9648_v11  ;;  %v9655_v26 = vadd.f32 %v2820_v51, %v2013_v22  ;;  %v2812_v6 = vadd.f32 %v2811_v53, %v9387_v61  ;;  %v9658_v19 = vpop.f32.mrf.mxu0 }
 0x209   : > { %v6846_v23 = vpop.f32.mrf.mxu1 }
 0x20a   : > { %10317 = vst [vmem:[#allocation6_spill] sm:$0xff] %v9655_v26  ;;  %v9662_v36 = vadd.f32 %v2812_v6, %v2005_v9  ;;  %v2833_v55 = vadd.f32 %v6846_v23, %v9393_v63  ;;  %v9665_v25 = vpop.f32.mrf.mxu0 }
 0x20b   : > { %v2824_v29 = vpop.f32.mrf.mxu1 }
 0x20c   : > { %10319 = vst [vmem:[#allocation43_spill] sm:$0xff] %v9662_v36  ;;  %v9669_v22 = vadd.f32 %v2833_v55, %v2026_v57  ;;  %v2825_v61 = vadd.f32 %v2824_v29, %v9398_v56  ;;  %v9672_v51 = vpop.f32.mrf.mxu0 }
 0x20d   : > { %v6847_v53 = vpop.f32.mrf.mxu1 }
 0x20e   : > { %10321 = vst [vmem:[#allocation12_spill] sm:$0xff] %v9669_v22  ;;  %v9676_v9 = vadd.f32 %v2825_v61, %v2018_v31  ;;  %v2836_v63 = vadd.f32 %v6847_v53, %v9406_v37  ;;  %v9679_v6 = vpop.f32.mrf.mxu0 }
 0x20f   : > { %v2827_v23 = vpop.f32.mrf.mxu1 }
 0x210   : > { %10323 = vst [vmem:[#allocation10_spill] sm:$0xff] %v9676_v9  ;;  %v9681_v1 = vadd.f32 %v2836_v63, %v2029_v15  ;;  %v2828_v52 = vadd.f32 %v2827_v23, %v9410_v42  ;;  %v9684_v57 = vpop.f32.mrf.mxu0 }
 0x212   : > { %10324 = vst [vmem:[#allocation16_spill] sm:$0xff] %v9681_v1  ;;  %v6850_v56 = vpop.f32.mrf.mxu1  ;;  %v9687_v55 = vadd.f32 %v2828_v52, %v9469_v12  ;;  %v9690_v38 = vpop.f32.mrf.mxu0 }
 0x213   : > { %v2849_v29 = vadd.f32 %v6850_v56, %v9414_v7 }
 0x214   : > { %10325 = vst [vmem:[#allocation11_spill] sm:$0xff] %v9687_v55  ;;  %v2840_v16 = vpop.f32.mrf.mxu1  ;;  %v9696_v61 = vpop.f32.mrf.mxu0 }
 0x215   : > { %v9693_v37 = vadd.f32 %v2849_v29, %v9477_v33  ;;  %v2841_v31 = vadd.f32 %v2840_v16, %v9420_v21 }
 0x216   : > { %v6851_v53 = vpop.f32.mrf.mxu1  ;;  %v9702_v12 = vpop.f32.mrf.mxu0 }
 0x217   : > { %10326 = vst [vmem:[#allocation14_spill] sm:$0xff] %v9693_v37  ;;  %v9699_v42 = vadd.f32 %v2841_v31, %v9485_v27  ;;  %v2852_v39 = vadd.f32 %v6851_v53, %v9427_v34 }
 0x218   : > { %v2843_v15 = vpop.f32.mrf.mxu1  ;;  %v9708_v33 = vpop.f32.mrf.mxu0 }
 0x219   : > { %10327 = vst [vmem:[#allocation44_spill] sm:$0xff] %v9699_v42  ;;  %v9705_v7 = vadd.f32 %v2852_v39, %v9490_v46  ;;  %v2844_v63 = vadd.f32 %v2843_v15, %v9431_v40 }
 0x21a   : > { %v6918_v23 = vpop.f32.mrf.mxu1  ;;  %v9713_v52 = vpop.f32.mrf.mxu0 }
 0x21b   : > { %10328 = vst [vmem:[#allocation21_spill] sm:$0xff] %v9705_v7  ;;  %v9711_v21 = vadd.f32 %v2844_v63, %v9495_v62 }
 0x21c   : > { %v3948_v27 = vpop.f32.mrf.mxu1  ;;  %v9715_v56 = vpop.f32.mrf.mxu0 }
 0x21d   : > { %10329 = vst [vmem:[#allocation19_spill] sm:$0xff] %v9711_v21 }
 0x21e   : > { %v6919_v34 = vpop.f32.mrf.mxu1  ;;  %v9717_v29 = vpop.f32.mrf.mxu0 }
 0x220   : > { %v3951_v16 = vpop.f32.mrf.mxu1  ;;  %v9719_v31 = vpop.f32.mrf.mxu0 }
 0x222   : > { %v9721_v46 = vpop.f32.mrf.mxu1  ;;  %v9723_v40 = vpop.f32.mrf.mxu0 }
 0x223   : > { %10330 = vst [vmem:[#allocation22_spill] sm:$0xff] %v9723_v40 }
 0x224   : > { %v9725_v53 = vpop.f32.mrf.mxu1  ;;  %v9727_v39 = vpop.f32.mrf.mxu0 }
 0x225   : > { %10331 = vst [vmem:[#allocation23_spill] sm:$0xff] %v9727_v39 }
 0x226   : > { %v9729_v62 = vpop.f32.mrf.mxu1  ;;  %v9731_v15 = vpop.f32.mrf.mxu0 }
 0x227   : > { %10332 = vst [vmem:[#allocation24_spill] sm:$0xff] %v9731_v15 }
 0x228   : > { %v9733_v63 = vpop.f32.mrf.mxu1  ;;  %v9735_v21 = vpop.f32.mrf.mxu0 }
 0x229   : > { %10333 = vst [vmem:[#allocation27_spill] sm:$0xff] %v9735_v21 }
 0x22a   : > { %v9737_v7 = vpop.f32.mrf.mxu1  ;;  %v9739_v30 = vpop.f32.mrf.mxu0 }
 0x22b   : > { %10334 = vst [vmem:[#allocation54_spill] sm:$0xff] %v9739_v30 }
 0x22c   : > { %v9741_v42 = vpop.f32.mrf.mxu1  ;;  %v9743_v37 = vpop.f32.mrf.mxu0 }
 0x22d   : > { %10335 = vst [vmem:[#allocation55_spill] sm:$0xff] %v9743_v37 }
 0x22e   : > { %v9745_v45 = vpop.f32.mrf.mxu1  ;;  %v9749_v28 = vpop.f32.mrf.mxu0 }
 0x22f   : > { %10336 = vst [vmem:[#allocation56_spill] sm:$0xff] %v9749_v28 }
 0x230   : > { %v9747_v55 = vpop.f32.mrf.mxu1  ;;  %v9755_v22 = vpop.f32.mrf.mxu0 }
 0x231   : > { %10337 = vst [vmem:[#allocation57_spill] sm:$0xff] %v9755_v22 }
 0x232   : > { %v9751_v1 = vpop.f32.mrf.mxu1  ;;  %v9761_v11 = vpop.f32.mrf.mxu0 }
 0x233   : > { %10338 = vst [vmem:[#allocation58_spill] sm:$0xff] %v9761_v11 }
 0x234   : > { %v9753_v9 = vpop.f32.mrf.mxu1  ;;  %v9767_v3 = vpop.f32.mrf.mxu0 }
 0x235   : > { %10339 = vst [vmem:[#allocation59_spill] sm:$0xff] %v9767_v3 }
 0x236   : > { %v9757_v36 = vpop.f32.mrf.mxu1 }
 0x238   : > { %v9759_v26 = vpop.f32.mrf.mxu1 }
 0x23a   : > { %v9763_v32 = vpop.f32.mrf.mxu1 }
 0x23c   : > { %v9765_v37 = vpop.f32.mrf.mxu1 }
 0x23e   : > { %v9769_v30 = vpop.f32.mrf.mxu1  ;;  %v9773_v21 = vpop.f32.mrf.mxu0 }
 0x23f   : > { %10340 = vst [vmem:[#allocation60_spill] sm:$0xff] %v9769_v30  ;;  %10342 = vst [vmem:[#allocation62_spill] sm:$0xff] %v9773_v21 }
 0x240   : > { %v9771_v28 = vpop.f32.mrf.mxu1  ;;  %v9779_v47 = vpop.f32.mrf.mxu0 }
 0x241   : > { %10341 = vst [vmem:[#allocation61_spill] sm:$0xff] %v9771_v28  ;;  %10345 = vst [vmem:[#allocation65_spill] sm:$0xff] %v9779_v47 }
 0x242   : > { %v9775_v48 = vpop.f32.mrf.mxu1  ;;  %v9785_v13 = vpop.f32.mrf.mxu0 }
 0x243   : > { %10343 = vst [vmem:[#allocation63_spill] sm:$0xff] %v9775_v48  ;;  %10348 = vst [vmem:[#allocation68_spill] sm:$0xff] %v9785_v13 }
 0x244   : > { %v9777_v22 = vpop.f32.mrf.mxu1  ;;  %v9791_v60 = vpop.f32.mrf.mxu0 }
 0x245   : > { %10344 = vst [vmem:[#allocation64_spill] sm:$0xff] %v9777_v22  ;;  %10351 = vst [vmem:[#allocation71_spill] sm:$0xff] %v9791_v60 }
 0x246   : > { %v9781_v15 = vpop.f32.mrf.mxu1 }
 0x247   : > { %10346 = vst [vmem:[#allocation66_spill] sm:$0xff] %v9781_v15 }
 0x248   : > { %v9783_v11 = vpop.f32.mrf.mxu1 }
 0x249   : > { %10347 = vst [vmem:[#allocation67_spill] sm:$0xff] %v9783_v11 }
 0x24a   : > { %v9787_v39 = vpop.f32.mrf.mxu1 }
 0x24b   : > { %10349 = vst [vmem:[#allocation69_spill] sm:$0xff] %v9787_v39 }
 0x24c   : > { %v9789_v3 = vpop.f32.mrf.mxu1 }
 0x24d   : > { %10350 = vst [vmem:[#allocation70_spill] sm:$0xff] %v9789_v3 }
 0x24e   : > { %v9793_v28 = vpop.f32.mrf.mxu1 }
 0x24f   : > { %10352 = vst [vmem:[#allocation72_spill] sm:$0xff] %v9793_v28  ;;  %v3957_v28 = vadd.f32 %v6918_v23, %v9438_v8 }
 0x250   : > { %v9795_v21 = vpop.f32.mrf.mxu1  ;;  %v9797_v22 = vpop.f32.mrf.mxu0 }
 0x251   : > { %10353 = vst [vmem:[#allocation73_spill] sm:$0xff] %v9795_v21  ;;  %10354 = vst [vmem:[#allocation74_spill] sm:$0xff] %v9797_v22  ;;  %v3949_v22 = vadd.f32 %v3948_v27, %v9445_v2 }
 0x252   : > { %v9799_v47 = vpop.f32.mrf.mxu0 }
 0x253   : > { %10355 = vst [vmem:[#allocation75_spill] sm:$0xff] %v9799_v47  ;;  %v3960_v47 = vadd.f32 %v6919_v34, %v10362_v24  ;;  %v4075_v8 = vadd.f32 %v3949_v22, %v9513_v59 }
 0x254   : > { %v9801_v15 = vpop.f32.mrf.mxu1  ;;  %v9803_v11 = vpop.f32.mrf.mxu0 }
 0x255   : > { %10356 = vst [vmem:[#allocation76_spill] sm:$0xff] %v9801_v15  ;;  %10357 = vst [vmem:[#allocation77_spill] sm:$0xff] %v9803_v11  ;;  %v4077_v11 = vadd.f32 %v3957_v28, %v9506_v50  ;;  %v4078_v2 = vadd.f32 %v3960_v47, %v9520_v20 }
 0x256   : > { %v9805_v13 = vpop.f32.mrf.mxu1  ;;  %v9807_v39 = vpop.f32.mrf.mxu0 }
 0x257   : > { %10358 = vst [vmem:[#allocation78_spill] sm:$0xff] %v9805_v13  ;;  %10359 = vst [vmem:[#allocation79_spill] sm:$0xff] %v9807_v39  ;;  %v10363_v39 = vld [vmem:[#allocation47_spill] sm:$0xff] }
 0x258   : > { %v9809_v3 = vpop.f32.mrf.mxu1  ;;  %v7062_v60 = vpop.f32.mrf.mxu0  ;;  %v3952_v40 = vadd.f32 %v3951_v16, %v10363_v39  ;;  %v10366_v16 = vld [vmem:[#allocation50_spill] sm:$0xff] }
 0x259   : > { %10360 = vst [vmem:[#allocation80_spill] sm:$0xff] %v9809_v3 }
 0x25a   : > { %v9812_v48 = vpop.f32.mrf.mxu1  ;;  %v5507_v21 = vpop.f32.mrf.mxu0 }
 0x25b   : > { %10361 = vst [vmem:[#allocation81_spill] sm:$0xff] %v9812_v48 }
 0x25c   : > { %v7014_v4 = vpop.f32.mrf.mxu1  ;;  %v7063_v15 = vpop.f32.mrf.mxu0 }
 0x25d   : > { %v5034_v13 = vadd.f32 %v7014_v4, %v9651_v49  ;;  %v10364_v4 = vld [vmem:[#allocation48_spill] sm:$0xff] }
 0x25e   : > { %v5025_v3 = vpop.f32.mrf.mxu1  ;;  %v5510_v30 = vpop.f32.mrf.mxu0  ;;  %v3973_v28 = vadd.f32 %v9721_v46, %v10364_v4  ;;  %v10367_v46 = vld [vmem:[#allocation51_spill] sm:$0xff] }
 0x25f   : > { %v5154_v23 = vadd.f32 %v5034_v13, %v4077_v11  ;;  %v5026_v48 = vadd.f32 %v5025_v3, %v9658_v19  ;;  %v4076_v13 = vadd.f32 %v3952_v40, %v9527_v0  ;;  %v10365_v19 = vld [vmem:[#allocation49_spill] sm:$0xff] }
 0x260   : > { %v7015_v50 = vpop.f32.mrf.mxu1  ;;  %v7066_v24 = vpop.f32.mrf.mxu0  ;;  %v3965_v22 = vadd.f32 %v9725_v53, %v10365_v19  ;;  %v4081_v0 = vadd.f32 %v3973_v28, %v9534_v18  ;;  %v10368_v53 = vld [vmem:[#allocation52_spill] sm:$0xff] }
 0x261   : > { %v5636_v49 = vadd.f32 %v7062_v60, %v5154_v23  ;;  %v5152_v27 = vadd.f32 %v5026_v48, %v4075_v8  ;;  %v5037_v59 = vadd.f32 %v7015_v50, %v9665_v25  ;;  %v3976_v60 = vadd.f32 %v9729_v62, %v10366_v16 }
 0x262   : > { %v5028_v3 = vpop.f32.mrf.mxu1  ;;  %v5523_v11 = vpop.f32.mrf.mxu0  ;;  %v3968_v48 = vadd.f32 %v9733_v63, %v10367_v46  ;;  %v3989_v23 = vadd.f32 %v9737_v7, %v10368_v53  ;;  %v4079_v63 = vadd.f32 %v3965_v22, %v9541_v44  ;;  %v10370_v22 = vld [vmem:[#allocation34_spill] sm:$0xff]  ;;  %v10371_v46 = vld [vmem:[#allocation25_spill] sm:$0xff]  ;;  %v10373_v53 = vld [vmem:[#allocation36_spill] sm:$0xff] }
 0x263   : > { %5668 = vst [vmem:[%s9825_s23 + $0x10] sm:$0xff] %v5636_v49  ;;  %v5634_v34 = vadd.f32 %v5507_v21, %v5152_v27  ;;  %v5155_v20 = vadd.f32 %v5037_v59, %v4078_v2  ;;  %v5029_v47 = vadd.f32 %v5028_v3, %v9672_v51  ;;  %v10369_v51 = vld [vmem:[#allocation53_spill] sm:$0xff] }
 0x264   : > { %v7018_v25 = vpop.f32.mrf.mxu1  ;;  %v7067_v39 = vpop.f32.mrf.mxu0  ;;  %v3981_v2 = vadd.f32 %v9741_v42, %v10369_v51  ;;  %v4080_v28 = vadd.f32 %v3968_v48, %v9555_v10  ;;  %v4085_v44 = vadd.f32 %v3989_v23, %v9562_v41  ;;  %v10372_v48 = vld [vmem:[#allocation3_spill] sm:$0xff] }
 0x265   : > { %5666 = vst [vmem:[%s9825_s23] sm:$0xff] %v5634_v34  ;;  %v5637_v40 = vadd.f32 %v7063_v15, %v5155_v20  ;;  %v5153_v8 = vadd.f32 %v5029_v47, %v4076_v13  ;;  %v5050_v21 = vadd.f32 %v7018_v25, %v9679_v6  ;;  %v4082_v15 = vadd.f32 %v3976_v60, %v9548_v43 }
 0x266   : > { %v5041_v62 = vpop.f32.mrf.mxu1  ;;  %v5526_v50 = vpop.f32.mrf.mxu0  ;;  %v5735_v6 = vmul.f32 %v5634_v34, %v5634_v34  ;;  %v5737_v47 = vmul.f32 %v5636_v49, %v5636_v49  ;;  %v4005_v41 = vadd.f32 %v9751_v1, %v10372_v48  ;;  %v10377_v48 = vld [vmem:[#allocation4_spill] sm:$0xff] }
 0x267   : > { %5669 = vst [vmem:[%s9825_s23 + $0x18] sm:$0xff] %v5637_v40  ;;  %v5635_v4 = vadd.f32 %v5510_v30, %v5153_v8  ;;  %v5158_v27 = vadd.f32 %v5050_v21, %v4081_v0  ;;  %v5042_v18 = vadd.f32 %v5041_v62, %v9684_v57  ;;  %v4083_v30 = vadd.f32 %v3981_v2, %v9569_v5 }
 0x268   : > { %v7019_v59 = vpop.f32.mrf.mxu1  ;;  %v7070_v7 = vpop.f32.mrf.mxu0  ;;  %v3992_v57 = vadd.f32 %v9745_v45, %v10370_v22 }
 0x269   : > { %5667 = vst [vmem:[%s9825_s23 + $0x8] sm:$0xff] %v5635_v4  ;;  %v5698_v13 = vadd.f32 %v5635_v4, %v5634_v34  ;;  %v5736_v42 = vmul.f32 %v5635_v4, %v5635_v4  ;;  %v5640_v3 = vadd.f32 %v7066_v24, %v5158_v27  ;;  %v5156_v19 = vadd.f32 %v5042_v18, %v4079_v63  ;;  %v10374_v18 = vld [vmem:[#allocation26_spill] sm:$0xff] }
 0x26a   : > { %v5053_v43 = vadd.f32 %v7019_v59, %v9690_v38  ;;  %v5044_v10 = vpop.f32.mrf.mxu1  ;;  %v5539_v20 = vpop.f32.mrf.mxu0  ;;  %v3984_v24 = vadd.f32 %v9747_v55, %v10371_v46  ;;  %v5738_v38 = vmul.f32 %v5637_v40, %v5637_v40  ;;  %v4086_v27 = vadd.f32 %v3992_v57, %v9574_v35 }
 0x26b   : > { %v5699_v16 = vadd.f32 %v5698_v13, %v5636_v49  ;;  %v5767_v60 = vadd.f32 %v5736_v42, %v5735_v6  ;;  %5672 = vst [vmem:[%s9825_s23 + $0x30] sm:$0xff] %v5640_v3  ;;  %v5638_v34 = vadd.f32 %v5523_v11, %v5156_v19  ;;  %v5045_v25 = vadd.f32 %v5044_v10, %v9696_v61  ;;  %v10375_v10 = vld [vmem:[#allocation9_spill] sm:$0xff] }
 0x26c   : > { %v5159_v5 = vadd.f32 %v5053_v43, %v4082_v15  ;;  %v7022_v45 = vpop.f32.mrf.mxu1  ;;  %v7071_v0 = vpop.f32.mrf.mxu0  ;;  %v3997_v11 = vadd.f32 %v9753_v9, %v10373_v53  ;;  %v4084_v13 = vadd.f32 %v3984_v24, %v9580_v17  ;;  %v4089_v42 = vadd.f32 %v4005_v41, %v9586_v14 }
 0x26d   : > { %v5768_v8 = vadd.f32 %v5767_v60, %v5737_v47  ;;  %5670 = vst [vmem:[%s9825_s23 + $0x20] sm:$0xff] %v5638_v34  ;;  %v5700_v21 = vadd.f32 %v5699_v16, %v5637_v40  ;;  %v5066_v49 = vadd.f32 %v7022_v45, %v9702_v12  ;;  %v5739_v23 = vmul.f32 %v5638_v34, %v5638_v34  ;;  %v10378_v45 = vld [vmem:[#allocation40_spill] sm:$0xff] }
 0x26e   : > { %v5641_v55 = vadd.f32 %v7067_v39, %v5159_v5  ;;  %v5157_v51 = vadd.f32 %v5045_v25, %v4080_v28  ;;  %v5057_v2 = vpop.f32.mrf.mxu1  ;;  %v5542_v1 = vpop.f32.mrf.mxu0  ;;  %v4008_v40 = vadd.f32 %v9757_v36, %v10374_v18  ;;  %v4000_v47 = vadd.f32 %v9759_v26, %v10375_v10 }
 0x26f   : > { %v5701_v62 = vadd.f32 %v5700_v21, %v5638_v34  ;;  %v5769_v61 = vadd.f32 %v5768_v8, %v5738_v38  ;;  %v5162_v63 = vadd.f32 %v5066_v49, %v4085_v44  ;;  %v5058_v4 = vadd.f32 %v5057_v2, %v9708_v33 }
 0x270   : > { %5673 = vst [vmem:[%s9825_s23 + $0x38] sm:$0xff] %v5641_v55  ;;  %v5639_v12 = vadd.f32 %v5526_v50, %v5157_v51  ;;  %v7023_v9 = vpop.f32.mrf.mxu1  ;;  %v7074_v15 = vpop.f32.mrf.mxu0  ;;  %v4087_v44 = vadd.f32 %v3997_v11, %v9592_v54  ;;  %v4013_v41 = vadd.f32 %v9765_v37, %v10377_v48  ;;  %v10381_v51 = vld [vmem:[#allocation8_spill] sm:$0xff]  ;;  %v10395_v48 = vld [vmem:[#allocation66_spill] sm:$0xff] }
 0x271   : > { %v5770_v39 = vadd.f32 %v5769_v61, %v5739_v23  ;;  %v5644_v28 = vadd.f32 %v7070_v7, %v5162_v63  ;;  %v5160_v6 = vadd.f32 %v5058_v4, %v4083_v30  ;;  %v5069_v59 = vadd.f32 %v7023_v9, %v9713_v52  ;;  %v10384_v9 = vld [vmem:[#allocation23_spill] sm:$0xff] }
 0x272   : > { %5671 = vst [vmem:[%s9825_s23 + $0x28] sm:$0xff] %v5639_v12  ;;  %v5702_v33 = vadd.f32 %v5701_v62, %v5639_v12  ;;  %v5740_v35 = vmul.f32 %v5639_v12, %v5639_v12  ;;  %v5060_v19 = vpop.f32.mrf.mxu1  ;;  %v5555_v36 = vpop.f32.mrf.mxu0  ;;  %v4090_v30 = vadd.f32 %v4008_v40, %v9598_v58  ;;  %v5741_v52 = vmul.f32 %v5640_v3, %v5640_v3 }
 0x273   : > { %5676 = vst [vmem:[%s9825_s23 + $0x50] sm:$0xff] %v5644_v28  ;;  %v5642_v50 = vadd.f32 %v5539_v20, %v5160_v6  ;;  %v5163_v22 = vadd.f32 %v5069_v59, %v4086_v27  ;;  %v5061_v7 = vadd.f32 %v5060_v19, %v9715_v56  ;;  %v10376_v20 = vld [vmem:[#allocation28_spill] sm:$0xff]  ;;  %v5742_v56 = vmul.f32 %v5641_v55, %v5641_v55  ;;  %v10386_v19 = vld [vmem:[#allocation37_spill] sm:$0xff] }
 0x274   : > { %v5703_v57 = vadd.f32 %v5702_v33, %v5640_v3  ;;  %v5771_v17 = vadd.f32 %v5770_v39, %v5740_v35  ;;  %v7026_v14 = vpop.f32.mrf.mxu1  ;;  %v7075_v43 = vpop.f32.mrf.mxu0  ;;  %v4021_v34 = vadd.f32 %v9763_v32, %v10376_v20  ;;  %v4088_v2 = vadd.f32 %v4000_v47, %v10381_v51  ;;  %v10383_v27 = vld [vmem:[#allocation20_spill] sm:$0xff]  ;;  %v10398_v51 = vld [vmem:[#allocation41_spill] sm:$0xff] }
 0x275   : > { %5674 = vst [vmem:[%s9825_s23 + $0x40] sm:$0xff] %v5642_v50  ;;  %v5645_v16 = vadd.f32 %v7071_v0, %v5163_v22  ;;  %v5161_v60 = vadd.f32 %v5061_v7, %v4084_v13  ;;  %v5082_v54 = vadd.f32 %v7026_v14, %v9717_v29  ;;  %v10379_v0 = vld [vmem:[#allocation60_spill] sm:$0xff]  ;;  %v5743_v8 = vmul.f32 %v5642_v50, %v5642_v50 }
 0x276   : > { %v5772_v58 = vadd.f32 %v5771_v17, %v5741_v52  ;;  %v5704_v46 = vadd.f32 %v5703_v57, %v5641_v55  ;;  %v5073_v3 = vpop.f32.mrf.mxu1  ;;  %v5558_v24 = vpop.f32.mrf.mxu0  ;;  %v4024_v29 = vadd.f32 %v10379_v0, %v10378_v45  ;;  %v10380_v55 = vld [vmem:[#allocation22_spill] sm:$0xff]  ;;  %v4091_v18 = vadd.f32 %v4013_v41, %v10383_v27  ;;  %v10388_v52 = vld [vmem:[#allocation24_spill] sm:$0xff] }
 0x277   : > { %5677 = vst [vmem:[%s9825_s23 + $0x58] sm:$0xff] %v5645_v16  ;;  %v5643_v5 = vadd.f32 %v5542_v1, %v5161_v60  ;;  %v5166_v26 = vadd.f32 %v5082_v54, %v4089_v42  ;;  %v5074_v25 = vadd.f32 %v5073_v3, %v9719_v31  ;;  %v10382_v1 = vld [vmem:[#allocation17_spill] sm:$0xff]  ;;  %v5745_v59 = vmul.f32 %v5644_v28, %v5644_v28  ;;  %v10391_v54 = vld [vmem:[#allocation38_spill] sm:$0xff]  ;;  %v10392_v20 = vld [vmem:[#allocation64_spill] sm:$0xff] }
 0x278   : > { %v5705_v38 = vadd.f32 %v5704_v46, %v5642_v50  ;;  %v5773_v32 = vadd.f32 %v5772_v58, %v5742_v56  ;;  %v7027_v21 = vpop.f32.mrf.mxu1  ;;  %v7078_v49 = vpop.f32.mrf.mxu0  ;;  %v4093_v62 = vadd.f32 %v4021_v34, %v10382_v1  ;;  %v5746_v14 = vmul.f32 %v5645_v16, %v5645_v16  ;;  %v10393_v46 = vld [vmem:[#allocation27_spill] sm:$0xff] }
 0x279   : > { %5675 = vst [vmem:[%s9825_s23 + $0x48] sm:$0xff] %v5643_v5  ;;  %v5744_v53 = vmul.f32 %v5643_v5, %v5643_v5  ;;  %v5648_v11 = vadd.f32 %v7074_v15, %v5166_v26  ;;  %v5164_v23 = vadd.f32 %v5074_v25, %v4087_v44  ;;  %v5085_v37 = vadd.f32 %v7027_v21, %v10380_v55  ;;  %v10385_v15 = vld [vmem:[#allocation18_spill] sm:$0xff]  ;;  %v10387_v44 = vld [vmem:[#allocation61_spill] sm:$0xff]  ;;  %v10394_v3 = vld [vmem:[#allocation15_spill] sm:$0xff] }
 0x27a   : > { %v5774_v31 = vadd.f32 %v5773_v32, %v5743_v8  ;;  %v5706_v61 = vadd.f32 %v5705_v38, %v5643_v5  ;;  %v5076_v63 = vpop.f32.mrf.mxu1  ;;  %v5571_v4 = vpop.f32.mrf.mxu0  ;;  %v4094_v6 = vadd.f32 %v4024_v29, %v10385_v15  ;;  %v4016_v50 = vadd.f32 %v10387_v44, %v10386_v19  ;;  %v10396_v8 = vld [vmem:[#allocation54_spill] sm:$0xff]  ;;  %v10397_v21 = vld [vmem:[#allocation45_spill] sm:$0xff] }
 0x27b   : > { %5680 = vst [vmem:[%s9825_s23 + $0x70] sm:$0xff] %v5648_v11  ;;  %v5646_v40 = vadd.f32 %v5555_v36, %v5164_v23  ;;  %v5167_v12 = vadd.f32 %v5085_v37, %v4090_v30  ;;  %v5077_v39 = vadd.f32 %v5076_v63, %v10384_v9  ;;  %v10389_v36 = vld [vmem:[#allocation5_spill] sm:$0xff]  ;;  %v10390_v30 = vld [vmem:[#allocation63_spill] sm:$0xff]  ;;  %v4029_v34 = vadd.f32 %v10392_v20, %v10391_v54  ;;  %v10400_v63 = vld [vmem:[#allocation42_spill] sm:$0xff] }
 0x27c   : > { %v5707_v13 = vadd.f32 %v5706_v61, %v5644_v28  ;;  %v5775_v42 = vadd.f32 %v5774_v31, %v5744_v53  ;;  %v7030_v33 = vpop.f32.mrf.mxu1  ;;  %v7079_v35 = vpop.f32.mrf.mxu0  ;;  %v4037_v17 = vadd.f32 %v10390_v30, %v10389_v36  ;;  %v4040_v41 = vadd.f32 %v10395_v48, %v10394_v3  ;;  %v10399_v31 = vld [vmem:[#allocation55_spill] sm:$0xff]  ;;  %v10403_v19 = vld [vmem:[#allocation29_spill] sm:$0xff]  ;;  %v10410_v48 = vld [vmem:[#allocation58_spill] sm:$0xff] }
 0x27d   : > { %5678 = vst [vmem:[%s9825_s23 + $0x60] sm:$0xff] %v5646_v40  ;;  %v5649_v22 = vadd.f32 %v7075_v43, %v5167_v12  ;;  %v5165_v7 = vadd.f32 %v5077_v39, %v4088_v2  ;;  %v5098_v57 = vadd.f32 %v7030_v33, %v10388_v52  ;;  %v5747_v26 = vmul.f32 %v5646_v40, %v5646_v40  ;;  %v10401_v39 = vld [vmem:[#allocation6_spill] sm:$0xff]  ;;  %v10406_v36 = vld [vmem:[#allocation69_spill] sm:$0xff] }
 0x27e   : > { %v5776_v10 = vadd.f32 %v5775_v42, %v5745_v59  ;;  %v5708_v47 = vadd.f32 %v5707_v13, %v5645_v16  ;;  %v5089_v28 = vpop.f32.mrf.mxu1  ;;  %v5574_v60 = vpop.f32.mrf.mxu0  ;;  %v4097_v2 = vadd.f32 %v4037_v17, %v10398_v51  ;;  %v4095_v27 = vadd.f32 %v4029_v34, %v10400_v63  ;;  %v10402_v42 = vld [vmem:[#allocation56_spill] sm:$0xff] }
 0x27f   : > { %5681 = vst [vmem:[%s9825_s23 + $0x78] sm:$0xff] %v5649_v22  ;;  %v5647_v56 = vadd.f32 %v5558_v24, %v5165_v7  ;;  %v5170_v58 = vadd.f32 %v5098_v57, %v4093_v62  ;;  %v5090_v43 = vadd.f32 %v5089_v28, %v10393_v46  ;;  %v4092_v24 = vadd.f32 %v4016_v50, %v10397_v21  ;;  %v10405_v57 = vld [vmem:[#allocation7_spill] sm:$0xff]  ;;  %v10409_v28 = vld [vmem:[#allocation70_spill] sm:$0xff] }
 0x280   : > { %v5709_v5 = vadd.f32 %v5708_v47, %v5646_v40  ;;  %v5777_v25 = vadd.f32 %v5776_v10, %v5746_v14  ;;  %v7031_v45 = vpop.f32.mrf.mxu1  ;;  %v7082_v0 = vpop.f32.mrf.mxu0  ;;  %v4098_v15 = vadd.f32 %v4040_v41, %v10401_v39  ;;  %v5750_v44 = vmul.f32 %v5649_v22, %v5649_v22  ;;  %v10407_v10 = vld [vmem:[#allocation57_spill] sm:$0xff]  ;;  %v10408_v47 = vld [vmem:[#allocation30_spill] sm:$0xff] }
 0x281   : > { %5679 = vst [vmem:[%s9825_s23 + $0x68] sm:$0xff] %v5647_v56  ;;  %v5748_v16 = vmul.f32 %v5647_v56, %v5647_v56  ;;  %v5652_v29 = vadd.f32 %v7078_v49, %v5170_v58  ;;  %v5168_v38 = vadd.f32 %v5090_v43, %v4091_v18  ;;  %v5101_v32 = vadd.f32 %v7031_v45, %v10396_v8  ;;  %v10413_v8 = vld [vmem:[#allocation43_spill] sm:$0xff] }
 0x282   : > { %v5778_v53 = vadd.f32 %v5777_v25, %v5747_v26  ;;  %v5710_v23 = vadd.f32 %v5709_v5, %v5647_v56  ;;  %v5092_v55 = vpop.f32.mrf.mxu1  ;;  %v5587_v37 = vpop.f32.mrf.mxu0  ;;  %v5749_v49 = vmul.f32 %v5648_v11, %v5648_v11  ;;  %v4053_v30 = vadd.f32 %v10406_v36, %v10405_v57  ;;  %v10411_v5 = vld [vmem:[#allocation31_spill] sm:$0xff] }
 0x283   : > { %5684 = vst [vmem:[%s9825_s23 + $0x90] sm:$0xff] %v5652_v29  ;;  %v5650_v1 = vadd.f32 %v5571_v4, %v5168_v38  ;;  %v5171_v62 = vadd.f32 %v5101_v32, %v4094_v6  ;;  %v5093_v61 = vadd.f32 %v5092_v55, %v10399_v31  ;;  %v10404_v4 = vld [vmem:[#allocation67_spill] sm:$0xff]  ;;  %v4045_v54 = vadd.f32 %v10409_v28, %v10408_v47  ;;  %v10415_v55 = vld [vmem:[#allocation12_spill] sm:$0xff] }
 0x284   : > { %v5711_v18 = vadd.f32 %v5710_v23, %v5648_v11  ;;  %v5779_v40 = vadd.f32 %v5778_v53, %v5748_v16  ;;  %v7034_v12 = vpop.f32.mrf.mxu1  ;;  %v7083_v9 = vpop.f32.mrf.mxu0  ;;  %v4032_v6 = vadd.f32 %v10404_v4, %v10403_v19  ;;  %v10414_v53 = vld [vmem:[#allocation59_spill] sm:$0xff]  ;;  %v5753_v51 = vmul.f32 %v5652_v29, %v5652_v29  ;;  %v10420_v19 = vld [vmem:[#allocation73_spill] sm:$0xff]  ;;  %v10424_v47 = vld [vmem:[#allocation68_spill] sm:$0xff] }
 0x285   : > { %5682 = vst [vmem:[%s9825_s23 + $0x80] sm:$0xff] %v5650_v1  ;;  %v5653_v59 = vadd.f32 %v7079_v35, %v5171_v62  ;;  %v5169_v13 = vadd.f32 %v5093_v61, %v4092_v24  ;;  %v5114_v33 = vadd.f32 %v7034_v12, %v10402_v42  ;;  %v5751_v34 = vmul.f32 %v5650_v1, %v5650_v1  ;;  %v10416_v61 = vld [vmem:[#allocation10_spill] sm:$0xff]  ;;  %v10418_v12 = vld [vmem:[#allocation16_spill] sm:$0xff] }
 0x286   : > { %v5780_v50 = vadd.f32 %v5779_v40, %v5749_v49  ;;  %v5712_v7 = vadd.f32 %v5711_v18, %v5649_v22  ;;  %v5105_v52 = vpop.f32.mrf.mxu1  ;;  %v5590_v11 = vpop.f32.mrf.mxu0  ;;  %v4096_v32 = vadd.f32 %v4032_v6, %v10413_v8  ;;  %v4099_v63 = vadd.f32 %v4045_v54, %v10416_v61  ;;  %v10417_v18 = vld [vmem:[#allocation62_spill] sm:$0xff]  ;;  %v10425_v54 = vld [vmem:[#allocation35_spill] sm:$0xff] }
 0x287   : > { %5685 = vst [vmem:[%s9825_s23 + $0x98] sm:$0xff] %v5653_v59  ;;  %v5651_v17 = vadd.f32 %v5574_v60, %v5169_v13  ;;  %v5174_v14 = vadd.f32 %v5114_v33, %v4097_v2  ;;  %v5106_v35 = vadd.f32 %v5105_v52, %v10407_v10  ;;  %v10412_v60 = vld [vmem:[#allocation72_spill] sm:$0xff]  ;;  %v5754_v39 = vmul.f32 %v5653_v59, %v5653_v59 }
 0x288   : > { %v5713_v20 = vadd.f32 %v5712_v7, %v5650_v1  ;;  %v5781_v56 = vadd.f32 %v5780_v50, %v5750_v44  ;;  %v7035_v58 = vpop.f32.mrf.mxu1  ;;  %v7086_v46 = vpop.f32.mrf.mxu0  ;;  %v4056_v26 = vadd.f32 %v10412_v60, %v10411_v5  ;;  %v10421_v50 = vld [vmem:[#allocation65_spill] sm:$0xff]  ;;  %v10423_v52 = vld [vmem:[#allocation76_spill] sm:$0xff]  ;;  %v10428_v60 = vld [vmem:[#allocation71_spill] sm:$0xff] }
 0x289   : > { %5683 = vst [vmem:[%s9825_s23 + $0x88] sm:$0xff] %v5651_v17  ;;  %v5752_v22 = vmul.f32 %v5651_v17, %v5651_v17  ;;  %v5656_v43 = vadd.f32 %v7082_v0, %v5174_v14  ;;  %v5172_v3 = vadd.f32 %v5106_v35, %v4095_v27  ;;  %v5117_v41 = vadd.f32 %v7035_v58, %v10410_v48 }
 0x28a   : > { %v5782_v25 = vadd.f32 %v5781_v56, %v5751_v34  ;;  %v5714_v45 = vadd.f32 %v5713_v20, %v5651_v17  ;;  %v5108_v16 = vpop.f32.mrf.mxu1  ;;  %v5603_v38 = vpop.f32.mrf.mxu0  ;;  %v4101_v0 = vadd.f32 %v4053_v30, %v10415_v55  ;;  %v10426_v20 = vld [vmem:[#allocation78_spill] sm:$0xff] }
 0x28b   : > { %5688 = vst [vmem:[%s9825_s23 + $0xb0] sm:$0xff] %v5656_v43  ;;  %v5654_v21 = vadd.f32 %v5587_v37, %v5172_v3  ;;  %v5175_v24 = vadd.f32 %v5117_v41, %v4098_v15  ;;  %v5109_v23 = vadd.f32 %v5108_v16, %v10414_v53  ;;  %v4102_v37 = vadd.f32 %v4056_v26, %v10418_v12  ;;  %v10427_v3 = vld [vmem:[#allocation11_spill] sm:$0xff] }
 0x28c   : > { %v5715_v2 = vadd.f32 %v5714_v45, %v5652_v29  ;;  %v5783_v1 = vadd.f32 %v5782_v25, %v5752_v22  ;;  %v7038_v62 = vpop.f32.mrf.mxu1  ;;  %v7087_v31 = vpop.f32.mrf.mxu0  ;;  %v10419_v29 = vld [vmem:[#allocation32_spill] sm:$0xff]  ;;  %v10429_v25 = vld [vmem:[#allocation39_spill] sm:$0xff]  ;;  %v5757_v16 = vmul.f32 %v5656_v43, %v5656_v43 }
 0x28d   : > { %5686 = vst [vmem:[%s9825_s23 + $0xa0] sm:$0xff] %v5654_v21  ;;  %v5657_v27 = vadd.f32 %v7083_v9, %v5175_v24  ;;  %v5173_v49 = vadd.f32 %v5109_v23, %v4096_v32  ;;  %v5130_v40 = vadd.f32 %v7038_v62, %v10417_v18  ;;  %v4048_v4 = vadd.f32 %v10420_v19, %v10419_v29  ;;  %v10422_v9 = vld [vmem:[#allocation33_spill] sm:$0xff]  ;;  %v10431_v24 = vld [vmem:[#allocation14_spill] sm:$0xff] }
 0x28e   : > { %v5784_v15 = vadd.f32 %v5783_v1, %v5753_v51  ;;  %v5716_v13 = vadd.f32 %v5715_v2, %v5653_v59  ;;  %v5121_v42 = vpop.f32.mrf.mxu1  ;;  %v5606_v33 = vpop.f32.mrf.mxu0  ;;  %v4069_v57 = vadd.f32 %v10423_v52, %v10422_v9  ;;  %v5755_v30 = vmul.f32 %v5654_v21, %v5654_v21  ;;  %v10433_v2 = vld [vmem:[#allocation44_spill] sm:$0xff]  ;;  %v10434_v18 = vld [vmem:[#allocation13_spill] sm:$0xff] }
 0x28f   : > { %5689 = vst [vmem:[%s9825_s23 + $0xb8] sm:$0xff] %v5657_v27  ;;  %v5655_v6 = vadd.f32 %v5590_v11, %v5173_v49  ;;  %v5178_v44 = vadd.f32 %v5130_v40, %v4101_v0  ;;  %v5122_v7 = vadd.f32 %v5121_v42, %v10421_v50  ;;  %v4061_v11 = vadd.f32 %v10426_v20, %v10425_v54  ;;  %v10432_v0 = vld [vmem:[#allocation74_spill] sm:$0xff]  ;;  %v10435_v40 = vld [vmem:[#allocation81_spill] sm:$0xff] }
 0x290   : > { %v5717_v36 = vadd.f32 %v5716_v13, %v5654_v21  ;;  %v5785_v17 = vadd.f32 %v5784_v15, %v5754_v39  ;;  %v7039_v14 = vpop.f32.mrf.mxu1  ;;  %v7090_v22 = vpop.f32.mrf.mxu0  ;;  %v4100_v48 = vadd.f32 %v4048_v4, %v10427_v3  ;;  %v4105_v53 = vadd.f32 %v4069_v57, %v10431_v24  ;;  %v10436_v39 = vld [vmem:[#allocation75_spill] sm:$0xff]  ;;  %v10438_v50 = vld [vmem:[#allocation77_spill] sm:$0xff] }
 0x291   : > { %5687 = vst [vmem:[%s9825_s23 + $0xa8] sm:$0xff] %v5655_v6  ;;  %v5756_v59 = vmul.f32 %v5655_v6, %v5655_v6  ;;  %v5660_v10 = vadd.f32 %v7086_v46, %v5178_v44  ;;  %v5176_v35 = vadd.f32 %v5122_v7, %v4099_v63  ;;  %v5133_v28 = vadd.f32 %v7039_v14, %v10424_v47  ;;  %v10430_v46 = vld [vmem:[#allocation80_spill] sm:$0xff] }
 0x292   : > { %v5786_v34 = vadd.f32 %v5785_v17, %v5755_v30  ;;  %v5718_v56 = vadd.f32 %v5717_v36, %v5655_v6  ;;  %v5124_v58 = vpop.f32.mrf.mxu1  ;;  %v4072_v45 = vadd.f32 %v10430_v46, %v10429_v25  ;;  %v5758_v1 = vmul.f32 %v5657_v27, %v5657_v27  ;;  %v5619_v63 = vpop.f32.mrf.mxu0  ;;  %v10439_v36 = vld [vmem:[#allocation19_spill] sm:$0xff] }
 0x293   : > { %5692 = vst [vmem:[%s9825_s23 + $0xd0] sm:$0xff] %v5660_v10  ;;  %v5658_v41 = vadd.f32 %v5603_v38, %v5176_v35  ;;  %v5179_v5 = vadd.f32 %v5133_v28, %v4102_v37  ;;  %v5125_v26 = vadd.f32 %v5124_v58, %v10428_v60  ;;  %v4103_v38 = vadd.f32 %v4061_v11, %v10433_v2 }
 0x294   : > { %v5719_v8 = vadd.f32 %v5718_v56, %v5656_v43  ;;  %v5787_v32 = vadd.f32 %v5786_v34, %v5756_v59  ;;  %v7042_v21 = vpop.f32.mrf.mxu1  ;;  %v4064_v43 = vadd.f32 %v10435_v40, %v10434_v18  ;;  %v10440_v59 = vld [vmem:[#allocation79_spill] sm:$0xff]  ;;  %v5761_v47 = vmul.f32 %v5660_v10, %v5660_v10 }
 0x295   : > { %5690 = vst [vmem:[%s9825_s23 + $0xc0] sm:$0xff] %v5658_v41  ;;  %v5661_v23 = vadd.f32 %v7087_v31, %v5179_v5  ;;  %v5177_v55 = vadd.f32 %v5125_v26, %v4100_v48  ;;  %v5146_v51 = vadd.f32 %v7042_v21, %v10432_v0  ;;  %v10437_v31 = vld [vmem:[#allocation21_spill] sm:$0xff]  ;;  %v5759_v29 = vmul.f32 %v5658_v41, %v5658_v41 }
 0x296   : > { %v5788_v62 = vadd.f32 %v5787_v32, %v5757_v16  ;;  %v5720_v61 = vadd.f32 %v5719_v8, %v5657_v27  ;;  %v5137_v49 = vpop.f32.mrf.mxu1  ;;  %v4106_v13 = vadd.f32 %v4072_v45, %v10437_v31  ;;  %v4104_v30 = vadd.f32 %v4064_v43, %v10439_v36 }
 0x297   : > { %5693 = vst [vmem:[%s9825_s23 + $0xd8] sm:$0xff] %v5661_v23  ;;  %v5659_v12 = vadd.f32 %v5606_v33, %v5177_v55  ;;  %v5182_v37 = vadd.f32 %v5146_v51, %v4105_v53  ;;  %v5138_v15 = vadd.f32 %v5137_v49, %v10436_v39  ;;  %v7091_v33 = vpop.f32.mrf.mxu0  ;;  %v5762_v34 = vmul.f32 %v5661_v23, %v5661_v23 }
 0x298   : > { %v5721_v42 = vadd.f32 %v5720_v61, %v5658_v41  ;;  %v5789_v19 = vadd.f32 %v5788_v62, %v5758_v1  ;;  %v7043_v4 = vpop.f32.mrf.mxu1 }
 0x299   : > { %5691 = vst [vmem:[%s9825_s23 + $0xc8] sm:$0xff] %v5659_v12  ;;  %v5760_v6 = vmul.f32 %v5659_v12, %v5659_v12  ;;  %v5664_v27 = vadd.f32 %v7090_v22, %v5182_v37  ;;  %v5180_v44 = vadd.f32 %v5138_v15, %v4103_v38  ;;  %v5149_v7 = vadd.f32 %v7043_v4, %v10438_v50  ;;  %v5622_v22 = vpop.f32.mrf.mxu0 }
 0x29a   : > { %v5790_v9 = vadd.f32 %v5789_v19, %v5759_v29  ;;  %v5722_v52 = vadd.f32 %v5721_v42, %v5659_v12  ;;  %v5140_v57 = vpop.f32.mrf.mxu1 }
 0x29b   : > { %5696 = vst [vmem:[%s9825_s23 + $0xf0] sm:$0xff] %v5664_v27  ;;  %v5662_v17 = vadd.f32 %v5619_v63, %v5180_v44  ;;  %v5183_v14 = vadd.f32 %v5149_v7, %v4106_v13  ;;  %v5141_v35 = vadd.f32 %v5140_v57, %v10440_v59  ;;  %v5765_v46 = vmul.f32 %v5664_v27, %v5664_v27 }
 0x29c   : > { %v5723_v28 = vadd.f32 %v5722_v52, %v5660_v10  ;;  %v5791_v54 = vadd.f32 %v5790_v9, %v5760_v6 }
 0x29d   : > { %5694 = vst [vmem:[%s9825_s23 + $0xe0] sm:$0xff] %v5662_v17  ;;  %v5665_v20 = vadd.f32 %v7091_v33, %v5183_v14  ;;  %v5181_v11 = vadd.f32 %v5141_v35, %v4104_v30  ;;  %v5763_v41 = vmul.f32 %v5662_v17, %v5662_v17 }
 0x29e   : > { %v5792_v56 = vadd.f32 %v5791_v54, %v5761_v47  ;;  %v5724_v58 = vadd.f32 %v5723_v28, %v5661_v23 }
 0x29f   : > { %5697 = vst [vmem:[%s9825_s23 + $0xf8] sm:$0xff] %v5665_v20  ;;  %v5663_v3 = vadd.f32 %v5622_v22, %v5181_v11  ;;  %v5766_v16 = vmul.f32 %v5665_v20, %v5665_v20 }
 0x2a0   : > { %v5725_v48 = vadd.f32 %v5724_v58, %v5662_v17  ;;  %v5793_v5 = vadd.f32 %v5792_v56, %v5762_v34 }
 0x2a1   : > { %5695 = vst [vmem:[%s9825_s23 + $0xe8] sm:$0xff] %v5663_v3  ;;  %v5764_v60 = vmul.f32 %v5663_v3, %v5663_v3 }
 0x2a2   : > { %v5794_v26 = vadd.f32 %v5793_v5, %v5763_v41  ;;  %v5726_v25 = vadd.f32 %v5725_v48, %v5663_v3 }
 0x2a4   : > { %v5727_v10 = vadd.f32 %v5726_v25, %v5664_v27  ;;  %v5795_v45 = vadd.f32 %v5794_v26, %v5764_v60 }
 0x2a6   : > { %v5728_v8 = vadd.f32 %v5727_v10, %v5665_v20  ;;  %v5796_v32 = vadd.f32 %v5795_v45, %v5765_v46 }
 0x2a8   : > { %v5729_v21 = vrot.slane %v5728_v8, 4  ;;  %v5797_v24 = vadd.f32 %v5796_v32, %v5766_v16 }
 0x2aa   : > { %v5730_v53 = vadd.f32 %v5729_v21, %v5728_v8  ;;  %v5798_v23 = vrot.slane %v5797_v24, 4 }
 0x2ac   : > { %v5731_v55 = vrot.slane %v5730_v53, 2  ;;  %v5799_v0 = vadd.f32 %v5798_v23, %v5797_v24 }
 0x2ae   : > { %v5732_v51 = vadd.f32 %v5731_v55, %v5730_v53  ;;  %v5800_v2 = vrot.slane %v5799_v0, 2 }
 0x2b0   : > { %v5733_v38 = vrot.slane %v5732_v51, 1  ;;  %v5801_v1 = vadd.f32 %v5800_v2, %v5799_v0 }
 0x2b2   : > { %v5802_v62 = vrot.slane %v5801_v1, 1  ;;  %v5734_v61 = vadd.f32 %v5733_v38, %v5732_v51 }
 0x2b4   : > { %v5803_v63 = vadd.f32 %v5802_v62, %v5801_v1 }
 0x2b6   : > { %v5805_v49 = vsel %vm892_vm5, %v5734_v61, %v5803_v63 }
 0x2b7   : > { %5806 = vst [vmem:[%s235_s27] sm:$0x3] %v5805_v49 }
 0x2b8 PF: > { %s16_s18 = sadd.s32 1, %s7336_s18  }
 0x2b9   : > { %p13_p4 = scmp.ge.s32.totalorder %s16_s18, 4  }
 0x2bb   :  { %15 = sbr.rel (!%p13_p4) target bundleno = 1 (0x1), region = 88 }

</bundles_post_ra>
